<compile_context>
chip_gen: v7x
topology: tpu7x:2x2x1
jax: 0.10.0
libtpu: 0.0.40
codegen_flags: <defaults>
</compile_context>

<pallas_src>
import functools
import math

import jax
import jax.numpy as jnp
from jax.experimental import pallas as pl
from jax.experimental.pallas import tpu as pltpu


_SMALL_M = 64               # conv levels with fewer pixel rows run in plain JAX
_SMALL_HCL = 256            # hcl levels with h*w below this run in plain JAX
_BN_EPS = 1e-5
_FUSE_Y_VMEM_BYTES = 8 * 1024 * 1024   # budget for the VMEM-resident y scratch
_VMEM_LIMIT = 32 * 1024 * 1024


def _pick_tm(m):
    """Largest row tile (divisor of m) that keeps >=2 grid steps when possible."""
    for t in (1024, 512, 256, 128, 64, 32, 16, 8):
        if m % t == 0 and m // t >= 2:
            return t
    for t in (1024, 512, 256, 128, 64, 32, 16, 8):
        if m % t == 0:
            return t
    return m


# ---------------------------------------------------------------------------
# Pallas kernels
# ---------------------------------------------------------------------------

def conv1x1_bn_fused_kernel(x_ref, w_ref, g_ref, b_ref, o_ref,
                            y_sc, s_sc, c_sc, *, inv_m, tm):
    """Fused conv1x1 + BatchNorm.  grid = (phase, row_tile).

    phase 0: y = x @ w into VMEM scratch, accumulate per-channel sum / sum-sq.
    phase 1: (once) scale = g*rsqrt(var+eps), shift = b - mean*scale;
             out = y*scale + shift streamed from the resident y scratch.
    """
    phase = pl.program_id(0)
    i = pl.program_id(1)
    row0 = pl.multiple_of(i * tm, tm)

    @pl.when(phase == 0)
    def _pass1():
        @pl.when(i == 0)
        def _init():
            s_sc[...] = jnp.zeros_like(s_sc)

        y = jnp.dot(x_ref[...], w_ref[...], preferred_element_type=jnp.float32)
        y_sc[pl.ds(row0, tm), :] = y
        s_sc[0:1, :] += jnp.sum(y, axis=0, keepdims=True)
        s_sc[1:2, :] += jnp.sum(y * y, axis=0, keepdims=True)

    @pl.when(phase == 1)
    def _pass2():
        @pl.when(i == 0)
        def _finalize():
            mean = s_sc[0:1, :] * inv_m
            var = jnp.maximum(s_sc[1:2, :] * inv_m - mean * mean, 0.0)
            scale = jax.lax.rsqrt(var + _BN_EPS) * g_ref[...]
            c_sc[0:1, :] = scale
            c_sc[1:2, :] = b_ref[...] - mean * scale

        y = y_sc[pl.ds(row0, tm), :]
        o_ref[...] = y * c_sc[0:1, :] + c_sc[1:2, :]


def conv1x1_bn_att_fused_kernel(x_ref, w_ref, g_ref, b_ref, yup_ref,
                                wx_ref, wy_ref, ba_ref, o_ref,
                                y_sc, s_sc, c_sc, *, inv_m, tm):
    """Fused conv1x1 + BatchNorm + ABF attention (sigmoid gate + weighted sum)."""
    phase = pl.program_id(0)
    i = pl.program_id(1)
    row0 = pl.multiple_of(i * tm, tm)

    @pl.when(phase == 0)
    def _pass1():
        @pl.when(i == 0)
        def _init():
            s_sc[...] = jnp.zeros_like(s_sc)

        y = jnp.dot(x_ref[...], w_ref[...], preferred_element_type=jnp.float32)
        y_sc[pl.ds(row0, tm), :] = y
        s_sc[0:1, :] += jnp.sum(y, axis=0, keepdims=True)
        s_sc[1:2, :] += jnp.sum(y * y, axis=0, keepdims=True)

    @pl.when(phase == 1)
    def _pass2():
        @pl.when(i == 0)
        def _finalize():
            mean = s_sc[0:1, :] * inv_m
            var = jnp.maximum(s_sc[1:2, :] * inv_m - mean * mean, 0.0)
            scale = jax.lax.rsqrt(var + _BN_EPS) * g_ref[...]
            c_sc[0:1, :] = scale
            c_sc[1:2, :] = b_ref[...] - mean * scale

        xn = y_sc[pl.ds(row0, tm), :] * c_sc[0:1, :] + c_sc[1:2, :]
        yu = yup_ref[...]
        att = (jnp.dot(xn.astype(jnp.bfloat16), wx_ref[...],
                       preferred_element_type=jnp.float32)
               + jnp.dot(yu.astype(jnp.bfloat16), wy_ref[...],
                         preferred_element_type=jnp.float32)
               + ba_ref[...])
        att = jax.nn.sigmoid(att)
        o_ref[...] = xn * att[:, 0:1] + yu * att[:, 1:2]


def matmul_stats_kernel(x_ref, w_ref, y_ref, s_ref):
    """Two-pass fallback pass 1: y = x @ w + per-tile channel sum / sum-sq."""
    y = jnp.dot(x_ref[...], w_ref[...], preferred_element_type=jnp.float32)
    y_ref[...] = y
    s_ref[0, 0:1, :] = jnp.sum(y, axis=0, keepdims=True)
    s_ref[0, 1:2, :] = jnp.sum(y * y, axis=0, keepdims=True)


def scaleshift_kernel(y_ref, c_ref, o_ref):
    """Streaming BN apply with precomputed scale/shift rows."""
    o_ref[...] = y_ref[...] * c_ref[0:1, :] + c_ref[1:2, :]


def scaleshift_att_kernel(y_ref, c_ref, yup_ref, wx_ref, wy_ref, ba_ref, o_ref):
    """Streaming BN apply + ABF attention (two-pass fallback)."""
    xn = y_ref[...] * c_ref[0:1, :] + c_ref[1:2, :]
    yu = yup_ref[...]
    att = jax.nn.sigmoid(
        jnp.dot(xn.astype(jnp.bfloat16), wx_ref[...],
                preferred_element_type=jnp.float32)
        + jnp.dot(yu.astype(jnp.bfloat16), wy_ref[...],
                  preferred_element_type=jnp.float32)
        + ba_ref[...])
    o_ref[...] = xn * att[:, 0:1] + yu * att[:, 1:2]


def conv3x3_stats_kernel(xf_ref, w_ref, ml_ref, mr_ref, y_ref, s_ref, *, H, W):
    """conv3x3 (pad 1, no bias) without im2col, per-sample.

    xf_ref: (1, (H+2)*W + 2, C) bf16 per-sample flattened zero-padded input.
    Tap (ky, kx) contributes xf[r + ky*W + kx] @ w[ky, kx] to output row r;
    the left/right column wrap is removed by the masks ml / mr.  The nine
    contributions are accumulated locally and stored once; per-sample channel
    sum / sum-sq go to a per-sample stats row (batch axis stays parallel).
    """
    HW = H * W
    acc = None
    for ky in range(3):
        for kx in range(3):
            s = ky * W + kx
            slab = xf_ref[0, s:s + HW, :]                       # already bf16
            contrib = jnp.dot(slab, w_ref[ky, kx, :, :],
                              preferred_element_type=jnp.float32)
            if kx == 0:
                contrib = contrib * ml_ref[...]
            elif kx == 2:
                contrib = contrib * mr_ref[...]
            acc = contrib if acc is None else acc + contrib
    y_ref[0, :, :] = acc
    s_ref[0, 0:1, :] = jnp.sum(acc, axis=0, keepdims=True)
    s_ref[0, 1:2, :] = jnp.sum(acc * acc, axis=0, keepdims=True)


def hcl_level_kernel(fs_ref, ft_ref, full_ref, pooled_ref, *, bw, l0):
    """Per (sample, row-band) hcl reductions, single data pass.

    full_ref  (1,1,1,C): channel sums of (fs - ft)^2 over this band.
    pooled_ref(1,1,l0,C): the l0 block means of d = fs - ft for this band
                          (finest adaptive-pool level); coarser levels are
                          derived from these tiny values in plain JAX.
    """
    d = fs_ref[0] - ft_ref[0]                                   # (bh, W, C)
    bh = d.shape[0]
    C = d.shape[-1]
    full = jnp.sum(jnp.sum(d * d, axis=0), axis=0)              # (C,)
    full_ref[...] = full.reshape(1, 1, 1, C)

    rowsum = jnp.sum(d, axis=0)                                 # (W, C)
    cols = [jnp.sum(rowsum[j * bw:(j + 1) * bw, :], axis=0, keepdims=True)
            for j in range(l0)]
    pooled = jnp.concatenate(cols, axis=0) * (1.0 / float(bh * bw))
    pooled_ref[...] = pooled.reshape(1, 1, l0, C)


# ---------------------------------------------------------------------------
# Pallas wrappers
# ---------------------------------------------------------------------------

def _bn_scale_shift(stats, gamma, beta, m):
    mean = stats[0] / float(m)
    var = jnp.maximum(stats[1] / float(m) - mean * mean, 0.0)
    scale = gamma * jax.lax.rsqrt(var + _BN_EPS)
    shift = beta - mean * scale
    return jnp.stack([scale, shift], axis=0)                    # (2, C)


def _conv1x1_bn_fused(x2_bf16, w1_bf16, gamma, beta, yu2, w_att, b_att):
    m, cin = x2_bf16.shape
    cout = w1_bf16.shape[1]
    tm = _pick_tm(m)
    grid = (2, m // tm)
    g = gamma.reshape(1, cout)
    b = beta.reshape(1, cout)
    scratch = [pltpu.VMEM((m, cout), jnp.float32),
               pltpu.VMEM((2, cout), jnp.float32),
               pltpu.VMEM((2, cout), jnp.float32)]
    cp = pltpu.CompilerParams(dimension_semantics=("arbitrary", "arbitrary"),
                              vmem_limit_bytes=_VMEM_LIMIT)
    if yu2 is None:
        return pl.pallas_call(
            functools.partial(conv1x1_bn_fused_kernel, inv_m=1.0 / m, tm=tm),
            grid=grid,
            out_shape=jax.ShapeDtypeStruct((m, cout), jnp.float32),
            in_specs=[pl.BlockSpec((tm, cin), lambda p, i: (i * (1 - p), 0)),
                      pl.BlockSpec((cin, cout), lambda p, i: (0, 0)),
                      pl.BlockSpec((1, cout), lambda p, i: (0, 0)),
                      pl.BlockSpec((1, cout), lambda p, i: (0, 0))],
            out_specs=pl.BlockSpec((tm, cout), lambda p, i: (i * p, 0)),
            scratch_shapes=scratch,
            compiler_params=cp,
        )(x2_bf16, w1_bf16, g, b)

    wx = w_att[:cout, :].astype(jnp.bfloat16)
    wy = w_att[cout:, :].astype(jnp.bfloat16)
    return pl.pallas_call(
        functools.partial(conv1x1_bn_att_fused_kernel, inv_m=1.0 / m, tm=tm),
        grid=grid,
        out_shape=jax.ShapeDtypeStruct((m, cout), jnp.float32),
        in_specs=[pl.BlockSpec((tm, cin), lambda p, i: (i * (1 - p), 0)),
                  pl.BlockSpec((cin, cout), lambda p, i: (0, 0)),
                  pl.BlockSpec((1, cout), lambda p, i: (0, 0)),
                  pl.BlockSpec((1, cout), lambda p, i: (0, 0)),
                  pl.BlockSpec((tm, cout), lambda p, i: (i * p, 0)),
                  pl.BlockSpec((cout, 2), lambda p, i: (0, 0)),
                  pl.BlockSpec((cout, 2), lambda p, i: (0, 0)),
                  pl.BlockSpec((1, 2), lambda p, i: (0, 0))],
        out_specs=pl.BlockSpec((tm, cout), lambda p, i: (i * p, 0)),
        scratch_shapes=scratch,
        compiler_params=cp,
    )(x2_bf16, w1_bf16, g, b, yu2, wx, wy, b_att)


def _matmul_stats(x2_bf16, w_bf16):
    """Two-pass fallback pass 1: y and per-tile stats (row axis parallel)."""
    m, cin = x2_bf16.shape
    cout = w_bf16.shape[1]
    tm = _pick_tm(m)
    nt = m // tm
    y, stats_pt = pl.pallas_call(
        matmul_stats_kernel,
        grid=(nt,),
        out_shape=(jax.ShapeDtypeStruct((m, cout), jnp.float32),
                   jax.ShapeDtypeStruct((nt, 2, cout), jnp.float32)),
        in_specs=[pl.BlockSpec((tm, cin), lambda i: (i, 0)),
                  pl.BlockSpec((cin, cout), lambda i: (0, 0))],
        out_specs=(pl.BlockSpec((tm, cout), lambda i: (i, 0)),
                   pl.BlockSpec((1, 2, cout), lambda i: (i, 0, 0))),
        compiler_params=pltpu.CompilerParams(
            dimension_semantics=("parallel",),
            vmem_limit_bytes=_VMEM_LIMIT),
    )(x2_bf16, w_bf16)
    return y, jnp.sum(stats_pt, axis=0)


def _scaleshift(y2, sc):
    m, cout = y2.shape
    tm = _pick_tm(m)
    return pl.pallas_call(
        scaleshift_kernel,
        grid=(m // tm,),
        out_shape=jax.ShapeDtypeStruct((m, cout), jnp.float32),
        in_specs=[pl.BlockSpec((tm, cout), lambda i: (i, 0)),
                  pl.BlockSpec((2, cout), lambda i: (0, 0))],
        out_specs=pl.BlockSpec((tm, cout), lambda i: (i, 0)),
        compiler_params=pltpu.CompilerParams(
            dimension_semantics=("parallel",)),
    )(y2, sc)


def _scaleshift_att(y2, sc, yu2, w_att, b_att):
    m, cout = y2.shape
    tm = _pick_tm(m)
    wx = w_att[:cout, :].astype(jnp.bfloat16)
    wy = w_att[cout:, :].astype(jnp.bfloat16)
    return pl.pallas_call(
        scaleshift_att_kernel,
        grid=(m // tm,),
        out_shape=jax.ShapeDtypeStruct((m, cout), jnp.float32),
        in_specs=[pl.BlockSpec((tm, cout), lambda i: (i, 0)),
                  pl.BlockSpec((2, cout), lambda i: (0, 0)),
                  pl.BlockSpec((tm, cout), lambda i: (i, 0)),
                  pl.BlockSpec((cout, 2), lambda i: (0, 0)),
                  pl.BlockSpec((cout, 2), lambda i: (0, 0)),
                  pl.BlockSpec((1, 2), lambda i: (0, 0))],
        out_specs=pl.BlockSpec((tm, cout), lambda i: (i, 0)),
        compiler_params=pltpu.CompilerParams(
            dimension_semantics=("parallel",)),
    )(y2, sc, yu2, wx, wy, b_att)


# ---------------------------------------------------------------------------
# Plain-JAX fallbacks for tiny levels
# ---------------------------------------------------------------------------

def _conv1x1_bn_fuse_jax(x_nhwc, w1, gamma, beta, y_up, w_att, b_att):
    n, h, wd, cin = x_nhwc.shape
    cout = w1.shape[1]
    m = n * h * wd
    y = x_nhwc.reshape(m, cin) @ w1
    mean = y.mean(0, keepdims=True)
    var = ((y - mean) ** 2).mean(0, keepdims=True)
    xn = ((y - mean) * jax.lax.rsqrt(var + _BN_EPS)
          * gamma.reshape(1, -1) + beta.reshape(1, -1))
    if y_up is not None:
        yu = y_up.reshape(m, cout)
        att = jax.nn.sigmoid(jnp.concatenate([xn, yu], axis=1) @ w_att + b_att)
        xn = xn * att[:, 0:1] + yu * att[:, 1:2]
    return xn.reshape(n, h, wd, cout)


def _conv3x3_bn_jax(x_nhwc, w, gamma, beta):
    y = jax.lax.conv_general_dilated(
        x_nhwc, w, window_strides=(1, 1), padding='SAME',
        dimension_numbers=('NHWC', 'HWIO', 'NHWC'))
    n, h, wd, cout = y.shape
    y2 = y.reshape(-1, cout)
    mean = y2.mean(0, keepdims=True)
    var = ((y2 - mean) ** 2).mean(0, keepdims=True)
    out = ((y2 - mean) * jax.lax.rsqrt(var + _BN_EPS)
           * gamma.reshape(1, -1) + beta.reshape(1, -1))
    return out.reshape(n, h, wd, cout)


def _hcl_level_jax(fs, ft):
    n, h, w, c = fs.shape
    d = fs - ft
    loss = jnp.mean(d * d)
    cnt = 1.0
    tot = 1.0
    for l in (4, 2, 1):
        if l >= h:
            continue
        dl = d.reshape(n, l, h // l, l, w // l, c).mean(axis=(2, 4))
        cnt /= 2.0
        loss = loss + jnp.mean(dl * dl) * cnt
        tot += cnt
    return loss / tot


# ---------------------------------------------------------------------------
# Conv + BN (+ fuse) wrappers
# ---------------------------------------------------------------------------

def conv1x1_bn_fuse(x_nhwc, w1, gamma, beta, y_nhwc=None, w_att=None,
                    b_att=None):
    n, h, wd, cin = x_nhwc.shape
    cout = w1.shape[1]
    m = n * h * wd
    y_up = nearest_interp(y_nhwc, h, wd) if y_nhwc is not None else None
    if m < _SMALL_M:
        return _conv1x1_bn_fuse_jax(x_nhwc, w1, gamma, beta, y_up, w_att,
                                    b_att)

    x2 = x_nhwc.reshape(m, cin).astype(jnp.bfloat16)
    w1b = w1.astype(jnp.bfloat16)
    yu2 = y_up.reshape(m, cout) if y_up is not None else None

    if m * cout * 4 <= _FUSE_Y_VMEM_BYTES:
        out = _conv1x1_bn_fused(x2, w1b, gamma, beta, yu2, w_att, b_att)
    else:
        # y too large to hold resident in VMEM: two-pass pipeline.
        y_raw, stats = _matmul_stats(x2, w1b)
        sc = _bn_scale_shift(stats, gamma, beta, m)
        if yu2 is None:
            out = _scaleshift(y_raw, sc)
        else:
            out = _scaleshift_att(y_raw, sc, yu2, w_att, b_att)
    return out.reshape(n, h, wd, cout)


def conv3x3_bn(x_nhwc, w, gamma, beta):
    n, h, wd, cin = x_nhwc.shape
    assert w.shape[0] == 3 and w.shape[1] == 3 and w.shape[2] == cin, \
        "conv3x3 weight must be (3, 3, Cin, Cout)"
    cout = w.shape[3]
    m = n * h * wd
    if m < _SMALL_M:
        return _conv3x3_bn_jax(x_nhwc, w, gamma, beta)

    hw = h * wd
    # Per-sample flattened zero-padded layout: 1 zero entry, H-pad row, image
    # rows, H-pad row, 1 zero entry  -> ((h+2)*wd + 2, cin), cast to bf16.
    xh = jnp.pad(x_nhwc, ((0, 0), (1, 1), (0, 0), (0, 0)))
    xf = xh.reshape(n, (h + 2) * wd, cin)
    xf = jnp.pad(xf, ((0, 0), (1, 1), (0, 0))).astype(jnp.bfloat16)
    widx = jnp.arange(hw) % wd
    ml = (widx != 0).astype(jnp.float32)[:, None]          # kills left wrap
    mr = (widx != wd - 1).astype(jnp.float32)[:, None]     # kills right wrap

    y_raw, stats_ps = pl.pallas_call(
        functools.partial(conv3x3_stats_kernel, H=h, W=wd),
        grid=(n,),
        out_shape=(jax.ShapeDtypeStruct((n, hw, cout), jnp.float32),
                   jax.ShapeDtypeStruct((n, 2, cout), jnp.float32)),
        in_specs=[pl.BlockSpec((1, (h + 2) * wd + 2, cin),
                               lambda i: (i, 0, 0)),
                  pl.BlockSpec((3, 3, cin, cout), lambda i: (0, 0, 0, 0)),
                  pl.BlockSpec((hw, 1), lambda i: (0, 0)),
                  pl.BlockSpec((hw, 1), lambda i: (0, 0))],
        out_specs=(pl.BlockSpec((1, hw, cout), lambda i: (i, 0, 0)),
                   pl.BlockSpec((1, 2, cout), lambda i: (i, 0, 0))),
        compiler_params=pltpu.CompilerParams(
            dimension_semantics=("parallel",),
            vmem_limit_bytes=_VMEM_LIMIT),
    )(xf, w.astype(jnp.bfloat16), ml, mr)

    stats = jnp.sum(stats_ps, axis=0)
    sc = _bn_scale_shift(stats, gamma, beta, m)
    out = _scaleshift(y_raw.reshape(m, cout), sc)
    return out.reshape(n, h, wd, cout)


# ---------------------------------------------------------------------------
# Plain-JAX glue: interpolation / losses
# ---------------------------------------------------------------------------

def nearest_interp(y_nhwc, out_h, out_w):
    """F.interpolate(mode='nearest'): src = floor(dst * in / out)."""
    n, h, w, c = y_nhwc.shape
    hi = (jnp.arange(out_h) * h) // out_h
    wi = (jnp.arange(out_w) * w) // out_w
    return y_nhwc[:, hi][:, :, wi]


def bilinear_align_corners(x_nhwc, out_h, out_w):
    """F.interpolate(mode='bilinear', align_corners=True)."""
    n, h, w, c = x_nhwc.shape

    def coords(o, i):
        if o == 1:
            return jnp.zeros((1,), jnp.float32)
        return jnp.arange(o, dtype=jnp.float32) * ((i - 1) / (o - 1))

    sy = coords(out_h, h)
    sx = coords(out_w, w)
    y0 = jnp.floor(sy).astype(jnp.int32)
    x0 = jnp.floor(sx).astype(jnp.int32)
    y1 = jnp.clip(y0 + 1, 0, h - 1)
    x1 = jnp.clip(x0 + 1, 0, w - 1)
    wy = (sy - jnp.floor(sy))[None, :, None, None]
    wx = (sx - jnp.floor(sx))[None, None, :, None]

    def g(yi, xi):
        return x_nhwc[:, yi][:, :, xi]

    top = g(y0, x0) * (1.0 - wx) + g(y0, x1) * wx
    bot = g(y1, x0) * (1.0 - wx) + g(y1, x1) * wx
    return top * (1.0 - wy) + bot * wy


def _hcl_level_pallas(fs, ft):
    """One hcl level: full-res SSE + finest-pool block means in one data pass.

    grid = (batch, row band) -- both axes parallel; the tiny multi-scale
    pooled combination is done in plain JAX from the (n, l0, l0, C) means.
    """
    n, h, w, c = fs.shape
    pools = tuple(l for l in (4, 2, 1) if l < h)
    l0 = pools[0]
    bh, bw = h // l0, w // l0

    full, pooled = pl.pallas_call(
        functools.partial(hcl_level_kernel, bw=bw, l0=l0),
        grid=(n, l0),
        out_shape=(jax.ShapeDtypeStruct((n, l0, 1, c), jnp.float32),
                   jax.ShapeDtypeStruct((n, l0, l0, c), jnp.float32)),
        in_specs=[pl.BlockSpec((1, bh, w, c), lambda b, r: (b, r, 0, 0)),
                  pl.BlockSpec((1, bh, w, c), lambda b, r: (b, r, 0, 0))],
        out_specs=(pl.BlockSpec((1, 1, 1, c), lambda b, r: (b, r, 0, 0)),
                   pl.BlockSpec((1, 1, l0, c), lambda b, r: (b, r, 0, 0))),
        compiler_params=pltpu.CompilerParams(
            dimension_semantics=("parallel", "parallel"),
            vmem_limit_bytes=_VMEM_LIMIT),
    )(fs, ft)

    # TODO(synk): assumes H, W divisible by pool sizes (true here); PyTorch
    # adaptive_avg_pool2d also handles non-divisible sizes.
    loss = jnp.sum(full) / float(n * h * w * c)
    cnt = 1.0
    tot = 1.0
    for l in pools:
        r = l0 // l
        g = pooled.reshape(n, l, r, l, r, c).mean(axis=(2, 4))
        cnt /= 2.0
        loss = loss + (jnp.sum(g * g) / float(n * l * l * c)) * cnt
        tot += cnt
    return loss / tot


def hcl_loss(fstudent, fteacher):
    loss_all = 0.0
    for fs, ft in zip(fstudent, fteacher):
        n, h, w, c = fs.shape
        if h * w < _SMALL_HCL or not tuple(l for l in (4, 2, 1) if l < h):
            loss_all = loss_all + _hcl_level_jax(fs, ft)
        else:
            loss_all = loss_all + _hcl_level_pallas(fs, ft)
    return loss_all


def structure_loss(pred_nchw, mask_nchw):
    """BCE-with-logits (mean) + IoU-style loss; tiny, kept in plain JAX."""
    x = pred_nchw
    z = mask_nchw
    wbce = jnp.mean(jnp.maximum(x, 0.0) - x * z + jnp.log1p(jnp.exp(-jnp.abs(x))))
    p = jax.nn.sigmoid(x)
    inter = jnp.sum(p * z, axis=(2, 3))
    union = jnp.sum(p + z, axis=(2, 3))
    wiou = 1.0 - (inter + 1.0) / (union - inter + 1.0)
    return wbce + jnp.mean(wiou)


# ---------------------------------------------------------------------------
# ABF / ReviewKD / TransXNet_ReviewKD forward
# ---------------------------------------------------------------------------

def abf_forward(p, x_nhwc, y_nhwc=None):
    y_in = y_nhwc if p['fuse'] else None
    x = conv1x1_bn_fuse(x_nhwc, p['w1'], p['g1'], p['be1'],
                        y_in, p['w_att'], p['b_att'])
    y_out = conv3x3_bn(x, p['w2'], p['g2'], p['be2'])
    return y_out, x


def reviewkd_forward(abf_params_rev, student_features_nhwc):
    x = student_features_nhwc[::-1]
    out, res = abf_forward(abf_params_rev[0], x[0])
    results = [out]
    for feat, p in zip(x[1:], abf_params_rev[1:]):
        out, res = abf_forward(p, feat, res)
        results.insert(0, out)
    return results


def distillation_loss(student_outs_nhwc, teacher_feats_nhwc):
    s_interp = [
        bilinear_align_corners(s, t.shape[1], t.shape[2])
        for s, t in zip(student_outs_nhwc, teacher_feats_nhwc)
    ]
    return hcl_loss(s_interp, teacher_feats_nhwc)


def transxnet_reviewkd_forward_train(abf_params_rev, student_smap1,
                                     student_features, teacher_features,
                                     labels_lr):
    """Training-mode forward: returns (loss_sod, loss_distillation)."""
    student_nhwc = [jnp.transpose(f, (0, 2, 3, 1)) for f in student_features]
    teacher_nhwc = [jnp.transpose(f, (0, 2, 3, 1)) for f in teacher_features]

    results = reviewkd_forward(abf_params_rev, student_nhwc)  # finest first
    loss_dist = distillation_loss(results, teacher_nhwc)
    loss_sod = structure_loss(student_smap1, labels_lr)
    return loss_sod, loss_dist


# ---------------------------------------------------------------------------
# Deterministic parameter init (mirrors build_kd_trans / ABF.__init__)
# ---------------------------------------------------------------------------

def build_kd_trans_params(key, in_channels, out_channels, mid_channel):
    n_abf = len(in_channels)
    params = []
    for idx, in_c in enumerate(in_channels):
        fuse = idx < n_abf - 1
        key, k1, k2, k3, k4 = jax.random.split(key, 5)
        # conv1: kaiming_uniform_(a=1) -> bound = sqrt(3/fan_in), fan_in = in_c
        b1 = math.sqrt(3.0 / in_c)
        w1 = jax.random.uniform(k1, (in_c, mid_channel), jnp.float32, -b1, b1)
        # conv2: kaiming_uniform_(a=1), fan_in = mid_channel*9
        b2 = math.sqrt(3.0 / (mid_channel * 9))
        w2 = jax.random.uniform(k2, (3, 3, mid_channel, out_channels[idx]),
                                jnp.float32, -b2, b2)
        if fuse:
            fan_in = 2 * mid_channel
            bw = math.sqrt(1.0 / fan_in)   # default kaiming_uniform a=sqrt(5)
            w_att = jax.random.uniform(k3, (2 * mid_channel, 2), jnp.float32,
                                       -bw, bw)
            bb = 1.0 / math.sqrt(fan_in)
            b_att = jax.random.uniform(k4, (1, 2), jnp.float32, -bb, bb)
        else:
            w_att, b_att = None, None
        params.append(dict(
            w1=w1,
            g1=jnp.ones((mid_channel,), jnp.float32),
            be1=jnp.zeros((mid_channel,), jnp.float32),
            w2=w2,
            g2=jnp.ones((out_channels[idx],), jnp.float32),
            be2=jnp.zeros((out_channels[idx],), jnp.float32),
            w_att=w_att, b_att=b_att, fuse=fuse))
    return params[::-1]  # abfs = abfs[::-1] in ReviewKD.__init__


# ---------------------------------------------------------------------------
# Main
# ---------------------------------------------------------------------------

if __name__ == "__main__":
    key = jax.random.PRNGKey(0)
    N = 2
    C = 128  # scaled-down stand-in for the 256-channel ReviewKD config

    in_channels = [C, C, C, C, C]
    out_channels = [C, C, C, C, C]
    mid_channel = C

    key, kp = jax.random.split(key)
    abf_params_rev = build_kd_trans_params(kp, in_channels, out_channels,
                                           mid_channel)

    # Synthetic backbone outputs (student at img_size, teacher at img_size*2).
    student_spatial = [16, 8, 4, 2]
    student_features = []
    teacher_features = []
    for s in student_spatial:
        key, ks, kt = jax.random.split(key, 3)
        student_features.append(jax.random.normal(ks, (N, C, s, s), jnp.float32))
        teacher_features.append(
            jax.random.normal(kt, (N, C, 2 * s, 2 * s), jnp.float32))

    key, km, kl = jax.random.split(key, 3)
    student_smap1 = jax.random.normal(km, (N, 1, 16, 16), jnp.float32)
    labels_lr = (jax.random.uniform(kl, (N, 1, 16, 16)) > 0.5).astype(jnp.float32)

    fwd = jax.jit(functools.partial(transxnet_reviewkd_forward_train,
                                    abf_params_rev))
    loss_sod, loss_dist = fwd(student_smap1, student_features,
                              teacher_features, labels_lr)

    jax.block_until_ready((loss_sod, loss_dist))
    print("KERNEL_OK")
</pallas_src>

<mosaic_0001>
module attributes {stable_mosaic.version = 11 : i64} {
  func.func @conv1x1_bn_att_fused_kernel(%arg0: i32, %arg1: i32, %arg2: memref<64x128xbf16, #tpu.memory_space<vmem>>, %arg3: memref<128x128xbf16, #tpu.memory_space<vmem>>, %arg4: memref<1x128xf32, #tpu.memory_space<vmem>>, %arg5: memref<1x128xf32, #tpu.memory_space<vmem>>, %arg6: memref<64x128xf32, #tpu.memory_space<vmem>>, %arg7: memref<128x2xbf16, #tpu.memory_space<vmem>>, %arg8: memref<128x2xbf16, #tpu.memory_space<vmem>>, %arg9: memref<1x2xf32, #tpu.memory_space<vmem>>, %arg10: memref<64x128xf32, #tpu.memory_space<vmem>>, %arg11: memref<128x128xf32, #tpu.memory_space<vmem>>, %arg12: memref<2x128xf32, #tpu.memory_space<vmem>>, %arg13: memref<2x128xf32, #tpu.memory_space<vmem>>) attributes {dimension_semantics = [#tpu.dimension_semantics<arbitrary>, #tpu.dimension_semantics<arbitrary>], iteration_bounds = array<i64: 2, 2>, scalar_prefetch = 0 : i64, scratch_operands = 3 : i64, tpu.core_type = #tpu.core_type<tc>, window_params = [{transform_indices = @transform_0, window_bounds = array<i64: 64, 128>}, {pipeline_mode = #tpu.pipeline_mode<synchronous>, transform_indices = @transform_1, window_bounds = array<i64: 128, 128>}, {pipeline_mode = #tpu.pipeline_mode<synchronous>, transform_indices = @transform_2, window_bounds = array<i64: 1, 128>}, {pipeline_mode = #tpu.pipeline_mode<synchronous>, transform_indices = @transform_3, window_bounds = array<i64: 1, 128>}, {transform_indices = @transform_4, window_bounds = array<i64: 64, 128>}, {pipeline_mode = #tpu.pipeline_mode<synchronous>, transform_indices = @transform_5, window_bounds = array<i64: 128, 2>}, {pipeline_mode = #tpu.pipeline_mode<synchronous>, transform_indices = @transform_6, window_bounds = array<i64: 128, 2>}, {pipeline_mode = #tpu.pipeline_mode<synchronous>, transform_indices = @transform_7, window_bounds = array<i64: 1, 2>}, {transform_indices = @transform_8, window_bounds = array<i64: 64, 128>}]} {
    %c64_i32 = arith.constant 64 : i32
    %0 = arith.muli %arg1, %c64_i32 : i32
    %1 = tpu.assume_multiple %0, 64 : i32
    %c0_i32 = arith.constant 0 : i32
    %2 = arith.cmpi eq, %arg0, %c0_i32 : i32
    %3 = arith.extui %2 : i1 to i32
    %c0_i32_0 = arith.constant 0 : i32
    %4 = arith.cmpi ne, %3, %c0_i32_0 : i32
    scf.if %4 {
      %c0_i32_2 = arith.constant 0 : i32
      %8 = arith.cmpi eq, %arg1, %c0_i32_2 : i32
      %9 = arith.extui %8 : i1 to i32
      %c0_i32_3 = arith.constant 0 : i32
      %10 = arith.cmpi ne, %9, %c0_i32_3 : i32
      scf.if %10 {
        %cst_17 = arith.constant 0.000000e+00 : f32
        %27 = vector.broadcast %cst_17 : f32 to vector<2x128xf32>
        %c0_18 = arith.constant 0 : index
        %c0_19 = arith.constant 0 : index
        %28 = vector.load %arg12[%c0_18, %c0_19] : memref<2x128xf32, #tpu.memory_space<vmem>>, vector<2x128xf32>
        tpu.vector_store %arg12[%c0_18, %c0_19], %27 {strides = array<i32>} : memref<2x128xf32, #tpu.memory_space<vmem>>, vector<2x128xf32>,
      } else {
      }
      %c0 = arith.constant 0 : index
      %c0_4 = arith.constant 0 : index
      %11 = vector.load %arg2[%c0, %c0_4] : memref<64x128xbf16, #tpu.memory_space<vmem>>, vector<64x128xbf16>
      %c0_5 = arith.constant 0 : index
      %c0_6 = arith.constant 0 : index
      %12 = vector.load %arg3[%c0_5, %c0_6] : memref<128x128xbf16, #tpu.memory_space<vmem>>, vector<128x128xbf16>
      %cst = arith.constant dense<0.000000e+00> : vector<64x128xf32>
      %13 = tpu.matmul %11, %12, %cst {dimension_numbers = #tpu.dot_dimension_numbers<[1], [0], [0], [1], [0, 0, 1, 1], [], []>} : vector<64x128xbf16>, vector<128x128xbf16>, vector<64x128xf32> -> vector<64x128xf32>
      %14 = arith.index_cast %1 : i32 to index
      %c0_7 = arith.constant 0 : index
      %15 = vector.load %arg11[%14, %c0_7] : memref<128x128xf32, #tpu.memory_space<vmem>>, vector<64x128xf32>
      tpu.vector_store %arg11[%14, %c0_7], %13 {strides = array<i32>} : memref<128x128xf32, #tpu.memory_space<vmem>>, vector<64x128xf32>,
      %c0_8 = arith.constant 0 : index
      %c0_9 = arith.constant 0 : index
      %16 = vector.load %arg12[%c0_8, %c0_9] : memref<2x128xf32, #tpu.memory_space<vmem>>, vector<1x128xf32>
      %cst_10 = arith.constant dense<0.000000e+00> : vector<128xf32>
      %17 = vector.multi_reduction <add>, %13, %cst_10 [0] : vector<64x128xf32> to vector<128xf32>
      %18 = vector.shape_cast %17 : vector<128xf32> to vector<1x128xf32>
      %19 = arith.addf %16, %18 : vector<1x128xf32>
      %c0_11 = arith.constant 0 : index
      %c0_12 = arith.constant 0 : index
      %20 = vector.load %arg12[%c0_11, %c0_12] : memref<2x128xf32, #tpu.memory_space<vmem>>, vector<1x128xf32>
      tpu.vector_store %arg12[%c0_11, %c0_12], %19 {strides = array<i32>} : memref<2x128xf32, #tpu.memory_space<vmem>>, vector<1x128xf32>,
      %c1 = arith.constant 1 : index
      %c0_13 = arith.constant 0 : index
      %21 = vector.load %arg12[%c1, %c0_13] : memref<2x128xf32, #tpu.memory_space<vmem>>, vector<1x128xf32>
      %22 = arith.mulf %13, %13 : vector<64x128xf32>
      %cst_14 = arith.constant dense<0.000000e+00> : vector<128xf32>
      %23 = vector.multi_reduction <add>, %22, %cst_14 [0] : vector<64x128xf32> to vector<128xf32>
      %24 = vector.shape_cast %23 : vector<128xf32> to vector<1x128xf32>
      %25 = arith.addf %21, %24 : vector<1x128xf32>
      %c1_15 = arith.constant 1 : index
      %c0_16 = arith.constant 0 : index
      %26 = vector.load %arg12[%c1_15, %c0_16] : memref<2x128xf32, #tpu.memory_space<vmem>>, vector<1x128xf32>
      tpu.vector_store %arg12[%c1_15, %c0_16], %25 {strides = array<i32>} : memref<2x128xf32, #tpu.memory_space<vmem>>, vector<1x128xf32>,
    } else {
    }
    %c1_i32 = arith.constant 1 : i32
    %5 = arith.cmpi eq, %arg0, %c1_i32 : i32
    %6 = arith.extui %5 : i1 to i32
    %c0_i32_1 = arith.constant 0 : i32
    %7 = arith.cmpi ne, %6, %c0_i32_1 : i32
    scf.if %7 {
      %c0_i32_2 = arith.constant 0 : i32
      %8 = arith.cmpi eq, %arg1, %c0_i32_2 : i32
      %9 = arith.extui %8 : i1 to i32
      %c0_i32_3 = arith.constant 0 : i32
      %10 = arith.cmpi ne, %9, %c0_i32_3 : i32
      scf.if %10 {
        %c0_19 = arith.constant 0 : index
        %c0_20 = arith.constant 0 : index
        %43 = vector.load %arg12[%c0_19, %c0_20] : memref<2x128xf32, #tpu.memory_space<vmem>>, vector<1x128xf32>
        %cst_21 = arith.constant 7.812500e-03 : f32
        %44 = vector.broadcast %cst_21 : f32 to vector<1x128xf32>
        %45 = arith.mulf %43, %44 : vector<1x128xf32>
        %c1_22 = arith.constant 1 : index
        %c0_23 = arith.constant 0 : index
        %46 = vector.load %arg12[%c1_22, %c0_23] : memref<2x128xf32, #tpu.memory_space<vmem>>, vector<1x128xf32>
        %cst_24 = arith.constant 7.812500e-03 : f32
        %47 = vector.broadcast %cst_24 : f32 to vector<1x128xf32>
        %48 = arith.mulf %46, %47 : vector<1x128xf32>
        %49 = arith.mulf %45, %45 : vector<1x128xf32>
        %50 = arith.subf %48, %49 : vector<1x128xf32>
        %cst_25 = arith.constant 0.000000e+00 : f32
        %51 = vector.broadcast %cst_25 : f32 to vector<1x128xf32>
        %52 = arith.maximumf %50, %51 : vector<1x128xf32>
        %cst_26 = arith.constant 9.99999974E-6 : f32
        %53 = vector.broadcast %cst_26 : f32 to vector<1x128xf32>
        %54 = arith.addf %52, %53 : vector<1x128xf32>
        %55 = math.rsqrt %54 : vector<1x128xf32>
        %c0_27 = arith.constant 0 : index
        %c0_28 = arith.constant 0 : index
        %56 = vector.load %arg4[%c0_27, %c0_28] : memref<1x128xf32, #tpu.memory_space<vmem>>, vector<1x128xf32>
        %57 = arith.mulf %55, %56 : vector<1x128xf32>
        %c0_29 = arith.constant 0 : index
        %c0_30 = arith.constant 0 : index
        %58 = vector.load %arg13[%c0_29, %c0_30] : memref<2x128xf32, #tpu.memory_space<vmem>>, vector<1x128xf32>
        tpu.vector_store %arg13[%c0_29, %c0_30], %57 {strides = array<i32>} : memref<2x128xf32, #tpu.memory_space<vmem>>, vector<1x128xf32>,
        %c0_31 = arith.constant 0 : index
        %c0_32 = arith.constant 0 : index
        %59 = vector.load %arg5[%c0_31, %c0_32] : memref<1x128xf32, #tpu.memory_space<vmem>>, vector<1x128xf32>
        %60 = arith.mulf %45, %57 : vector<1x128xf32>
        %61 = arith.subf %59, %60 : vector<1x128xf32>
        %c1_33 = arith.constant 1 : index
        %c0_34 = arith.constant 0 : index
        %62 = vector.load %arg13[%c1_33, %c0_34] : memref<2x128xf32, #tpu.memory_space<vmem>>, vector<1x128xf32>
        tpu.vector_store %arg13[%c1_33, %c0_34], %61 {strides = array<i32>} : memref<2x128xf32, #tpu.memory_space<vmem>>, vector<1x128xf32>,
      } else {
      }
      %11 = arith.index_cast %1 : i32 to index
      %c0 = arith.constant 0 : index
      %12 = vector.load %arg11[%11, %c0] : memref<128x128xf32, #tpu.memory_space<vmem>>, vector<64x128xf32>
      %c0_4 = arith.constant 0 : index
      %c0_5 = arith.constant 0 : index
      %13 = vector.load %arg13[%c0_4, %c0_5] : memref<2x128xf32, #tpu.memory_space<vmem>>, vector<1x128xf32>
      %14 = vector.broadcast %13 : vector<1x128xf32> to vector<64x128xf32>
      %15 = arith.mulf %12, %14 : vector<64x128xf32>
      %c1 = arith.constant 1 : index
      %c0_6 = arith.constant 0 : index
      %16 = vector.load %arg13[%c1, %c0_6] : memref<2x128xf32, #tpu.memory_space<vmem>>, vector<1x128xf32>
      %17 = vector.broadcast %16 : vector<1x128xf32> to vector<64x128xf32>
      %18 = arith.addf %15, %17 : vector<64x128xf32>
      %c0_7 = arith.constant 0 : index
      %c0_8 = arith.constant 0 : index
      %19 = vector.load %arg6[%c0_7, %c0_8] : memref<64x128xf32, #tpu.memory_space<vmem>>, vector<64x128xf32>
      %20 = arith.truncf %18 : vector<64x128xf32> to vector<64x128xbf16>
      %c0_9 = arith.constant 0 : index
      %c0_10 = arith.constant 0 : index
      %21 = vector.load %arg7[%c0_9, %c0_10] : memref<128x2xbf16, #tpu.memory_space<vmem>>, vector<128x2xbf16>
      %cst = arith.constant dense<0.000000e+00> : vector<64x2xf32>
      %22 = tpu.matmul %20, %21, %cst {dimension_numbers = #tpu.dot_dimension_numbers<[1], [0], [0], [1], [0, 0, 1, 1], [], []>} : vector<64x128xbf16>, vector<128x2xbf16>, vector<64x2xf32> -> vector<64x2xf32>
      %23 = arith.truncf %19 : vector<64x128xf32> to vector<64x128xbf16>
      %c0_11 = arith.constant 0 : index
      %c0_12 = arith.constant 0 : index
      %24 = vector.load %arg8[%c0_11, %c0_12] : memref<128x2xbf16, #tpu.memory_space<vmem>>, vector<128x2xbf16>
      %cst_13 = arith.constant dense<0.000000e+00> : vector<64x2xf32>
      %25 = tpu.matmul %23, %24, %cst_13 {dimension_numbers = #tpu.dot_dimension_numbers<[1], [0], [0], [1], [0, 0, 1, 1], [], []>} : vector<64x128xbf16>, vector<128x2xbf16>, vector<64x2xf32> -> vector<64x2xf32>
      %26 = arith.addf %22, %25 : vector<64x2xf32>
      %c0_14 = arith.constant 0 : index
      %c0_15 = arith.constant 0 : index
      %27 = vector.load %arg9[%c0_14, %c0_15] : memref<1x2xf32, #tpu.memory_space<vmem>>, vector<1x2xf32>
      %28 = vector.broadcast %27 : vector<1x2xf32> to vector<64x2xf32>
      %29 = arith.addf %26, %28 : vector<64x2xf32>
      %30 = arith.negf %29 : vector<64x2xf32>
      %31 = math.exp %30 : vector<64x2xf32>
      %cst_16 = arith.constant 1.000000e+00 : f32
      %32 = vector.broadcast %cst_16 : f32 to vector<64x2xf32>
      %33 = arith.addf %32, %31 : vector<64x2xf32>
      %34 = arith.divf %32, %33 : vector<64x2xf32>
      %35 = vector.extract_strided_slice %34 {offsets = [0, 0], sizes = [64, 1], strides = [1, 1]} : vector<64x2xf32> to vector<64x1xf32>
      %36 = vector.broadcast %35 : vector<64x1xf32> to vector<64x128xf32>
      %37 = arith.mulf %18, %36 : vector<64x128xf32>
      %38 = vector.extract_strided_slice %34 {offsets = [0, 1], sizes = [64, 1], strides = [1, 1]} : vector<64x2xf32> to vector<64x1xf32>
      %39 = vector.broadcast %38 : vector<64x1xf32> to vector<64x128xf32>
      %40 = arith.mulf %19, %39 : vector<64x128xf32>
      %41 = arith.addf %37, %40 : vector<64x128xf32>
      %c0_17 = arith.constant 0 : index
      %c0_18 = arith.constant 0 : index
      %42 = vector.load %arg10[%c0_17, %c0_18] : memref<64x128xf32, #tpu.memory_space<vmem>>, vector<64x128xf32>
      tpu.vector_store %arg10[%c0_17, %c0_18], %41 {strides = array<i32>} : memref<64x128xf32, #tpu.memory_space<vmem>>, vector<64x128xf32>,
    } else {
    }
    return
  }
  func.func @transform_0(%arg0: i32, %arg1: i32) -> (i32, i32) {
    %c1_i32 = arith.constant 1 : i32
    %0 = arith.subi %c1_i32, %arg0 : i32
    %1 = arith.muli %arg1, %0 : i32
    %c0_i32 = arith.constant 0 : i32
    %c0_i32_0 = arith.constant 0 : i32
    return %1, %c0_i32 : i32, i32
  }
  func.func @transform_1(%arg0: i32, %arg1: i32) -> (i32, i32) {
    %c0_i32 = arith.constant 0 : i32
    %c0_i32_0 = arith.constant 0 : i32
    %c0_i32_1 = arith.constant 0 : i32
    return %c0_i32, %c0_i32_0 : i32, i32
  }
  func.func @transform_2(%arg0: i32, %arg1: i32) -> (i32, i32) {
    %c0_i32 = arith.constant 0 : i32
    %c0_i32_0 = arith.constant 0 : i32
    %c0_i32_1 = arith.constant 0 : i32
    return %c0_i32, %c0_i32_0 : i32, i32
  }
  func.func @transform_3(%arg0: i32, %arg1: i32) -> (i32, i32) {
    %c0_i32 = arith.constant 0 : i32
    %c0_i32_0 = arith.constant 0 : i32
    %c0_i32_1 = arith.constant 0 : i32
    return %c0_i32, %c0_i32_0 : i32, i32
  }
  func.func @transform_4(%arg0: i32, %arg1: i32) -> (i32, i32) {
    %0 = arith.muli %arg1, %arg0 : i32
    %c0_i32 = arith.constant 0 : i32
    %c0_i32_0 = arith.constant 0 : i32
    return %0, %c0_i32 : i32, i32
  }
  func.func @transform_5(%arg0: i32, %arg1: i32) -> (i32, i32) {
    %c0_i32 = arith.constant 0 : i32
    %c0_i32_0 = arith.constant 0 : i32
    %c0_i32_1 = arith.constant 0 : i32
    return %c0_i32, %c0_i32_0 : i32, i32
  }
  func.func @transform_6(%arg0: i32, %arg1: i32) -> (i32, i32) {
    %c0_i32 = arith.constant 0 : i32
    %c0_i32_0 = arith.constant 0 : i32
    %c0_i32_1 = arith.constant 0 : i32
    return %c0_i32, %c0_i32_0 : i32, i32
  }
  func.func @transform_7(%arg0: i32, %arg1: i32) -> (i32, i32) {
    %c0_i32 = arith.constant 0 : i32
    %c0_i32_0 = arith.constant 0 : i32
    %c0_i32_1 = arith.constant 0 : i32
    return %c0_i32, %c0_i32_0 : i32, i32
  }
  func.func @transform_8(%arg0: i32, %arg1: i32) -> (i32, i32) {
    %0 = arith.muli %arg1, %arg0 : i32
    %c0_i32 = arith.constant 0 : i32
    %c0_i32_0 = arith.constant 0 : i32
    return %0, %c0_i32 : i32, i32
  }
}

module attributes {stable_mosaic.version = 11 : i64} {
  func.func @conv3x3_stats_kernel(%arg0: i32, %arg1: memref<1x82x128xbf16, #tpu.memory_space<vmem>>, %arg2: memref<3x3x128x128xbf16, #tpu.memory_space<vmem>>, %arg3: memref<64x1xf32, #tpu.memory_space<vmem>>, %arg4: memref<64x1xf32, #tpu.memory_space<vmem>>, %arg5: memref<1x64x128xf32, #tpu.memory_space<vmem>>, %arg6: memref<1x2x128xf32, #tpu.memory_space<vmem>>) attributes {dimension_semantics = [#tpu.dimension_semantics<parallel>], iteration_bounds = array<i64: 2>, scalar_prefetch = 0 : i64, scratch_operands = 0 : i64, tpu.core_type = #tpu.core_type<tc>, window_params = [{transform_indices = @transform_0, window_bounds = array<i64: 1, 82, 128>}, {pipeline_mode = #tpu.pipeline_mode<synchronous>, transform_indices = @transform_1, window_bounds = array<i64: 3, 3, 128, 128>}, {pipeline_mode = #tpu.pipeline_mode<synchronous>, transform_indices = @transform_2, window_bounds = array<i64: 64, 1>}, {pipeline_mode = #tpu.pipeline_mode<synchronous>, transform_indices = @transform_3, window_bounds = array<i64: 64, 1>}, {transform_indices = @transform_4, window_bounds = array<i64: 1, 64, 128>}, {transform_indices = @transform_5, window_bounds = array<i64: 1, 2, 128>}]} {
    %c0 = arith.constant 0 : index
    %c0_0 = arith.constant 0 : index
    %c0_1 = arith.constant 0 : index
    %0 = vector.load %arg1[%c0, %c0_0, %c0_1] : memref<1x82x128xbf16, #tpu.memory_space<vmem>>, vector<1x64x128xbf16>
    %1 = vector.shape_cast %0 : vector<1x64x128xbf16> to vector<64x128xbf16>
    %c0_2 = arith.constant 0 : index
    %c0_3 = arith.constant 0 : index
    %c0_4 = arith.constant 0 : index
    %c0_5 = arith.constant 0 : index
    %2 = vector.load %arg2[%c0_2, %c0_3, %c0_4, %c0_5] : memref<3x3x128x128xbf16, #tpu.memory_space<vmem>>, vector<1x1x128x128xbf16>
    %3 = vector.shape_cast %2 : vector<1x1x128x128xbf16> to vector<128x128xbf16>
    %cst = arith.constant dense<0.000000e+00> : vector<64x128xf32>
    %4 = tpu.matmul %1, %3, %cst {dimension_numbers = #tpu.dot_dimension_numbers<[1], [0], [0], [1], [0, 0, 1, 1], [], []>} : vector<64x128xbf16>, vector<128x128xbf16>, vector<64x128xf32> -> vector<64x128xf32>
    %c0_6 = arith.constant 0 : index
    %c0_7 = arith.constant 0 : index
    %5 = vector.load %arg3[%c0_6, %c0_7] : memref<64x1xf32, #tpu.memory_space<vmem>>, vector<64x1xf32>
    %6 = vector.broadcast %5 : vector<64x1xf32> to vector<64x128xf32>
    %7 = arith.mulf %4, %6 : vector<64x128xf32>
    %c0_8 = arith.constant 0 : index
    %c1 = arith.constant 1 : index
    %c0_9 = arith.constant 0 : index
    %8 = vector.load %arg1[%c0_8, %c1, %c0_9] : memref<1x82x128xbf16, #tpu.memory_space<vmem>>, vector<1x64x128xbf16>
    %9 = vector.shape_cast %8 : vector<1x64x128xbf16> to vector<64x128xbf16>
    %c0_10 = arith.constant 0 : index
    %c1_11 = arith.constant 1 : index
    %c0_12 = arith.constant 0 : index
    %c0_13 = arith.constant 0 : index
    %10 = vector.load %arg2[%c0_10, %c1_11, %c0_12, %c0_13] : memref<3x3x128x128xbf16, #tpu.memory_space<vmem>>, vector<1x1x128x128xbf16>
    %11 = vector.shape_cast %10 : vector<1x1x128x128xbf16> to vector<128x128xbf16>
    %cst_14 = arith.constant dense<0.000000e+00> : vector<64x128xf32>
    %12 = tpu.matmul %9, %11, %cst_14 {dimension_numbers = #tpu.dot_dimension_numbers<[1], [0], [0], [1], [0, 0, 1, 1], [], []>} : vector<64x128xbf16>, vector<128x128xbf16>, vector<64x128xf32> -> vector<64x128xf32>
    %13 = arith.addf %7, %12 : vector<64x128xf32>
    %c0_15 = arith.constant 0 : index
    %c2 = arith.constant 2 : index
    %c0_16 = arith.constant 0 : index
    %14 = vector.load %arg1[%c0_15, %c2, %c0_16] : memref<1x82x128xbf16, #tpu.memory_space<vmem>>, vector<1x64x128xbf16>
    %15 = vector.shape_cast %14 : vector<1x64x128xbf16> to vector<64x128xbf16>
    %c0_17 = arith.constant 0 : index
    %c2_18 = arith.constant 2 : index
    %c0_19 = arith.constant 0 : index
    %c0_20 = arith.constant 0 : index
    %16 = vector.load %arg2[%c0_17, %c2_18, %c0_19, %c0_20] : memref<3x3x128x128xbf16, #tpu.memory_space<vmem>>, vector<1x1x128x128xbf16>
    %17 = vector.shape_cast %16 : vector<1x1x128x128xbf16> to vector<128x128xbf16>
    %cst_21 = arith.constant dense<0.000000e+00> : vector<64x128xf32>
    %18 = tpu.matmul %15, %17, %cst_21 {dimension_numbers = #tpu.dot_dimension_numbers<[1], [0], [0], [1], [0, 0, 1, 1], [], []>} : vector<64x128xbf16>, vector<128x128xbf16>, vector<64x128xf32> -> vector<64x128xf32>
    %c0_22 = arith.constant 0 : index
    %c0_23 = arith.constant 0 : index
    %19 = vector.load %arg4[%c0_22, %c0_23] : memref<64x1xf32, #tpu.memory_space<vmem>>, vector<64x1xf32>
    %20 = vector.broadcast %19 : vector<64x1xf32> to vector<64x128xf32>
    %21 = arith.mulf %18, %20 : vector<64x128xf32>
    %22 = arith.addf %13, %21 : vector<64x128xf32>
    %c0_24 = arith.constant 0 : index
    %c8 = arith.constant 8 : index
    %c0_25 = arith.constant 0 : index
    %23 = vector.load %arg1[%c0_24, %c8, %c0_25] : memref<1x82x128xbf16, #tpu.memory_space<vmem>>, vector<1x64x128xbf16>
    %24 = vector.shape_cast %23 : vector<1x64x128xbf16> to vector<64x128xbf16>
    %c1_26 = arith.constant 1 : index
    %c0_27 = arith.constant 0 : index
    %c0_28 = arith.constant 0 : index
    %c0_29 = arith.constant 0 : index
    %25 = vector.load %arg2[%c1_26, %c0_27, %c0_28, %c0_29] : memref<3x3x128x128xbf16, #tpu.memory_space<vmem>>, vector<1x1x128x128xbf16>
    %26 = vector.shape_cast %25 : vector<1x1x128x128xbf16> to vector<128x128xbf16>
    %cst_30 = arith.constant dense<0.000000e+00> : vector<64x128xf32>
    %27 = tpu.matmul %24, %26, %cst_30 {dimension_numbers = #tpu.dot_dimension_numbers<[1], [0], [0], [1], [0, 0, 1, 1], [], []>} : vector<64x128xbf16>, vector<128x128xbf16>, vector<64x128xf32> -> vector<64x128xf32>
    %c0_31 = arith.constant 0 : index
    %c0_32 = arith.constant 0 : index
    %28 = vector.load %arg3[%c0_31, %c0_32] : memref<64x1xf32, #tpu.memory_space<vmem>>, vector<64x1xf32>
    %29 = vector.broadcast %28 : vector<64x1xf32> to vector<64x128xf32>
    %30 = arith.mulf %27, %29 : vector<64x128xf32>
    %31 = arith.addf %22, %30 : vector<64x128xf32>
    %c0_33 = arith.constant 0 : index
    %c9 = arith.constant 9 : index
    %c0_34 = arith.constant 0 : index
    %32 = vector.load %arg1[%c0_33, %c9, %c0_34] : memref<1x82x128xbf16, #tpu.memory_space<vmem>>, vector<1x64x128xbf16>
    %33 = vector.shape_cast %32 : vector<1x64x128xbf16> to vector<64x128xbf16>
    %c1_35 = arith.constant 1 : index
    %c1_36 = arith.constant 1 : index
    %c0_37 = arith.constant 0 : index
    %c0_38 = arith.constant 0 : index
    %34 = vector.load %arg2[%c1_35, %c1_36, %c0_37, %c0_38] : memref<3x3x128x128xbf16, #tpu.memory_space<vmem>>, vector<1x1x128x128xbf16>
    %35 = vector.shape_cast %34 : vector<1x1x128x128xbf16> to vector<128x128xbf16>
    %cst_39 = arith.constant dense<0.000000e+00> : vector<64x128xf32>
    %36 = tpu.matmul %33, %35, %cst_39 {dimension_numbers = #tpu.dot_dimension_numbers<[1], [0], [0], [1], [0, 0, 1, 1], [], []>} : vector<64x128xbf16>, vector<128x128xbf16>, vector<64x128xf32> -> vector<64x128xf32>
    %37 = arith.addf %31, %36 : vector<64x128xf32>
    %c0_40 = arith.constant 0 : index
    %c10 = arith.constant 10 : index
    %c0_41 = arith.constant 0 : index
    %38 = vector.load %arg1[%c0_40, %c10, %c0_41] : memref<1x82x128xbf16, #tpu.memory_space<vmem>>, vector<1x64x128xbf16>
    %39 = vector.shape_cast %38 : vector<1x64x128xbf16> to vector<64x128xbf16>
    %c1_42 = arith.constant 1 : index
    %c2_43 = arith.constant 2 : index
    %c0_44 = arith.constant 0 : index
    %c0_45 = arith.constant 0 : index
    %40 = vector.load %arg2[%c1_42, %c2_43, %c0_44, %c0_45] : memref<3x3x128x128xbf16, #tpu.memory_space<vmem>>, vector<1x1x128x128xbf16>
    %41 = vector.shape_cast %40 : vector<1x1x128x128xbf16> to vector<128x128xbf16>
    %cst_46 = arith.constant dense<0.000000e+00> : vector<64x128xf32>
    %42 = tpu.matmul %39, %41, %cst_46 {dimension_numbers = #tpu.dot_dimension_numbers<[1], [0], [0], [1], [0, 0, 1, 1], [], []>} : vector<64x128xbf16>, vector<128x128xbf16>, vector<64x128xf32> -> vector<64x128xf32>
    %c0_47 = arith.constant 0 : index
    %c0_48 = arith.constant 0 : index
    %43 = vector.load %arg4[%c0_47, %c0_48] : memref<64x1xf32, #tpu.memory_space<vmem>>, vector<64x1xf32>
    %44 = vector.broadcast %43 : vector<64x1xf32> to vector<64x128xf32>
    %45 = arith.mulf %42, %44 : vector<64x128xf32>
    %46 = arith.addf %37, %45 : vector<64x128xf32>
    %c0_49 = arith.constant 0 : index
    %c16 = arith.constant 16 : index
    %c0_50 = arith.constant 0 : index
    %47 = vector.load %arg1[%c0_49, %c16, %c0_50] : memref<1x82x128xbf16, #tpu.memory_space<vmem>>, vector<1x64x128xbf16>
    %48 = vector.shape_cast %47 : vector<1x64x128xbf16> to vector<64x128xbf16>
    %c2_51 = arith.constant 2 : index
    %c0_52 = arith.constant 0 : index
    %c0_53 = arith.constant 0 : index
    %c0_54 = arith.constant 0 : index
    %49 = vector.load %arg2[%c2_51, %c0_52, %c0_53, %c0_54] : memref<3x3x128x128xbf16, #tpu.memory_space<vmem>>, vector<1x1x128x128xbf16>
    %50 = vector.shape_cast %49 : vector<1x1x128x128xbf16> to vector<128x128xbf16>
    %cst_55 = arith.constant dense<0.000000e+00> : vector<64x128xf32>
    %51 = tpu.matmul %48, %50, %cst_55 {dimension_numbers = #tpu.dot_dimension_numbers<[1], [0], [0], [1], [0, 0, 1, 1], [], []>} : vector<64x128xbf16>, vector<128x128xbf16>, vector<64x128xf32> -> vector<64x128xf32>
    %c0_56 = arith.constant 0 : index
    %c0_57 = arith.constant 0 : index
    %52 = vector.load %arg3[%c0_56, %c0_57] : memref<64x1xf32, #tpu.memory_space<vmem>>, vector<64x1xf32>
    %53 = vector.broadcast %52 : vector<64x1xf32> to vector<64x128xf32>
    %54 = arith.mulf %51, %53 : vector<64x128xf32>
    %55 = arith.addf %46, %54 : vector<64x128xf32>
    %c0_58 = arith.constant 0 : index
    %c17 = arith.constant 17 : index
    %c0_59 = arith.constant 0 : index
    %56 = vector.load %arg1[%c0_58, %c17, %c0_59] : memref<1x82x128xbf16, #tpu.memory_space<vmem>>, vector<1x64x128xbf16>
    %57 = vector.shape_cast %56 : vector<1x64x128xbf16> to vector<64x128xbf16>
    %c2_60 = arith.constant 2 : index
    %c1_61 = arith.constant 1 : index
    %c0_62 = arith.constant 0 : index
    %c0_63 = arith.constant 0 : index
    %58 = vector.load %arg2[%c2_60, %c1_61, %c0_62, %c0_63] : memref<3x3x128x128xbf16, #tpu.memory_space<vmem>>, vector<1x1x128x128xbf16>
    %59 = vector.shape_cast %58 : vector<1x1x128x128xbf16> to vector<128x128xbf16>
    %cst_64 = arith.constant dense<0.000000e+00> : vector<64x128xf32>
    %60 = tpu.matmul %57, %59, %cst_64 {dimension_numbers = #tpu.dot_dimension_numbers<[1], [0], [0], [1], [0, 0, 1, 1], [], []>} : vector<64x128xbf16>, vector<128x128xbf16>, vector<64x128xf32> -> vector<64x128xf32>
    %61 = arith.addf %55, %60 : vector<64x128xf32>
    %c0_65 = arith.constant 0 : index
    %c18 = arith.constant 18 : index
    %c0_66 = arith.constant 0 : index
    %62 = vector.load %arg1[%c0_65, %c18, %c0_66] : memref<1x82x128xbf16, #tpu.memory_space<vmem>>, vector<1x64x128xbf16>
    %63 = vector.shape_cast %62 : vector<1x64x128xbf16> to vector<64x128xbf16>
    %c2_67 = arith.constant 2 : index
    %c2_68 = arith.constant 2 : index
    %c0_69 = arith.constant 0 : index
    %c0_70 = arith.constant 0 : index
    %64 = vector.load %arg2[%c2_67, %c2_68, %c0_69, %c0_70] : memref<3x3x128x128xbf16, #tpu.memory_space<vmem>>, vector<1x1x128x128xbf16>
    %65 = vector.shape_cast %64 : vector<1x1x128x128xbf16> to vector<128x128xbf16>
    %cst_71 = arith.constant dense<0.000000e+00> : vector<64x128xf32>
    %66 = tpu.matmul %63, %65, %cst_71 {dimension_numbers = #tpu.dot_dimension_numbers<[1], [0], [0], [1], [0, 0, 1, 1], [], []>} : vector<64x128xbf16>, vector<128x128xbf16>, vector<64x128xf32> -> vector<64x128xf32>
    %c0_72 = arith.constant 0 : index
    %c0_73 = arith.constant 0 : index
    %67 = vector.load %arg4[%c0_72, %c0_73] : memref<64x1xf32, #tpu.memory_space<vmem>>, vector<64x1xf32>
    %68 = vector.broadcast %67 : vector<64x1xf32> to vector<64x128xf32>
    %69 = arith.mulf %66, %68 : vector<64x128xf32>
    %70 = arith.addf %61, %69 : vector<64x128xf32>
    %c0_74 = arith.constant 0 : index
    %c0_75 = arith.constant 0 : index
    %c0_76 = arith.constant 0 : index
    %71 = vector.load %arg5[%c0_74, %c0_75, %c0_76] : memref<1x64x128xf32, #tpu.memory_space<vmem>>, vector<1x64x128xf32>
    %72 = vector.shape_cast %71 : vector<1x64x128xf32> to vector<64x128xf32>
    %73 = vector.shape_cast %70 : vector<64x128xf32> to vector<1x64x128xf32>
    tpu.vector_store %arg5[%c0_74, %c0_75, %c0_76], %73 {strides = array<i32>} : memref<1x64x128xf32, #tpu.memory_space<vmem>>, vector<1x64x128xf32>,
    %cst_77 = arith.constant dense<0.000000e+00> : vector<128xf32>
    %74 = vector.multi_reduction <add>, %70, %cst_77 [0] : vector<64x128xf32> to vector<128xf32>
    %75 = vector.shape_cast %74 : vector<128xf32> to vector<1x128xf32>
    %c0_78 = arith.constant 0 : index
    %c0_79 = arith.constant 0 : index
    %c0_80 = arith.constant 0 : index
    %76 = vector.load %arg6[%c0_78, %c0_79, %c0_80] : memref<1x2x128xf32, #tpu.memory_space<vmem>>, vector<1x1x128xf32>
    %77 = vector.shape_cast %76 : vector<1x1x128xf32> to vector<1x128xf32>
    %78 = vector.shape_cast %75 : vector<1x128xf32> to vector<1x1x128xf32>
    tpu.vector_store %arg6[%c0_78, %c0_79, %c0_80], %78 {strides = array<i32>} : memref<1x2x128xf32, #tpu.memory_space<vmem>>, vector<1x1x128xf32>,
    %79 = arith.mulf %70, %70 : vector<64x128xf32>
    %cst_81 = arith.constant dense<0.000000e+00> : vector<128xf32>
    %80 = vector.multi_reduction <add>, %79, %cst_81 [0] : vector<64x128xf32> to vector<128xf32>
    %81 = vector.shape_cast %80 : vector<128xf32> to vector<1x128xf32>
    %c0_82 = arith.constant 0 : index
    %c1_83 = arith.constant 1 : index
    %c0_84 = arith.constant 0 : index
    %82 = vector.load %arg6[%c0_82, %c1_83, %c0_84] : memref<1x2x128xf32, #tpu.memory_space<vmem>>, vector<1x1x128xf32>
    %83 = vector.shape_cast %82 : vector<1x1x128xf32> to vector<1x128xf32>
    %84 = vector.shape_cast %81 : vector<1x128xf32> to vector<1x1x128xf32>
    tpu.vector_store %arg6[%c0_82, %c1_83, %c0_84], %84 {strides = array<i32>} : memref<1x2x128xf32, #tpu.memory_space<vmem>>, vector<1x1x128xf32>,
    return
  }
  func.func @transform_0(%arg0: i32) -> (i32, i32, i32) {
    %c0_i32 = arith.constant 0 : i32
    %c0_i32_0 = arith.constant 0 : i32
    %c0_i32_1 = arith.constant 0 : i32
    return %arg0, %c0_i32, %c0_i32_0 : i32, i32, i32
  }
  func.func @transform_1(%arg0: i32) -> (i32, i32, i32, i32) {
    %c0_i32 = arith.constant 0 : i32
    %c0_i32_0 = arith.constant 0 : i32
    %c0_i32_1 = arith.constant 0 : i32
    %c0_i32_2 = arith.constant 0 : i32
    %c0_i32_3 = arith.constant 0 : i32
    return %c0_i32, %c0_i32_0, %c0_i32_1, %c0_i32_2 : i32, i32, i32, i32
  }
  func.func @transform_2(%arg0: i32) -> (i32, i32) {
    %c0_i32 = arith.constant 0 : i32
    %c0_i32_0 = arith.constant 0 : i32
    %c0_i32_1 = arith.constant 0 : i32
    return %c0_i32, %c0_i32_0 : i32, i32
  }
  func.func @transform_3(%arg0: i32) -> (i32, i32) {
    %c0_i32 = arith.constant 0 : i32
    %c0_i32_0 = arith.constant 0 : i32
    %c0_i32_1 = arith.constant 0 : i32
    return %c0_i32, %c0_i32_0 : i32, i32
  }
  func.func @transform_4(%arg0: i32) -> (i32, i32, i32) {
    %c0_i32 = arith.constant 0 : i32
    %c0_i32_0 = arith.constant 0 : i32
    %c0_i32_1 = arith.constant 0 : i32
    return %arg0, %c0_i32, %c0_i32_0 : i32, i32, i32
  }
  func.func @transform_5(%arg0: i32) -> (i32, i32, i32) {
    %c0_i32 = arith.constant 0 : i32
    %c0_i32_0 = arith.constant 0 : i32
    %c0_i32_1 = arith.constant 0 : i32
    return %arg0, %c0_i32, %c0_i32_0 : i32, i32, i32
  }
}

module attributes {stable_mosaic.version = 11 : i64} {
  func.func @scaleshift_kernel(%arg0: i32, %arg1: memref<64x128xf32, #tpu.memory_space<vmem>>, %arg2: memref<2x128xf32, #tpu.memory_space<vmem>>, %arg3: memref<64x128xf32, #tpu.memory_space<vmem>>) attributes {dimension_semantics = [#tpu.dimension_semantics<parallel>], iteration_bounds = array<i64: 2>, scalar_prefetch = 0 : i64, scratch_operands = 0 : i64, tpu.core_type = #tpu.core_type<tc>, window_params = [{transform_indices = @transform_0, window_bounds = array<i64: 64, 128>}, {pipeline_mode = #tpu.pipeline_mode<synchronous>, transform_indices = @transform_1, window_bounds = array<i64: 2, 128>}, {transform_indices = @transform_2, window_bounds = array<i64: 64, 128>}]} {
    %c0 = arith.constant 0 : index
    %c0_0 = arith.constant 0 : index
    %0 = vector.load %arg1[%c0, %c0_0] : memref<64x128xf32, #tpu.memory_space<vmem>>, vector<64x128xf32>
    %c0_1 = arith.constant 0 : index
    %c0_2 = arith.constant 0 : index
    %1 = vector.load %arg2[%c0_1, %c0_2] : memref<2x128xf32, #tpu.memory_space<vmem>>, vector<1x128xf32>
    %2 = vector.broadcast %1 : vector<1x128xf32> to vector<64x128xf32>
    %3 = arith.mulf %0, %2 : vector<64x128xf32>
    %c1 = arith.constant 1 : index
    %c0_3 = arith.constant 0 : index
    %4 = vector.load %arg2[%c1, %c0_3] : memref<2x128xf32, #tpu.memory_space<vmem>>, vector<1x128xf32>
    %5 = vector.broadcast %4 : vector<1x128xf32> to vector<64x128xf32>
    %6 = arith.addf %3, %5 : vector<64x128xf32>
    %c0_4 = arith.constant 0 : index
    %c0_5 = arith.constant 0 : index
    %7 = vector.load %arg3[%c0_4, %c0_5] : memref<64x128xf32, #tpu.memory_space<vmem>>, vector<64x128xf32>
    tpu.vector_store %arg3[%c0_4, %c0_5], %6 {strides = array<i32>} : memref<64x128xf32, #tpu.memory_space<vmem>>, vector<64x128xf32>,
    return
  }
  func.func @transform_0(%arg0: i32) -> (i32, i32) {
    %c0_i32 = arith.constant 0 : i32
    %c0_i32_0 = arith.constant 0 : i32
    return %arg0, %c0_i32 : i32, i32
  }
  func.func @transform_1(%arg0: i32) -> (i32, i32) {
    %c0_i32 = arith.constant 0 : i32
    %c0_i32_0 = arith.constant 0 : i32
    %c0_i32_1 = arith.constant 0 : i32
    return %c0_i32, %c0_i32_0 : i32, i32
  }
  func.func @transform_2(%arg0: i32) -> (i32, i32) {
    %c0_i32 = arith.constant 0 : i32
    %c0_i32_0 = arith.constant 0 : i32
    return %arg0, %c0_i32 : i32, i32
  }
}

module attributes {stable_mosaic.version = 11 : i64} {
  func.func @conv3x3_stats_kernel(%arg0: i32, %arg1: memref<1x290x128xbf16, #tpu.memory_space<vmem>>, %arg2: memref<3x3x128x128xbf16, #tpu.memory_space<vmem>>, %arg3: memref<256x1xf32, #tpu.memory_space<vmem>>, %arg4: memref<256x1xf32, #tpu.memory_space<vmem>>, %arg5: memref<1x256x128xf32, #tpu.memory_space<vmem>>, %arg6: memref<1x2x128xf32, #tpu.memory_space<vmem>>) attributes {dimension_semantics = [#tpu.dimension_semantics<parallel>], iteration_bounds = array<i64: 2>, scalar_prefetch = 0 : i64, scratch_operands = 0 : i64, tpu.core_type = #tpu.core_type<tc>, window_params = [{transform_indices = @transform_0, window_bounds = array<i64: 1, 290, 128>}, {pipeline_mode = #tpu.pipeline_mode<synchronous>, transform_indices = @transform_1, window_bounds = array<i64: 3, 3, 128, 128>}, {pipeline_mode = #tpu.pipeline_mode<synchronous>, transform_indices = @transform_2, window_bounds = array<i64: 256, 1>}, {pipeline_mode = #tpu.pipeline_mode<synchronous>, transform_indices = @transform_3, window_bounds = array<i64: 256, 1>}, {transform_indices = @transform_4, window_bounds = array<i64: 1, 256, 128>}, {transform_indices = @transform_5, window_bounds = array<i64: 1, 2, 128>}]} {
    %c0 = arith.constant 0 : index
    %c0_0 = arith.constant 0 : index
    %c0_1 = arith.constant 0 : index
    %0 = vector.load %arg1[%c0, %c0_0, %c0_1] : memref<1x290x128xbf16, #tpu.memory_space<vmem>>, vector<1x256x128xbf16>
    %1 = vector.shape_cast %0 : vector<1x256x128xbf16> to vector<256x128xbf16>
    %c0_2 = arith.constant 0 : index
    %c0_3 = arith.constant 0 : index
    %c0_4 = arith.constant 0 : index
    %c0_5 = arith.constant 0 : index
    %2 = vector.load %arg2[%c0_2, %c0_3, %c0_4, %c0_5] : memref<3x3x128x128xbf16, #tpu.memory_space<vmem>>, vector<1x1x128x128xbf16>
    %3 = vector.shape_cast %2 : vector<1x1x128x128xbf16> to vector<128x128xbf16>
    %cst = arith.constant dense<0.000000e+00> : vector<256x128xf32>
    %4 = tpu.matmul %1, %3, %cst {dimension_numbers = #tpu.dot_dimension_numbers<[1], [0], [0], [1], [0, 0, 1, 1], [], []>} : vector<256x128xbf16>, vector<128x128xbf16>, vector<256x128xf32> -> vector<256x128xf32>
    %c0_6 = arith.constant 0 : index
    %c0_7 = arith.constant 0 : index
    %5 = vector.load %arg3[%c0_6, %c0_7] : memref<256x1xf32, #tpu.memory_space<vmem>>, vector<256x1xf32>
    %6 = vector.broadcast %5 : vector<256x1xf32> to vector<256x128xf32>
    %7 = arith.mulf %4, %6 : vector<256x128xf32>
    %c0_8 = arith.constant 0 : index
    %c1 = arith.constant 1 : index
    %c0_9 = arith.constant 0 : index
    %8 = vector.load %arg1[%c0_8, %c1, %c0_9] : memref<1x290x128xbf16, #tpu.memory_space<vmem>>, vector<1x256x128xbf16>
    %9 = vector.shape_cast %8 : vector<1x256x128xbf16> to vector<256x128xbf16>
    %c0_10 = arith.constant 0 : index
    %c1_11 = arith.constant 1 : index
    %c0_12 = arith.constant 0 : index
    %c0_13 = arith.constant 0 : index
    %10 = vector.load %arg2[%c0_10, %c1_11, %c0_12, %c0_13] : memref<3x3x128x128xbf16, #tpu.memory_space<vmem>>, vector<1x1x128x128xbf16>
    %11 = vector.shape_cast %10 : vector<1x1x128x128xbf16> to vector<128x128xbf16>
    %cst_14 = arith.constant dense<0.000000e+00> : vector<256x128xf32>
    %12 = tpu.matmul %9, %11, %cst_14 {dimension_numbers = #tpu.dot_dimension_numbers<[1], [0], [0], [1], [0, 0, 1, 1], [], []>} : vector<256x128xbf16>, vector<128x128xbf16>, vector<256x128xf32> -> vector<256x128xf32>
    %13 = arith.addf %7, %12 : vector<256x128xf32>
    %c0_15 = arith.constant 0 : index
    %c2 = arith.constant 2 : index
    %c0_16 = arith.constant 0 : index
    %14 = vector.load %arg1[%c0_15, %c2, %c0_16] : memref<1x290x128xbf16, #tpu.memory_space<vmem>>, vector<1x256x128xbf16>
    %15 = vector.shape_cast %14 : vector<1x256x128xbf16> to vector<256x128xbf16>
    %c0_17 = arith.constant 0 : index
    %c2_18 = arith.constant 2 : index
    %c0_19 = arith.constant 0 : index
    %c0_20 = arith.constant 0 : index
    %16 = vector.load %arg2[%c0_17, %c2_18, %c0_19, %c0_20] : memref<3x3x128x128xbf16, #tpu.memory_space<vmem>>, vector<1x1x128x128xbf16>
    %17 = vector.shape_cast %16 : vector<1x1x128x128xbf16> to vector<128x128xbf16>
    %cst_21 = arith.constant dense<0.000000e+00> : vector<256x128xf32>
    %18 = tpu.matmul %15, %17, %cst_21 {dimension_numbers = #tpu.dot_dimension_numbers<[1], [0], [0], [1], [0, 0, 1, 1], [], []>} : vector<256x128xbf16>, vector<128x128xbf16>, vector<256x128xf32> -> vector<256x128xf32>
    %c0_22 = arith.constant 0 : index
    %c0_23 = arith.constant 0 : index
    %19 = vector.load %arg4[%c0_22, %c0_23] : memref<256x1xf32, #tpu.memory_space<vmem>>, vector<256x1xf32>
    %20 = vector.broadcast %19 : vector<256x1xf32> to vector<256x128xf32>
    %21 = arith.mulf %18, %20 : vector<256x128xf32>
    %22 = arith.addf %13, %21 : vector<256x128xf32>
    %c0_24 = arith.constant 0 : index
    %c16 = arith.constant 16 : index
    %c0_25 = arith.constant 0 : index
    %23 = vector.load %arg1[%c0_24, %c16, %c0_25] : memref<1x290x128xbf16, #tpu.memory_space<vmem>>, vector<1x256x128xbf16>
    %24 = vector.shape_cast %23 : vector<1x256x128xbf16> to vector<256x128xbf16>
    %c1_26 = arith.constant 1 : index
    %c0_27 = arith.constant 0 : index
    %c0_28 = arith.constant 0 : index
    %c0_29 = arith.constant 0 : index
    %25 = vector.load %arg2[%c1_26, %c0_27, %c0_28, %c0_29] : memref<3x3x128x128xbf16, #tpu.memory_space<vmem>>, vector<1x1x128x128xbf16>
    %26 = vector.shape_cast %25 : vector<1x1x128x128xbf16> to vector<128x128xbf16>
    %cst_30 = arith.constant dense<0.000000e+00> : vector<256x128xf32>
    %27 = tpu.matmul %24, %26, %cst_30 {dimension_numbers = #tpu.dot_dimension_numbers<[1], [0], [0], [1], [0, 0, 1, 1], [], []>} : vector<256x128xbf16>, vector<128x128xbf16>, vector<256x128xf32> -> vector<256x128xf32>
    %c0_31 = arith.constant 0 : index
    %c0_32 = arith.constant 0 : index
    %28 = vector.load %arg3[%c0_31, %c0_32] : memref<256x1xf32, #tpu.memory_space<vmem>>, vector<256x1xf32>
    %29 = vector.broadcast %28 : vector<256x1xf32> to vector<256x128xf32>
    %30 = arith.mulf %27, %29 : vector<256x128xf32>
    %31 = arith.addf %22, %30 : vector<256x128xf32>
    %c0_33 = arith.constant 0 : index
    %c17 = arith.constant 17 : index
    %c0_34 = arith.constant 0 : index
    %32 = vector.load %arg1[%c0_33, %c17, %c0_34] : memref<1x290x128xbf16, #tpu.memory_space<vmem>>, vector<1x256x128xbf16>
    %33 = vector.shape_cast %32 : vector<1x256x128xbf16> to vector<256x128xbf16>
    %c1_35 = arith.constant 1 : index
    %c1_36 = arith.constant 1 : index
    %c0_37 = arith.constant 0 : index
    %c0_38 = arith.constant 0 : index
    %34 = vector.load %arg2[%c1_35, %c1_36, %c0_37, %c0_38] : memref<3x3x128x128xbf16, #tpu.memory_space<vmem>>, vector<1x1x128x128xbf16>
    %35 = vector.shape_cast %34 : vector<1x1x128x128xbf16> to vector<128x128xbf16>
    %cst_39 = arith.constant dense<0.000000e+00> : vector<256x128xf32>
    %36 = tpu.matmul %33, %35, %cst_39 {dimension_numbers = #tpu.dot_dimension_numbers<[1], [0], [0], [1], [0, 0, 1, 1], [], []>} : vector<256x128xbf16>, vector<128x128xbf16>, vector<256x128xf32> -> vector<256x128xf32>
    %37 = arith.addf %31, %36 : vector<256x128xf32>
    %c0_40 = arith.constant 0 : index
    %c18 = arith.constant 18 : index
    %c0_41 = arith.constant 0 : index
    %38 = vector.load %arg1[%c0_40, %c18, %c0_41] : memref<1x290x128xbf16, #tpu.memory_space<vmem>>, vector<1x256x128xbf16>
    %39 = vector.shape_cast %38 : vector<1x256x128xbf16> to vector<256x128xbf16>
    %c1_42 = arith.constant 1 : index
    %c2_43 = arith.constant 2 : index
    %c0_44 = arith.constant 0 : index
    %c0_45 = arith.constant 0 : index
    %40 = vector.load %arg2[%c1_42, %c2_43, %c0_44, %c0_45] : memref<3x3x128x128xbf16, #tpu.memory_space<vmem>>, vector<1x1x128x128xbf16>
    %41 = vector.shape_cast %40 : vector<1x1x128x128xbf16> to vector<128x128xbf16>
    %cst_46 = arith.constant dense<0.000000e+00> : vector<256x128xf32>
    %42 = tpu.matmul %39, %41, %cst_46 {dimension_numbers = #tpu.dot_dimension_numbers<[1], [0], [0], [1], [0, 0, 1, 1], [], []>} : vector<256x128xbf16>, vector<128x128xbf16>, vector<256x128xf32> -> vector<256x128xf32>
    %c0_47 = arith.constant 0 : index
    %c0_48 = arith.constant 0 : index
    %43 = vector.load %arg4[%c0_47, %c0_48] : memref<256x1xf32, #tpu.memory_space<vmem>>, vector<256x1xf32>
    %44 = vector.broadcast %43 : vector<256x1xf32> to vector<256x128xf32>
    %45 = arith.mulf %42, %44 : vector<256x128xf32>
    %46 = arith.addf %37, %45 : vector<256x128xf32>
    %c0_49 = arith.constant 0 : index
    %c32 = arith.constant 32 : index
    %c0_50 = arith.constant 0 : index
    %47 = vector.load %arg1[%c0_49, %c32, %c0_50] : memref<1x290x128xbf16, #tpu.memory_space<vmem>>, vector<1x256x128xbf16>
    %48 = vector.shape_cast %47 : vector<1x256x128xbf16> to vector<256x128xbf16>
    %c2_51 = arith.constant 2 : index
    %c0_52 = arith.constant 0 : index
    %c0_53 = arith.constant 0 : index
    %c0_54 = arith.constant 0 : index
    %49 = vector.load %arg2[%c2_51, %c0_52, %c0_53, %c0_54] : memref<3x3x128x128xbf16, #tpu.memory_space<vmem>>, vector<1x1x128x128xbf16>
    %50 = vector.shape_cast %49 : vector<1x1x128x128xbf16> to vector<128x128xbf16>
    %cst_55 = arith.constant dense<0.000000e+00> : vector<256x128xf32>
    %51 = tpu.matmul %48, %50, %cst_55 {dimension_numbers = #tpu.dot_dimension_numbers<[1], [0], [0], [1], [0, 0, 1, 1], [], []>} : vector<256x128xbf16>, vector<128x128xbf16>, vector<256x128xf32> -> vector<256x128xf32>
    %c0_56 = arith.constant 0 : index
    %c0_57 = arith.constant 0 : index
    %52 = vector.load %arg3[%c0_56, %c0_57] : memref<256x1xf32, #tpu.memory_space<vmem>>, vector<256x1xf32>
    %53 = vector.broadcast %52 : vector<256x1xf32> to vector<256x128xf32>
    %54 = arith.mulf %51, %53 : vector<256x128xf32>
    %55 = arith.addf %46, %54 : vector<256x128xf32>
    %c0_58 = arith.constant 0 : index
    %c33 = arith.constant 33 : index
    %c0_59 = arith.constant 0 : index
    %56 = vector.load %arg1[%c0_58, %c33, %c0_59] : memref<1x290x128xbf16, #tpu.memory_space<vmem>>, vector<1x256x128xbf16>
    %57 = vector.shape_cast %56 : vector<1x256x128xbf16> to vector<256x128xbf16>
    %c2_60 = arith.constant 2 : index
    %c1_61 = arith.constant 1 : index
    %c0_62 = arith.constant 0 : index
    %c0_63 = arith.constant 0 : index
    %58 = vector.load %arg2[%c2_60, %c1_61, %c0_62, %c0_63] : memref<3x3x128x128xbf16, #tpu.memory_space<vmem>>, vector<1x1x128x128xbf16>
    %59 = vector.shape_cast %58 : vector<1x1x128x128xbf16> to vector<128x128xbf16>
    %cst_64 = arith.constant dense<0.000000e+00> : vector<256x128xf32>
    %60 = tpu.matmul %57, %59, %cst_64 {dimension_numbers = #tpu.dot_dimension_numbers<[1], [0], [0], [1], [0, 0, 1, 1], [], []>} : vector<256x128xbf16>, vector<128x128xbf16>, vector<256x128xf32> -> vector<256x128xf32>
    %61 = arith.addf %55, %60 : vector<256x128xf32>
    %c0_65 = arith.constant 0 : index
    %c34 = arith.constant 34 : index
    %c0_66 = arith.constant 0 : index
    %62 = vector.load %arg1[%c0_65, %c34, %c0_66] : memref<1x290x128xbf16, #tpu.memory_space<vmem>>, vector<1x256x128xbf16>
    %63 = vector.shape_cast %62 : vector<1x256x128xbf16> to vector<256x128xbf16>
    %c2_67 = arith.constant 2 : index
    %c2_68 = arith.constant 2 : index
    %c0_69 = arith.constant 0 : index
    %c0_70 = arith.constant 0 : index
    %64 = vector.load %arg2[%c2_67, %c2_68, %c0_69, %c0_70] : memref<3x3x128x128xbf16, #tpu.memory_space<vmem>>, vector<1x1x128x128xbf16>
    %65 = vector.shape_cast %64 : vector<1x1x128x128xbf16> to vector<128x128xbf16>
    %cst_71 = arith.constant dense<0.000000e+00> : vector<256x128xf32>
    %66 = tpu.matmul %63, %65, %cst_71 {dimension_numbers = #tpu.dot_dimension_numbers<[1], [0], [0], [1], [0, 0, 1, 1], [], []>} : vector<256x128xbf16>, vector<128x128xbf16>, vector<256x128xf32> -> vector<256x128xf32>
    %c0_72 = arith.constant 0 : index
    %c0_73 = arith.constant 0 : index
    %67 = vector.load %arg4[%c0_72, %c0_73] : memref<256x1xf32, #tpu.memory_space<vmem>>, vector<256x1xf32>
    %68 = vector.broadcast %67 : vector<256x1xf32> to vector<256x128xf32>
    %69 = arith.mulf %66, %68 : vector<256x128xf32>
    %70 = arith.addf %61, %69 : vector<256x128xf32>
    %c0_74 = arith.constant 0 : index
    %c0_75 = arith.constant 0 : index
    %c0_76 = arith.constant 0 : index
    %71 = vector.load %arg5[%c0_74, %c0_75, %c0_76] : memref<1x256x128xf32, #tpu.memory_space<vmem>>, vector<1x256x128xf32>
    %72 = vector.shape_cast %71 : vector<1x256x128xf32> to vector<256x128xf32>
    %73 = vector.shape_cast %70 : vector<256x128xf32> to vector<1x256x128xf32>
    tpu.vector_store %arg5[%c0_74, %c0_75, %c0_76], %73 {strides = array<i32>} : memref<1x256x128xf32, #tpu.memory_space<vmem>>, vector<1x256x128xf32>,
    %cst_77 = arith.constant dense<0.000000e+00> : vector<128xf32>
    %74 = vector.multi_reduction <add>, %70, %cst_77 [0] : vector<256x128xf32> to vector<128xf32>
    %75 = vector.shape_cast %74 : vector<128xf32> to vector<1x128xf32>
    %c0_78 = arith.constant 0 : index
    %c0_79 = arith.constant 0 : index
    %c0_80 = arith.constant 0 : index
    %76 = vector.load %arg6[%c0_78, %c0_79, %c0_80] : memref<1x2x128xf32, #tpu.memory_space<vmem>>, vector<1x1x128xf32>
    %77 = vector.shape_cast %76 : vector<1x1x128xf32> to vector<1x128xf32>
    %78 = vector.shape_cast %75 : vector<1x128xf32> to vector<1x1x128xf32>
    tpu.vector_store %arg6[%c0_78, %c0_79, %c0_80], %78 {strides = array<i32>} : memref<1x2x128xf32, #tpu.memory_space<vmem>>, vector<1x1x128xf32>,
    %79 = arith.mulf %70, %70 : vector<256x128xf32>
    %cst_81 = arith.constant dense<0.000000e+00> : vector<128xf32>
    %80 = vector.multi_reduction <add>, %79, %cst_81 [0] : vector<256x128xf32> to vector<128xf32>
    %81 = vector.shape_cast %80 : vector<128xf32> to vector<1x128xf32>
    %c0_82 = arith.constant 0 : index
    %c1_83 = arith.constant 1 : index
    %c0_84 = arith.constant 0 : index
    %82 = vector.load %arg6[%c0_82, %c1_83, %c0_84] : memref<1x2x128xf32, #tpu.memory_space<vmem>>, vector<1x1x128xf32>
    %83 = vector.shape_cast %82 : vector<1x1x128xf32> to vector<1x128xf32>
    %84 = vector.shape_cast %81 : vector<1x128xf32> to vector<1x1x128xf32>
    tpu.vector_store %arg6[%c0_82, %c1_83, %c0_84], %84 {strides = array<i32>} : memref<1x2x128xf32, #tpu.memory_space<vmem>>, vector<1x1x128xf32>,
    return
  }
  func.func @transform_0(%arg0: i32) -> (i32, i32, i32) {
    %c0_i32 = arith.constant 0 : i32
    %c0_i32_0 = arith.constant 0 : i32
    %c0_i32_1 = arith.constant 0 : i32
    return %arg0, %c0_i32, %c0_i32_0 : i32, i32, i32
  }
  func.func @transform_1(%arg0: i32) -> (i32, i32, i32, i32) {
    %c0_i32 = arith.constant 0 : i32
    %c0_i32_0 = arith.constant 0 : i32
    %c0_i32_1 = arith.constant 0 : i32
    %c0_i32_2 = arith.constant 0 : i32
    %c0_i32_3 = arith.constant 0 : i32
    return %c0_i32, %c0_i32_0, %c0_i32_1, %c0_i32_2 : i32, i32, i32, i32
  }
  func.func @transform_2(%arg0: i32) -> (i32, i32) {
    %c0_i32 = arith.constant 0 : i32
    %c0_i32_0 = arith.constant 0 : i32
    %c0_i32_1 = arith.constant 0 : i32
    return %c0_i32, %c0_i32_0 : i32, i32
  }
  func.func @transform_3(%arg0: i32) -> (i32, i32) {
    %c0_i32 = arith.constant 0 : i32
    %c0_i32_0 = arith.constant 0 : i32
    %c0_i32_1 = arith.constant 0 : i32
    return %c0_i32, %c0_i32_0 : i32, i32
  }
  func.func @transform_4(%arg0: i32) -> (i32, i32, i32) {
    %c0_i32 = arith.constant 0 : i32
    %c0_i32_0 = arith.constant 0 : i32
    %c0_i32_1 = arith.constant 0 : i32
    return %arg0, %c0_i32, %c0_i32_0 : i32, i32, i32
  }
  func.func @transform_5(%arg0: i32) -> (i32, i32, i32) {
    %c0_i32 = arith.constant 0 : i32
    %c0_i32_0 = arith.constant 0 : i32
    %c0_i32_1 = arith.constant 0 : i32
    return %arg0, %c0_i32, %c0_i32_0 : i32, i32, i32
  }
}

module attributes {stable_mosaic.version = 11 : i64} {
  func.func @conv1x1_bn_att_fused_kernel(%arg0: i32, %arg1: i32, %arg2: memref<256x128xbf16, #tpu.memory_space<vmem>>, %arg3: memref<128x128xbf16, #tpu.memory_space<vmem>>, %arg4: memref<1x128xf32, #tpu.memory_space<vmem>>, %arg5: memref<1x128xf32, #tpu.memory_space<vmem>>, %arg6: memref<256x128xf32, #tpu.memory_space<vmem>>, %arg7: memref<128x2xbf16, #tpu.memory_space<vmem>>, %arg8: memref<128x2xbf16, #tpu.memory_space<vmem>>, %arg9: memref<1x2xf32, #tpu.memory_space<vmem>>, %arg10: memref<256x128xf32, #tpu.memory_space<vmem>>, %arg11: memref<512x128xf32, #tpu.memory_space<vmem>>, %arg12: memref<2x128xf32, #tpu.memory_space<vmem>>, %arg13: memref<2x128xf32, #tpu.memory_space<vmem>>) attributes {dimension_semantics = [#tpu.dimension_semantics<arbitrary>, #tpu.dimension_semantics<arbitrary>], iteration_bounds = array<i64: 2, 2>, scalar_prefetch = 0 : i64, scratch_operands = 3 : i64, tpu.core_type = #tpu.core_type<tc>, window_params = [{transform_indices = @transform_0, window_bounds = array<i64: 256, 128>}, {pipeline_mode = #tpu.pipeline_mode<synchronous>, transform_indices = @transform_1, window_bounds = array<i64: 128, 128>}, {pipeline_mode = #tpu.pipeline_mode<synchronous>, transform_indices = @transform_2, window_bounds = array<i64: 1, 128>}, {pipeline_mode = #tpu.pipeline_mode<synchronous>, transform_indices = @transform_3, window_bounds = array<i64: 1, 128>}, {transform_indices = @transform_4, window_bounds = array<i64: 256, 128>}, {pipeline_mode = #tpu.pipeline_mode<synchronous>, transform_indices = @transform_5, window_bounds = array<i64: 128, 2>}, {pipeline_mode = #tpu.pipeline_mode<synchronous>, transform_indices = @transform_6, window_bounds = array<i64: 128, 2>}, {pipeline_mode = #tpu.pipeline_mode<synchronous>, transform_indices = @transform_7, window_bounds = array<i64: 1, 2>}, {transform_indices = @transform_8, window_bounds = array<i64: 256, 128>}]} {
    %c256_i32 = arith.constant 256 : i32
    %0 = arith.muli %arg1, %c256_i32 : i32
    %1 = tpu.assume_multiple %0, 256 : i32
    %c0_i32 = arith.constant 0 : i32
    %2 = arith.cmpi eq, %arg0, %c0_i32 : i32
    %3 = arith.extui %2 : i1 to i32
    %c0_i32_0 = arith.constant 0 : i32
    %4 = arith.cmpi ne, %3, %c0_i32_0 : i32
    scf.if %4 {
      %c0_i32_2 = arith.constant 0 : i32
      %8 = arith.cmpi eq, %arg1, %c0_i32_2 : i32
      %9 = arith.extui %8 : i1 to i32
      %c0_i32_3 = arith.constant 0 : i32
      %10 = arith.cmpi ne, %9, %c0_i32_3 : i32
      scf.if %10 {
        %cst_17 = arith.constant 0.000000e+00 : f32
        %27 = vector.broadcast %cst_17 : f32 to vector<2x128xf32>
        %c0_18 = arith.constant 0 : index
        %c0_19 = arith.constant 0 : index
        %28 = vector.load %arg12[%c0_18, %c0_19] : memref<2x128xf32, #tpu.memory_space<vmem>>, vector<2x128xf32>
        tpu.vector_store %arg12[%c0_18, %c0_19], %27 {strides = array<i32>} : memref<2x128xf32, #tpu.memory_space<vmem>>, vector<2x128xf32>,
      } else {
      }
      %c0 = arith.constant 0 : index
      %c0_4 = arith.constant 0 : index
      %11 = vector.load %arg2[%c0, %c0_4] : memref<256x128xbf16, #tpu.memory_space<vmem>>, vector<256x128xbf16>
      %c0_5 = arith.constant 0 : index
      %c0_6 = arith.constant 0 : index
      %12 = vector.load %arg3[%c0_5, %c0_6] : memref<128x128xbf16, #tpu.memory_space<vmem>>, vector<128x128xbf16>
      %cst = arith.constant dense<0.000000e+00> : vector<256x128xf32>
      %13 = tpu.matmul %11, %12, %cst {dimension_numbers = #tpu.dot_dimension_numbers<[1], [0], [0], [1], [0, 0, 1, 1], [], []>} : vector<256x128xbf16>, vector<128x128xbf16>, vector<256x128xf32> -> vector<256x128xf32>
      %14 = arith.index_cast %1 : i32 to index
      %c0_7 = arith.constant 0 : index
      %15 = vector.load %arg11[%14, %c0_7] : memref<512x128xf32, #tpu.memory_space<vmem>>, vector<256x128xf32>
      tpu.vector_store %arg11[%14, %c0_7], %13 {strides = array<i32>} : memref<512x128xf32, #tpu.memory_space<vmem>>, vector<256x128xf32>,
      %c0_8 = arith.constant 0 : index
      %c0_9 = arith.constant 0 : index
      %16 = vector.load %arg12[%c0_8, %c0_9] : memref<2x128xf32, #tpu.memory_space<vmem>>, vector<1x128xf32>
      %cst_10 = arith.constant dense<0.000000e+00> : vector<128xf32>
      %17 = vector.multi_reduction <add>, %13, %cst_10 [0] : vector<256x128xf32> to vector<128xf32>
      %18 = vector.shape_cast %17 : vector<128xf32> to vector<1x128xf32>
      %19 = arith.addf %16, %18 : vector<1x128xf32>
      %c0_11 = arith.constant 0 : index
      %c0_12 = arith.constant 0 : index
      %20 = vector.load %arg12[%c0_11, %c0_12] : memref<2x128xf32, #tpu.memory_space<vmem>>, vector<1x128xf32>
      tpu.vector_store %arg12[%c0_11, %c0_12], %19 {strides = array<i32>} : memref<2x128xf32, #tpu.memory_space<vmem>>, vector<1x128xf32>,
      %c1 = arith.constant 1 : index
      %c0_13 = arith.constant 0 : index
      %21 = vector.load %arg12[%c1, %c0_13] : memref<2x128xf32, #tpu.memory_space<vmem>>, vector<1x128xf32>
      %22 = arith.mulf %13, %13 : vector<256x128xf32>
      %cst_14 = arith.constant dense<0.000000e+00> : vector<128xf32>
      %23 = vector.multi_reduction <add>, %22, %cst_14 [0] : vector<256x128xf32> to vector<128xf32>
      %24 = vector.shape_cast %23 : vector<128xf32> to vector<1x128xf32>
      %25 = arith.addf %21, %24 : vector<1x128xf32>
      %c1_15 = arith.constant 1 : index
      %c0_16 = arith.constant 0 : index
      %26 = vector.load %arg12[%c1_15, %c0_16] : memref<2x128xf32, #tpu.memory_space<vmem>>, vector<1x128xf32>
      tpu.vector_store %arg12[%c1_15, %c0_16], %25 {strides = array<i32>} : memref<2x128xf32, #tpu.memory_space<vmem>>, vector<1x128xf32>,
    } else {
    }
    %c1_i32 = arith.constant 1 : i32
    %5 = arith.cmpi eq, %arg0, %c1_i32 : i32
    %6 = arith.extui %5 : i1 to i32
    %c0_i32_1 = arith.constant 0 : i32
    %7 = arith.cmpi ne, %6, %c0_i32_1 : i32
    scf.if %7 {
      %c0_i32_2 = arith.constant 0 : i32
      %8 = arith.cmpi eq, %arg1, %c0_i32_2 : i32
      %9 = arith.extui %8 : i1 to i32
      %c0_i32_3 = arith.constant 0 : i32
      %10 = arith.cmpi ne, %9, %c0_i32_3 : i32
      scf.if %10 {
        %c0_19 = arith.constant 0 : index
        %c0_20 = arith.constant 0 : index
        %43 = vector.load %arg12[%c0_19, %c0_20] : memref<2x128xf32, #tpu.memory_space<vmem>>, vector<1x128xf32>
        %cst_21 = arith.constant 0.001953125 : f32
        %44 = vector.broadcast %cst_21 : f32 to vector<1x128xf32>
        %45 = arith.mulf %43, %44 : vector<1x128xf32>
        %c1_22 = arith.constant 1 : index
        %c0_23 = arith.constant 0 : index
        %46 = vector.load %arg12[%c1_22, %c0_23] : memref<2x128xf32, #tpu.memory_space<vmem>>, vector<1x128xf32>
        %cst_24 = arith.constant 0.001953125 : f32
        %47 = vector.broadcast %cst_24 : f32 to vector<1x128xf32>
        %48 = arith.mulf %46, %47 : vector<1x128xf32>
        %49 = arith.mulf %45, %45 : vector<1x128xf32>
        %50 = arith.subf %48, %49 : vector<1x128xf32>
        %cst_25 = arith.constant 0.000000e+00 : f32
        %51 = vector.broadcast %cst_25 : f32 to vector<1x128xf32>
        %52 = arith.maximumf %50, %51 : vector<1x128xf32>
        %cst_26 = arith.constant 9.99999974E-6 : f32
        %53 = vector.broadcast %cst_26 : f32 to vector<1x128xf32>
        %54 = arith.addf %52, %53 : vector<1x128xf32>
        %55 = math.rsqrt %54 : vector<1x128xf32>
        %c0_27 = arith.constant 0 : index
        %c0_28 = arith.constant 0 : index
        %56 = vector.load %arg4[%c0_27, %c0_28] : memref<1x128xf32, #tpu.memory_space<vmem>>, vector<1x128xf32>
        %57 = arith.mulf %55, %56 : vector<1x128xf32>
        %c0_29 = arith.constant 0 : index
        %c0_30 = arith.constant 0 : index
        %58 = vector.load %arg13[%c0_29, %c0_30] : memref<2x128xf32, #tpu.memory_space<vmem>>, vector<1x128xf32>
        tpu.vector_store %arg13[%c0_29, %c0_30], %57 {strides = array<i32>} : memref<2x128xf32, #tpu.memory_space<vmem>>, vector<1x128xf32>,
        %c0_31 = arith.constant 0 : index
        %c0_32 = arith.constant 0 : index
        %59 = vector.load %arg5[%c0_31, %c0_32] : memref<1x128xf32, #tpu.memory_space<vmem>>, vector<1x128xf32>
        %60 = arith.mulf %45, %57 : vector<1x128xf32>
        %61 = arith.subf %59, %60 : vector<1x128xf32>
        %c1_33 = arith.constant 1 : index
        %c0_34 = arith.constant 0 : index
        %62 = vector.load %arg13[%c1_33, %c0_34] : memref<2x128xf32, #tpu.memory_space<vmem>>, vector<1x128xf32>
        tpu.vector_store %arg13[%c1_33, %c0_34], %61 {strides = array<i32>} : memref<2x128xf32, #tpu.memory_space<vmem>>, vector<1x128xf32>,
      } else {
      }
      %11 = arith.index_cast %1 : i32 to index
      %c0 = arith.constant 0 : index
      %12 = vector.load %arg11[%11, %c0] : memref<512x128xf32, #tpu.memory_space<vmem>>, vector<256x128xf32>
      %c0_4 = arith.constant 0 : index
      %c0_5 = arith.constant 0 : index
      %13 = vector.load %arg13[%c0_4, %c0_5] : memref<2x128xf32, #tpu.memory_space<vmem>>, vector<1x128xf32>
      %14 = vector.broadcast %13 : vector<1x128xf32> to vector<256x128xf32>
      %15 = arith.mulf %12, %14 : vector<256x128xf32>
      %c1 = arith.constant 1 : index
      %c0_6 = arith.constant 0 : index
      %16 = vector.load %arg13[%c1, %c0_6] : memref<2x128xf32, #tpu.memory_space<vmem>>, vector<1x128xf32>
      %17 = vector.broadcast %16 : vector<1x128xf32> to vector<256x128xf32>
      %18 = arith.addf %15, %17 : vector<256x128xf32>
      %c0_7 = arith.constant 0 : index
      %c0_8 = arith.constant 0 : index
      %19 = vector.load %arg6[%c0_7, %c0_8] : memref<256x128xf32, #tpu.memory_space<vmem>>, vector<256x128xf32>
      %20 = arith.truncf %18 : vector<256x128xf32> to vector<256x128xbf16>
      %c0_9 = arith.constant 0 : index
      %c0_10 = arith.constant 0 : index
      %21 = vector.load %arg7[%c0_9, %c0_10] : memref<128x2xbf16, #tpu.memory_space<vmem>>, vector<128x2xbf16>
      %cst = arith.constant dense<0.000000e+00> : vector<256x2xf32>
      %22 = tpu.matmul %20, %21, %cst {dimension_numbers = #tpu.dot_dimension_numbers<[1], [0], [0], [1], [0, 0, 1, 1], [], []>} : vector<256x128xbf16>, vector<128x2xbf16>, vector<256x2xf32> -> vector<256x2xf32>
      %23 = arith.truncf %19 : vector<256x128xf32> to vector<256x128xbf16>
      %c0_11 = arith.constant 0 : index
      %c0_12 = arith.constant 0 : index
      %24 = vector.load %arg8[%c0_11, %c0_12] : memref<128x2xbf16, #tpu.memory_space<vmem>>, vector<128x2xbf16>
      %cst_13 = arith.constant dense<0.000000e+00> : vector<256x2xf32>
      %25 = tpu.matmul %23, %24, %cst_13 {dimension_numbers = #tpu.dot_dimension_numbers<[1], [0], [0], [1], [0, 0, 1, 1], [], []>} : vector<256x128xbf16>, vector<128x2xbf16>, vector<256x2xf32> -> vector<256x2xf32>
      %26 = arith.addf %22, %25 : vector<256x2xf32>
      %c0_14 = arith.constant 0 : index
      %c0_15 = arith.constant 0 : index
      %27 = vector.load %arg9[%c0_14, %c0_15] : memref<1x2xf32, #tpu.memory_space<vmem>>, vector<1x2xf32>
      %28 = vector.broadcast %27 : vector<1x2xf32> to vector<256x2xf32>
      %29 = arith.addf %26, %28 : vector<256x2xf32>
      %30 = arith.negf %29 : vector<256x2xf32>
      %31 = math.exp %30 : vector<256x2xf32>
      %cst_16 = arith.constant 1.000000e+00 : f32
      %32 = vector.broadcast %cst_16 : f32 to vector<256x2xf32>
      %33 = arith.addf %32, %31 : vector<256x2xf32>
      %34 = arith.divf %32, %33 : vector<256x2xf32>
      %35 = vector.extract_strided_slice %34 {offsets = [0, 0], sizes = [256, 1], strides = [1, 1]} : vector<256x2xf32> to vector<256x1xf32>
      %36 = vector.broadcast %35 : vector<256x1xf32> to vector<256x128xf32>
      %37 = arith.mulf %18, %36 : vector<256x128xf32>
      %38 = vector.extract_strided_slice %34 {offsets = [0, 1], sizes = [256, 1], strides = [1, 1]} : vector<256x2xf32> to vector<256x1xf32>
      %39 = vector.broadcast %38 : vector<256x1xf32> to vector<256x128xf32>
      %40 = arith.mulf %19, %39 : vector<256x128xf32>
      %41 = arith.addf %37, %40 : vector<256x128xf32>
      %c0_17 = arith.constant 0 : index
      %c0_18 = arith.constant 0 : index
      %42 = vector.load %arg10[%c0_17, %c0_18] : memref<256x128xf32, #tpu.memory_space<vmem>>, vector<256x128xf32>
      tpu.vector_store %arg10[%c0_17, %c0_18], %41 {strides = array<i32>} : memref<256x128xf32, #tpu.memory_space<vmem>>, vector<256x128xf32>,
    } else {
    }
    return
  }
  func.func @transform_0(%arg0: i32, %arg1: i32) -> (i32, i32) {
    %c1_i32 = arith.constant 1 : i32
    %0 = arith.subi %c1_i32, %arg0 : i32
    %1 = arith.muli %arg1, %0 : i32
    %c0_i32 = arith.constant 0 : i32
    %c0_i32_0 = arith.constant 0 : i32
    return %1, %c0_i32 : i32, i32
  }
  func.func @transform_1(%arg0: i32, %arg1: i32) -> (i32, i32) {
    %c0_i32 = arith.constant 0 : i32
    %c0_i32_0 = arith.constant 0 : i32
    %c0_i32_1 = arith.constant 0 : i32
    return %c0_i32, %c0_i32_0 : i32, i32
  }
  func.func @transform_2(%arg0: i32, %arg1: i32) -> (i32, i32) {
    %c0_i32 = arith.constant 0 : i32
    %c0_i32_0 = arith.constant 0 : i32
    %c0_i32_1 = arith.constant 0 : i32
    return %c0_i32, %c0_i32_0 : i32, i32
  }
  func.func @transform_3(%arg0: i32, %arg1: i32) -> (i32, i32) {
    %c0_i32 = arith.constant 0 : i32
    %c0_i32_0 = arith.constant 0 : i32
    %c0_i32_1 = arith.constant 0 : i32
    return %c0_i32, %c0_i32_0 : i32, i32
  }
  func.func @transform_4(%arg0: i32, %arg1: i32) -> (i32, i32) {
    %0 = arith.muli %arg1, %arg0 : i32
    %c0_i32 = arith.constant 0 : i32
    %c0_i32_0 = arith.constant 0 : i32
    return %0, %c0_i32 : i32, i32
  }
  func.func @transform_5(%arg0: i32, %arg1: i32) -> (i32, i32) {
    %c0_i32 = arith.constant 0 : i32
    %c0_i32_0 = arith.constant 0 : i32
    %c0_i32_1 = arith.constant 0 : i32
    return %c0_i32, %c0_i32_0 : i32, i32
  }
  func.func @transform_6(%arg0: i32, %arg1: i32) -> (i32, i32) {
    %c0_i32 = arith.constant 0 : i32
    %c0_i32_0 = arith.constant 0 : i32
    %c0_i32_1 = arith.constant 0 : i32
    return %c0_i32, %c0_i32_0 : i32, i32
  }
  func.func @transform_7(%arg0: i32, %arg1: i32) -> (i32, i32) {
    %c0_i32 = arith.constant 0 : i32
    %c0_i32_0 = arith.constant 0 : i32
    %c0_i32_1 = arith.constant 0 : i32
    return %c0_i32, %c0_i32_0 : i32, i32
  }
  func.func @transform_8(%arg0: i32, %arg1: i32) -> (i32, i32) {
    %0 = arith.muli %arg1, %arg0 : i32
    %c0_i32 = arith.constant 0 : i32
    %c0_i32_0 = arith.constant 0 : i32
    return %0, %c0_i32 : i32, i32
  }
}

module attributes {stable_mosaic.version = 11 : i64} {
  func.func @scaleshift_kernel(%arg0: i32, %arg1: memref<256x128xf32, #tpu.memory_space<vmem>>, %arg2: memref<2x128xf32, #tpu.memory_space<vmem>>, %arg3: memref<256x128xf32, #tpu.memory_space<vmem>>) attributes {dimension_semantics = [#tpu.dimension_semantics<parallel>], iteration_bounds = array<i64: 2>, scalar_prefetch = 0 : i64, scratch_operands = 0 : i64, tpu.core_type = #tpu.core_type<tc>, window_params = [{transform_indices = @transform_0, window_bounds = array<i64: 256, 128>}, {pipeline_mode = #tpu.pipeline_mode<synchronous>, transform_indices = @transform_1, window_bounds = array<i64: 2, 128>}, {transform_indices = @transform_2, window_bounds = array<i64: 256, 128>}]} {
    %c0 = arith.constant 0 : index
    %c0_0 = arith.constant 0 : index
    %0 = vector.load %arg1[%c0, %c0_0] : memref<256x128xf32, #tpu.memory_space<vmem>>, vector<256x128xf32>
    %c0_1 = arith.constant 0 : index
    %c0_2 = arith.constant 0 : index
    %1 = vector.load %arg2[%c0_1, %c0_2] : memref<2x128xf32, #tpu.memory_space<vmem>>, vector<1x128xf32>
    %2 = vector.broadcast %1 : vector<1x128xf32> to vector<256x128xf32>
    %3 = arith.mulf %0, %2 : vector<256x128xf32>
    %c1 = arith.constant 1 : index
    %c0_3 = arith.constant 0 : index
    %4 = vector.load %arg2[%c1, %c0_3] : memref<2x128xf32, #tpu.memory_space<vmem>>, vector<1x128xf32>
    %5 = vector.broadcast %4 : vector<1x128xf32> to vector<256x128xf32>
    %6 = arith.addf %3, %5 : vector<256x128xf32>
    %c0_4 = arith.constant 0 : index
    %c0_5 = arith.constant 0 : index
    %7 = vector.load %arg3[%c0_4, %c0_5] : memref<256x128xf32, #tpu.memory_space<vmem>>, vector<256x128xf32>
    tpu.vector_store %arg3[%c0_4, %c0_5], %6 {strides = array<i32>} : memref<256x128xf32, #tpu.memory_space<vmem>>, vector<256x128xf32>,
    return
  }
  func.func @transform_0(%arg0: i32) -> (i32, i32) {
    %c0_i32 = arith.constant 0 : i32
    %c0_i32_0 = arith.constant 0 : i32
    return %arg0, %c0_i32 : i32, i32
  }
  func.func @transform_1(%arg0: i32) -> (i32, i32) {
    %c0_i32 = arith.constant 0 : i32
    %c0_i32_0 = arith.constant 0 : i32
    %c0_i32_1 = arith.constant 0 : i32
    return %c0_i32, %c0_i32_0 : i32, i32
  }
  func.func @transform_2(%arg0: i32) -> (i32, i32) {
    %c0_i32 = arith.constant 0 : i32
    %c0_i32_0 = arith.constant 0 : i32
    return %arg0, %c0_i32 : i32, i32
  }
}

module attributes {stable_mosaic.version = 11 : i64} {
  func.func @hcl_level_kernel(%arg0: i32, %arg1: i32, %arg2: memref<1x4x16x128xf32, #tpu.memory_space<vmem>>, %arg3: memref<1x4x16x128xf32, #tpu.memory_space<vmem>>, %arg4: memref<1x1x1x128xf32, #tpu.memory_space<vmem>>, %arg5: memref<1x1x4x128xf32, #tpu.memory_space<vmem>>) attributes {dimension_semantics = [#tpu.dimension_semantics<parallel>, #tpu.dimension_semantics<parallel>], iteration_bounds = array<i64: 2, 4>, scalar_prefetch = 0 : i64, scratch_operands = 0 : i64, tpu.core_type = #tpu.core_type<tc>, window_params = [{transform_indices = @transform_0, window_bounds = array<i64: 1, 4, 16, 128>}, {transform_indices = @transform_1, window_bounds = array<i64: 1, 4, 16, 128>}, {transform_indices = @transform_2, window_bounds = array<i64: 1, 1, 1, 128>}, {transform_indices = @transform_3, window_bounds = array<i64: 1, 1, 4, 128>}]} {
    %c0 = arith.constant 0 : index
    %c0_0 = arith.constant 0 : index
    %c0_1 = arith.constant 0 : index
    %c0_2 = arith.constant 0 : index
    %0 = vector.load %arg2[%c0, %c0_0, %c0_1, %c0_2] : memref<1x4x16x128xf32, #tpu.memory_space<vmem>>, vector<1x4x16x128xf32>
    %1 = vector.shape_cast %0 : vector<1x4x16x128xf32> to vector<4x16x128xf32>
    %c0_3 = arith.constant 0 : index
    %c0_4 = arith.constant 0 : index
    %c0_5 = arith.constant 0 : index
    %c0_6 = arith.constant 0 : index
    %2 = vector.load %arg3[%c0_3, %c0_4, %c0_5, %c0_6] : memref<1x4x16x128xf32, #tpu.memory_space<vmem>>, vector<1x4x16x128xf32>
    %3 = vector.shape_cast %2 : vector<1x4x16x128xf32> to vector<4x16x128xf32>
    %4 = arith.subf %1, %3 : vector<4x16x128xf32>
    %5 = arith.mulf %4, %4 : vector<4x16x128xf32>
    %cst = arith.constant dense<0.000000e+00> : vector<16x128xf32>
    %6 = vector.multi_reduction <add>, %5, %cst [0] : vector<4x16x128xf32> to vector<16x128xf32>
    %cst_7 = arith.constant dense<0.000000e+00> : vector<128xf32>
    %7 = vector.multi_reduction <add>, %6, %cst_7 [0] : vector<16x128xf32> to vector<128xf32>
    %8 = vector.shape_cast %7 : vector<128xf32> to vector<1x1x1x128xf32>
    %c0_8 = arith.constant 0 : index
    %c0_9 = arith.constant 0 : index
    %c0_10 = arith.constant 0 : index
    %c0_11 = arith.constant 0 : index
    %9 = vector.load %arg4[%c0_8, %c0_9, %c0_10, %c0_11] : memref<1x1x1x128xf32, #tpu.memory_space<vmem>>, vector<1x1x1x128xf32>
    tpu.vector_store %arg4[%c0_8, %c0_9, %c0_10, %c0_11], %8 {strides = array<i32>} : memref<1x1x1x128xf32, #tpu.memory_space<vmem>>, vector<1x1x1x128xf32>,
    %cst_12 = arith.constant dense<0.000000e+00> : vector<16x128xf32>
    %10 = vector.multi_reduction <add>, %4, %cst_12 [0] : vector<4x16x128xf32> to vector<16x128xf32>
    %11 = vector.extract_strided_slice %10 {offsets = [0, 0], sizes = [4, 128], strides = [1, 1]} : vector<16x128xf32> to vector<4x128xf32>
    %cst_13 = arith.constant dense<0.000000e+00> : vector<128xf32>
    %12 = vector.multi_reduction <add>, %11, %cst_13 [0] : vector<4x128xf32> to vector<128xf32>
    %13 = vector.shape_cast %12 : vector<128xf32> to vector<1x128xf32>
    %14 = vector.extract_strided_slice %10 {offsets = [4, 0], sizes = [4, 128], strides = [1, 1]} : vector<16x128xf32> to vector<4x128xf32>
    %cst_14 = arith.constant dense<0.000000e+00> : vector<128xf32>
    %15 = vector.multi_reduction <add>, %14, %cst_14 [0] : vector<4x128xf32> to vector<128xf32>
    %16 = vector.shape_cast %15 : vector<128xf32> to vector<1x128xf32>
    %17 = vector.extract_strided_slice %10 {offsets = [8, 0], sizes = [4, 128], strides = [1, 1]} : vector<16x128xf32> to vector<4x128xf32>
    %cst_15 = arith.constant dense<0.000000e+00> : vector<128xf32>
    %18 = vector.multi_reduction <add>, %17, %cst_15 [0] : vector<4x128xf32> to vector<128xf32>
    %19 = vector.shape_cast %18 : vector<128xf32> to vector<1x128xf32>
    %20 = vector.extract_strided_slice %10 {offsets = [12, 0], sizes = [4, 128], strides = [1, 1]} : vector<16x128xf32> to vector<4x128xf32>
    %cst_16 = arith.constant dense<0.000000e+00> : vector<128xf32>
    %21 = vector.multi_reduction <add>, %20, %cst_16 [0] : vector<4x128xf32> to vector<128xf32>
    %22 = vector.shape_cast %21 : vector<128xf32> to vector<1x128xf32>
    %23 = tpu.concatenate %13, %16, %19, %22 in 0 : vector<1x128xf32>, vector<1x128xf32>, vector<1x128xf32>, vector<1x128xf32> -> vector<4x128xf32>
    %cst_17 = arith.constant 6.250000e-02 : f32
    %24 = vector.broadcast %cst_17 : f32 to vector<4x128xf32>
    %25 = arith.mulf %23, %24 : vector<4x128xf32>
    %26 = vector.shape_cast %25 : vector<4x128xf32> to vector<1x1x4x128xf32>
    %c0_18 = arith.constant 0 : index
    %c0_19 = arith.constant 0 : index
    %c0_20 = arith.constant 0 : index
    %c0_21 = arith.constant 0 : index
    %27 = vector.load %arg5[%c0_18, %c0_19, %c0_20, %c0_21] : memref<1x1x4x128xf32, #tpu.memory_space<vmem>>, vector<1x1x4x128xf32>
    tpu.vector_store %arg5[%c0_18, %c0_19, %c0_20, %c0_21], %26 {strides = array<i32>} : memref<1x1x4x128xf32, #tpu.memory_space<vmem>>, vector<1x1x4x128xf32>,
    return
  }
  func.func @transform_0(%arg0: i32, %arg1: i32) -> (i32, i32, i32, i32) {
    %c0_i32 = arith.constant 0 : i32
    %c0_i32_0 = arith.constant 0 : i32
    %c0_i32_1 = arith.constant 0 : i32
    return %arg0, %arg1, %c0_i32, %c0_i32_0 : i32, i32, i32, i32
  }
  func.func @transform_1(%arg0: i32, %arg1: i32) -> (i32, i32, i32, i32) {
    %c0_i32 = arith.constant 0 : i32
    %c0_i32_0 = arith.constant 0 : i32
    %c0_i32_1 = arith.constant 0 : i32
    return %arg0, %arg1, %c0_i32, %c0_i32_0 : i32, i32, i32, i32
  }
  func.func @transform_2(%arg0: i32, %arg1: i32) -> (i32, i32, i32, i32) {
    %c0_i32 = arith.constant 0 : i32
    %c0_i32_0 = arith.constant 0 : i32
    %c0_i32_1 = arith.constant 0 : i32
    return %arg0, %arg1, %c0_i32, %c0_i32_0 : i32, i32, i32, i32
  }
  func.func @transform_3(%arg0: i32, %arg1: i32) -> (i32, i32, i32, i32) {
    %c0_i32 = arith.constant 0 : i32
    %c0_i32_0 = arith.constant 0 : i32
    %c0_i32_1 = arith.constant 0 : i32
    return %arg0, %arg1, %c0_i32, %c0_i32_0 : i32, i32, i32, i32
  }
}

module attributes {stable_mosaic.version = 11 : i64} {
  func.func @hcl_level_kernel(%arg0: i32, %arg1: i32, %arg2: memref<1x8x32x128xf32, #tpu.memory_space<vmem>>, %arg3: memref<1x8x32x128xf32, #tpu.memory_space<vmem>>, %arg4: memref<1x1x1x128xf32, #tpu.memory_space<vmem>>, %arg5: memref<1x1x4x128xf32, #tpu.memory_space<vmem>>) attributes {dimension_semantics = [#tpu.dimension_semantics<parallel>, #tpu.dimension_semantics<parallel>], iteration_bounds = array<i64: 2, 4>, scalar_prefetch = 0 : i64, scratch_operands = 0 : i64, tpu.core_type = #tpu.core_type<tc>, window_params = [{transform_indices = @transform_0, window_bounds = array<i64: 1, 8, 32, 128>}, {transform_indices = @transform_1, window_bounds = array<i64: 1, 8, 32, 128>}, {transform_indices = @transform_2, window_bounds = array<i64: 1, 1, 1, 128>}, {transform_indices = @transform_3, window_bounds = array<i64: 1, 1, 4, 128>}]} {
    %c0 = arith.constant 0 : index
    %c0_0 = arith.constant 0 : index
    %c0_1 = arith.constant 0 : index
    %c0_2 = arith.constant 0 : index
    %0 = vector.load %arg2[%c0, %c0_0, %c0_1, %c0_2] : memref<1x8x32x128xf32, #tpu.memory_space<vmem>>, vector<1x8x32x128xf32>
    %1 = vector.shape_cast %0 : vector<1x8x32x128xf32> to vector<8x32x128xf32>
    %c0_3 = arith.constant 0 : index
    %c0_4 = arith.constant 0 : index
    %c0_5 = arith.constant 0 : index
    %c0_6 = arith.constant 0 : index
    %2 = vector.load %arg3[%c0_3, %c0_4, %c0_5, %c0_6] : memref<1x8x32x128xf32, #tpu.memory_space<vmem>>, vector<1x8x32x128xf32>
    %3 = vector.shape_cast %2 : vector<1x8x32x128xf32> to vector<8x32x128xf32>
    %4 = arith.subf %1, %3 : vector<8x32x128xf32>
    %5 = arith.mulf %4, %4 : vector<8x32x128xf32>
    %cst = arith.constant dense<0.000000e+00> : vector<32x128xf32>
    %6 = vector.multi_reduction <add>, %5, %cst [0] : vector<8x32x128xf32> to vector<32x128xf32>
    %cst_7 = arith.constant dense<0.000000e+00> : vector<128xf32>
    %7 = vector.multi_reduction <add>, %6, %cst_7 [0] : vector<32x128xf32> to vector<128xf32>
    %8 = vector.shape_cast %7 : vector<128xf32> to vector<1x1x1x128xf32>
    %c0_8 = arith.constant 0 : index
    %c0_9 = arith.constant 0 : index
    %c0_10 = arith.constant 0 : index
    %c0_11 = arith.constant 0 : index
    %9 = vector.load %arg4[%c0_8, %c0_9, %c0_10, %c0_11] : memref<1x1x1x128xf32, #tpu.memory_space<vmem>>, vector<1x1x1x128xf32>
    tpu.vector_store %arg4[%c0_8, %c0_9, %c0_10, %c0_11], %8 {strides = array<i32>} : memref<1x1x1x128xf32, #tpu.memory_space<vmem>>, vector<1x1x1x128xf32>,
    %cst_12 = arith.constant dense<0.000000e+00> : vector<32x128xf32>
    %10 = vector.multi_reduction <add>, %4, %cst_12 [0] : vector<8x32x128xf32> to vector<32x128xf32>
    %11 = vector.extract_strided_slice %10 {offsets = [0, 0], sizes = [8, 128], strides = [1, 1]} : vector<32x128xf32> to vector<8x128xf32>
    %cst_13 = arith.constant dense<0.000000e+00> : vector<128xf32>
    %12 = vector.multi_reduction <add>, %11, %cst_13 [0] : vector<8x128xf32> to vector<128xf32>
    %13 = vector.shape_cast %12 : vector<128xf32> to vector<1x128xf32>
    %14 = vector.extract_strided_slice %10 {offsets = [8, 0], sizes = [8, 128], strides = [1, 1]} : vector<32x128xf32> to vector<8x128xf32>
    %cst_14 = arith.constant dense<0.000000e+00> : vector<128xf32>
    %15 = vector.multi_reduction <add>, %14, %cst_14 [0] : vector<8x128xf32> to vector<128xf32>
    %16 = vector.shape_cast %15 : vector<128xf32> to vector<1x128xf32>
    %17 = vector.extract_strided_slice %10 {offsets = [16, 0], sizes = [8, 128], strides = [1, 1]} : vector<32x128xf32> to vector<8x128xf32>
    %cst_15 = arith.constant dense<0.000000e+00> : vector<128xf32>
    %18 = vector.multi_reduction <add>, %17, %cst_15 [0] : vector<8x128xf32> to vector<128xf32>
    %19 = vector.shape_cast %18 : vector<128xf32> to vector<1x128xf32>
    %20 = vector.extract_strided_slice %10 {offsets = [24, 0], sizes = [8, 128], strides = [1, 1]} : vector<32x128xf32> to vector<8x128xf32>
    %cst_16 = arith.constant dense<0.000000e+00> : vector<128xf32>
    %21 = vector.multi_reduction <add>, %20, %cst_16 [0] : vector<8x128xf32> to vector<128xf32>
    %22 = vector.shape_cast %21 : vector<128xf32> to vector<1x128xf32>
    %23 = tpu.concatenate %13, %16, %19, %22 in 0 : vector<1x128xf32>, vector<1x128xf32>, vector<1x128xf32>, vector<1x128xf32> -> vector<4x128xf32>
    %cst_17 = arith.constant 1.562500e-02 : f32
    %24 = vector.broadcast %cst_17 : f32 to vector<4x128xf32>
    %25 = arith.mulf %23, %24 : vector<4x128xf32>
    %26 = vector.shape_cast %25 : vector<4x128xf32> to vector<1x1x4x128xf32>
    %c0_18 = arith.constant 0 : index
    %c0_19 = arith.constant 0 : index
    %c0_20 = arith.constant 0 : index
    %c0_21 = arith.constant 0 : index
    %27 = vector.load %arg5[%c0_18, %c0_19, %c0_20, %c0_21] : memref<1x1x4x128xf32, #tpu.memory_space<vmem>>, vector<1x1x4x128xf32>
    tpu.vector_store %arg5[%c0_18, %c0_19, %c0_20, %c0_21], %26 {strides = array<i32>} : memref<1x1x4x128xf32, #tpu.memory_space<vmem>>, vector<1x1x4x128xf32>,
    return
  }
  func.func @transform_0(%arg0: i32, %arg1: i32) -> (i32, i32, i32, i32) {
    %c0_i32 = arith.constant 0 : i32
    %c0_i32_0 = arith.constant 0 : i32
    %c0_i32_1 = arith.constant 0 : i32
    return %arg0, %arg1, %c0_i32, %c0_i32_0 : i32, i32, i32, i32
  }
  func.func @transform_1(%arg0: i32, %arg1: i32) -> (i32, i32, i32, i32) {
    %c0_i32 = arith.constant 0 : i32
    %c0_i32_0 = arith.constant 0 : i32
    %c0_i32_1 = arith.constant 0 : i32
    return %arg0, %arg1, %c0_i32, %c0_i32_0 : i32, i32, i32, i32
  }
  func.func @transform_2(%arg0: i32, %arg1: i32) -> (i32, i32, i32, i32) {
    %c0_i32 = arith.constant 0 : i32
    %c0_i32_0 = arith.constant 0 : i32
    %c0_i32_1 = arith.constant 0 : i32
    return %arg0, %arg1, %c0_i32, %c0_i32_0 : i32, i32, i32, i32
  }
  func.func @transform_3(%arg0: i32, %arg1: i32) -> (i32, i32, i32, i32) {
    %c0_i32 = arith.constant 0 : i32
    %c0_i32_0 = arith.constant 0 : i32
    %c0_i32_1 = arith.constant 0 : i32
    return %arg0, %arg1, %c0_i32, %c0_i32_0 : i32, i32, i32, i32
  }
}

</mosaic_0001>

<bundles_post_ra>
// kernel: transxnet_reviewkd_forward_train.10
= control target key start
LH: loop header
LB: loop body
LE: loop exit
PB: predicated region body
PF: predicated region fallthrough
CT: control target
= control target key end

     0   :  { %s289_s9 = smov 0   ;;  %s312_s0 = inlined_call_operand.vmem [shape: f32[128,128], index: 0, kind: input, shape index: {}]   ;;  %s313_s1 = inlined_call_operand.vmem [shape: f32[2,128], index: 1, kind: input, shape index: {}]   ;;  %s314_s2 = inlined_call_operand.vmem [shape: f32[128,128], index: 2, kind: output, shape index: {}]  }
   0x1 LB: > { %s245_s10 = sadd.s32 4294967295, %s272_s9   ;;  %p249_p0 = scmp.ge.s32.totalorder %s272_s9, 1  ;;  %s272_s9 = sphi %s289_s9, %s12_s9  }
   0x2   : > { %p113_p1 = scmp.lt.s32.totalorder %s272_s9, 3 }
   0x4   : > { %p114_p2 = pnand %p249_p0, %p113_p1 }
   0x5   : > { %s250_s11 = sshll.u32 (!%p114_p2), %s245_s10, 3  ;;  %v254_v0 = vld [vmem:[%s313_s1] ss:$0 sm:$0xff] (!%p114_p2)  ;;  %v255_v1 = vld [vmem:[%s313_s1 + $0x1] ss:$0 sm:$0xff] (!%p114_p2) }
   0x6   : > { %117 = sbr.rel (%p114_p2) target bundleno = 25 (0x19), region = 28  ;;  %p136_p3 = scmp.lt.s32.totalorder (!%p114_p2), %s250_s11, 15 }
   0xd   : > { %s316_s11 = smov (!%p136_p3, %s250_s11), 15 }
   0xe   : > { %s251_s12 = sshll.u32 %s316_s11, 3 }
   0xf   : > { %s139_s17 = scalar_lea.vmem %s312_s0, %s251_s12  ;;  %s145_s22 = scalar_lea.vmem %s314_s2, %s251_s12 }
  0x10   : > { %v147_v2 = vld [vmem:[%s139_s17] sm:$0xff]  ;;  %v148_v3 = vld [vmem:[%s139_s17 + $0x8] sm:$0xff]  ;;  %v149_v4 = vld [vmem:[%s139_s17 + $0x10] sm:$0xff] }
  0x11   : > { %v160_v5 = vmul.f32 %v254_v0, %v147_v2  ;;  %v161_v6 = vmul.f32 %v254_v0, %v148_v3  ;;  %v162_v7 = vmul.f32 %v254_v0, %v149_v4  ;;  %v150_v8 = vld [vmem:[%s139_s17 + $0x18] sm:$0xff]  ;;  %v151_v9 = vld [vmem:[%s139_s17 + $0x20] sm:$0xff]  ;;  %v152_v10 = vld [vmem:[%s139_s17 + $0x28] sm:$0xff] }
  0x12   : > { %v163_v11 = vmul.f32 %v254_v0, %v150_v8  ;;  %v164_v12 = vmul.f32 %v254_v0, %v151_v9  ;;  %v165_v13 = vmul.f32 %v254_v0, %v152_v10  ;;  %v153_v14 = vld [vmem:[%s139_s17 + $0x30] sm:$0xff]  ;;  %v154_v15 = vld [vmem:[%s139_s17 + $0x38] sm:$0xff] }
  0x13   : > { %v173_v16 = vadd.f32 %v255_v1, %v160_v5  ;;  %v174_v17 = vadd.f32 %v255_v1, %v161_v6  ;;  %v175_v18 = vadd.f32 %v255_v1, %v162_v7  ;;  %v166_v19 = vmul.f32 %v254_v0, %v153_v14 }
  0x14   : > { %v176_v20 = vadd.f32 %v255_v1, %v163_v11  ;;  %v177_v21 = vadd.f32 %v255_v1, %v164_v12  ;;  %v178_v22 = vadd.f32 %v255_v1, %v165_v13  ;;  %v167_v23 = vmul.f32 %v254_v0, %v154_v15 }
  0x15   : > { %181 = vst [vmem:[%s145_s22] sm:$0xff] %v173_v16  ;;  %182 = vst [vmem:[%s145_s22 + $0x8] sm:$0xff] %v174_v17  ;;  %v179_v24 = vadd.f32 %v255_v1, %v166_v19 }
  0x16   : > { %183 = vst [vmem:[%s145_s22 + $0x10] sm:$0xff] %v175_v18  ;;  %184 = vst [vmem:[%s145_s22 + $0x18] sm:$0xff] %v176_v20  ;;  %v180_v25 = vadd.f32 %v255_v1, %v167_v23 }
  0x17   : > { %185 = vst [vmem:[%s145_s22 + $0x20] sm:$0xff] %v177_v21  ;;  %186 = vst [vmem:[%s145_s22 + $0x28] sm:$0xff] %v178_v22 }
  0x18   : > { %187 = vst [vmem:[%s145_s22 + $0x30] sm:$0xff] %v179_v24  ;;  %188 = vst [vmem:[%s145_s22 + $0x38] sm:$0xff] %v180_v25 }
  0x19 PF: > { %s12_s9 = sadd.s32 1, %s272_s9  }
  0x1a   : > { %p9_p4 = scmp.ge.s32.totalorder %s12_s9, 4  }
  0x1c   :  { %11 = sbr.rel (!%p9_p4) target bundleno = 1 (0x1), region = 58 }

// kernel: transxnet_reviewkd_forward_train.8
= control target key start
LH: loop header
LB: loop body
LE: loop exit
PB: predicated region body
PF: predicated region fallthrough
CT: control target
= control target key end

     0   :  { %s1569_s27 = smov 0   ;;  %s1571_s28 = smov 0   ;;  %s1826_s0 = inlined_call_operand.vmem [shape: bf16[128,128], index: 0, kind: input, shape index: {}]   ;;  %s1827_s1 = inlined_call_operand.vmem [shape: bf16[128,128], index: 1, kind: input, shape index: {}]   ;;  %s1828_s2 = inlined_call_operand.vmem [shape: f32[1,128], index: 2, kind: input, shape index: {}]   ;;  %s1829_s3 = inlined_call_operand.vmem [shape: f32[1,128], index: 3, kind: input, shape index: {}]   ;;  %s1830_s4 = inlined_call_operand.vmem [shape: f32[128,128], index: 4, kind: input, shape index: {}]   ;;  %s1831_s5 = inlined_call_operand.vmem [shape: bf16[128,2], index: 5, kind: input, shape index: {}]   ;;  %s1832_s6 = inlined_call_operand.vmem [shape: bf16[128,2], index: 6, kind: input, shape index: {}]   ;;  %s1833_s7 = inlined_call_operand.vmem [shape: f32[1,2], index: 7, kind: input, shape index: {}]   ;;  %s1834_s8 = inlined_call_operand.vmem [shape: f32[128,128], index: 8, kind: output, shape index: {}]  }
   0x1   :  { %s1573_s29 = smov 0   ;;  %s1575_s30 = smov 0  }
   0x2   :  { %s1577_s9 = smov 0  }
   0x3 LB: > { %s27_s10 = sadd.s32 1, %s1511_s29  ;;  %s30_s11 = sadd.s32 1, %s1515_s30  ;;  %s1519_s9 = sphi %s1577_s9, %s18_s9   ;;  %s1515_s30 = sphi %s1575_s30, %s1838_s30   ;;  %s1511_s29 = sphi %s1573_s29, %s1837_s29   ;;  %s1507_s28 = sphi %s1571_s28, %s1836_s28   ;;  %s1503_s27 = sphi %s1569_s27, %s1835_s27  }
   0x4   : > { %p28_p0 = scmp.ge.s32.totalorder %s27_s10, 2  ;;  %p1181_p1 = scmp.ge.s32.totalorder %s1519_s9, 1 }
   0x5   : > { %p300_p2 = scmp.lt.s32.totalorder %s1519_s9, 5 }
   0x6   : > { %s1840_s10 = smov (%p28_p0, %s27_s10), 0  ;;  %s1842_s11 = smov (!%p28_p0, %s30_s11), %s1515_s30 }
   0x7   : > { %p301_p3 = pnand %p1181_p1, %p300_p2  ;;  %p32_p4 = scmp.ge.s32.totalorder %s1842_s11, 2 }
   0x8   : > { %s343_s12 = ssub.s32 (!%p301_p3), 1, %s1507_s28  ;;  %s353_s13 = smul.u32 (!%p301_p3), %s1503_s27, %s1507_s28 }
   0x9   : > { %s1844_s11 = smov (%p32_p4, %s1842_s11), 0  ;;  %304 = sbr.rel (%p301_p3) target bundleno = 792 (0x318), region = 52 }
   0xa   : > { %s344_s14 = smul.u32 (!%p301_p3), %s1503_s27, %s343_s12  ;;  %s1188_s15 = sshll.u32 (!%p301_p3), %s1503_s27, 6 }
   0xb   : > { %s1184_s16 = sshll.u32 (!%p301_p3), %s353_s13, 3  ;;  %p1189_p7 = scmp.ne.s32.totalorder (!%p301_p3), %s1507_s28, 0 }
   0xc   : > { %s1182_s17 = sshll.u32 (!%p301_p3), %s344_s14, 3  ;;  %p355_p5 = scmp.lt.s32.totalorder (!%p301_p3), %s1184_s16, 15 }
   0xd   : > { %p346_p6 = scmp.lt.s32.totalorder (!%p301_p3), %s1182_s17, 15 }
  0x10   : > { %s1846_s16 = smov (!%p355_p5, %s1184_s16), 15  ;;  %s1848_s17 = smov (!%p346_p6, %s1182_s17), 15 }
  0x11   : > { %s1185_s18 = sshll.u32 %s1846_s16, 3  ;;  %s1183_s19 = sshll.u32 %s1848_s17, 2 }
  0x12   : > { %s1611_s22 = scalar_lea.vmem %s1830_s4, %s1185_s18  ;;  %s1616_s25 = scalar_lea.vmem %s1826_s0, %s1183_s19 }
  0x13   : > { %s1621_s13 = scalar_lea.vmem %s1834_s8, %s1185_s18  ;;  %374 = sbr.rel (%p1189_p7) target bundleno = 312 (0x138), region = 56 }
  0x14   : > { %p1190_p8 = scmp.ne.s32.totalorder (!%p1189_p7), %s1503_s27, 0 }
  0x1a   : > { %378 = sbr.rel (%p1190_p8) target bundleno = 33 (0x21), region = 60  ;;  %v1521_v0 = vmov (!%p1190_p8), 0.0  }
  0x1b   : > { %379 = vst [vmem:[#allocation3] sm:$0x3] (!%p1190_p8), %v1521_v0 }
  0x21 PF: > { %v1409_v1 = vld [vmem:[%s1827_s1] sm:$0xff]   ;;  %v1410_v2 = vld [vmem:[%s1827_s1 + $0x8] sm:$0xff]   ;;  %v1411_v3 = vld [vmem:[%s1827_s1 + $0x10] sm:$0xff]   ;;  %s541_s20 = scalar_lea.vmem [#allocation2], %s1188_s15 }
  0x22   : > { %1270 = vmatprep.subr.bf16.mxu0 %v1409_v1  ;;  %1342 = vmatprep.subr.bf16.mxu1 %v1409_v1  ;;  %v1412_v4 = vld [vmem:[%s1827_s1 + $0x18] sm:$0xff]   ;;  %v1417_v5 = vld [vmem:[%s1616_s25] sm:$0xff]   ;;  %v1419_v6 = vld [vmem:[%s1616_s25 + $0x10] sm:$0xff]  }
  0x23   : > { %1271 = vmatpush3.bf16.msra.mxu0 %v1409_v1  ;;  %1350 = vmatpush3.bf16.msra.mxu1 %v1409_v1  ;;  %v1413_v7 = vld [vmem:[%s1827_s1 + $0x20] sm:$0xff]   ;;  %v1414_v8 = vld [vmem:[%s1827_s1 + $0x28] sm:$0xff]   ;;  %v1415_v9 = vld [vmem:[%s1827_s1 + $0x30] sm:$0xff]  }
  0x24   : > { %1272 = vmatprep.subr.bf16.mxu0 %v1410_v2  ;;  %1343 = vmatprep.subr.bf16.mxu1 %v1410_v2  ;;  %v1416_v10 = vld [vmem:[%s1827_s1 + $0x38] sm:$0xff]   ;;  %v1418_v11 = vld [vmem:[%s1616_s25 + $0x8] sm:$0xff]   ;;  %v550_v52 = vld [vmem:[#allocation3] sm:$0x1] }
  0x25   : > { %1286 = vmatprep.mubr.bf16.mxu0 %v1417_v5  ;;  %1290 = vmatprep.mubr.bf16.mxu1 %v1419_v6  ;;  %v1420_v12 = vld [vmem:[%s1616_s25 + $0x18] sm:$0xff]   ;;  %v566_v55 = vld [vmem:[#allocation3 + $0x1] sm:$0x1] }
  0x27   : > { %1273 = vmatpush3.bf16.msra.mxu0 %v1410_v2  ;;  %1351 = vmatpush3.bf16.msra.mxu1 %v1410_v2 }
  0x28   : > { %1274 = vmatprep.subr.bf16.mxu0 %v1411_v3  ;;  %1344 = vmatprep.subr.bf16.mxu1 %v1411_v3 }
  0x2b   : > { %1275 = vmatpush3.bf16.msra.mxu0 %v1411_v3  ;;  %1352 = vmatpush3.bf16.msra.mxu1 %v1411_v3 }
  0x2c   : > { %1276 = vmatprep.subr.bf16.mxu0 %v1412_v4  ;;  %1345 = vmatprep.subr.bf16.mxu1 %v1412_v4 }
  0x2f   : > { %1277 = vmatpush3.bf16.msra.mxu0 %v1412_v4  ;;  %1353 = vmatpush3.bf16.msra.mxu1 %v1412_v4 }
  0x30   : > { %1278 = vmatprep.subr.bf16.mxu0 %v1413_v7  ;;  %1346 = vmatprep.subr.bf16.mxu1 %v1413_v7 }
  0x33   : > { %1279 = vmatpush3.bf16.msra.mxu0 %v1413_v7  ;;  %1354 = vmatpush3.bf16.msra.mxu1 %v1413_v7 }
  0x34   : > { %1280 = vmatprep.subr.bf16.mxu0 %v1414_v8  ;;  %1347 = vmatprep.subr.bf16.mxu1 %v1414_v8 }
  0x37   : > { %1281 = vmatpush3.bf16.msra.mxu0 %v1414_v8  ;;  %1355 = vmatpush3.bf16.msra.mxu1 %v1414_v8 }
  0x38   : > { %1282 = vmatprep.subr.bf16.mxu0 %v1415_v9  ;;  %1348 = vmatprep.subr.bf16.mxu1 %v1415_v9 }
  0x3b   : > { %1283 = vmatpush3.bf16.msra.mxu0 %v1415_v9  ;;  %1356 = vmatpush3.bf16.msra.mxu1 %v1415_v9 }
  0x3c   : > { %1284 = vmatprep.subr.bf16.mxu0 %v1416_v10  ;;  %1349 = vmatprep.subr.bf16.mxu1 %v1416_v10 }
  0x3f   : > { %1285 = vmatpush3.bf16.msra.mxu0 %v1416_v10  ;;  %1357 = vmatpush3.bf16.msra.mxu1 %v1416_v10 }
  0x42   : > { %1287 = vmatmul.mubr.bf16.vlgmr.msra.gmra.mrb[0].mxu0 %v1418_v11  ;;  %1291 = vmatmul.mubr.bf16.vlgmr.msra.gmra.mrb[0].mxu1 %v1420_v12 }
 0x115   : > { %v1288_v13 = vpop.f32.mrb[0].mxu0  ;;  %v1292_v14 = vpop.f32.mrb[0].mxu1 }
 0x116   : > { %544 = vst [vmem:[%s541_s20 + $0x10] sm:$0xff] %v1288_v13  ;;  %v510_v15 = vpop.f32.mrb[1].mxu0  ;;  %548 = vst [vmem:[%s541_s20 + $0x30] sm:$0xff] %v1292_v14  ;;  %v526_v16 = vpop.f32.mrb[1].mxu1  ;;  %v569_v24 = vmul.f32 %v1288_v13, %v1288_v13  ;;  %v573_v36 = vmul.f32 %v1292_v14, %v1292_v14 }
 0x117   : > { %542 = vst [vmem:[%s541_s20] sm:$0xff] %v510_v15  ;;  %v1289_v17 = vpop.f32.mrb[2].mxu0  ;;  %546 = vst [vmem:[%s541_s20 + $0x20] sm:$0xff] %v526_v16  ;;  %v1293_v18 = vpop.f32.mrb[2].mxu1  ;;  %v567_v21 = vmul.f32 %v510_v15, %v510_v15  ;;  %v571_v30 = vmul.f32 %v526_v16, %v526_v16 }
 0x118   : > { %545 = vst [vmem:[%s541_s20 + $0x18] sm:$0xff] %v1289_v17  ;;  %v513_v19 = vpop.f32.mrb[3].mxu0  ;;  %549 = vst [vmem:[%s541_s20 + $0x38] sm:$0xff] %v1293_v18  ;;  %v529_v20 = vpop.f32.mrb[3].mxu1  ;;  %v570_v27 = vmul.f32 %v1289_v17, %v1289_v17  ;;  %v574_v39 = vmul.f32 %v1293_v18, %v1293_v18 }
 0x119   : > { %543 = vst [vmem:[%s541_s20 + $0x8] sm:$0xff] %v513_v19  ;;  %v551_v22 = vadd.f32 %v513_v19, %v510_v15  ;;  %v568_v23 = vmul.f32 %v513_v19, %v513_v19  ;;  %547 = vst [vmem:[%s541_s20 + $0x28] sm:$0xff] %v529_v20  ;;  %v572_v35 = vmul.f32 %v529_v20, %v529_v20 }
 0x11b   : > { %v552_v25 = vadd.f32 %v1288_v13, %v551_v22  ;;  %v575_v26 = vadd.f32 %v568_v23, %v567_v21 }
 0x11d   : > { %v576_v28 = vadd.f32 %v575_v26, %v569_v24  ;;  %v553_v29 = vadd.f32 %v1289_v17, %v552_v25 }
 0x11f   : > { %v554_v31 = vadd.f32 %v553_v29, %v526_v16  ;;  %v577_v32 = vadd.f32 %v576_v28, %v570_v27 }
 0x121   : > { %v578_v33 = vadd.f32 %v577_v32, %v571_v30  ;;  %v555_v34 = vadd.f32 %v554_v31, %v529_v20 }
 0x123   : > { %v556_v37 = vadd.f32 %v1292_v14, %v555_v34  ;;  %v579_v38 = vadd.f32 %v578_v33, %v572_v35 }
 0x125   : > { %v557_v40 = vadd.f32 %v1293_v18, %v556_v37  ;;  %v580_v41 = vadd.f32 %v579_v38, %v573_v36 }
 0x127   : > { %v558_v42 = vrot.slane %v557_v40, 4  ;;  %v581_v43 = vadd.f32 %v580_v41, %v574_v39 }
 0x129   : > { %v559_v44 = vadd.f32 %v558_v42, %v557_v40  ;;  %v582_v45 = vrot.slane %v581_v43, 4 }
 0x12b   : > { %v560_v46 = vrot.slane %v559_v44, 2  ;;  %v583_v47 = vadd.f32 %v582_v45, %v581_v43 }
 0x12d   : > { %v561_v48 = vadd.f32 %v560_v46, %v559_v44  ;;  %v584_v49 = vrot.slane %v583_v47, 2 }
 0x12f   : > { %v562_v50 = vrot.slane %v561_v48, 1  ;;  %v585_v51 = vadd.f32 %v584_v49, %v583_v47 }
 0x131   : > { %v563_v53 = vadd.f32 %v562_v50, %v561_v48  ;;  %v586_v54 = vrot.slane %v585_v51, 1 }
 0x133   : > { %v564_v56 = vadd.f32 %v563_v53, %v550_v52  ;;  %v587_v57 = vadd.f32 %v586_v54, %v585_v51 }
 0x135   : > { %565 = vst [vmem:[#allocation3] sm:$0x1] %v564_v56  ;;  %v588_v58 = vadd.f32 %v587_v57, %v566_v55 }
 0x137   : > { %589 = vst [vmem:[#allocation3 + $0x1] sm:$0x1] %v588_v58 }
 0x138 PF: > { %p1203_p9 = scmp.ne.s32.totalorder %s1507_s28, 1 }
 0x139   : > { %p1204_p10 = scmp.ne.s32.totalorder (!%p1203_p9), %s1503_s27, 0 }
 0x13a   : > { %593 = sbr.rel (%p1203_p9) target bundleno = 792 (0x318), region = 64 }
 0x141   : > { %597 = sbr.rel (%p1204_p10) target bundleno = 350 (0x15e), region = 68  ;;  %v598_v59 = vld [vmem:[#allocation3] sm:$0x1] (!%p1204_p10)  ;;  %v600_v60 = vld [vmem:[#allocation3 + $0x1] sm:$0x1] (!%p1204_p10) }
 0x142   : > { %v599_v61 = vmul.f32 (!%p1204_p10), 0.0078125, %v598_v59  ;;  %v601_v62 = vmul.f32 (!%p1204_p10), 0.0078125, %v600_v60  ;;  %v607_v3 = vld [vmem:[%s1828_s2] sm:$0x1] (!%p1204_p10) }
 0x143   : > { %v610_v6 = vld [vmem:[%s1829_s3] sm:$0x1] (!%p1204_p10) }
 0x144   : > { %v602_v63 = vmul.f32 (!%p1204_p10), %v599_v61, %v599_v61 }
 0x146   : > { %v603_v0 = vsub.f32 (!%p1204_p10), %v601_v62, %v602_v63 }
 0x148   : > { %v604_v1 = vmax.f32 %v603_v0, 0.0 }
 0x14a   : > { %v605_v2 = vadd.f32 1e-05, %v604_v1 }
 0x14c   : > { %1421 = vrsqrt.f32 %v605_v2 }
 0x156   : > { %v1422_v4 = vpop.eup %1421 }
 0x157   : > { %v608_v5 = vmul.f32 %v1422_v4, %v607_v3 }
 0x159   : > { %609 = vst [vmem:[#allocation4] sm:$0x1] %v608_v5  ;;  %v611_v7 = vmul.f32 %v608_v5, %v599_v61 }
 0x15b   : > { %v612_v8 = vsub.f32 %v610_v6, %v611_v7 }
 0x15d   : > { %613 = vst [vmem:[#allocation4 + $0x1] sm:$0x1] %v612_v8 }
 0x15e PF: > { %v1433_v9 = vld [vmem:[%s1832_s6] sm:$0xff]   ;;  %v1435_v11 = vld [vmem:[%s1832_s6 + $0x8] sm:$0xff]   ;;  %v1437_v13 = vld [vmem:[%s1832_s6 + $0x10] sm:$0xff]   ;;  %s1707_s28 = scalar_lea.vmem [#allocation2], %s1188_s15  ;;  %v1522_v3 = vmov 0  }
 0x15f   : > { %v1434_v10 = vld [vmem:[%s1831_s5] sm:$0xff]   ;;  %1294 = vmatprep.subr.bf16.mxu1 %v1433_v9  ;;  %v1436_v12 = vld [vmem:[%s1831_s5 + $0x8] sm:$0xff]   ;;  %v1438_v14 = vld [vmem:[%s1831_s5 + $0x10] sm:$0xff]   ;;  %1423 = vset.pattern.permute.xlu1 %v1522_v3 }
 0x160   : > { %1318 = vmatprep.subr.bf16.mxu0 %v1434_v10  ;;  %1295 = vmatpush3.bf16.msra.mxu1 %v1433_v9  ;;  %v1439_v15 = vld [vmem:[%s1832_s6 + $0x18] sm:$0xff]   ;;  %v1441_v17 = vld [vmem:[%s1832_s6 + $0x20] sm:$0xff]   ;;  %v1443_v19 = vld [vmem:[%s1832_s6 + $0x28] sm:$0xff]  }
 0x161   : > { %1319 = vmatpush3.bf16.msra.mxu0 %v1434_v10  ;;  %1296 = vmatprep.subr.bf16.mxu1 %v1435_v11  ;;  %v1440_v16 = vld [vmem:[%s1831_s5 + $0x18] sm:$0xff]   ;;  %v1442_v18 = vld [vmem:[%s1831_s5 + $0x20] sm:$0xff]   ;;  %v1444_v20 = vld [vmem:[%s1831_s5 + $0x28] sm:$0xff]  }
 0x162   : > { %1320 = vmatprep.subr.bf16.mxu0 %v1436_v12  ;;  %v1700_v21 = vld [vmem:[%s1611_s22] sm:$0xff]  ;;  %v1703_v22 = vld [vmem:[%s1611_s22 + $0x8] sm:$0xff]  ;;  %v1445_v30 = vld [vmem:[%s1832_s6 + $0x30] sm:$0xff]   ;;  %1425 = vset.pattern.permute.xlu0 %v1522_v3 }
 0x163   : > { %v615_v23 = vld [vmem:[%s1707_s28] sm:$0xff]  ;;  %v677_v24 = vpack.c.bf16 %v1703_v22, %v1700_v21  ;;  %v616_v25 = vld [vmem:[%s1707_s28 + $0x8] sm:$0xff]  ;;  %v617_v33 = vld [vmem:[%s1707_s28 + $0x10] sm:$0xff] }
 0x164   : > { %1297 = vmatpush3.bf16.msra.mxu1 %v1435_v11  ;;  %v1205_v26 = vld [vmem:[#allocation4] ss:$0 sm:$0xff]  ;;  %v1206_v27 = vld [vmem:[#allocation4 + $0x1] ss:$0 sm:$0xff]  ;;  %v618_v34 = vld [vmem:[%s1707_s28 + $0x18] sm:$0xff] }
 0x165   : > { %1321 = vmatpush3.bf16.msra.mxu0 %v1436_v12  ;;  %1298 = vmatprep.subr.bf16.mxu1 %v1437_v13  ;;  %v628_v28 = vmul.f32 %v1205_v26, %v615_v23  ;;  %v629_v29 = vmul.f32 %v1205_v26, %v616_v25  ;;  %v1446_v35 = vld [vmem:[%s1831_s5 + $0x30] sm:$0xff]   ;;  %v619_v36 = vld [vmem:[%s1707_s28 + $0x20] sm:$0xff]  ;;  %v620_v37 = vld [vmem:[%s1707_s28 + $0x28] sm:$0xff]  ;;  %v630_v39 = vmul.f32 %v1205_v26, %v617_v33 }
 0x166   : > { %1322 = vmatprep.subr.bf16.mxu0 %v1438_v14  ;;  %1310 = vmatprep.mubr.bf16.mxu1 %v677_v24  ;;  %v631_v40 = vmul.f32 %v1205_v26, %v618_v34  ;;  %v1447_v41 = vld [vmem:[%s1832_s6 + $0x38] sm:$0xff]   ;;  %v632_v42 = vmul.f32 %v1205_v26, %v619_v36  ;;  %v633_v43 = vmul.f32 %v1205_v26, %v620_v37  ;;  %v1736_v45 = vld [vmem:[%s1611_s22 + $0x10] sm:$0xff]  ;;  %v1746_v49 = vld [vmem:[%s1611_s22 + $0x20] sm:$0xff] }
 0x167   : > { %v1716_v31 = vadd.f32 %v1206_v27, %v628_v28  ;;  %v1718_v32 = vadd.f32 %v1206_v27, %v629_v29  ;;  %v1448_v44 = vld [vmem:[%s1831_s5 + $0x38] sm:$0xff]   ;;  %v1741_v47 = vadd.f32 %v1206_v27, %v630_v39  ;;  %v1749_v50 = vld [vmem:[%s1611_s22 + $0x28] sm:$0xff]  ;;  %v621_v53 = vld [vmem:[%s1707_s28 + $0x30] sm:$0xff] }
 0x168   : > { %1299 = vmatpush3.bf16.msra.mxu1 %v1437_v13  ;;  %v1739_v46 = vld [vmem:[%s1611_s22 + $0x18] sm:$0xff]  ;;  %v1743_v48 = vadd.f32 %v1206_v27, %v631_v40  ;;  %v1751_v51 = vadd.f32 %v1206_v27, %v632_v42  ;;  %v1753_v52 = vadd.f32 %v1206_v27, %v633_v43  ;;  %v679_v57 = vpack.c.bf16 %v1749_v50, %v1746_v49  ;;  %v1766_v61 = vld [vmem:[%s1611_s22 + $0x30] sm:$0xff]  ;;  %v1223_v6 = vld [vmem:[%s1833_s7] ss:$0 sm:$0xff] }
 0x169   : > { %1323 = vmatpush3.bf16.msra.mxu0 %v1438_v14  ;;  %1300 = vmatprep.subr.bf16.mxu1 %v1439_v15  ;;  %v657_v38 = vpack.c.bf16 %v1718_v32, %v1716_v31  ;;  %v622_v54 = vld [vmem:[%s1707_s28 + $0x38] sm:$0xff]  ;;  %v678_v55 = vpack.c.bf16 %v1739_v46, %v1736_v45  ;;  %v634_v58 = vmul.f32 %v1205_v26, %v621_v53 }
 0x16a   : > { %1324 = vmatprep.subr.bf16.mxu0 %v1440_v16  ;;  %v658_v56 = vpack.c.bf16 %v1743_v48, %v1741_v47  ;;  %v635_v59 = vmul.f32 %v1205_v26, %v622_v54  ;;  %v659_v60 = vpack.c.bf16 %v1753_v52, %v1751_v51  ;;  %v1769_v62 = vld [vmem:[%s1611_s22 + $0x38] sm:$0xff] }
 0x16b   : > { %1334 = vmatprep.mubr.bf16.mxu0 %v657_v38  ;;  %v1771_v63 = vadd.f32 %v1206_v27, %v634_v58  ;;  %v680_v1 = vpack.c.bf16 %v1769_v62, %v1766_v61 }
 0x16c   : > { %1301 = vmatpush3.bf16.msra.mxu1 %v1439_v15  ;;  %v1773_v0 = vadd.f32 %v1206_v27, %v635_v59 }
 0x16d   : > { %1325 = vmatpush3.bf16.msra.mxu0 %v1440_v16  ;;  %1302 = vmatprep.subr.bf16.mxu1 %v1441_v17 }
 0x16e   : > { %1326 = vmatprep.subr.bf16.mxu0 %v1442_v18  ;;  %v660_v2 = vpack.c.bf16 %v1773_v0, %v1771_v63 }
 0x170   : > { %1303 = vmatpush3.bf16.msra.mxu1 %v1441_v17 }
 0x171   : > { %1327 = vmatpush3.bf16.msra.mxu0 %v1442_v18  ;;  %1304 = vmatprep.subr.bf16.mxu1 %v1443_v19 }
 0x172   : > { %1328 = vmatprep.subr.bf16.mxu0 %v1444_v20 }
 0x174   : > { %1305 = vmatpush3.bf16.msra.mxu1 %v1443_v19 }
 0x175   : > { %1329 = vmatpush3.bf16.msra.mxu0 %v1444_v20  ;;  %1306 = vmatprep.subr.bf16.mxu1 %v1445_v30 }
 0x176   : > { %1330 = vmatprep.subr.bf16.mxu0 %v1446_v35 }
 0x178   : > { %1307 = vmatpush3.bf16.msra.mxu1 %v1445_v30 }
 0x179   : > { %1331 = vmatpush3.bf16.msra.mxu0 %v1446_v35  ;;  %1308 = vmatprep.subr.bf16.mxu1 %v1447_v41 }
 0x17a   : > { %1332 = vmatprep.subr.bf16.mxu0 %v1448_v44 }
 0x17c   : > { %1309 = vmatpush3.bf16.msra.mxu1 %v1447_v41 }
 0x17d   : > { %1333 = vmatpush3.bf16.msra.mxu0 %v1448_v44 }
 0x17f   : > { %1311 = vmatmul.mubr.bf16.vlgmr.msra.gmra.mrb[0].mxu1 %v678_v55 }
 0x180   : > { %1335 = vmatmul.mubr.bf16.vlgmr.msra.gmra.mrb[0].mxu0 %v658_v56  ;;  %1314 = vmatprep.mubr.bf16.mxu1 %v679_v57 }
 0x181   : > { %1338 = vmatprep.mubr.bf16.mxu0 %v659_v60 }
 0x187   : > { %1315 = vmatmul.mubr.bf16.gmra.mrb[4].mxu1 %v680_v1 }
 0x188   : > { %1339 = vmatmul.mubr.bf16.gmra.mrb[4].mxu0 %v660_v2 }
 0x252   : > { %v1312_v4 = vpop.f32.mrb[0].mxu1 }
 0x253   : > { %v1336_v5 = vpop.f32.mrb[0].mxu0  ;;  %v779_v7 = vpop.f32.mrb[1].mxu1 }
 0x254   : > { %v901_v8 = vadd.f32 %v1336_v5, %v1312_v4  ;;  %v892_v9 = vpop.f32.mrb[1].mxu0  ;;  %v1313_v10 = vpop.f32.mrb[2].mxu1 }
 0x255   : > { %v893_v11 = vadd.f32 %v892_v9, %v779_v7  ;;  %v1337_v12 = vpop.f32.mrb[2].mxu0  ;;  %v782_v13 = vpop.f32.mrb[3].mxu1 }
 0x256   : > { %v932_v14 = vadd.f32 %v1223_v6, %v901_v8  ;;  %v904_v15 = vadd.f32 %v1337_v12, %v1313_v10  ;;  %v895_v16 = vpop.f32.mrb[3].mxu0 }
 0x257   : > { %v930_v17 = vadd.f32 %v1223_v6, %v893_v11  ;;  %v896_v18 = vadd.f32 %v895_v16, %v782_v13  ;;  %v1523_v13 = vmov 1  }
 0x258   : > { %v1226_v19 = vmul.f32 -1.442695, %v932_v14  ;;  %v933_v20 = vadd.f32 %v1223_v6, %v904_v15 }
 0x259   : > { %v1224_v23 = vmul.f32 -1.442695, %v930_v17  ;;  %v931_v28 = vadd.f32 %v1223_v6, %v896_v18 }
 0x25a   : > { %1449 = vpow2.f32 %v1226_v19  ;;  %v1316_v24 = vpop.f32.mrb[4].mxu1  ;;  %v1227_v27 = vmul.f32 -1.442695, %v933_v20 }
 0x25b   : > { %1451 = vpow2.f32 %v1224_v23  ;;  %v1340_v25 = vpop.f32.mrb[4].mxu0  ;;  %v795_v26 = vpop.f32.mrb[5].mxu1  ;;  %v1225_v42 = vmul.f32 -1.442695, %v931_v28 }
 0x25c   : > { %v917_v29 = vadd.f32 %v1340_v25, %v1316_v24  ;;  %v908_v30 = vpop.f32.mrb[5].mxu0  ;;  %v1317_v33 = vpop.f32.mrb[6].mxu1  ;;  %1453 = vpow2.f32 %v1227_v27 }
 0x25d   : > { %v909_v34 = vadd.f32 %v908_v30, %v795_v26  ;;  %v1341_v35 = vpop.f32.mrb[6].mxu0  ;;  %v798_v36 = vpop.f32.mrb[7].mxu1  ;;  %1455 = vpow2.f32 %v1225_v42 }
 0x25e   : > { %v936_v37 = vadd.f32 %v1223_v6, %v917_v29  ;;  %v920_v38 = vadd.f32 %v1341_v35, %v1317_v33  ;;  %v911_v39 = vpop.f32.mrb[7].mxu0 }
 0x25f   : > { %v934_v40 = vadd.f32 %v1223_v6, %v909_v34  ;;  %v912_v41 = vadd.f32 %v911_v39, %v798_v36 }
 0x260   : > { %v1230_v43 = vmul.f32 -1.442695, %v936_v37  ;;  %v937_v57 = vadd.f32 %v1223_v6, %v920_v38 }
 0x261   : > { %v1228_v44 = vmul.f32 -1.442695, %v934_v40  ;;  %v935_v60 = vadd.f32 %v1223_v6, %v912_v41 }
 0x262   : > { %1457 = vpow2.f32 %v1230_v43  ;;  %v1231_v59 = vmul.f32 -1.442695, %v937_v57 }
 0x263   : > { %1459 = vpow2.f32 %v1228_v44  ;;  %v1229_v4 = vmul.f32 -1.442695, %v935_v60 }
 0x264   : > { %v1450_v53 = vpop.eup %1449 }
 0x265   : > { %v1452_v54 = vpop.eup %1451  ;;  %v964_v55 = vadd.f32 1.0, %v1450_v53 }
 0x266   : > { %v962_v56 = vadd.f32 1.0, %v1452_v54  ;;  %v1454_v58 = vpop.eup %1453 }
 0x267   : > { %1461 = vrcp.f32 %v964_v55  ;;  %v965_v1 = vadd.f32 1.0, %v1454_v58  ;;  %v1456_v2 = vpop.eup %1455 }
 0x268   : > { %1463 = vrcp.f32 %v962_v56  ;;  %v963_v10 = vadd.f32 1.0, %v1456_v2 }
 0x269   : > { %1465 = vpow2.f32 %v1231_v59 }
 0x26a   : > { %1467 = vrcp.f32 %v965_v1 }
 0x26b   : > { %1469 = vpow2.f32 %v1229_v4 }
 0x26c   : > { %v1458_v5 = vpop.eup %1457  ;;  %1471 = vrcp.f32 %v963_v10 }
 0x26d   : > { %v1460_v7 = vpop.eup %1459  ;;  %v968_v11 = vadd.f32 1.0, %v1458_v5 }
 0x26e   : > { %v966_v12 = vadd.f32 1.0, %v1460_v7 }
 0x26f   : > { %1473 = vrcp.f32 %v968_v11 }
 0x270   : > { %1475 = vrcp.f32 %v966_v12 }
 0x271   : > { %v1462_v8 = vpop.eup %1461 }
 0x272   : > { %v1464_v9 = vpop.eup %1463  ;;  %998 = vperm.xlu1 %1423, %v1462_v8  }
 0x273   : > { %988 = vperm.xlu0 %1425, %v1464_v9   ;;  %v1466_v6 = vpop.eup %1465 }
 0x274   : > { %v1468_v14 = vpop.eup %1467  ;;  %v969_v15 = vadd.f32 1.0, %v1466_v6 }
 0x275   : > { %v1470_v16 = vpop.eup %1469 }
 0x276   : > { %1424 = vset.pattern.permute.xlu1 %v1523_v13  ;;  %1477 = vrcp.f32 %v969_v15  ;;  %v967_v17 = vadd.f32 1.0, %v1470_v16  ;;  %v1472_v18 = vpop.eup %1471 }
 0x277   : > { %1043 = vperm.xlu1 %1424, %v1462_v8   ;;  %1426 = vset.pattern.permute.xlu0 %v1523_v13 }
 0x278   : > { %1035 = vperm.xlu0 %1426, %v1464_v9   ;;  %1479 = vrcp.f32 %v967_v17 }
 0x279   : > { %v1474_v19 = vpop.eup %1473 }
 0x27a   : > { %v1476_v20 = vpop.eup %1475 }
 0x27b   : > { %1427 = vset.pattern.permute.xlu1 %v1522_v3 }
 0x27c   : > { %1003 = vperm.xlu1 %1427, %v1468_v14   ;;  %1047 = vperm.xlu0 %1426, %v1468_v14  }
 0x280   : > { %1429 = vset.pattern.permute.xlu1 %v1523_v13  ;;  %1428 = vset.pattern.permute.xlu0 %v1522_v3  ;;  %v1478_v23 = vpop.eup %1477 }
 0x281   : > { %1039 = vperm.xlu1 %1429, %v1472_v18   ;;  %993 = vperm.xlu0 %1428, %v1472_v18  }
 0x282   : > { %v1480_v24 = vpop.eup %1479 }
 0x285   : > { %1051 = vperm.xlu1 %1429, %v1476_v20   ;;  %1018 = vperm.xlu0 %1428, %v1474_v19  }
 0x289   : > { %1430 = vset.pattern.permute.xlu1 %v1522_v3  ;;  %1008 = vperm.xlu0 %1428, %v1476_v20  }
 0x28a   : > { %1023 = vperm.xlu1 %1430, %v1478_v23  }
 0x28d   : > { %1431 = vset.pattern.permute.xlu0 %v1523_v13 }
 0x28e   : > { %1013 = vperm.xlu1 %1430, %v1480_v24   ;;  %1055 = vperm.xlu0 %1431, %v1480_v24  }
 0x292   : > { %1432 = vset.pattern.permute.xlu1 %v1523_v13  ;;  %1063 = vperm.xlu0 %1431, %v1478_v23  }
 0x293   : > { %1059 = vperm.xlu1 %1432, %v1474_v19  }
 0x2f1   : > { %v999_v25 = vpop.permute.xlu1 %998 }
 0x2f2   : > { %v989_v26 = vpop.permute.xlu0 %988  ;;  %v1028_v28 = vmul.f32 %v999_v25, %v1741_v47 }
 0x2f3   : > { %v1026_v30 = vmul.f32 %v989_v26, %v1716_v31 }
 0x2f6   : > { %v1044_v27 = vpop.permute.xlu1 %1043 }
 0x2f7   : > { %v1068_v29 = vmul.f32 %v1044_v27, %v1736_v45  ;;  %v1036_v3 = vpop.permute.xlu0 %1035 }
 0x2f8   : > { %v1066_v33 = vmul.f32 %v1036_v3, %v1700_v21 }
 0x2f9   : > { %v1076_v34 = vadd.f32 %v1068_v29, %v1028_v28 }
 0x2fa   : > { %v1074_v35 = vadd.f32 %v1066_v33, %v1026_v30 }
 0x2fb   : > { %1084 = vst [vmem:[%s1621_s13 + $0x10] sm:$0xff] %v1076_v34  ;;  %v1004_v36 = vpop.permute.xlu1 %1003  ;;  %v1048_v37 = vpop.permute.xlu0 %1047 }
 0x2fc   : > { %1082 = vst [vmem:[%s1621_s13] sm:$0xff] %v1074_v35  ;;  %v1029_v38 = vmul.f32 %v1004_v36, %v1743_v48  ;;  %v1069_v39 = vmul.f32 %v1048_v37, %v1739_v46 }
 0x2fe   : > { %v1077_v47 = vadd.f32 %v1069_v39, %v1029_v38 }
 0x300   : > { %1085 = vst [vmem:[%s1621_s13 + $0x18] sm:$0xff] %v1077_v47  ;;  %v1040_v45 = vpop.permute.xlu1 %1039  ;;  %v994_v40 = vpop.permute.xlu0 %993 }
 0x301   : > { %v1067_v31 = vmul.f32 %v1040_v45, %v1703_v22  ;;  %v1027_v21 = vmul.f32 %v994_v40, %v1718_v32 }
 0x303   : > { %v1075_v41 = vadd.f32 %v1067_v31, %v1027_v21 }
 0x304   : > { %v1052_v42 = vpop.permute.xlu1 %1051  ;;  %v1019_v43 = vpop.permute.xlu0 %1018 }
 0x305   : > { %1083 = vst [vmem:[%s1621_s13 + $0x8] sm:$0xff] %v1075_v41  ;;  %v1070_v53 = vmul.f32 %v1052_v42, %v1746_v49 }
 0x308   : > { %v1009_v44 = vpop.permute.xlu0 %1008 }
 0x309   : > { %v1030_v48 = vmul.f32 %v1009_v44, %v1751_v51  ;;  %v1024_v46 = vpop.permute.xlu1 %1023  ;;  %v1032_v51 = vmul.f32 %v1019_v43, %v1771_v63 }
 0x30a   : > { %v1033_v59 = vmul.f32 %v1024_v46, %v1773_v0 }
 0x30b   : > { %v1078_v54 = vadd.f32 %v1070_v53, %v1030_v48 }
 0x30d   : > { %1086 = vst [vmem:[%s1621_s13 + $0x20] sm:$0xff] %v1078_v54  ;;  %v1014_v55 = vpop.permute.xlu1 %1013  ;;  %v1056_v56 = vpop.permute.xlu0 %1055 }
 0x30e   : > { %v1031_v22 = vmul.f32 %v1014_v55, %v1753_v52  ;;  %v1071_v32 = vmul.f32 %v1056_v56, %v1749_v50 }
 0x310   : > { %v1079_v57 = vadd.f32 %v1071_v32, %v1031_v22 }
 0x311   : > { %v1064_v58 = vpop.permute.xlu0 %1063 }
 0x312   : > { %1087 = vst [vmem:[%s1621_s13 + $0x28] sm:$0xff] %v1079_v57  ;;  %v1073_v49 = vmul.f32 %v1064_v58, %v1769_v62  ;;  %v1060_v60 = vpop.permute.xlu1 %1059 }
 0x313   : > { %v1072_v1 = vmul.f32 %v1060_v60, %v1766_v61 }
 0x314   : > { %v1081_v2 = vadd.f32 %v1073_v49, %v1033_v59 }
 0x315   : > { %v1080_v4 = vadd.f32 %v1072_v1, %v1032_v51 }
 0x316   : > { %1089 = vst [vmem:[%s1621_s13 + $0x38] sm:$0xff] %v1081_v2 }
 0x317   : > { %1088 = vst [vmem:[%s1621_s13 + $0x30] sm:$0xff] %v1080_v4 }
 0x318 PF: > { %s18_s9 = sadd.s32 1, %s1519_s9   ;;  %s1835_s27 = smov %s1511_s29 }
 0x319   : > { %p15_p11 = scmp.ge.s32.totalorder %s18_s9, 6   ;;  %s1836_s28 = smov %s1515_s30 }
 0x31a   : > { %s1837_s29 = smov %s1840_s10  ;;  %s1838_s30 = smov %s1844_s11 }
 0x31b   :  { %17 = sbr.rel (!%p15_p11) target bundleno = 3 (0x3), region = 103 }

// kernel: transxnet_reviewkd_forward_train.9
= control target key start
LH: loop header
LB: loop body
LE: loop exit
PB: predicated region body
PF: predicated region fallthrough
CT: control target
= control target key end

     0   :  { %s2858_s18 = smov 0   ;;  %s3414_s0 = inlined_call_operand.vmem [shape: bf16[2,82,128], index: 0, kind: input, shape index: {}]   ;;  %s3415_s1 = inlined_call_operand.vmem [shape: bf16[3,3,128,128], index: 1, kind: input, shape index: {}]   ;;  %s3416_s2 = inlined_call_operand.vmem [shape: f32[64,1], index: 2, kind: input, shape index: {}]   ;;  %s3417_s3 = inlined_call_operand.vmem [shape: f32[64,1], index: 3, kind: input, shape index: {}]   ;;  %s3418_s4 = inlined_call_operand.vmem [shape: f32[2,64,128], index: 4, kind: output, shape index: {0}]   ;;  %s3419_s5 = inlined_call_operand.vmem [shape: f32[2,2,128], index: 5, kind: output, shape index: {1}]  }
   0x1 LB: > { %s2067_s19 = sadd.s32 4294967295, %s2825_s18   ;;  %p2071_p0 = scmp.ge.s32.totalorder %s2825_s18, 1  ;;  %s2825_s18 = sphi %s2858_s18, %s16_s18  }
   0x2   : > { %p190_p1 = scmp.lt.s32.totalorder %s2825_s18, 3 }
   0x4   : > { %p191_p2 = pnand %p2071_p0, %p190_p1 }
   0x5   : > { %v2717_v0 = vld [vmem:[%s3415_s1] sm:$0xff] (!%p191_p2)   ;;  %v2719_v2 = vld [vmem:[%s3415_s1 + $0x8] sm:$0xff] (!%p191_p2)   ;;  %p222_p3 = scmp.lt.s32.totalorder (!%p191_p2), %s2067_s19, 1  ;;  %v2721_v4 = vld [vmem:[%s3415_s1 + $0x10] sm:$0xff] (!%p191_p2)   ;;  %v2827_v6 = vmov (!%p191_p2), 0   ;;  %vm686_vm1 = vcmask (!%p191_p2), 1046528  }
   0x6   : > { %194 = sbr.rel (%p191_p2) target bundleno = 414 (0x19e), region = 36  ;;  %v2718_v1 = vld [vmem:[%s3415_s1 + $0x40] sm:$0xff] (!%p191_p2)   ;;  %2417 = vmatprep.subr.bf16.mxu0 (!%p191_p2), %v2717_v0  ;;  %v2720_v3 = vld [vmem:[%s3415_s1 + $0x48] sm:$0xff] (!%p191_p2)   ;;  %v2722_v5 = vld [vmem:[%s3415_s1 + $0x50] sm:$0xff] (!%p191_p2)   ;;  %2715 = vset.pattern.permute.xlu0 (!%p191_p2), %v2827_v6  ;;  %vm503_vm0 = vsmask.f32 (!%p191_p2), 7424 }
   0x7   : > { %2441 = vmatprep.subr.bf16.mxu1 (!%p191_p2), %v2718_v1  ;;  %2418 = vmatpush3.bf16.msra.mxu0 (!%p191_p2), %v2717_v0  ;;  %v2723_v7 = vld [vmem:[%s3415_s1 + $0x18] sm:$0xff] (!%p191_p2)   ;;  %v2725_v9 = vld [vmem:[%s3415_s1 + $0x20] sm:$0xff] (!%p191_p2)   ;;  %v2727_v11 = vld [vmem:[%s3415_s1 + $0x28] sm:$0xff] (!%p191_p2)  }
   0x8   : > { %2442 = vmatpush3.bf16.msra.mxu1 (!%p191_p2), %v2718_v1  ;;  %2419 = vmatprep.subr.bf16.mxu0 (!%p191_p2), %v2719_v2  ;;  %v2724_v8 = vld [vmem:[%s3415_s1 + $0x58] sm:$0xff] (!%p191_p2)   ;;  %v2726_v10 = vld [vmem:[%s3415_s1 + $0x60] sm:$0xff] (!%p191_p2)   ;;  %v2728_v13 = vld [vmem:[%s3415_s1 + $0x68] sm:$0xff] (!%p191_p2)  }
   0x9   : > { %2443 = vmatprep.subr.bf16.mxu1 (!%p191_p2), %v2720_v3  ;;  %2716 = vset.pattern.permute.xlu1 (!%p191_p2), %v2827_v6  ;;  %v2729_v17 = vld [vmem:[%s3415_s1 + $0x30] sm:$0xff] (!%p191_p2)   ;;  %v2731_v27 = vld [vmem:[%s3415_s1 + $0x38] sm:$0xff] (!%p191_p2)   ;;  %v2738_v36 = vld [vmem:[%s3415_s1 + $0x80] sm:$0xff] (!%p191_p2)  }
   0xa   : > { %v2730_v18 = vld [vmem:[%s3415_s1 + $0x70] sm:$0xff] (!%p191_p2)   ;;  %v2732_v32 = vld [vmem:[%s3415_s1 + $0x78] sm:$0xff] (!%p191_p2)   ;;  %v2739_v39 = vld [vmem:[%s3415_s1 + $0xc0] sm:$0xff] (!%p191_p2)  }
   0xb   : > { %2420 = vmatpush3.bf16.msra.mxu0 (!%p191_p2), %v2719_v2  ;;  %v2741_v41 = vld [vmem:[%s3415_s1 + $0x88] sm:$0xff] (!%p191_p2)   ;;  %v2743_v45 = vld [vmem:[%s3415_s1 + $0x90] sm:$0xff] (!%p191_p2)   ;;  %v2745_v56 = vld [vmem:[%s3415_s1 + $0x98] sm:$0xff] (!%p191_p2)  }
   0xc   : > { %2444 = vmatpush3.bf16.msra.mxu1 (!%p191_p2), %v2720_v3  ;;  %2421 = vmatprep.subr.bf16.mxu0 (!%p191_p2), %v2721_v4  ;;  %v2742_v43 = vld [vmem:[%s3415_s1 + $0xc8] sm:$0xff] (!%p191_p2)   ;;  %v2744_v49 = vld [vmem:[%s3415_s1 + $0xd0] sm:$0xff] (!%p191_p2)   ;;  %v2746_v58 = vld [vmem:[%s3415_s1 + $0xd8] sm:$0xff] (!%p191_p2)  }
   0xd   : > { %s3421_s19 = smov (!%p222_p3, %s2067_s19), 1  ;;  %2445 = vmatprep.subr.bf16.mxu1 %v2722_v5  ;;  %v2748_v6 = vld [vmem:[%s3415_s1 + $0xe0] sm:$0xff]  }
   0xe   : > { %s2705_s11 = smul.u32 44, %s3421_s19  ;;  %s2308_s21 = sshll.u32 %s3421_s19, 6 }
   0xf   : > { %2422 = vmatpush3.bf16.msra.mxu0 %v2721_v4  ;;  %v2747_v4 = vld [vmem:[%s3415_s1 + $0xa0] sm:$0xff]   ;;  %s3390_s25 = scalar_lea.vmem %s3418_s4, %s2308_s21  ;;  %s2075_s26 = sshll.u32 %s3421_s19, 1 }
  0x10   : > { %2446 = vmatpush3.bf16.msra.mxu1 %v2722_v5  ;;  %2423 = vmatprep.subr.bf16.mxu0 %v2723_v7  ;;  %s2905_s22 = scalar_lea.vmem %s3414_s0, %s2705_s11  ;;  %s235_s29 = scalar_lea.vmem %s3419_s5, %s2075_s26 }
  0x11   : > { %2447 = vmatprep.subr.bf16.mxu1 %v2724_v8  ;;  %v2733_v12 = vld [vmem:[%s2905_s22] sm:$0xff]   ;;  %v2916_v16 = vld [vmem:[%s2905_s22 + $0x8] sm:$0xf]  ;;  %v2925_v19 = vld [vmem:[%s2905_s22 + $0xc] sm:$0xf] }
  0x12   : > { %2433 = vmatprep.mubr.bf16.mxu0 %v2733_v12  ;;  %v454_v14 = vld [vmem:[%s2905_s22] sm:$0xf]  ;;  %v2913_v15 = vld [vmem:[%s2905_s22 + $0x4] sm:$0xf]  ;;  %v2929_v21 = vld [vmem:[%s2905_s22 + $0x10] sm:$0xf]  ;;  %v2933_v22 = vcombine.low %v2916_v16, %v2925_v19 }
  0x13   : > { %2424 = vmatpush3.bf16.msra.mxu0 %v2723_v7  ;;  %v2104_v20 = vcombine.low %v454_v14, %v2913_v15  ;;  %v2937_v26 = vld [vmem:[%s2905_s22 + $0x14] sm:$0xf]  ;;  %v2734_v40 = vld [vmem:[%s2905_s22 + $0x8] sm:$0xff]   ;;  %v2971_v46 = vld [vmem:[%s2905_s22 + $0x18] sm:$0xf]  ;;  %v2158_v2 = vcombine.low %v2913_v15, %v2916_v16 }
  0x14   : > { %2448 = vmatpush3.bf16.msra.mxu1 %v2724_v8  ;;  %2425 = vmatprep.subr.bf16.mxu0 %v2725_v9  ;;  %v512_v25 = vshll.u32 %v2933_v22, 16  ;;  %v2944_v29 = vcombine.low %v2929_v21, %v2937_v26  ;;  %v516_v31 = vshrl.u32 %v2933_v22, 16  ;;  %v2751_v44 = vld [vmem:[%s2905_s22 + $0x10] sm:$0xff]   ;;  %v2975_v48 = vld [vmem:[%s2905_s22 + $0x1c] sm:$0xf]  ;;  %v688_v63 = vrot.slane %v2933_v22, 1 }
  0x15   : > { %2449 = vmatprep.subr.bf16.mxu1 %v2726_v10  ;;  %v505_v23 = vshrl.u32 %v2104_v20, 16  ;;  %v507_v24 = vshll.u32 %v2104_v20, 16  ;;  %v2982_v50 = vcombine.low %v2971_v46, %v2975_v48  ;;  %v2752_v51 = vld [vmem:[%s2905_s22 + $0x18] sm:$0xff]   ;;  %v2986_v52 = vld [vmem:[%s2905_s22 + $0x20] ss:$0 sps:$4 sm:$0x11]  }
  0x16   : > { %v514_v30 = vrot.slane %v512_v25, 1  ;;  %v520_v34 = vshll.u32 %v2944_v29, 16  ;;  %v524_v47 = vshrl.u32 %v2944_v29, 16  ;;  %v536_v57 = vshll.u32 %v2986_v52, 16  ;;  %v665_v60 = vld [vmem:[%s2905_s22] sm:$0xe] }
  0x17   : > { %2426 = vmatpush3.bf16.msra.mxu0 %v2725_v9  ;;  %v509_v28 = vrot.slane %v507_v24, 1  ;;  %v528_v54 = vshll.u32 %v2982_v50, 16  ;;  %v532_v55 = vshrl.u32 %v2982_v50, 16  ;;  %v2133_v62 = vcombine.low %v665_v60, %v2913_v15  ;;  %v2749_v8 = vld [vmem:[%s3415_s1 + $0xa8] sm:$0xff]   ;;  %v2757_v12 = vld [vmem:[%s3415_s1 + $0xb8] sm:$0xff]   ;;  %v2762_v22 = vld [vmem:[%s3415_s1 + $0x140] sm:$0xff]  }
  0x18   : > { %2450 = vmatpush3.bf16.msra.mxu1 %v2726_v10  ;;  %2427 = vmatprep.subr.bf16.mxu0 %v2727_v11  ;;  %v518_v37 = vor.u32 %v516_v31, %v514_v30  ;;  %v522_v38 = vrot.slane %v520_v34, 1  ;;  %v538_v61 = vrot.slane %v536_v57, 1  ;;  %v2750_v9 = vld [vmem:[%s3415_s1 + $0xe8] sm:$0xff]   ;;  %v2754_v10 = vld [vmem:[%s3415_s1 + $0xb0] sm:$0xff]   ;;  %v690_v15 = vrot.slane %v2944_v29, 1  ;;  %v401_v57 = vld [vmem:[%s3416_s2 + $0x18] sm:$0xff] }
  0x19   : > { %2451 = vmatprep.subr.bf16.mxu1 %v2728_v13  ;;  %v510_v33 = vor.u32 %v509_v28, %v505_v23  ;;  %v530_v59 = vrot.slane %v528_v54, 1  ;;  %v687_v3 = vrot.slane %v2133_v62, 1  ;;  %v3030_v14 = vld [vmem:[%s2905_s22 + $0x8] sm:$0xf]  ;;  %v3034_v16 = vld [vmem:[%s2905_s22 + $0xc] sm:$0xf]  ;;  %v2159_v28 = vcombine.low %v2925_v19, %v2929_v21 }
  0x1a   : > { %v523_v42 = vsel %vm503_vm0, %v518_v37, %v522_v38  ;;  %v526_v53 = vor.u32 %v524_v47, %v522_v38  ;;  %v2761_v23 = vld [vmem:[%s3415_s1 + $0x100] sm:$0xff]   ;;  %v692_v24 = vrot.slane %v2982_v50, 1  ;;  %v691_v29 = vsel %vm686_vm1, %v688_v63, %v690_v15  ;;  %v2764_v31 = vld [vmem:[%s3415_s1 + $0x148] sm:$0xff]   ;;  %v2766_v34 = vld [vmem:[%s3415_s1 + $0x150] sm:$0xff]  }
  0x1b   : > { %2428 = vmatpush3.bf16.msra.mxu0 %v2727_v11  ;;  %v515_v35 = vsel %vm503_vm0, %v510_v33, %v514_v30  ;;  %v534_v1 = vor.u32 %v532_v55, %v530_v59  ;;  %v689_v7 = vsel %vm686_vm1, %v687_v3, %v688_v63  ;;  %v2755_v11 = vld [vmem:[%s3415_s1 + $0xf0] sm:$0xff]   ;;  %v2160_v19 = vcombine.low %v2937_v26, %v2971_v46  ;;  %v877_v26 = vld [vmem:[%s2905_s22 + $0x20] sm:$0xf]  ;;  %v399_v47 = vld [vmem:[%s3416_s2 + $0x8] sm:$0xff] }
  0x1c   : > { %2452 = vmatpush3.bf16.msra.mxu1 %v2728_v13  ;;  %2429 = vmatprep.subr.bf16.mxu0 %v2729_v17  ;;  %v531_v0 = vsel %vm503_vm0, %v526_v53, %v530_v59  ;;  %v2758_v13 = vld [vmem:[%s3415_s1 + $0xf8] sm:$0xff]   ;;  %v693_v33 = vsel %vm686_vm1, %v690_v15, %v692_v24  ;;  %v694_v21 = vrot.slane %v2986_v52, 1  ;;  %v400_v52 = vld [vmem:[%s3416_s2 + $0x10] sm:$0xff]  ;;  %v2772_v53 = vld [vmem:[%s3415_s1 + $0x160] sm:$0xff]  }
  0x1d   : > { %2453 = vmatprep.subr.bf16.mxu1 %v2730_v18  ;;  %2457 = vmatprep.mubr.bf16.mxu1 %v515_v35  ;;  %v539_v5 = vsel %vm503_vm0, %v534_v1, %v538_v61  ;;  %v2769_v50 = vld [vmem:[%s3415_s1 + $0x118] sm:$0xff]   ;;  %v2771_v54 = vld [vmem:[%s3415_s1 + $0x120] sm:$0xff]   ;;  %v2774_v55 = vld [vmem:[%s3415_s1 + $0x168] sm:$0xff]  }
  0x1e   : > { %v2773_v59 = vld [vmem:[%s3415_s1 + $0x128] sm:$0xff]   ;;  %v2775_v60 = vld [vmem:[%s3415_s1 + $0x130] sm:$0xff]   ;;  %v402_v62 = vld [vmem:[%s3416_s2 + $0x20] sm:$0xff] }
  0x1f   : > { %2430 = vmatpush3.bf16.msra.mxu0 %v2729_v17  ;;  %v1034_v17 = vld [vmem:[%s2905_s22 + $0x4] sm:$0xf]  ;;  %v2776_v63 = vld [vmem:[%s3415_s1 + $0x170] sm:$0xff]   ;;  %v3138_v1 = vld [vmem:[%s2905_s22 + $0x1c] sm:$0xf] }
  0x20   : > { %2454 = vmatpush3.bf16.msra.mxu1 %v2730_v18  ;;  %2431 = vmatprep.subr.bf16.mxu0 %v2731_v27  ;;  %v3038_v18 = vld [vmem:[%s2905_s22 + $0x10] sm:$0xf]  ;;  %v2186_v20 = vcombine.low %v1034_v17, %v3030_v14  ;;  %v2778_v3 = vld [vmem:[%s3415_s1 + $0x178] sm:$0xff]  }
  0x21   : > { %2455 = vmatprep.subr.bf16.mxu1 %v2732_v32  ;;  %v3050_v25 = vcombine.low %v3034_v16, %v3038_v18 }
  0x22   : > { %v1086_v30 = vshll.u32 %v2186_v20, 16 }
  0x23   : > { %2432 = vmatpush3.bf16.msra.mxu0 %v2731_v27  ;;  %v1244_v27 = vld [vmem:[%s2905_s22 + $0x4] sm:$0xe]  ;;  %v1091_v37 = vshll.u32 %v3050_v25, 16 }
  0x24   : > { %2456 = vmatpush3.bf16.msra.mxu1 %v2732_v32  ;;  %2465 = vmatprep.subr.bf16.mxu0 %v2738_v36  ;;  %v2763_v32 = vld [vmem:[%s3415_s1 + $0x108] sm:$0xff]   ;;  %v2215_v35 = vcombine.low %v1244_v27, %v3030_v14  ;;  %v1088_v38 = vrot.slane %v1086_v30, 1 }
  0x25   : > { %2489 = vmatprep.subr.bf16.mxu1 %v2739_v39  ;;  %v3081_v46 = vrot.slane %v1091_v37, 1  ;;  %v2785_v30 = vld [vmem:[%s3415_s1 + $0x188] sm:$0xff]  }
  0x26   : > { %2434 = vmatmul.mubr.bf16.vlgmr.msra.gmra.mrb[0].mxu0 %v2734_v40  ;;  %v2765_v40 = vld [vmem:[%s3415_s1 + $0x110] sm:$0xff]  }
  0x27   : > { %2458 = vmatmul.mubr.bf16.vlgmr.msra.gmra.mrb[0].mxu1 %v523_v42  ;;  %2466 = vmatpush3.bf16.msra.mxu0 %v2738_v36  ;;  %v1084_v36 = vshrl.u32 %v2186_v20, 16  ;;  %v1266_v42 = vrot.slane %v3050_v25, 1 }
  0x28   : > { %2490 = vmatpush3.bf16.msra.mxu1 %v2739_v39  ;;  %2467 = vmatprep.subr.bf16.mxu0 %v2741_v41  ;;  %v398_v39 = vld [vmem:[%s3416_s2] sm:$0xff] }
  0x29   : > { %2491 = vmatprep.subr.bf16.mxu1 %v2742_v43  ;;  %2437 = vmatprep.mubr.bf16.mxu0 %v2751_v44  ;;  %v2161_v44 = vcombine.low %v2975_v48, %v877_v26 }
  0x2a   : > { %2461 = vmatprep.mubr.bf16.mxu1 %v531_v0  ;;  %408 = vperm.xlu0 %2715, %v398_v39   ;;  %v813_v0 = vld [vmem:[%s3417_s3] sm:$0xff] }
  0x2b   : > { %2468 = vmatpush3.bf16.msra.mxu0 %v2741_v41  ;;  %v1265_v41 = vrot.slane %v2215_v35, 1  ;;  %823 = vperm.xlu1 %2716, %v813_v0   ;;  %v2796_v0 = vld [vmem:[%s3415_s1 + $0x1e8] sm:$0xff]  }
  0x2c   : > { %2492 = vmatpush3.bf16.msra.mxu1 %v2742_v43  ;;  %2469 = vmatprep.subr.bf16.mxu0 %v2743_v45  ;;  %v695_v43 = vsel %vm686_vm1, %v692_v24, %v694_v21  ;;  %v2783_v24 = vld [vmem:[%s3415_s1 + $0x180] sm:$0xff]  }
  0x2d   : > { %2493 = vmatprep.subr.bf16.mxu1 %v2744_v49  ;;  %v1267_v48 = vsel %vm686_vm1, %v1265_v41, %v1266_v42 }
  0x2e   : > { %2438 = vmatmul.mubr.bf16.gmra.mrb[4].mxu0 %v2752_v51  ;;  %413 = vperm.xlu0 %2715, %v399_v47  }
  0x2f   : > { %2470 = vmatpush3.bf16.msra.mxu0 %v2743_v45  ;;  %2462 = vmatmul.mubr.bf16.gmra.mrb[4].mxu1 %v539_v5  ;;  %v1089_v45 = vor.u32 %v1088_v38, %v1084_v36  ;;  %v814_v5 = vld [vmem:[%s3417_s3 + $0x8] sm:$0xff]  ;;  %v405_v36 = vld [vmem:[%s3416_s2 + $0x38] sm:$0xff] }
  0x30   : > { %2494 = vmatpush3.bf16.msra.mxu1 %v2744_v49  ;;  %2471 = vmatprep.subr.bf16.mxu0 %v2745_v56  ;;  %v2770_v49 = vld [vmem:[%s3415_s1 + $0x158] sm:$0xff]  }
  0x31   : > { %2495 = vmatprep.subr.bf16.mxu1 %v2746_v58  ;;  %2481 = vmatprep.mubr.bf16.mxu0 %v689_v7  ;;  %v1094_v51 = vsel %vm503_vm0, %v1089_v45, %v3081_v46  ;;  %v403_v7 = vld [vmem:[%s3416_s2 + $0x28] sm:$0xff]  ;;  %v817_v45 = vld [vmem:[%s3417_s3 + $0x20] sm:$0xff] }
  0x32   : > { %2505 = vmatprep.mubr.bf16.mxu1 %v2158_v2  ;;  %418 = vperm.xlu0 %2715, %v400_v52   ;;  %v3141_v2 = vld [vmem:[%s2905_s22 + $0x20] sm:$0xf] }
  0x33   : > { %2472 = vmatpush3.bf16.msra.mxu0 %v2745_v56  ;;  %v3110_v56 = vld [vmem:[%s2905_s22 + $0x14] sm:$0xf]  ;;  %828 = vperm.xlu1 %2716, %v814_v5  }
  0x34   : > { %2496 = vmatpush3.bf16.msra.mxu1 %v2746_v58  ;;  %2473 = vmatprep.subr.bf16.mxu0 %v2747_v4  ;;  %v3116_v58 = vld [vmem:[%s2905_s22 + $0x18] sm:$0xf]  ;;  %v2798_v5 = vld [vmem:[%s3415_s1 + $0x1f0] sm:$0xff]  }
  0x35   : > { %2497 = vmatprep.subr.bf16.mxu1 %v2748_v6  ;;  %v3126_v61 = vcombine.low %v3110_v56, %v3116_v58 }
  0x36   : > { %423 = vperm.xlu0 %2715, %v401_v57   ;;  %v2792_v57 = vld [vmem:[%s3415_s1 + $0x1d8] sm:$0xff]  }
  0x37   : > { %2474 = vmatpush3.bf16.msra.mxu0 %v2747_v4  ;;  %v1095_v4 = vshrl.u32 %v3050_v25, 16  ;;  %v1103_v15 = vshrl.u32 %v3126_v61, 16  ;;  %v2786_v25 = vld [vmem:[%s3415_s1 + $0x1c8] sm:$0xff]  }
  0x38   : > { %2498 = vmatpush3.bf16.msra.mxu1 %v2748_v6  ;;  %2475 = vmatprep.subr.bf16.mxu0 %v2749_v8  ;;  %v1099_v6 = vshll.u32 %v3126_v61, 16 }
  0x39   : > { %2499 = vmatprep.subr.bf16.mxu1 %v2750_v9 }
  0x3a   : > { %428 = vperm.xlu0 %2715, %v402_v62   ;;  %v1101_v27 = vrot.slane %v1099_v6, 1  ;;  %v2793_v62 = vld [vmem:[%s3415_s1 + $0x1a0] sm:$0xff]  }
  0x3b   : > { %2476 = vmatpush3.bf16.msra.mxu0 %v2749_v8  ;;  %v1564_v8 = vld [vmem:[%s2905_s22 + $0x8] sm:$0xf]  ;;  %v3253_v6 = vld [vmem:[%s2905_s22 + $0x20] sm:$0xff]  }
  0x3c   : > { %2500 = vmatpush3.bf16.msra.mxu1 %v2750_v9  ;;  %2477 = vmatprep.subr.bf16.mxu0 %v2754_v10  ;;  %v3156_v9 = vld [vmem:[%s2905_s22 + $0xc] sm:$0xf] }
  0x3d   : > { %2501 = vmatprep.subr.bf16.mxu1 %v2755_v11  ;;  %v2268_v20 = vcombine.low %v1564_v8, %v3156_v9 }
  0x3e   : > { %433 = vperm.xlu0 %2715, %v403_v7   ;;  %v2799_v7 = vld [vmem:[%s3415_s1 + $0x1b8] sm:$0xff]  }
  0x3f   : > { %2478 = vmatpush3.bf16.msra.mxu0 %v2754_v10  ;;  %v2777_v10 = vld [vmem:[%s3415_s1 + $0x138] sm:$0xff]   ;;  %v1616_v35 = vshll.u32 %v2268_v20, 16 }
  0x40   : > { %2502 = vmatpush3.bf16.msra.mxu1 %v2755_v11  ;;  %2479 = vmatprep.subr.bf16.mxu0 %v2757_v12  ;;  %v2189_v11 = vcombine.low %v3138_v1, %v3141_v2 }
  0x41   : > { %2503 = vmatprep.subr.bf16.mxu1 %v2758_v13 }
  0x42   : > { %v1107_v17 = vshll.u32 %v2189_v11, 16  ;;  %v1111_v38 = vshrl.u32 %v2189_v11, 16 }
  0x43   : > { %2480 = vmatpush3.bf16.msra.mxu0 %v2757_v12  ;;  %v815_v12 = vld [vmem:[%s3417_s3 + $0x10] sm:$0xff] }
  0x44   : > { %2504 = vmatpush3.bf16.msra.mxu1 %v2758_v13  ;;  %2537 = vmatprep.subr.bf16.mxu0 %v2762_v22  ;;  %v1268_v13 = vrot.slane %v3126_v61, 1  ;;  %v1109_v21 = vrot.slane %v1107_v17, 1  ;;  %v819_v61 = vld [vmem:[%s3417_s3 + $0x30] sm:$0xff] }
  0x45   : > { %2513 = vmatprep.subr.bf16.mxu1 %v2761_v23  ;;  %833 = vperm.xlu1 %2716, %v815_v12  }
  0x46   : > { %2482 = vmatmul.mubr.bf16.vlgmr.msra.gmra.mrb[8].mxu0 %v691_v29  ;;  %v2784_v29 = vld [vmem:[%s3415_s1 + $0x1c0] sm:$0xff]   ;;  %v1113_v47 = vor.u32 %v1111_v38, %v1109_v21  ;;  %v1800_v38 = vrot.slane %v3253_v6, 1 }
  0x47   : > { %2506 = vmatmul.mubr.bf16.vlgmr.msra.gmra.mrb[8].mxu1 %v2159_v28  ;;  %2538 = vmatpush3.bf16.msra.mxu0 %v2762_v22  ;;  %v404_v22 = vld [vmem:[%s3416_s2 + $0x30] sm:$0xff]  ;;  %v2788_v28 = vld [vmem:[%s2905_s22 + $0x24] ss:$0 sps:$4 sm:$0x11]  }
  0x48   : > { %2514 = vmatpush3.bf16.msra.mxu1 %v2761_v23  ;;  %2539 = vmatprep.subr.bf16.mxu0 %v2764_v31  ;;  %v1097_v23 = vor.u32 %v1095_v4, %v3081_v46  ;;  %v1115_v39 = vshll.u32 %v2788_v28, 16  ;;  %v2789_v46 = vld [vmem:[%s3415_s1 + $0x190] sm:$0xff]   ;;  %v3247_v4 = vld [vmem:[%s2905_s22 + $0x18] sm:$0xff]  }
  0x49   : > { %2515 = vmatprep.subr.bf16.mxu1 %v2763_v32  ;;  %2485 = vmatprep.mubr.bf16.mxu0 %v693_v33  ;;  %v1269_v33 = vsel %vm686_vm1, %v1266_v42, %v1268_v13  ;;  %v1614_v42 = vshrl.u32 %v2268_v20, 16  ;;  %v1633_v12 = vshrl.u32 %v3247_v4, 16  ;;  %v2806_v20 = vld [vmem:[%s3415_s1 + $0x200] sm:$0xff]  }
  0x4a   : > { %2509 = vmatprep.mubr.bf16.mxu1 %v2160_v19  ;;  %438 = vperm.xlu0 %2715, %v404_v22   ;;  %v1105_v19 = vor.u32 %v1103_v15, %v1101_v27  ;;  %v1102_v37 = vsel %vm503_vm0, %v1097_v23, %v1101_v27  ;;  %v3269_v22 = vld [vmem:[%s2905_s22 + $0x28] ss:$0 sps:$4 sm:$0x11]   ;;  %v2241_v23 = vcombine.low %v3038_v18, %v3110_v56 }
  0x4b   : > { %2540 = vmatpush3.bf16.msra.mxu0 %v2764_v31  ;;  %v1270_v31 = vrot.slane %v2189_v11, 1  ;;  %v2800_v11 = vld [vmem:[%s3415_s1 + $0x1f8] sm:$0xff]   ;;  %v2242_v18 = vcombine.low %v3116_v58, %v3138_v1 }
  0x4c   : > { %2516 = vmatpush3.bf16.msra.mxu1 %v2763_v32  ;;  %2541 = vmatprep.subr.bf16.mxu0 %v2766_v34  ;;  %v816_v32 = vld [vmem:[%s3417_s3 + $0x18] sm:$0xff]  ;;  %v1110_v41 = vsel %vm503_vm0, %v1105_v19, %v1109_v21  ;;  %v1407_v19 = vld [vmem:[%s2905_s22 + $0x24] sm:$0xf] }
  0x4d   : > { %2517 = vmatprep.subr.bf16.mxu1 %v2765_v40  ;;  %838 = vperm.xlu1 %2716, %v816_v32   ;;  %v1271_v26 = vsel %vm686_vm1, %v1268_v13, %v1270_v31  ;;  %v1637_v13 = vshll.u32 %v3253_v6, 16  ;;  %v1645_v32 = vshll.u32 %v3269_v22, 16  ;;  %v2243_v58 = vcombine.low %v3141_v2, %v1407_v19 }
  0x4e   : > { %2486 = vmatmul.mubr.bf16.gmra.mrb[12].mxu0 %v695_v43  ;;  %443 = vperm.xlu0 %2715, %v405_v36   ;;  %v1618_v43 = vrot.slane %v1616_v35, 1  ;;  %v2812_v36 = vld [vmem:[%s3415_s1 + $0x210] sm:$0xff]  }
  0x4f   : > { %2542 = vmatpush3.bf16.msra.mxu0 %v2766_v34  ;;  %2510 = vmatmul.mubr.bf16.gmra.mrb[12].mxu1 %v2161_v44  ;;  %v3190_v34 = vld [vmem:[%s2905_s22 + $0x10] sm:$0xff]   ;;  %v1639_v27 = vrot.slane %v1637_v13, 1  ;;  %v1647_v35 = vrot.slane %v1645_v32, 1 }
  0x50   : > { %2518 = vmatpush3.bf16.msra.mxu1 %v2765_v40  ;;  %2543 = vmatprep.subr.bf16.mxu0 %v2770_v49  ;;  %v1272_v40 = vrot.slane %v2788_v28, 1  ;;  %v1621_v44 = vshll.u32 %v3190_v34, 16  ;;  %v1625_v8 = vshrl.u32 %v3190_v34, 16  ;;  %v1774_v28 = vld [vmem:[%s2905_s22 + $0x8] sm:$0xe] }
  0x51   : > { %2519 = vmatprep.subr.bf16.mxu1 %v2769_v50  ;;  %2553 = vmatprep.mubr.bf16.mxu0 %v1267_v48  ;;  %v2297_v56 = vcombine.low %v1774_v28, %v3156_v9  ;;  %v1796_v9 = vrot.slane %v3190_v34, 1 }
  0x52   : > { %2529 = vmatprep.mubr.bf16.mxu1 %v1094_v51  ;;  %843 = vperm.xlu1 %2716, %v817_v45   ;;  %v1273_v48 = vsel %vm686_vm1, %v1270_v31, %v1272_v40  ;;  %v1619_v51 = vor.u32 %v1618_v43, %v1614_v42  ;;  %v1623_v52 = vrot.slane %v1621_v44, 1  ;;  %v1641_v31 = vshrl.u32 %v3253_v6, 16  ;;  %v2815_v40 = vld [vmem:[%s3415_s1 + $0x228] sm:$0xff]   ;;  %v2817_v42 = vld [vmem:[%s3415_s1 + $0x238] sm:$0xff]  }
  0x53   : > { %2544 = vmatpush3.bf16.msra.mxu0 %v2770_v49  ;;  %v1117_v49 = vrot.slane %v1115_v39, 1  ;;  %v1795_v1 = vrot.slane %v2297_v56, 1  ;;  %v1802_v43 = vrot.slane %v3269_v22, 1 }
  0x54   : > { %2520 = vmatpush3.bf16.msra.mxu1 %v2769_v50  ;;  %2545 = vmatprep.subr.bf16.mxu0 %v2772_v53  ;;  %v2790_v50 = vld [vmem:[%s3415_s1 + $0x1d0] sm:$0xff]   ;;  %v1627_v15 = vor.u32 %v1625_v8, %v1623_v52  ;;  %v1643_v21 = vor.u32 %v1641_v31, %v1639_v27 }
  0x55   : > { %2521 = vmatprep.subr.bf16.mxu1 %v2771_v54  ;;  %v1797_v2 = vsel %vm686_vm1, %v1795_v1, %v1796_v9  ;;  %v1803_v45 = vsel %vm686_vm1, %v1800_v38, %v1802_v43 }
  0x56   : > { %v1648_v39 = vsel %vm503_vm0, %v1643_v21, %v1647_v35 }
  0x57   : > { %2546 = vmatpush3.bf16.msra.mxu0 %v2772_v53  ;;  %v818_v53 = vld [vmem:[%s3417_s3 + $0x28] sm:$0xff] }
  0x58   : > { %2522 = vmatpush3.bf16.msra.mxu1 %v2771_v54  ;;  %2547 = vmatprep.subr.bf16.mxu0 %v2774_v55  ;;  %v2791_v54 = vld [vmem:[%s3415_s1 + $0x198] sm:$0xff]  }
  0x59   : > { %2523 = vmatprep.subr.bf16.mxu1 %v2773_v59  ;;  %848 = vperm.xlu1 %2716, %v818_v53  }
  0x5b   : > { %2548 = vmatpush3.bf16.msra.mxu0 %v2774_v55  ;;  %v1118_v55 = vsel %vm503_vm0, %v1113_v47, %v1117_v49 }
  0x5c   : > { %2524 = vmatpush3.bf16.msra.mxu1 %v2773_v59  ;;  %2549 = vmatprep.subr.bf16.mxu0 %v2776_v63  ;;  %v2240_v59 = vcombine.low %v3030_v14, %v3034_v16  ;;  %v2794_v14 = vld [vmem:[%s3415_s1 + $0x1e0] sm:$0xff]   ;;  %v820_v16 = vld [vmem:[%s3417_s3 + $0x38] sm:$0xff] }
  0x5d   : > { %2525 = vmatprep.subr.bf16.mxu1 %v2775_v60  ;;  %853 = vperm.xlu1 %2716, %v819_v61  }
  0x5f   : > { %2550 = vmatpush3.bf16.msra.mxu0 %v2776_v63  ;;  %v2795_v63 = vld [vmem:[%s3415_s1 + $0x1a8] sm:$0xff]  }
  0x60   : > { %2526 = vmatpush3.bf16.msra.mxu1 %v2775_v60  ;;  %2551 = vmatprep.subr.bf16.mxu0 %v2778_v3  ;;  %v1624_v60 = vsel %vm503_vm0, %v1619_v51, %v1623_v52 }
  0x61   : > { %2527 = vmatprep.subr.bf16.mxu1 %v2777_v10  ;;  %858 = vperm.xlu1 %2716, %v820_v16  }
  0x63   : > { %2552 = vmatpush3.bf16.msra.mxu0 %v2778_v3  ;;  %v2797_v3 = vld [vmem:[%s3415_s1 + $0x1b0] sm:$0xff]  }
  0x64   : > { %2528 = vmatpush3.bf16.msra.mxu1 %v2777_v10  ;;  %2561 = vmatprep.subr.bf16.mxu0 %v2783_v24  ;;  %v1629_v10 = vshll.u32 %v3247_v4, 16 }
  0x65   : > { %2585 = vmatprep.subr.bf16.mxu1 %v2784_v29 }
  0x66   : > { %2554 = vmatmul.mubr.bf16.vlgmr.msra.gmra.mrb[16].mxu0 %v1269_v33  ;;  %v1631_v17 = vrot.slane %v1629_v10, 1 }
  0x67   : > { %2530 = vmatmul.mubr.bf16.vlgmr.msra.gmra.mrb[0].mxu1 %v1102_v37  ;;  %2562 = vmatpush3.bf16.msra.mxu0 %v2783_v24  ;;  %v1798_v37 = vrot.slane %v3247_v4, 1 }
  0x68   : > { %2586 = vmatpush3.bf16.msra.mxu1 %v2784_v29  ;;  %2563 = vmatprep.subr.bf16.mxu0 %v2785_v30  ;;  %v1635_v24 = vor.u32 %v1633_v12, %v1631_v17  ;;  %v1632_v29 = vsel %vm503_vm0, %v1627_v15, %v1631_v17 }
  0x69   : > { %2587 = vmatprep.subr.bf16.mxu1 %v2786_v25  ;;  %2557 = vmatprep.mubr.bf16.mxu0 %v1271_v26  ;;  %v1801_v34 = vsel %vm686_vm1, %v1798_v37, %v1800_v38  ;;  %v2814_v26 = vld [vmem:[%s3415_s1 + $0x220] sm:$0xff]   ;;  %v1799_v44 = vsel %vm686_vm1, %v1796_v9, %v1798_v37 }
  0x6a   : > { %2533 = vmatprep.mubr.bf16.mxu1 %v1110_v41  ;;  %v1640_v33 = vsel %vm503_vm0, %v1635_v24, %v1639_v27  ;;  %v2816_v41 = vld [vmem:[%s3415_s1 + $0x230] sm:$0xff]  }
  0x6b   : > { %2564 = vmatpush3.bf16.msra.mxu0 %v2785_v30  ;;  %v2807_v30 = vld [vmem:[%s3415_s1 + $0x208] sm:$0xff]  }
  0x6c   : > { %2588 = vmatpush3.bf16.msra.mxu1 %v2786_v25  ;;  %2565 = vmatprep.subr.bf16.mxu0 %v2789_v46  ;;  %v2813_v25 = vld [vmem:[%s3415_s1 + $0x218] sm:$0xff]  }
  0x6d   : > { %2589 = vmatprep.subr.bf16.mxu1 %v2790_v50 }
  0x6e   : > { %2558 = vmatmul.mubr.bf16.gmra.mrb[20].mxu0 %v1273_v48 }
  0x6f   : > { %2566 = vmatpush3.bf16.msra.mxu0 %v2789_v46  ;;  %2534 = vmatmul.mubr.bf16.gmra.mrb[4].mxu1 %v1118_v55 }
  0x70   : > { %2590 = vmatpush3.bf16.msra.mxu1 %v2790_v50  ;;  %2567 = vmatprep.subr.bf16.mxu0 %v2791_v54 }
  0x71   : > { %2591 = vmatprep.subr.bf16.mxu1 %v2792_v57  ;;  %2577 = vmatprep.mubr.bf16.mxu0 %v2240_v59 }
  0x72   : > { %2601 = vmatprep.mubr.bf16.mxu1 %v1624_v60 }
  0x73   : > { %2568 = vmatpush3.bf16.msra.mxu0 %v2791_v54 }
  0x74   : > { %2592 = vmatpush3.bf16.msra.mxu1 %v2792_v57  ;;  %2569 = vmatprep.subr.bf16.mxu0 %v2793_v62 }
  0x75   : > { %2593 = vmatprep.subr.bf16.mxu1 %v2794_v14 }
  0x77   : > { %2570 = vmatpush3.bf16.msra.mxu0 %v2793_v62 }
  0x78   : > { %2594 = vmatpush3.bf16.msra.mxu1 %v2794_v14  ;;  %2571 = vmatprep.subr.bf16.mxu0 %v2795_v63 }
  0x79   : > { %2595 = vmatprep.subr.bf16.mxu1 %v2796_v0 }
  0x7b   : > { %2572 = vmatpush3.bf16.msra.mxu0 %v2795_v63 }
  0x7c   : > { %2596 = vmatpush3.bf16.msra.mxu1 %v2796_v0  ;;  %2573 = vmatprep.subr.bf16.mxu0 %v2797_v3 }
  0x7d   : > { %2597 = vmatprep.subr.bf16.mxu1 %v2798_v5 }
  0x7f   : > { %2574 = vmatpush3.bf16.msra.mxu0 %v2797_v3 }
  0x80   : > { %2598 = vmatpush3.bf16.msra.mxu1 %v2798_v5  ;;  %2575 = vmatprep.subr.bf16.mxu0 %v2799_v7 }
  0x81   : > { %2599 = vmatprep.subr.bf16.mxu1 %v2800_v11 }
  0x83   : > { %2576 = vmatpush3.bf16.msra.mxu0 %v2799_v7 }
  0x84   : > { %2600 = vmatpush3.bf16.msra.mxu1 %v2800_v11  ;;  %2609 = vmatprep.subr.bf16.mxu0 %v2806_v20 }
  0x85   : > { %2633 = vmatprep.subr.bf16.mxu1 %v2806_v20 }
  0x86   : > { %2578 = vmatmul.mubr.bf16.vlgmr.msra.gmra.mrb[24].mxu0 %v2241_v23 }
  0x87   : > { %2602 = vmatmul.mubr.bf16.vlgmr.msra.gmra.mrb[0].mxu1 %v1632_v29  ;;  %2610 = vmatpush3.bf16.msra.mxu0 %v2806_v20 }
  0x88   : > { %2641 = vmatpush3.bf16.msra.mxu1 %v2806_v20  ;;  %2611 = vmatprep.subr.bf16.mxu0 %v2807_v30 }
  0x89   : > { %2634 = vmatprep.subr.bf16.mxu1 %v2807_v30  ;;  %2581 = vmatprep.mubr.bf16.mxu0 %v2242_v18 }
  0x8a   : > { %2605 = vmatprep.mubr.bf16.mxu1 %v1640_v33 }
  0x8b   : > { %2612 = vmatpush3.bf16.msra.mxu0 %v2807_v30 }
  0x8c   : > { %2642 = vmatpush3.bf16.msra.mxu1 %v2807_v30  ;;  %2613 = vmatprep.subr.bf16.mxu0 %v2812_v36 }
  0x8d   : > { %2635 = vmatprep.subr.bf16.mxu1 %v2812_v36 }
  0x8e   : > { %2582 = vmatmul.mubr.bf16.gmra.mrb[28].mxu0 %v2243_v58 }
  0x8f   : > { %2606 = vmatmul.mubr.bf16.gmra.mrb[4].mxu1 %v1648_v39  ;;  %2614 = vmatpush3.bf16.msra.mxu0 %v2812_v36 }
  0x90   : > { %2643 = vmatpush3.bf16.msra.mxu1 %v2812_v36  ;;  %2615 = vmatprep.subr.bf16.mxu0 %v2813_v25 }
  0x91   : > { %2636 = vmatprep.subr.bf16.mxu1 %v2813_v25  ;;  %2625 = vmatprep.mubr.bf16.mxu0 %v1797_v2 }
  0x92   : > { %2629 = vmatprep.mubr.bf16.mxu1 %v1801_v34 }
  0x93   : > { %2616 = vmatpush3.bf16.msra.mxu0 %v2813_v25 }
  0x94   : > { %2644 = vmatpush3.bf16.msra.mxu1 %v2813_v25  ;;  %2617 = vmatprep.subr.bf16.mxu0 %v2814_v26 }
  0x95   : > { %2637 = vmatprep.subr.bf16.mxu1 %v2814_v26 }
  0x97   : > { %2618 = vmatpush3.bf16.msra.mxu0 %v2814_v26 }
  0x98   : > { %2645 = vmatpush3.bf16.msra.mxu1 %v2814_v26  ;;  %2619 = vmatprep.subr.bf16.mxu0 %v2815_v40 }
  0x99   : > { %2638 = vmatprep.subr.bf16.mxu1 %v2815_v40 }
  0x9b   : > { %2620 = vmatpush3.bf16.msra.mxu0 %v2815_v40 }
  0x9c   : > { %2646 = vmatpush3.bf16.msra.mxu1 %v2815_v40  ;;  %2621 = vmatprep.subr.bf16.mxu0 %v2816_v41 }
  0x9d   : > { %2639 = vmatprep.subr.bf16.mxu1 %v2816_v41 }
  0x9f   : > { %2622 = vmatpush3.bf16.msra.mxu0 %v2816_v41 }
  0xa0   : > { %2647 = vmatpush3.bf16.msra.mxu1 %v2816_v41  ;;  %2623 = vmatprep.subr.bf16.mxu0 %v2817_v42 }
  0xa1   : > { %2640 = vmatprep.subr.bf16.mxu1 %v2817_v42 }
  0xa3   : > { %2624 = vmatpush3.bf16.msra.mxu0 %v2817_v42 }
  0xa4   : > { %2648 = vmatpush3.bf16.msra.mxu1 %v2817_v42 }
  0xa6   : > { %2626 = vmatmul.mubr.bf16.vlgmr.msra.gmra.mrb[32].mxu0 %v1799_v44 }
  0xa7   : > { %2630 = vmatmul.mubr.bf16.vlgmr.msra.gmra.mrb[16].mxu1 %v1803_v45 }
  0xa9   : > { %v3315_v47 = vpop.permute.xlu0 %408 }
  0xaa   : > { %v3313_v46 = vpop.permute.xlu1 %823 }
  0xad   : > { %v3319_v52 = vpop.permute.xlu0 %413 }
  0xb1   : > { %v3323_v57 = vpop.permute.xlu0 %418 }
  0xb2   : > { %v3317_v51 = vpop.permute.xlu1 %828 }
  0xb5   : > { %v3327_v14 = vpop.permute.xlu0 %423 }
  0xb9   : > { %v3329_v16 = vpop.permute.xlu0 %428 }
  0xbd   : > { %v3333_v0 = vpop.permute.xlu0 %433 }
  0xc4   : > { %v3321_v54 = vpop.permute.xlu1 %833 }
  0xc9   : > { %v3337_v4 = vpop.permute.xlu0 %438 }
  0xcc   : > { %v3325_v62 = vpop.permute.xlu1 %838 }
  0xcd   : > { %v3353_v58 = vpop.permute.xlu0 %443 }
  0xd1   : > { %v3331_v63 = vpop.permute.xlu1 %843 }
  0xd8   : > { %v3335_v3 = vpop.permute.xlu1 %848 }
  0xdc   : > { %v3339_v6 = vpop.permute.xlu1 %853 }
  0xe0   : > { %v3355_v38 = vpop.permute.xlu1 %858 }
  0xf9   : > { %v2435_v49 = vpop.f32.mrb[0].mxu0 }
  0xfa   : > { %v367_v50 = vpop.f32.mrb[1].mxu0  ;;  %v448_v7 = vmul.f32 %v2435_v49, %v3323_v57 }
  0xfb   : > { %v2436_v48 = vpop.f32.mrb[2].mxu0  ;;  %v446_v12 = vmul.f32 %v3315_v47, %v367_v50 }
  0xfc   : > { %v370_v53 = vpop.f32.mrb[3].mxu0  ;;  %v449_v22 = vmul.f32 %v2436_v48, %v3327_v14 }
  0xfd   : > { %v447_v30 = vmul.f32 %v3319_v52, %v370_v53 }
 0x101   : > { %v2439_v55 = vpop.f32.mrb[4].mxu0 }
 0x102   : > { %v383_v59 = vpop.f32.mrb[5].mxu0  ;;  %v452_v39 = vmul.f32 %v2439_v55, %v3337_v4 }
 0x103   : > { %v2440_v60 = vpop.f32.mrb[6].mxu0  ;;  %v450_v26 = vmul.f32 %v3329_v16, %v383_v59 }
 0x104   : > { %v386_v61 = vpop.f32.mrb[7].mxu0  ;;  %v453_v44 = vmul.f32 %v2440_v60, %v3353_v58 }
 0x105   : > { %v451_v55 = vmul.f32 %v3333_v0, %v386_v61 }
 0x119   : > { %v2483_v5 = vpop.f32.mrb[8].mxu0 }
 0x11a   : > { %v863_v8 = vmul.f32 %v2483_v5, %v3321_v54  ;;  %v782_v10 = vpop.f32.mrb[9].mxu0  ;;  %v2507_v11 = vpop.f32.mrb[8].mxu1 }
 0x11b   : > { %v861_v13 = vmul.f32 %v3313_v46, %v782_v10  ;;  %v2484_v15 = vpop.f32.mrb[10].mxu0  ;;  %v1020_v17 = vmul.f32 %v2507_v11, %v3323_v57  ;;  %v987_v20 = vpop.f32.mrb[9].mxu1 }
 0x11c   : > { %v2649_v23 = vadd.f32 %v863_v8, %v448_v7  ;;  %v864_v24 = vmul.f32 %v2484_v15, %v3325_v62  ;;  %v785_v27 = vpop.f32.mrb[11].mxu0  ;;  %v1018_v28 = vmul.f32 %v987_v20, %v3315_v47  ;;  %v2508_v29 = vpop.f32.mrb[10].mxu1 }
 0x11d   : > { %v2654_v31 = vadd.f32 %v861_v13, %v446_v12  ;;  %v862_v32 = vmul.f32 %v3317_v51, %v785_v27  ;;  %v1021_v18 = vmul.f32 %v2508_v29, %v3327_v14  ;;  %v990_v56 = vpop.f32.mrb[11].mxu1 }
 0x11e   : > { %v2659_v33 = vadd.f32 %v864_v24, %v449_v22  ;;  %v2650_v19 = vadd.f32 %v2649_v23, %v1020_v17  ;;  %v1019_v21 = vmul.f32 %v990_v56, %v3319_v52 }
 0x11f   : > { %v2664_v35 = vadd.f32 %v862_v32, %v447_v30  ;;  %v2655_v36 = vadd.f32 %v2654_v31, %v1018_v28 }
 0x120   : > { %v2660_v1 = vadd.f32 %v2659_v33, %v1021_v18 }
 0x121   : > { %v2665_v9 = vadd.f32 %v2664_v35, %v1019_v21  ;;  %v2487_v37 = vpop.f32.mrb[12].mxu0 }
 0x122   : > { %v867_v25 = vmul.f32 %v2487_v37, %v3339_v6  ;;  %v798_v2 = vpop.f32.mrb[13].mxu0  ;;  %v2511_v34 = vpop.f32.mrb[12].mxu1 }
 0x123   : > { %v865_v40 = vmul.f32 %v3331_v63, %v798_v2  ;;  %v2488_v41 = vpop.f32.mrb[14].mxu0  ;;  %v1024_v42 = vmul.f32 %v2511_v34, %v3337_v4  ;;  %v1003_v43 = vpop.f32.mrb[13].mxu1 }
 0x124   : > { %v2669_v45 = vadd.f32 %v867_v25, %v452_v39  ;;  %v868_v49 = vmul.f32 %v2488_v41, %v3355_v38  ;;  %v801_v50 = vpop.f32.mrb[15].mxu0  ;;  %v1022_v48 = vmul.f32 %v1003_v43, %v3329_v16  ;;  %v2512_v53 = vpop.f32.mrb[14].mxu1 }
 0x125   : > { %v2674_v5 = vadd.f32 %v865_v40, %v450_v26  ;;  %v866_v59 = vmul.f32 %v3335_v3, %v801_v50  ;;  %v1025_v7 = vmul.f32 %v2512_v53, %v3353_v58  ;;  %v1006_v8 = vpop.f32.mrb[15].mxu1 }
 0x126   : > { %v2679_v10 = vadd.f32 %v868_v49, %v453_v44  ;;  %v2670_v11 = vadd.f32 %v2669_v45, %v1024_v42  ;;  %v1023_v12 = vmul.f32 %v1006_v8, %v3333_v0 }
 0x127   : > { %v2684_v60 = vadd.f32 %v866_v59, %v451_v55  ;;  %v2675_v13 = vadd.f32 %v2674_v5, %v1022_v48 }
 0x128   : > { %v2680_v15 = vadd.f32 %v2679_v10, %v1025_v7 }
 0x129   : > { %v2685_v17 = vadd.f32 %v2684_v60, %v1023_v12 }
 0x139   : > { %v2555_v20 = vpop.f32.mrb[16].mxu0 }
 0x13a   : > { %v1393_v22 = vmul.f32 %v2555_v20, %v3321_v54  ;;  %v1360_v23 = vpop.f32.mrb[17].mxu0 }
 0x13b   : > { %v1391_v61 = vmul.f32 %v1360_v23, %v3313_v46  ;;  %v2556_v24 = vpop.f32.mrb[18].mxu0 }
 0x13c   : > { %v2651_v27 = vadd.f32 %v2650_v19, %v1393_v22  ;;  %v1394_v28 = vmul.f32 %v2556_v24, %v3325_v62  ;;  %v1363_v29 = vpop.f32.mrb[19].mxu0 }
 0x13d   : > { %v2656_v30 = vadd.f32 %v2655_v36, %v1391_v61  ;;  %v1392_v31 = vmul.f32 %v1363_v29, %v3317_v51 }
 0x13e   : > { %v2661_v32 = vadd.f32 %v2660_v1, %v1394_v28 }
 0x13f   : > { %v2666_v18 = vadd.f32 %v2665_v9, %v1392_v31 }
 0x141   : > { %v2559_v56 = vpop.f32.mrb[20].mxu0 }
 0x142   : > { %v1397_v33 = vmul.f32 %v2559_v56, %v3339_v6  ;;  %v1376_v21 = vpop.f32.mrb[21].mxu0 }
 0x143   : > { %v1395_v35 = vmul.f32 %v1376_v21, %v3331_v63  ;;  %v2560_v37 = vpop.f32.mrb[22].mxu0 }
 0x144   : > { %v2671_v39 = vadd.f32 %v2670_v11, %v1397_v33  ;;  %v1398_v25 = vmul.f32 %v2560_v37, %v3355_v38  ;;  %v1379_v2 = vpop.f32.mrb[23].mxu0 }
 0x145   : > { %v2676_v19 = vadd.f32 %v2675_v13, %v1395_v35  ;;  %v1396_v34 = vmul.f32 %v1379_v2, %v3335_v3 }
 0x146   : > { %v2681_v26 = vadd.f32 %v2680_v15, %v1398_v25 }
 0x147   : > { %v2686_v36 = vadd.f32 %v2685_v17, %v1396_v34 }
 0x159   : > { %v2579_v40 = vpop.f32.mrb[24].mxu0 }
 0x15a   : > { %v1550_v1 = vmul.f32 %v2579_v40, %v3323_v57  ;;  %v2603_v9 = vpop.f32.mrb[0].mxu1  ;;  %v1517_v41 = vpop.f32.mrb[25].mxu0 }
 0x15b   : > { %v1548_v42 = vmul.f32 %v1517_v41, %v3315_v47  ;;  %v1735_v43 = vpop.f32.mrb[1].mxu1  ;;  %v2580_v44 = vpop.f32.mrb[26].mxu0 }
 0x15c   : > { %v2652_v45 = vadd.f32 %v2651_v27, %v1550_v1  ;;  %v1551_v49 = vmul.f32 %v2580_v44, %v3327_v14  ;;  %v2604_v50 = vpop.f32.mrb[2].mxu1  ;;  %v1520_v48 = vpop.f32.mrb[27].mxu0 }
 0x15d   : > { %v2657_v53 = vadd.f32 %v2656_v30, %v1548_v42  ;;  %v1549_v55 = vmul.f32 %v1520_v48, %v3319_v52  ;;  %v1738_v5 = vpop.f32.mrb[3].mxu1 }
 0x15e   : > { %v2653_v59 = vadd.f32 %v2652_v45, %v2603_v9  ;;  %v2662_v7 = vadd.f32 %v2661_v32, %v1551_v49 }
 0x15f   : > { %v2658_v8 = vadd.f32 %v2657_v53, %v1735_v43  ;;  %v2667_v10 = vadd.f32 %v2666_v18, %v1549_v55 }
 0x160   : > { %v2663_v57 = vadd.f32 %v2662_v7, %v2604_v50 }
 0x161   : > { %v2668_v11 = vadd.f32 %v2667_v10, %v1738_v5  ;;  %v2583_v12 = vpop.f32.mrb[28].mxu0 }
 0x162   : > { %v1554_v47 = vmul.f32 %v2583_v12, %v3337_v4  ;;  %v2607_v60 = vpop.f32.mrb[4].mxu1  ;;  %v1533_v13 = vpop.f32.mrb[29].mxu0 }
 0x163   : > { %v1552_v15 = vmul.f32 %v1533_v13, %v3329_v16  ;;  %v1751_v14 = vpop.f32.mrb[5].mxu1  ;;  %v2584_v17 = vpop.f32.mrb[30].mxu0 }
 0x164   : > { %v2672_v20 = vadd.f32 %v2671_v39, %v1554_v47  ;;  %v1555_v52 = vmul.f32 %v2584_v17, %v3353_v58  ;;  %v2608_v22 = vpop.f32.mrb[6].mxu1  ;;  %v1536_v23 = vpop.f32.mrb[31].mxu0 }
 0x165   : > { %v2677_v61 = vadd.f32 %v2676_v19, %v1552_v15  ;;  %v1553_v24 = vmul.f32 %v1536_v23, %v3333_v0  ;;  %v1754_v27 = vpop.f32.mrb[7].mxu1 }
 0x166   : > { %v2673_v28 = vadd.f32 %v2672_v20, %v2607_v60  ;;  %v2682_v29 = vadd.f32 %v2681_v26, %v1555_v52 }
 0x167   : > { %v2678_v30 = vadd.f32 %v2677_v61, %v1751_v14  ;;  %v2687_v4 = vadd.f32 %v2686_v36, %v1553_v24 }
 0x168   : > { %v2683_v31 = vadd.f32 %v2682_v29, %v2608_v22 }
 0x169   : > { %v2688_v32 = vadd.f32 %v2687_v4, %v1754_v27 }
 0x179   : > { %v2627_v16 = vpop.f32.mrb[32].mxu0 }
 0x17a   : > { %v1923_v18 = vmul.f32 %v2627_v16, %v3321_v54  ;;  %v2631_v56 = vpop.f32.mrb[16].mxu1  ;;  %v1890_v33 = vpop.f32.mrb[33].mxu0 }
 0x17b   : > { %v1927_v0 = vmul.f32 %v2631_v56, %v3339_v6  ;;  %v1921_v58 = vmul.f32 %v1890_v33, %v3313_v46  ;;  %v1906_v21 = vpop.f32.mrb[17].mxu1  ;;  %v2628_v35 = vpop.f32.mrb[34].mxu0 }
 0x17c   : > { %v1931_v37 = vadd.f32 %v2653_v59, %v1923_v18  ;;  %v1925_v39 = vmul.f32 %v1906_v21, %v3331_v63  ;;  %v1924_v54 = vmul.f32 %v2628_v35, %v3325_v62  ;;  %v2632_v25 = vpop.f32.mrb[18].mxu1  ;;  %v1893_v2 = vpop.f32.mrb[35].mxu0 }
 0x17d   : > { %v1935_v19 = vadd.f32 %v2673_v28, %v1927_v0  ;;  %v1929_v34 = vadd.f32 %v2658_v8, %v1921_v58  ;;  %v1928_v6 = vmul.f32 %v2632_v25, %v3355_v38  ;;  %v1922_v46 = vmul.f32 %v1893_v2, %v3317_v51  ;;  %v1909_v26 = vpop.f32.mrb[19].mxu1 }
 0x17e   : > { %1939 = vst [vmem:[%s3390_s25 + $0x10] sm:$0xff] %v1931_v37  ;;  %v1933_v36 = vadd.f32 %v2678_v30, %v1925_v39  ;;  %v1932_v40 = vadd.f32 %v2663_v57, %v1924_v54  ;;  %v1926_v63 = vmul.f32 %v1909_v26, %v3335_v3  ;;  %v1961_v51 = vmul.f32 %v1931_v37, %v1931_v37 }
 0x17f   : > { %1943 = vst [vmem:[%s3390_s25 + $0x30] sm:$0xff] %v1935_v19  ;;  %1937 = vst [vmem:[%s3390_s25] sm:$0xff] %v1929_v34  ;;  %v1936_v62 = vadd.f32 %v2683_v31, %v1928_v6  ;;  %v1930_v1 = vadd.f32 %v2668_v11, %v1922_v46  ;;  %v1959_v41 = vmul.f32 %v1929_v34, %v1929_v34 }
 0x180   : > { %1941 = vst [vmem:[%s3390_s25 + $0x20] sm:$0xff] %v1933_v36  ;;  %1940 = vst [vmem:[%s3390_s25 + $0x18] sm:$0xff] %v1932_v40  ;;  %v1934_v9 = vadd.f32 %v2688_v32, %v1926_v63  ;;  %v1962_v45 = vmul.f32 %v1932_v40, %v1932_v40  ;;  %v1963_v3 = vmul.f32 %v1933_v36, %v1933_v36 }
 0x181   : > { %1944 = vst [vmem:[%s3390_s25 + $0x38] sm:$0xff] %v1936_v62  ;;  %1938 = vst [vmem:[%s3390_s25 + $0x8] sm:$0xff] %v1930_v1  ;;  %v1945_v38 = vadd.f32 %v1930_v1, %v1929_v34  ;;  %v1960_v42 = vmul.f32 %v1930_v1, %v1930_v1  ;;  %v1965_v7 = vmul.f32 %v1935_v19, %v1935_v19 }
 0x182   : > { %1942 = vst [vmem:[%s3390_s25 + $0x28] sm:$0xff] %v1934_v9  ;;  %v1964_v5 = vmul.f32 %v1934_v9, %v1934_v9  ;;  %v1966_v57 = vmul.f32 %v1936_v62, %v1936_v62 }
 0x183   : > { %v1946_v43 = vadd.f32 %v1945_v38, %v1931_v37  ;;  %v1967_v44 = vadd.f32 %v1960_v42, %v1959_v41 }
 0x185   : > { %v1968_v49 = vadd.f32 %v1967_v44, %v1961_v51  ;;  %v1947_v50 = vadd.f32 %v1946_v43, %v1932_v40 }
 0x187   : > { %v1948_v48 = vadd.f32 %v1947_v50, %v1933_v36  ;;  %v1969_v53 = vadd.f32 %v1968_v49, %v1962_v45 }
 0x189   : > { %v1949_v55 = vadd.f32 %v1948_v48, %v1934_v9  ;;  %v1970_v59 = vadd.f32 %v1969_v53, %v1963_v3 }
 0x18b   : > { %v1950_v8 = vadd.f32 %v1949_v55, %v1935_v19  ;;  %v1971_v10 = vadd.f32 %v1970_v59, %v1964_v5 }
 0x18d   : > { %v1951_v11 = vadd.f32 %v1950_v8, %v1936_v62  ;;  %v1972_v12 = vadd.f32 %v1971_v10, %v1965_v7 }
 0x18f   : > { %v1952_v47 = vrot.slane %v1951_v11, 4  ;;  %v1973_v60 = vadd.f32 %v1972_v12, %v1966_v57 }
 0x191   : > { %v1953_v13 = vadd.f32 %v1952_v47, %v1951_v11  ;;  %v1974_v15 = vrot.slane %v1973_v60, 4 }
 0x193   : > { %v1954_v14 = vrot.slane %v1953_v13, 2  ;;  %v1975_v17 = vadd.f32 %v1974_v15, %v1973_v60 }
 0x195   : > { %v1955_v20 = vadd.f32 %v1954_v14, %v1953_v13  ;;  %v1976_v52 = vrot.slane %v1975_v17, 2 }
 0x197   : > { %v1956_v22 = vrot.slane %v1955_v20, 1  ;;  %v1977_v23 = vadd.f32 %v1976_v52, %v1975_v17 }
 0x199   : > { %v1957_v61 = vadd.f32 %v1956_v22, %v1955_v20  ;;  %v1978_v24 = vrot.slane %v1977_v23, 1 }
 0x19b   : > { %1958 = vst [vmem:[%s235_s29] sm:$0x1] %v1957_v61  ;;  %v1979_v27 = vadd.f32 %v1978_v24, %v1977_v23 }
 0x19d   : > { %1980 = vst [vmem:[%s235_s29 + $0x1] sm:$0x1] %v1979_v27 }
 0x19e PF: > { %s16_s18 = sadd.s32 1, %s2825_s18  }
 0x19f   : > { %p13_p4 = scmp.ge.s32.totalorder %s16_s18, 4  }
 0x1a1   :  { %15 = sbr.rel (!%p13_p4) target bundleno = 1 (0x1), region = 86 }

// kernel: transxnet_reviewkd_forward_train.13
= control target key start
LH: loop header
LB: loop body
LE: loop exit
PB: predicated region body
PF: predicated region fallthrough
CT: control target
= control target key end

     0   :  { %s385_s9 = smov 0   ;;  %s544_s0 = inlined_call_operand.vmem [shape: f32[512,128], index: 0, kind: input, shape index: {}]   ;;  %s545_s1 = inlined_call_operand.vmem [shape: f32[2,128], index: 1, kind: input, shape index: {}]   ;;  %s546_s2 = inlined_call_operand.vmem [shape: f32[512,128], index: 2, kind: output, shape index: {}]  }
   0x1 LB: > { %s341_s10 = sadd.s32 4294967295, %s368_s9   ;;  %p345_p0 = scmp.ge.s32.totalorder %s368_s9, 1  ;;  %s368_s9 = sphi %s385_s9, %s12_s9  }
   0x2   : > { %p113_p1 = scmp.lt.s32.totalorder %s368_s9, 3 }
   0x4   : > { %p114_p2 = pnand %p345_p0, %p113_p1 }
   0x5   : > { %s346_s11 = sshll.u32 (!%p114_p2), %s341_s10, 5  ;;  %v396_v0 = vld [vmem:[%s545_s1] ss:$0 sm:$0xff] (!%p114_p2)  ;;  %v406_v1 = vld [vmem:[%s545_s1 + $0x1] ss:$0 sm:$0xff] (!%p114_p2) }
   0x6   : > { %117 = sbr.rel (%p114_p2) target bundleno = 40 (0x28), region = 28  ;;  %p136_p3 = scmp.lt.s32.totalorder (!%p114_p2), %s346_s11, 63 }
   0xd   : > { %s548_s11 = smov (!%p136_p3, %s346_s11), 63 }
   0xe   : > { %s347_s12 = sshll.u32 %s548_s11, 3 }
   0xf   : > { %s401_s17 = scalar_lea.vmem %s544_s0, %s347_s12  ;;  %s420_s22 = scalar_lea.vmem %s546_s2, %s347_s12 }
  0x10   : > { %v147_v2 = vld [vmem:[%s401_s17] sm:$0xff]  ;;  %v148_v3 = vld [vmem:[%s401_s17 + $0x8] sm:$0xff]  ;;  %v149_v4 = vld [vmem:[%s401_s17 + $0x10] sm:$0xff] }
  0x11   : > { %v184_v5 = vmul.f32 %v396_v0, %v147_v2  ;;  %v185_v6 = vmul.f32 %v396_v0, %v148_v3  ;;  %v186_v7 = vmul.f32 %v396_v0, %v149_v4  ;;  %v150_v8 = vld [vmem:[%s401_s17 + $0x18] sm:$0xff]  ;;  %v151_v9 = vld [vmem:[%s401_s17 + $0x20] sm:$0xff]  ;;  %v152_v10 = vld [vmem:[%s401_s17 + $0x28] sm:$0xff] }
  0x12   : > { %v187_v11 = vmul.f32 %v396_v0, %v150_v8  ;;  %v188_v12 = vmul.f32 %v396_v0, %v151_v9  ;;  %v189_v13 = vmul.f32 %v396_v0, %v152_v10  ;;  %v153_v14 = vld [vmem:[%s401_s17 + $0x30] sm:$0xff]  ;;  %v154_v15 = vld [vmem:[%s401_s17 + $0x38] sm:$0xff]  ;;  %v155_v16 = vld [vmem:[%s401_s17 + $0x40] sm:$0xff] }
  0x13   : > { %v221_v17 = vadd.f32 %v406_v1, %v184_v5  ;;  %v222_v18 = vadd.f32 %v406_v1, %v185_v6  ;;  %v223_v19 = vadd.f32 %v406_v1, %v186_v7  ;;  %v190_v20 = vmul.f32 %v396_v0, %v153_v14  ;;  %v156_v21 = vld [vmem:[%s401_s17 + $0x48] sm:$0xff]  ;;  %v157_v22 = vld [vmem:[%s401_s17 + $0x50] sm:$0xff]  ;;  %v158_v23 = vld [vmem:[%s401_s17 + $0x58] sm:$0xff] }
  0x14   : > { %v224_v24 = vadd.f32 %v406_v1, %v187_v11  ;;  %v225_v25 = vadd.f32 %v406_v1, %v188_v12  ;;  %v226_v26 = vadd.f32 %v406_v1, %v189_v13  ;;  %v191_v27 = vmul.f32 %v396_v0, %v154_v15  ;;  %v159_v28 = vld [vmem:[%s401_s17 + $0x60] sm:$0xff]  ;;  %v160_v29 = vld [vmem:[%s401_s17 + $0x68] sm:$0xff]  ;;  %v161_v30 = vld [vmem:[%s401_s17 + $0x70] sm:$0xff] }
  0x15   : > { %253 = vst [vmem:[%s420_s22] sm:$0xff] %v221_v17  ;;  %254 = vst [vmem:[%s420_s22 + $0x8] sm:$0xff] %v222_v18  ;;  %v227_v31 = vadd.f32 %v406_v1, %v190_v20  ;;  %v192_v32 = vmul.f32 %v396_v0, %v155_v16  ;;  %v193_v33 = vmul.f32 %v396_v0, %v156_v21  ;;  %v162_v35 = vld [vmem:[%s401_s17 + $0x78] sm:$0xff]  ;;  %v163_v40 = vld [vmem:[%s401_s17 + $0x80] sm:$0xff] }
  0x16   : > { %255 = vst [vmem:[%s420_s22 + $0x10] sm:$0xff] %v223_v19  ;;  %v194_v34 = vmul.f32 %v396_v0, %v157_v22  ;;  %256 = vst [vmem:[%s420_s22 + $0x18] sm:$0xff] %v224_v24  ;;  %v228_v36 = vadd.f32 %v406_v1, %v191_v27  ;;  %v195_v37 = vmul.f32 %v396_v0, %v158_v23  ;;  %v164_v41 = vld [vmem:[%s401_s17 + $0x88] sm:$0xff]  ;;  %v165_v42 = vld [vmem:[%s401_s17 + $0x90] sm:$0xff] }
  0x17   : > { %257 = vst [vmem:[%s420_s22 + $0x20] sm:$0xff] %v225_v25  ;;  %258 = vst [vmem:[%s420_s22 + $0x28] sm:$0xff] %v226_v26  ;;  %v196_v38 = vmul.f32 %v396_v0, %v159_v28  ;;  %v197_v39 = vmul.f32 %v396_v0, %v160_v29  ;;  %v229_v43 = vadd.f32 %v406_v1, %v192_v32  ;;  %v166_v47 = vld [vmem:[%s401_s17 + $0x98] sm:$0xff]  ;;  %v167_v48 = vld [vmem:[%s401_s17 + $0xa0] sm:$0xff] }
  0x18   : > { %259 = vst [vmem:[%s420_s22 + $0x30] sm:$0xff] %v227_v31  ;;  %v230_v44 = vadd.f32 %v406_v1, %v193_v33  ;;  %v231_v45 = vadd.f32 %v406_v1, %v194_v34  ;;  %v198_v46 = vmul.f32 %v396_v0, %v161_v30  ;;  %v168_v49 = vld [vmem:[%s401_s17 + $0xa8] sm:$0xff]  ;;  %260 = vst [vmem:[%s420_s22 + $0x38] sm:$0xff] %v228_v36  ;;  %v169_v54 = vld [vmem:[%s401_s17 + $0xb0] sm:$0xff] }
  0x19   : > { %v232_v50 = vadd.f32 %v406_v1, %v195_v37  ;;  %v233_v51 = vadd.f32 %v406_v1, %v196_v38  ;;  %v234_v52 = vadd.f32 %v406_v1, %v197_v39  ;;  %v199_v53 = vmul.f32 %v396_v0, %v162_v35  ;;  %261 = vst [vmem:[%s420_s22 + $0x40] sm:$0xff] %v229_v43  ;;  %v170_v59 = vld [vmem:[%s401_s17 + $0xb8] sm:$0xff]  ;;  %v171_v2 = vld [vmem:[%s401_s17 + $0xc0] sm:$0xff]  ;;  %v172_v3 = vld [vmem:[%s401_s17 + $0xc8] sm:$0xff] }
  0x1a   : > { %262 = vst [vmem:[%s420_s22 + $0x48] sm:$0xff] %v230_v44  ;;  %263 = vst [vmem:[%s420_s22 + $0x50] sm:$0xff] %v231_v45  ;;  %v235_v55 = vadd.f32 %v406_v1, %v198_v46  ;;  %v200_v56 = vmul.f32 %v396_v0, %v163_v40  ;;  %v201_v57 = vmul.f32 %v396_v0, %v164_v41  ;;  %v173_v4 = vld [vmem:[%s401_s17 + $0xd0] sm:$0xff]  ;;  %v174_v9 = vld [vmem:[%s401_s17 + $0xd8] sm:$0xff] }
  0x1b   : > { %v202_v58 = vmul.f32 %v396_v0, %v165_v42  ;;  %264 = vst [vmem:[%s420_s22 + $0x58] sm:$0xff] %v232_v50  ;;  %265 = vst [vmem:[%s420_s22 + $0x60] sm:$0xff] %v233_v51  ;;  %v236_v60 = vadd.f32 %v406_v1, %v199_v53  ;;  %v203_v61 = vmul.f32 %v396_v0, %v166_v47  ;;  %v175_v10 = vld [vmem:[%s401_s17 + $0xe0] sm:$0xff]  ;;  %v176_v11 = vld [vmem:[%s401_s17 + $0xe8] sm:$0xff] }
  0x1c   : > { %266 = vst [vmem:[%s420_s22 + $0x68] sm:$0xff] %v234_v52  ;;  %v204_v62 = vmul.f32 %v396_v0, %v167_v48  ;;  %v205_v63 = vmul.f32 %v396_v0, %v168_v49  ;;  %267 = vst [vmem:[%s420_s22 + $0x70] sm:$0xff] %v235_v55  ;;  %v237_v5 = vadd.f32 %v406_v1, %v200_v56  ;;  %v177_v16 = vld [vmem:[%s401_s17 + $0xf0] sm:$0xff]  ;;  %v178_v21 = vld [vmem:[%s401_s17 + $0xf8] sm:$0xff] }
  0x1d   : > { %v238_v6 = vadd.f32 %v406_v1, %v201_v57  ;;  %v239_v7 = vadd.f32 %v406_v1, %v202_v58  ;;  %v206_v8 = vmul.f32 %v396_v0, %v169_v54  ;;  %268 = vst [vmem:[%s420_s22 + $0x78] sm:$0xff] %v236_v60  ;;  %v240_v12 = vadd.f32 %v406_v1, %v203_v61 }
  0x1e   : > { %v241_v13 = vadd.f32 %v406_v1, %v204_v62  ;;  %v242_v14 = vadd.f32 %v406_v1, %v205_v63  ;;  %v207_v15 = vmul.f32 %v396_v0, %v170_v59  ;;  %269 = vst [vmem:[%s420_s22 + $0x80] sm:$0xff] %v237_v5  ;;  %v208_v18 = vmul.f32 %v396_v0, %v171_v2 }
  0x1f   : > { %270 = vst [vmem:[%s420_s22 + $0x88] sm:$0xff] %v238_v6  ;;  %271 = vst [vmem:[%s420_s22 + $0x90] sm:$0xff] %v239_v7  ;;  %v243_v17 = vadd.f32 %v406_v1, %v206_v8  ;;  %v209_v19 = vmul.f32 %v396_v0, %v172_v3  ;;  %v210_v20 = vmul.f32 %v396_v0, %v173_v4 }
  0x20   : > { %272 = vst [vmem:[%s420_s22 + $0x98] sm:$0xff] %v240_v12  ;;  %273 = vst [vmem:[%s420_s22 + $0xa0] sm:$0xff] %v241_v13  ;;  %v244_v22 = vadd.f32 %v406_v1, %v207_v15  ;;  %v211_v23 = vmul.f32 %v396_v0, %v174_v9  ;;  %v212_v24 = vmul.f32 %v396_v0, %v175_v10 }
  0x21   : > { %274 = vst [vmem:[%s420_s22 + $0xa8] sm:$0xff] %v242_v14  ;;  %v213_v25 = vmul.f32 %v396_v0, %v176_v11  ;;  %275 = vst [vmem:[%s420_s22 + $0xb0] sm:$0xff] %v243_v17  ;;  %v245_v26 = vadd.f32 %v406_v1, %v208_v18  ;;  %v246_v27 = vadd.f32 %v406_v1, %v209_v19 }
  0x22   : > { %v247_v28 = vadd.f32 %v406_v1, %v210_v20  ;;  %v214_v29 = vmul.f32 %v396_v0, %v177_v16  ;;  %276 = vst [vmem:[%s420_s22 + $0xb8] sm:$0xff] %v244_v22  ;;  %v248_v30 = vadd.f32 %v406_v1, %v211_v23  ;;  %v249_v31 = vadd.f32 %v406_v1, %v212_v24 }
  0x23   : > { %v250_v32 = vadd.f32 %v406_v1, %v213_v25  ;;  %v215_v33 = vmul.f32 %v396_v0, %v178_v21  ;;  %277 = vst [vmem:[%s420_s22 + $0xc0] sm:$0xff] %v245_v26  ;;  %278 = vst [vmem:[%s420_s22 + $0xc8] sm:$0xff] %v246_v27 }
  0x24   : > { %279 = vst [vmem:[%s420_s22 + $0xd0] sm:$0xff] %v247_v28  ;;  %v251_v34 = vadd.f32 %v406_v1, %v214_v29  ;;  %280 = vst [vmem:[%s420_s22 + $0xd8] sm:$0xff] %v248_v30 }
  0x25   : > { %281 = vst [vmem:[%s420_s22 + $0xe0] sm:$0xff] %v249_v31  ;;  %282 = vst [vmem:[%s420_s22 + $0xe8] sm:$0xff] %v250_v32  ;;  %v252_v35 = vadd.f32 %v406_v1, %v215_v33 }
  0x26   : > { %283 = vst [vmem:[%s420_s22 + $0xf0] sm:$0xff] %v251_v34 }
  0x27   : > { %284 = vst [vmem:[%s420_s22 + $0xf8] sm:$0xff] %v252_v35 }
  0x28 PF: > { %s12_s9 = sadd.s32 1, %s368_s9  }
  0x29   : > { %p9_p4 = scmp.ge.s32.totalorder %s12_s9, 4  }
  0x2b   :  { %11 = sbr.rel (!%p9_p4) target bundleno = 1 (0x1), region = 58 }

// kernel: transxnet_reviewkd_forward_train.15
= control target key start
LH: loop header
LB: loop body
LE: loop exit
PB: predicated region body
PF: predicated region fallthrough
CT: control target
= control target key end

     0   :  { %s632_s12 = smov 0   ;;  %s634_s13 = smov 0   ;;  %s702_s0 = inlined_call_operand.vmem [shape: f32[2,16,16,128], index: 0, kind: input, shape index: {}]   ;;  %s703_s1 = inlined_call_operand.vmem [shape: f32[2,16,16,128], index: 1, kind: input, shape index: {}]   ;;  %s704_s2 = inlined_call_operand.vmem [shape: f32[2,4,1,128], index: 2, kind: output, shape index: {0}]   ;;  %s705_s3 = inlined_call_operand.vmem [shape: f32[2,4,4,128], index: 3, kind: output, shape index: {1}]  }
   0x1   :  { %s636_s14 = smov 0   ;;  %s638_s15 = smov 0  }
   0x2   :  { %s640_s16 = smov 0  }
   0x3 LB: > { %s23_s17 = sadd.s32 1, %s602_s14  ;;  %s26_s18 = sadd.s32 1, %s606_s15  ;;  %s610_s16 = sphi %s640_s16, %s14_s16   ;;  %s606_s15 = sphi %s638_s15, %s709_s15   ;;  %s602_s14 = sphi %s636_s14, %s708_s14   ;;  %s598_s13 = sphi %s634_s13, %s707_s13   ;;  %s594_s12 = sphi %s632_s12, %s706_s12  }
   0x4   : > { %p24_p0 = scmp.ge.s32.totalorder %s23_s17, 4  ;;  %p518_p1 = scmp.ge.s32.totalorder %s610_s16, 1 }
   0x5   : > { %p182_p2 = scmp.lt.s32.totalorder %s610_s16, 9 }
   0x6   : > { %s711_s17 = smov (%p24_p0, %s23_s17), 0  ;;  %s713_s18 = smov (!%p24_p0, %s26_s18), %s606_s15 }
   0x7   : > { %p183_p3 = pnand %p518_p1, %p182_p2  ;;  %p28_p4 = scmp.ge.s32.totalorder %s713_s18, 2 }
   0x8   : > { %s519_s19 = sshll.u32 (!%p183_p3), %s594_s12, 2  ;;  %p232_p5 = scmp.lt.s32.totalorder (!%p183_p3), %s598_s13, 1  ;;  %vm320_vm0 = vcmask (!%p183_p3), 1043456   ;;  %vm355_vm1 = vcmask (!%p183_p3), 1040384   ;;  %vm357_vm2 = vcmask (!%p183_p3), 1041408   ;;  %vm359_vm3 = vcmask (!%p183_p3), 1042432  }
   0x9   : > { %s715_s18 = smov (%p28_p4, %s713_s18), 0  ;;  %186 = sbr.rel (%p183_p3) target bundleno = 55 (0x37), region = 28 }
   0xa   : > { %p234_p6 = scmp.lt.s32.totalorder (!%p183_p3), %s519_s19, 15  ;;  %p255_p7 = scmp.lt.s32.totalorder (!%p183_p3), %s594_s12, 3 }
  0x10   : > { %s717_s13 = smov (!%p232_p5, %s598_s13), 1  ;;  %s719_s19 = smov (!%p234_p6, %s519_s19), 15 }
  0x11   : > { %s521_s20 = sshll.u32 %s717_s13, 5  ;;  %s520_s21 = sshll.u32 %s719_s19, 1 }
  0x12   : > { %s238_s22 = sadd.s32 %s521_s20, %s520_s21  ;;  %s721_s12 = smov (!%p255_p7, %s594_s12), 3 }
  0x13   : > { %s522_s23 = sshll.u32 %s238_s22, 3  ;;  %s527_s30 = sshll.u32 %s717_s13, 2 }
  0x14   : > { %s240_s26 = scalar_lea.vmem %s702_s0, %s522_s23  ;;  %s251_s29 = scalar_lea.vmem %s703_s1, %s522_s23 }
  0x15   : > { %v268_v0 = vld [vmem:[%s240_s26] sm:$0xff]  ;;  %v269_v1 = vld [vmem:[%s240_s26 + $0x8] sm:$0xff]  ;;  %v270_v2 = vld [vmem:[%s240_s26 + $0x10] sm:$0xff]  ;;  %s258_s4 = sadd.s32 %s527_s30, %s721_s12 }
  0x16   : > { %v271_v3 = vld [vmem:[%s240_s26 + $0x18] sm:$0xff]  ;;  %v272_v4 = vld [vmem:[%s240_s26 + $0x20] sm:$0xff]  ;;  %v273_v5 = vld [vmem:[%s240_s26 + $0x28] sm:$0xff]  ;;  %s259_s7 = scalar_lea.vmem %s704_s2, %s258_s4  ;;  %s529_s8 = sshll.u32 %s258_s4, 2 }
  0x17   : > { %v274_v6 = vld [vmem:[%s240_s26 + $0x30] sm:$0xff]  ;;  %v275_v7 = vld [vmem:[%s240_s26 + $0x38] sm:$0xff]  ;;  %v276_v8 = vld [vmem:[%s251_s29] sm:$0xff]  ;;  %s267_s11 = scalar_lea.vmem %s705_s3, %s529_s8 }
  0x18   : > { %v277_v9 = vld [vmem:[%s251_s29 + $0x8] sm:$0xff]  ;;  %v278_v10 = vld [vmem:[%s251_s29 + $0x10] sm:$0xff]  ;;  %v279_v11 = vld [vmem:[%s251_s29 + $0x18] sm:$0xff]  ;;  %v284_v12 = vsub.f32 %v268_v0, %v276_v8 }
  0x19   : > { %v280_v13 = vld [vmem:[%s251_s29 + $0x20] sm:$0xff]  ;;  %v281_v14 = vld [vmem:[%s251_s29 + $0x28] sm:$0xff]  ;;  %v282_v15 = vld [vmem:[%s251_s29 + $0x30] sm:$0xff]  ;;  %v285_v16 = vsub.f32 %v269_v1, %v277_v9  ;;  %v286_v17 = vsub.f32 %v270_v2, %v278_v10  ;;  %v287_v18 = vsub.f32 %v271_v3, %v279_v11 }
  0x1a   : > { %v283_v19 = vld [vmem:[%s251_s29 + $0x38] sm:$0xff]  ;;  %v288_v20 = vsub.f32 %v272_v4, %v280_v13  ;;  %v289_v21 = vsub.f32 %v273_v5, %v281_v14  ;;  %v290_v22 = vsub.f32 %v274_v6, %v282_v15  ;;  %v292_v23 = vmul.f32 %v284_v12, %v284_v12 }
  0x1b   : > { %v291_v24 = vsub.f32 %v275_v7, %v283_v19  ;;  %v293_v25 = vmul.f32 %v285_v16, %v285_v16  ;;  %v294_v26 = vmul.f32 %v286_v17, %v286_v17  ;;  %v295_v27 = vmul.f32 %v287_v18, %v287_v18 }
  0x1c   : > { %v296_v28 = vmul.f32 %v288_v20, %v288_v20  ;;  %v297_v29 = vmul.f32 %v289_v21, %v289_v21  ;;  %v298_v30 = vmul.f32 %v290_v22, %v290_v22  ;;  %v314_v31 = vadd.f32 %v286_v17, %v284_v12 }
  0x1d   : > { %v299_v32 = vmul.f32 %v291_v24, %v291_v24  ;;  %v300_v33 = vadd.f32 %v294_v26, %v292_v23  ;;  %v303_v34 = vadd.f32 %v295_v27, %v293_v25  ;;  %v317_v35 = vadd.f32 %v287_v18, %v285_v16 }
  0x1e   : > { %v315_v36 = vadd.f32 %v314_v31, %v288_v20 }
  0x1f   : > { %v301_v37 = vadd.f32 %v300_v33, %v296_v28  ;;  %v304_v38 = vadd.f32 %v303_v34, %v297_v29  ;;  %v318_v39 = vadd.f32 %v317_v35, %v289_v21 }
  0x20   : > { %v316_v40 = vadd.f32 %v315_v36, %v290_v22 }
  0x21   : > { %v302_v41 = vadd.f32 %v301_v37, %v298_v30  ;;  %v305_v42 = vadd.f32 %v304_v38, %v299_v32  ;;  %v319_v43 = vadd.f32 %v318_v39, %v291_v24 }
  0x22   : > { %v329_v44 = vrot.slane %v316_v40, 4  ;;  %v321_v45 = vsel %vm320_vm0, %v316_v40, 0.0 }
  0x23   : > { %v306_v46 = vadd.f32 %v305_v42, %v302_v41  ;;  %v322_v47 = vrot.slane %v321_v45, 4  ;;  %v338_v48 = vsel %vm320_vm0, %v319_v43, 0.0  ;;  %v346_v49 = vrot.slane %v319_v43, 4 }
  0x24   : > { %v331_v50 = vsel %vm320_vm0, %v329_v44, 0.0  ;;  %v339_v51 = vrot.slane %v338_v48, 4 }
  0x25   : > { %v307_v52 = vrot.slane %v306_v46, 4  ;;  %v323_v53 = vadd.f32 %v322_v47, %v321_v45  ;;  %v332_v54 = vrot.slane %v331_v50, 4  ;;  %v348_v55 = vsel %vm320_vm0, %v346_v49, 0.0 }
  0x26   : > { %v340_v56 = vadd.f32 %v339_v51, %v338_v48  ;;  %v349_v57 = vrot.slane %v348_v55, 4 }
  0x27   : > { %v308_v58 = vadd.f32 %v307_v52, %v306_v46  ;;  %v324_v59 = vrot.slane %v323_v53, 2  ;;  %v333_v60 = vadd.f32 %v332_v54, %v331_v50 }
  0x28   : > { %v341_v61 = vrot.slane %v340_v56, 2  ;;  %v350_v62 = vadd.f32 %v349_v57, %v348_v55 }
  0x29   : > { %v309_v63 = vrot.slane %v308_v58, 2  ;;  %v325_v0 = vadd.f32 %v324_v59, %v323_v53  ;;  %v334_v1 = vrot.slane %v333_v60, 2 }
  0x2a   : > { %v342_v2 = vadd.f32 %v341_v61, %v340_v56  ;;  %v351_v3 = vrot.slane %v350_v62, 2 }
  0x2b   : > { %v310_v4 = vadd.f32 %v309_v63, %v308_v58  ;;  %v326_v5 = vrot.slane %v325_v0, 1  ;;  %v335_v6 = vadd.f32 %v334_v1, %v333_v60 }
  0x2c   : > { %v343_v7 = vrot.slane %v342_v2, 1  ;;  %v352_v8 = vadd.f32 %v351_v3, %v350_v62 }
  0x2d   : > { %v311_v9 = vrot.slane %v310_v4, 1  ;;  %v327_v10 = vadd.f32 %v326_v5, %v325_v0  ;;  %v336_v11 = vrot.slane %v335_v6, 1 }
  0x2e   : > { %v344_v12 = vadd.f32 %v343_v7, %v342_v2  ;;  %v353_v13 = vrot.slane %v352_v8, 1 }
  0x2f   : > { %v312_v14 = vadd.f32 %v311_v9, %v310_v4  ;;  %v337_v15 = vadd.f32 %v336_v11, %v335_v6 }
  0x30   : > { %v354_v16 = vadd.f32 %v353_v13, %v352_v8 }
  0x31   : > { %313 = vst [vmem:[%s259_s7] sm:$0x1] %v312_v14  ;;  %v356_v17 = vsel %vm355_vm1, %v327_v10, %v337_v15 }
  0x32   : > { %v358_v18 = vsel %vm357_vm2, %v356_v17, %v344_v12 }
  0x33   : > { %v360_v19 = vsel %vm359_vm3, %v358_v18, %v354_v16 }
  0x34   : > { %v361_v20 = vmul.f32 0.0625, %v360_v19 }
  0x36   : > { %362 = vst [vmem:[%s267_s11] sm:$0xf] %v361_v20 }
  0x37 PF: > { %s14_s16 = sadd.s32 1, %s610_s16   ;;  %s706_s12 = smov %s602_s14 }
  0x38   : > { %p11_p8 = scmp.ge.s32.totalorder %s14_s16, 10   ;;  %s707_s13 = smov %s606_s15 }
  0x39   : > { %s708_s14 = smov %s711_s17  ;;  %s709_s15 = smov %s715_s18 }
  0x3a   :  { %13 = sbr.rel (!%p11_p8) target bundleno = 3 (0x3), region = 73 }

// kernel: transxnet_reviewkd_forward_train.11
= control target key start
LH: loop header
LB: loop body
LE: loop exit
PB: predicated region body
PF: predicated region fallthrough
CT: control target
= control target key end

     0   :  { %s2981_s27 = smov 0   ;;  %s2983_s28 = smov 0   ;;  %s3727_s0 = inlined_call_operand.vmem [shape: bf16[512,128], index: 0, kind: input, shape index: {}]   ;;  %s3728_s1 = inlined_call_operand.vmem [shape: bf16[128,128], index: 1, kind: input, shape index: {}]   ;;  %s3729_s2 = inlined_call_operand.vmem [shape: f32[1,128], index: 2, kind: input, shape index: {}]   ;;  %s3730_s3 = inlined_call_operand.vmem [shape: f32[1,128], index: 3, kind: input, shape index: {}]   ;;  %s3731_s4 = inlined_call_operand.vmem [shape: f32[512,128], index: 4, kind: input, shape index: {}]   ;;  %s3732_s5 = inlined_call_operand.vmem [shape: bf16[128,2], index: 5, kind: input, shape index: {}]   ;;  %s3733_s6 = inlined_call_operand.vmem [shape: bf16[128,2], index: 6, kind: input, shape index: {}]   ;;  %s3734_s7 = inlined_call_operand.vmem [shape: f32[1,2], index: 7, kind: input, shape index: {}]   ;;  %s3735_s8 = inlined_call_operand.vmem [shape: f32[512,128], index: 8, kind: output, shape index: {}]  }
   0x1   :  { %s2985_s29 = smov 0   ;;  %s2987_s30 = smov 0  }
   0x2   :  { %s2989_s9 = smov 0  }
   0x3 LB: > { %s27_s10 = sadd.s32 1, %s2923_s29  ;;  %s30_s11 = sadd.s32 1, %s2927_s30  ;;  %s2931_s9 = sphi %s2989_s9, %s18_s9   ;;  %s2927_s30 = sphi %s2987_s30, %s3754_s30   ;;  %s2923_s29 = sphi %s2985_s29, %s3753_s29   ;;  %s2919_s28 = sphi %s2983_s28, %s3752_s28   ;;  %s2915_s27 = sphi %s2981_s27, %s3751_s27  }
   0x4   : > { %p28_p0 = scmp.ge.s32.totalorder %s27_s10, 2  ;;  %p2261_p1 = scmp.ge.s32.totalorder %s2931_s9, 1 }
   0x5   : > { %p300_p2 = scmp.lt.s32.totalorder %s2931_s9, 5 }
   0x6   : > { %s3756_s10 = smov (%p28_p0, %s27_s10), 0  ;;  %s3758_s11 = smov (!%p28_p0, %s30_s11), %s2927_s30 }
   0x7   : > { %p301_p3 = pnand %p2261_p1, %p300_p2  ;;  %p32_p4 = scmp.ge.s32.totalorder %s3758_s11, 2 }
   0x8   : > { %s343_s12 = ssub.s32 (!%p301_p3), 1, %s2919_s28  ;;  %s353_s13 = smul.u32 (!%p301_p3), %s2915_s27, %s2919_s28 }
   0x9   : > { %s3760_s11 = smov (%p32_p4, %s3758_s11), 0  ;;  %304 = sbr.rel (%p301_p3) target bundleno = 949 (0x3b5), region = 52 }
   0xa   : > { %s344_s14 = smul.u32 (!%p301_p3), %s2915_s27, %s343_s12  ;;  %s2268_s15 = sshll.u32 (!%p301_p3), %s2915_s27, 8 }
   0xb   : > { %s2264_s16 = sshll.u32 (!%p301_p3), %s353_s13, 5  ;;  %p2269_p7 = scmp.ne.s32.totalorder (!%p301_p3), %s2919_s28, 0 }
   0xc   : > { %s2262_s17 = sshll.u32 (!%p301_p3), %s344_s14, 5  ;;  %p355_p5 = scmp.lt.s32.totalorder (!%p301_p3), %s2264_s16, 63 }
   0xd   : > { %p346_p6 = scmp.lt.s32.totalorder (!%p301_p3), %s2262_s17, 63 }
  0x10   : > { %s3762_s16 = smov (!%p355_p5, %s2264_s16), 63  ;;  %s3764_s17 = smov (!%p346_p6, %s2262_s17), 63 }
  0x11   : > { %s2265_s18 = sshll.u32 %s3762_s16, 3  ;;  %s2263_s19 = sshll.u32 %s3764_s17, 2 }
  0x12   : > { %s3023_s22 = scalar_lea.vmem %s3731_s4, %s2265_s18  ;;  %s3028_s25 = scalar_lea.vmem %s3727_s0, %s2263_s19 }
  0x13   : > { %s3033_s13 = scalar_lea.vmem %s3735_s8, %s2265_s18  ;;  %374 = sbr.rel (%p2269_p7) target bundleno = 360 (0x168), region = 56 }
  0x14   : > { %p2270_p8 = scmp.ne.s32.totalorder (!%p2269_p7), %s2915_s27, 0 }
  0x1a   : > { %378 = sbr.rel (%p2270_p8) target bundleno = 33 (0x21), region = 60  ;;  %v2933_v0 = vmov (!%p2270_p8), 0.0  }
  0x1b   : > { %379 = vst [vmem:[#allocation3] sm:$0x3] (!%p2270_p8), %v2933_v0 }
  0x21 PF: > { %v2657_v1 = vld [vmem:[%s3728_s1] sm:$0xff]   ;;  %v2658_v2 = vld [vmem:[%s3728_s1 + $0x8] sm:$0xff]   ;;  %v2659_v3 = vld [vmem:[%s3728_s1 + $0x10] sm:$0xff]   ;;  %s3081_s20 = scalar_lea.vmem [#allocation2], %s2268_s15 }
  0x22   : > { %2422 = vmatprep.subr.bf16.mxu0 %v2657_v1  ;;  %2566 = vmatprep.subr.bf16.mxu1 %v2657_v1  ;;  %v2660_v4 = vld [vmem:[%s3728_s1 + $0x18] sm:$0xff]   ;;  %v2665_v5 = vld [vmem:[%s3028_s25] sm:$0xff]   ;;  %v2662_v7 = vld [vmem:[%s3728_s1 + $0x28] sm:$0xff]  }
  0x23   : > { %2423 = vmatpush3.bf16.msra.mxu0 %v2657_v1  ;;  %2574 = vmatpush3.bf16.msra.mxu1 %v2657_v1  ;;  %v2661_v6 = vld [vmem:[%s3728_s1 + $0x20] sm:$0xff]   ;;  %v2663_v9 = vld [vmem:[%s3728_s1 + $0x30] sm:$0xff]   ;;  %v2664_v10 = vld [vmem:[%s3728_s1 + $0x38] sm:$0xff]  }
  0x24   : > { %2424 = vmatprep.subr.bf16.mxu0 %v2658_v2  ;;  %2567 = vmatprep.subr.bf16.mxu1 %v2658_v2  ;;  %v2673_v8 = vld [vmem:[%s3028_s25 + $0x40] sm:$0xff]   ;;  %v2666_v11 = vld [vmem:[%s3028_s25 + $0x8] sm:$0xff]   ;;  %v2667_v13 = vld [vmem:[%s3028_s25 + $0x10] sm:$0xff]  }
  0x25   : > { %2438 = vmatprep.mubr.bf16.mxu0 %v2665_v5  ;;  %2454 = vmatprep.mubr.bf16.mxu1 %v2673_v8  ;;  %v2674_v12 = vld [vmem:[%s3028_s25 + $0x48] sm:$0xff]   ;;  %v2675_v14 = vld [vmem:[%s3028_s25 + $0x50] sm:$0xff]   ;;  %v2668_v15 = vld [vmem:[%s3028_s25 + $0x18] sm:$0xff]  }
  0x26   : > { %v2676_v16 = vld [vmem:[%s3028_s25 + $0x58] sm:$0xff]   ;;  %v2669_v17 = vld [vmem:[%s3028_s25 + $0x20] sm:$0xff]   ;;  %v2670_v19 = vld [vmem:[%s3028_s25 + $0x28] sm:$0xff]  }
  0x27   : > { %2425 = vmatpush3.bf16.msra.mxu0 %v2658_v2  ;;  %2575 = vmatpush3.bf16.msra.mxu1 %v2658_v2  ;;  %v2677_v18 = vld [vmem:[%s3028_s25 + $0x60] sm:$0xff]   ;;  %v2678_v20 = vld [vmem:[%s3028_s25 + $0x68] sm:$0xff]   ;;  %v2671_v21 = vld [vmem:[%s3028_s25 + $0x30] sm:$0xff]  }
  0x28   : > { %2426 = vmatprep.subr.bf16.mxu0 %v2659_v3  ;;  %2568 = vmatprep.subr.bf16.mxu1 %v2659_v3  ;;  %v2679_v22 = vld [vmem:[%s3028_s25 + $0x70] sm:$0xff]   ;;  %v2672_v23 = vld [vmem:[%s3028_s25 + $0x38] sm:$0xff]  }
  0x29   : > { %v2680_v24 = vld [vmem:[%s3028_s25 + $0x78] sm:$0xff]  }
  0x2b   : > { %2427 = vmatpush3.bf16.msra.mxu0 %v2659_v3  ;;  %2576 = vmatpush3.bf16.msra.mxu1 %v2659_v3 }
  0x2c   : > { %2428 = vmatprep.subr.bf16.mxu0 %v2660_v4  ;;  %2569 = vmatprep.subr.bf16.mxu1 %v2660_v4 }
  0x2f   : > { %2429 = vmatpush3.bf16.msra.mxu0 %v2660_v4  ;;  %2577 = vmatpush3.bf16.msra.mxu1 %v2660_v4 }
  0x30   : > { %2430 = vmatprep.subr.bf16.mxu0 %v2661_v6  ;;  %2570 = vmatprep.subr.bf16.mxu1 %v2661_v6 }
  0x33   : > { %2431 = vmatpush3.bf16.msra.mxu0 %v2661_v6  ;;  %2578 = vmatpush3.bf16.msra.mxu1 %v2661_v6 }
  0x34   : > { %2432 = vmatprep.subr.bf16.mxu0 %v2662_v7  ;;  %2571 = vmatprep.subr.bf16.mxu1 %v2662_v7 }
  0x37   : > { %2433 = vmatpush3.bf16.msra.mxu0 %v2662_v7  ;;  %2579 = vmatpush3.bf16.msra.mxu1 %v2662_v7 }
  0x38   : > { %2434 = vmatprep.subr.bf16.mxu0 %v2663_v9  ;;  %2572 = vmatprep.subr.bf16.mxu1 %v2663_v9 }
  0x3b   : > { %2435 = vmatpush3.bf16.msra.mxu0 %v2663_v9  ;;  %2580 = vmatpush3.bf16.msra.mxu1 %v2663_v9 }
  0x3c   : > { %2436 = vmatprep.subr.bf16.mxu0 %v2664_v10  ;;  %2573 = vmatprep.subr.bf16.mxu1 %v2664_v10 }
  0x3f   : > { %2437 = vmatpush3.bf16.msra.mxu0 %v2664_v10  ;;  %2581 = vmatpush3.bf16.msra.mxu1 %v2664_v10 }
  0x42   : > { %2439 = vmatmul.mubr.bf16.vlgmr.msra.gmra.mrb[0].mxu0 %v2666_v11  ;;  %2455 = vmatmul.mubr.bf16.vlgmr.msra.gmra.mrb[0].mxu1 %v2674_v12 }
  0x43   : > { %2442 = vmatprep.mubr.bf16.mxu0 %v2667_v13  ;;  %2458 = vmatprep.mubr.bf16.mxu1 %v2675_v14 }
  0x4a   : > { %2443 = vmatmul.mubr.bf16.gmra.mrb[4].mxu0 %v2668_v15  ;;  %2459 = vmatmul.mubr.bf16.gmra.mrb[4].mxu1 %v2676_v16 }
  0x4b   : > { %2446 = vmatprep.mubr.bf16.mxu0 %v2669_v17  ;;  %2462 = vmatprep.mubr.bf16.mxu1 %v2677_v18 }
  0x52   : > { %2447 = vmatmul.mubr.bf16.gmra.mrb[8].mxu0 %v2670_v19  ;;  %2463 = vmatmul.mubr.bf16.gmra.mrb[8].mxu1 %v2678_v20 }
  0x53   : > { %2450 = vmatprep.mubr.bf16.mxu0 %v2671_v21  ;;  %2466 = vmatprep.mubr.bf16.mxu1 %v2679_v22 }
  0x5a   : > { %2451 = vmatmul.mubr.bf16.gmra.mrb[12].mxu0 %v2672_v23  ;;  %2467 = vmatmul.mubr.bf16.gmra.mrb[12].mxu1 %v2680_v24 }
 0x115   : > { %v2440_v25 = vpop.f32.mrb[0].mxu0  ;;  %v3077_v26 = vpop.f32.mrb[0].mxu1 }
 0x116   : > { %736 = vst [vmem:[%s3081_s20 + $0x10] sm:$0xff] %v2440_v25  ;;  %v606_v27 = vpop.f32.mrb[1].mxu0  ;;  %752 = vst [vmem:[%s3081_s20 + $0x90] sm:$0xff] %v3077_v26  ;;  %v3086_v28 = vpop.f32.mrb[1].mxu1  ;;  %v809_v36 = vmul.f32 %v2440_v25, %v2440_v25 }
 0x117   : > { %734 = vst [vmem:[%s3081_s20] sm:$0xff] %v606_v27  ;;  %v2441_v29 = vpop.f32.mrb[2].mxu0  ;;  %750 = vst [vmem:[%s3081_s20 + $0x80] sm:$0xff] %v3086_v28  ;;  %v3091_v30 = vpop.f32.mrb[2].mxu1  ;;  %v807_v33 = vmul.f32 %v606_v27, %v606_v27 }
 0x118   : > { %737 = vst [vmem:[%s3081_s20 + $0x18] sm:$0xff] %v2441_v29  ;;  %v609_v31 = vpop.f32.mrb[3].mxu0  ;;  %753 = vst [vmem:[%s3081_s20 + $0x98] sm:$0xff] %v3091_v30  ;;  %v3096_v32 = vpop.f32.mrb[3].mxu1  ;;  %v810_v39 = vmul.f32 %v2441_v29, %v2441_v29 }
 0x119   : > { %735 = vst [vmem:[%s3081_s20 + $0x8] sm:$0xff] %v609_v31  ;;  %v767_v34 = vadd.f32 %v609_v31, %v606_v27  ;;  %v808_v35 = vmul.f32 %v609_v31, %v609_v31  ;;  %751 = vst [vmem:[%s3081_s20 + $0x88] sm:$0xff] %v3096_v32 }
 0x11b   : > { %v768_v37 = vadd.f32 %v2440_v25, %v767_v34  ;;  %v839_v38 = vadd.f32 %v808_v35, %v807_v33 }
 0x11d   : > { %v840_v40 = vadd.f32 %v839_v38, %v809_v36  ;;  %v2444_v41 = vpop.f32.mrb[4].mxu0  ;;  %v769_v42 = vadd.f32 %v2441_v29, %v768_v37  ;;  %v3101_v43 = vpop.f32.mrb[4].mxu1 }
 0x11e   : > { %740 = vst [vmem:[%s3081_s20 + $0x30] sm:$0xff] %v2444_v41  ;;  %v622_v44 = vpop.f32.mrb[5].mxu0  ;;  %756 = vst [vmem:[%s3081_s20 + $0xb0] sm:$0xff] %v3101_v43  ;;  %v3106_v45 = vpop.f32.mrb[5].mxu1  ;;  %v813_v56 = vmul.f32 %v2444_v41, %v2444_v41 }
 0x11f   : > { %738 = vst [vmem:[%s3081_s20 + $0x20] sm:$0xff] %v622_v44  ;;  %v770_v46 = vadd.f32 %v769_v42, %v622_v44  ;;  %v811_v47 = vmul.f32 %v622_v44, %v622_v44  ;;  %v841_v48 = vadd.f32 %v840_v40, %v810_v39  ;;  %v2445_v49 = vpop.f32.mrb[6].mxu0  ;;  %754 = vst [vmem:[%s3081_s20 + $0xa0] sm:$0xff] %v3106_v45  ;;  %v3111_v50 = vpop.f32.mrb[6].mxu1 }
 0x120   : > { %741 = vst [vmem:[%s3081_s20 + $0x38] sm:$0xff] %v2445_v49  ;;  %v625_v51 = vpop.f32.mrb[7].mxu0  ;;  %757 = vst [vmem:[%s3081_s20 + $0xb8] sm:$0xff] %v3111_v50  ;;  %v3116_v52 = vpop.f32.mrb[7].mxu1  ;;  %v814_v59 = vmul.f32 %v2445_v49, %v2445_v49  ;;  %v823_v42 = vmul.f32 %v3086_v28, %v3086_v28 }
 0x121   : > { %v842_v53 = vadd.f32 %v841_v48, %v811_v47  ;;  %739 = vst [vmem:[%s3081_s20 + $0x28] sm:$0xff] %v625_v51  ;;  %v771_v54 = vadd.f32 %v770_v46, %v625_v51  ;;  %v812_v55 = vmul.f32 %v625_v51, %v625_v51  ;;  %755 = vst [vmem:[%s3081_s20 + $0xa8] sm:$0xff] %v3116_v52 }
 0x122   : > { %v825_v51 = vmul.f32 %v3077_v26, %v3077_v26 }
 0x123   : > { %v772_v57 = vadd.f32 %v2444_v41, %v771_v54  ;;  %v843_v58 = vadd.f32 %v842_v53, %v812_v55  ;;  %v826_v55 = vmul.f32 %v3091_v30, %v3091_v30 }
 0x125   : > { %v844_v60 = vadd.f32 %v843_v58, %v813_v56  ;;  %v2448_v61 = vpop.f32.mrb[8].mxu0  ;;  %v773_v62 = vadd.f32 %v2445_v49, %v772_v57  ;;  %v3121_v63 = vpop.f32.mrb[8].mxu1  ;;  %v824_v49 = vmul.f32 %v3096_v32, %v3096_v32 }
 0x126   : > { %744 = vst [vmem:[%s3081_s20 + $0x50] sm:$0xff] %v2448_v61  ;;  %v638_v0 = vpop.f32.mrb[9].mxu0  ;;  %760 = vst [vmem:[%s3081_s20 + $0xd0] sm:$0xff] %v3121_v63  ;;  %v3126_v1 = vpop.f32.mrb[9].mxu1  ;;  %v817_v12 = vmul.f32 %v2448_v61, %v2448_v61 }
 0x127   : > { %742 = vst [vmem:[%s3081_s20 + $0x40] sm:$0xff] %v638_v0  ;;  %v774_v2 = vadd.f32 %v773_v62, %v638_v0  ;;  %v815_v3 = vmul.f32 %v638_v0, %v638_v0  ;;  %v845_v4 = vadd.f32 %v844_v60, %v814_v59  ;;  %v2449_v5 = vpop.f32.mrb[10].mxu0  ;;  %758 = vst [vmem:[%s3081_s20 + $0xc0] sm:$0xff] %v3126_v1  ;;  %v3131_v6 = vpop.f32.mrb[10].mxu1 }
 0x128   : > { %745 = vst [vmem:[%s3081_s20 + $0x58] sm:$0xff] %v2449_v5  ;;  %v641_v7 = vpop.f32.mrb[11].mxu0  ;;  %761 = vst [vmem:[%s3081_s20 + $0xd8] sm:$0xff] %v3131_v6  ;;  %v3136_v8 = vpop.f32.mrb[11].mxu1  ;;  %v818_v15 = vmul.f32 %v2449_v5, %v2449_v5 }
 0x129   : > { %v846_v9 = vadd.f32 %v845_v4, %v815_v3  ;;  %743 = vst [vmem:[%s3081_s20 + $0x48] sm:$0xff] %v641_v7  ;;  %v775_v10 = vadd.f32 %v774_v2, %v641_v7  ;;  %v816_v11 = vmul.f32 %v641_v7, %v641_v7  ;;  %759 = vst [vmem:[%s3081_s20 + $0xc8] sm:$0xff] %v3136_v8 }
 0x12b   : > { %v776_v13 = vadd.f32 %v2448_v61, %v775_v10  ;;  %v847_v14 = vadd.f32 %v846_v9, %v816_v11  ;;  %v828_v61 = vmul.f32 %v3116_v52, %v3116_v52  ;;  %v832_v9 = vmul.f32 %v3136_v8, %v3136_v8 }
 0x12d   : > { %v848_v16 = vadd.f32 %v847_v14, %v817_v12  ;;  %v2452_v17 = vpop.f32.mrb[12].mxu0  ;;  %v777_v18 = vadd.f32 %v2449_v5, %v776_v13  ;;  %v3141_v19 = vpop.f32.mrb[12].mxu1 }
 0x12e   : > { %748 = vst [vmem:[%s3081_s20 + $0x70] sm:$0xff] %v2452_v17  ;;  %v654_v20 = vpop.f32.mrb[13].mxu0  ;;  %764 = vst [vmem:[%s3081_s20 + $0xf0] sm:$0xff] %v3141_v19  ;;  %v718_v21 = vpop.f32.mrb[13].mxu1  ;;  %v821_v36 = vmul.f32 %v2452_v17, %v2452_v17 }
 0x12f   : > { %746 = vst [vmem:[%s3081_s20 + $0x60] sm:$0xff] %v654_v20  ;;  %v778_v22 = vadd.f32 %v777_v18, %v654_v20  ;;  %v819_v23 = vmul.f32 %v654_v20, %v654_v20  ;;  %v849_v24 = vadd.f32 %v848_v16, %v818_v15  ;;  %v2453_v25 = vpop.f32.mrb[14].mxu0  ;;  %762 = vst [vmem:[%s3081_s20 + $0xe0] sm:$0xff] %v718_v21  ;;  %v2469_v27 = vpop.f32.mrb[14].mxu1 }
 0x130   : > { %749 = vst [vmem:[%s3081_s20 + $0x78] sm:$0xff] %v2453_v25  ;;  %v657_v29 = vpop.f32.mrb[15].mxu0  ;;  %765 = vst [vmem:[%s3081_s20 + $0xf8] sm:$0xff] %v2469_v27  ;;  %v721_v31 = vpop.f32.mrb[15].mxu1  ;;  %v822_v39 = vmul.f32 %v2453_v25, %v2453_v25 }
 0x131   : > { %v850_v33 = vadd.f32 %v849_v24, %v819_v23  ;;  %747 = vst [vmem:[%s3081_s20 + $0x68] sm:$0xff] %v657_v29  ;;  %v779_v34 = vadd.f32 %v778_v22, %v657_v29  ;;  %v820_v35 = vmul.f32 %v657_v29, %v657_v29  ;;  %763 = vst [vmem:[%s3081_s20 + $0xe8] sm:$0xff] %v721_v31 }
 0x132   : > { %v836_v18 = vmul.f32 %v721_v31, %v721_v31 }
 0x133   : > { %v780_v37 = vadd.f32 %v2452_v17, %v779_v34  ;;  %v851_v38 = vadd.f32 %v850_v33, %v820_v35 }
 0x135   : > { %v852_v40 = vadd.f32 %v851_v38, %v821_v36  ;;  %v781_v41 = vadd.f32 %v2453_v25, %v780_v37 }
 0x137   : > { %v782_v44 = vadd.f32 %v781_v41, %v3086_v28  ;;  %v853_v46 = vadd.f32 %v852_v40, %v822_v39  ;;  %v827_v28 = vmul.f32 %v3106_v45, %v3106_v45  ;;  %v806_v41 = vld [vmem:[#allocation3 + $0x1] sm:$0x1] }
 0x139   : > { %v854_v47 = vadd.f32 %v853_v46, %v823_v42  ;;  %v783_v48 = vadd.f32 %v782_v44, %v3096_v32 }
 0x13b   : > { %v784_v53 = vadd.f32 %v3077_v26, %v783_v48  ;;  %v855_v54 = vadd.f32 %v854_v47, %v824_v49  ;;  %v829_v26 = vmul.f32 %v3101_v43, %v3101_v43 }
 0x13d   : > { %v856_v56 = vadd.f32 %v855_v54, %v825_v51  ;;  %v785_v57 = vadd.f32 %v3091_v30, %v784_v53  ;;  %v830_v30 = vmul.f32 %v3111_v50, %v3111_v50 }
 0x13f   : > { %v786_v58 = vadd.f32 %v785_v57, %v3106_v45  ;;  %v857_v59 = vadd.f32 %v856_v56, %v826_v55  ;;  %v831_v45 = vmul.f32 %v3126_v1, %v3126_v1 }
 0x141   : > { %v858_v60 = vadd.f32 %v857_v59, %v827_v28  ;;  %v787_v32 = vadd.f32 %v786_v58, %v3116_v52 }
 0x143   : > { %v788_v62 = vadd.f32 %v3101_v43, %v787_v32  ;;  %v859_v0 = vadd.f32 %v858_v60, %v828_v61  ;;  %v833_v43 = vmul.f32 %v3121_v63, %v3121_v63 }
 0x145   : > { %v860_v2 = vadd.f32 %v859_v0, %v829_v26  ;;  %v789_v3 = vadd.f32 %v3111_v50, %v788_v62  ;;  %v834_v50 = vmul.f32 %v3131_v6, %v3131_v6 }
 0x147   : > { %v790_v4 = vadd.f32 %v789_v3, %v3126_v1  ;;  %v861_v5 = vadd.f32 %v860_v2, %v830_v30  ;;  %v835_v1 = vmul.f32 %v718_v21, %v718_v21 }
 0x149   : > { %v862_v7 = vadd.f32 %v861_v5, %v831_v45  ;;  %v791_v52 = vadd.f32 %v790_v4, %v3136_v8  ;;  %v837_v8 = vmul.f32 %v3141_v19, %v3141_v19 }
 0x14b   : > { %v792_v10 = vadd.f32 %v3121_v63, %v791_v52  ;;  %v863_v11 = vadd.f32 %v862_v7, %v832_v9  ;;  %v838_v63 = vmul.f32 %v2469_v27, %v2469_v27 }
 0x14d   : > { %v864_v12 = vadd.f32 %v863_v11, %v833_v43  ;;  %v793_v13 = vadd.f32 %v3131_v6, %v792_v10 }
 0x14f   : > { %v794_v14 = vadd.f32 %v793_v13, %v718_v21  ;;  %v865_v15 = vadd.f32 %v864_v12, %v834_v50 }
 0x151   : > { %v866_v16 = vadd.f32 %v865_v15, %v835_v1  ;;  %v795_v17 = vadd.f32 %v794_v14, %v721_v31  ;;  %v766_v31 = vld [vmem:[#allocation3] sm:$0x1] }
 0x153   : > { %v796_v20 = vadd.f32 %v3141_v19, %v795_v17  ;;  %v867_v22 = vadd.f32 %v866_v16, %v836_v18 }
 0x155   : > { %v797_v23 = vadd.f32 %v2469_v27, %v796_v20  ;;  %v868_v24 = vadd.f32 %v867_v22, %v837_v8 }
 0x157   : > { %v798_v25 = vrot.slane %v797_v23, 4  ;;  %v869_v29 = vadd.f32 %v868_v24, %v838_v63 }
 0x159   : > { %v799_v33 = vadd.f32 %v798_v25, %v797_v23  ;;  %v870_v34 = vrot.slane %v869_v29, 4 }
 0x15b   : > { %v800_v6 = vrot.slane %v799_v33, 2  ;;  %v871_v35 = vadd.f32 %v870_v34, %v869_v29 }
 0x15d   : > { %v801_v21 = vadd.f32 %v800_v6, %v799_v33  ;;  %v872_v36 = vrot.slane %v871_v35, 2 }
 0x15f   : > { %v802_v37 = vrot.slane %v801_v21, 1  ;;  %v873_v38 = vadd.f32 %v872_v36, %v871_v35 }
 0x161   : > { %v803_v39 = vadd.f32 %v802_v37, %v801_v21  ;;  %v874_v40 = vrot.slane %v873_v38, 1 }
 0x163   : > { %v804_v42 = vadd.f32 %v803_v39, %v766_v31  ;;  %v875_v19 = vadd.f32 %v874_v40, %v873_v38 }
 0x165   : > { %805 = vst [vmem:[#allocation3] sm:$0x1] %v804_v42  ;;  %v876_v44 = vadd.f32 %v875_v19, %v806_v41 }
 0x167   : > { %877 = vst [vmem:[#allocation3 + $0x1] sm:$0x1] %v876_v44 }
 0x168 PF: > { %p2295_p9 = scmp.ne.s32.totalorder %s2919_s28, 1 }
 0x16a   : > { %881 = sbr.rel (%p2295_p9) target bundleno = 949 (0x3b5), region = 64 }
 0x171   : > { %p2296_p10 = scmp.ne.s32.totalorder %s2915_s27, 0 }
 0x172   : > { %v886_v27 = vld [vmem:[#allocation3] sm:$0x1] (!%p2296_p10)  ;;  %v888_v46 = vld [vmem:[#allocation3 + $0x1] sm:$0x1] (!%p2296_p10) }
 0x173   : > { %885 = sbr.rel (%p2296_p10) target bundleno = 399 (0x18f), region = 68  ;;  %v887_v47 = vmul.f32 (!%p2296_p10), 0.001953125, %v886_v27  ;;  %v889_v48 = vmul.f32 (!%p2296_p10), 0.001953125, %v888_v46  ;;  %v895_v55 = vld [vmem:[%s3729_s2] sm:$0x1] (!%p2296_p10) }
 0x174   : > { %v898_v28 = vld [vmem:[%s3730_s3] sm:$0x1] (!%p2296_p10) }
 0x175   : > { %v890_v49 = vmul.f32 (!%p2296_p10), %v887_v47, %v887_v47 }
 0x177   : > { %v891_v51 = vsub.f32 (!%p2296_p10), %v889_v48, %v890_v49 }
 0x179   : > { %v892_v53 = vmax.f32 (!%p2296_p10), %v891_v51, 0.0 }
 0x17b   : > { %v893_v54 = vadd.f32 1e-05, %v892_v53 }
 0x17d   : > { %2681 = vrsqrt.f32 %v893_v54 }
 0x187   : > { %v2682_v56 = vpop.eup %2681 }
 0x188   : > { %v896_v57 = vmul.f32 %v2682_v56, %v895_v55 }
 0x18a   : > { %897 = vst [vmem:[#allocation4] sm:$0x1] %v896_v57  ;;  %v899_v58 = vmul.f32 %v896_v57, %v887_v47 }
 0x18c   : > { %v900_v59 = vsub.f32 %v898_v28, %v899_v58 }
 0x18e   : > { %901 = vst [vmem:[#allocation4 + $0x1] sm:$0x1] %v900_v59 }
 0x18f PF: > { %v2717_v60 = vld [vmem:[%s3733_s6] sm:$0xff]   ;;  %v2719_v61 = vld [vmem:[%s3733_s6 + $0x8] sm:$0xff]   ;;  %v2721_v62 = vld [vmem:[%s3733_s6 + $0x10] sm:$0xff]   ;;  %s3239_s28 = scalar_lea.vmem [#allocation2], %s2268_s15 }
 0x190   : > { %v2718_v32 = vld [vmem:[%s3732_s5] sm:$0xff]   ;;  %2470 = vmatprep.subr.bf16.mxu1 %v2717_v60  ;;  %v2720_v26 = vld [vmem:[%s3732_s5 + $0x8] sm:$0xff]   ;;  %v2722_v0 = vld [vmem:[%s3732_s5 + $0x10] sm:$0xff]  }
 0x191   : > { %2518 = vmatprep.subr.bf16.mxu0 %v2718_v32  ;;  %2471 = vmatpush3.bf16.msra.mxu1 %v2717_v60  ;;  %v2723_v30 = vld [vmem:[%s3733_s6 + $0x18] sm:$0xff]   ;;  %v2725_v3 = vld [vmem:[%s3733_s6 + $0x20] sm:$0xff]   ;;  %v2727_v4 = vld [vmem:[%s3733_s6 + $0x28] sm:$0xff]  }
 0x192   : > { %2519 = vmatpush3.bf16.msra.mxu0 %v2718_v32  ;;  %2472 = vmatprep.subr.bf16.mxu1 %v2719_v61  ;;  %v2724_v2 = vld [vmem:[%s3732_s5 + $0x18] sm:$0xff]   ;;  %v2726_v45 = vld [vmem:[%s3732_s5 + $0x20] sm:$0xff]   ;;  %v2728_v5 = vld [vmem:[%s3732_s5 + $0x28] sm:$0xff]  }
 0x193   : > { %2520 = vmatprep.subr.bf16.mxu0 %v2720_v26  ;;  %v1009_v7 = vld [vmem:[%s3023_s22] sm:$0xff]  ;;  %v1010_v52 = vld [vmem:[%s3023_s22 + $0x8] sm:$0xff]  ;;  %v2729_v1 = vld [vmem:[%s3733_s6 + $0x30] sm:$0xff]  }
 0x194   : > { %v903_v9 = vld [vmem:[%s3239_s28] sm:$0xff]  ;;  %v1073_v43 = vpack.c.bf16 %v1010_v52, %v1009_v7  ;;  %v904_v10 = vld [vmem:[%s3239_s28 + $0x8] sm:$0xff]  ;;  %v905_v16 = vld [vmem:[%s3239_s28 + $0x10] sm:$0xff] }
 0x195   : > { %2473 = vmatpush3.bf16.msra.mxu1 %v2719_v61  ;;  %v3243_v11 = vld [vmem:[#allocation4] ss:$0 sm:$0xff]  ;;  %v3245_v50 = vld [vmem:[#allocation4 + $0x1] ss:$0 sm:$0xff]  ;;  %v906_v17 = vld [vmem:[%s3239_s28 + $0x18] sm:$0xff] }
 0x196   : > { %2521 = vmatpush3.bf16.msra.mxu0 %v2720_v26  ;;  %2474 = vmatprep.subr.bf16.mxu1 %v2721_v62  ;;  %v940_v12 = vmul.f32 %v3243_v11, %v903_v9  ;;  %v941_v13 = vmul.f32 %v3243_v11, %v904_v10  ;;  %v2730_v18 = vld [vmem:[%s3732_s5 + $0x30] sm:$0xff]   ;;  %v907_v8 = vld [vmem:[%s3239_s28 + $0x20] sm:$0xff]  ;;  %v908_v20 = vld [vmem:[%s3239_s28 + $0x28] sm:$0xff]  ;;  %v942_v63 = vmul.f32 %v3243_v11, %v905_v16 }
 0x197   : > { %2522 = vmatprep.subr.bf16.mxu0 %v2722_v0  ;;  %2486 = vmatprep.mubr.bf16.mxu1 %v1073_v43  ;;  %v943_v23 = vmul.f32 %v3243_v11, %v906_v17  ;;  %v2731_v24 = vld [vmem:[%s3733_s6 + $0x38] sm:$0xff]   ;;  %v944_v25 = vmul.f32 %v3243_v11, %v907_v8  ;;  %v945_v29 = vmul.f32 %v3243_v11, %v908_v20  ;;  %v1011_v34 = vld [vmem:[%s3023_s22 + $0x10] sm:$0xff]  ;;  %v1013_v36 = vld [vmem:[%s3023_s22 + $0x20] sm:$0xff] }
 0x198   : > { %v3253_v14 = vadd.f32 %v3245_v50, %v940_v12  ;;  %v3256_v15 = vadd.f32 %v3245_v50, %v941_v13  ;;  %v2732_v33 = vld [vmem:[%s3732_s5 + $0x38] sm:$0xff]   ;;  %v3280_v35 = vadd.f32 %v3245_v50, %v942_v63  ;;  %v1014_v37 = vld [vmem:[%s3023_s22 + $0x28] sm:$0xff]  ;;  %v909_v39 = vld [vmem:[%s3239_s28 + $0x30] sm:$0xff] }
 0x199   : > { %2475 = vmatpush3.bf16.msra.mxu1 %v2721_v62  ;;  %v1012_v6 = vld [vmem:[%s3023_s22 + $0x18] sm:$0xff]  ;;  %v3283_v21 = vadd.f32 %v3245_v50, %v943_v23  ;;  %v3288_v38 = vadd.f32 %v3245_v50, %v944_v25  ;;  %v3291_v31 = vadd.f32 %v3245_v50, %v945_v29  ;;  %v911_v41 = vld [vmem:[%s3239_s28 + $0x40] sm:$0xff]  ;;  %v912_v42 = vld [vmem:[%s3239_s28 + $0x48] sm:$0xff]  ;;  %v1075_v27 = vpack.c.bf16 %v1014_v37, %v1013_v36 }
 0x19a   : > { %2523 = vmatpush3.bf16.msra.mxu0 %v2722_v0  ;;  %2476 = vmatprep.subr.bf16.mxu1 %v2723_v30  ;;  %v1041_v22 = vpack.c.bf16 %v3256_v15, %v3253_v14  ;;  %v910_v40 = vld [vmem:[%s3239_s28 + $0x38] sm:$0xff]  ;;  %v1074_v19 = vpack.c.bf16 %v1012_v6, %v1011_v34  ;;  %v946_v46 = vmul.f32 %v3243_v11, %v909_v39  ;;  %v1015_v53 = vld [vmem:[%s3023_s22 + $0x30] sm:$0xff]  ;;  %v1017_v57 = vld [vmem:[%s3023_s22 + $0x40] sm:$0xff] }
 0x19b   : > { %2524 = vmatprep.subr.bf16.mxu0 %v2724_v2  ;;  %v1042_v44 = vpack.c.bf16 %v3283_v21, %v3280_v35  ;;  %v947_v47 = vmul.f32 %v3243_v11, %v910_v40  ;;  %v1043_v48 = vpack.c.bf16 %v3291_v31, %v3288_v38  ;;  %v948_v49 = vmul.f32 %v3243_v11, %v911_v41  ;;  %v1016_v54 = vld [vmem:[%s3023_s22 + $0x38] sm:$0xff]  ;;  %v1018_v28 = vld [vmem:[%s3023_s22 + $0x48] sm:$0xff]  ;;  %v913_v60 = vld [vmem:[%s3239_s28 + $0x50] sm:$0xff] }
 0x19c   : > { %2534 = vmatprep.mubr.bf16.mxu0 %v1041_v22  ;;  %v949_v51 = vmul.f32 %v3243_v11, %v912_v42  ;;  %v3308_v55 = vadd.f32 %v3245_v50, %v946_v46  ;;  %v914_v32 = vld [vmem:[%s3239_s28 + $0x58] sm:$0xff]  ;;  %v915_v61 = vld [vmem:[%s3239_s28 + $0x60] sm:$0xff]  ;;  %v916_v26 = vld [vmem:[%s3239_s28 + $0x68] sm:$0xff]  ;;  %v1076_v62 = vpack.c.bf16 %v1016_v54, %v1015_v53 }
 0x19d   : > { %2477 = vmatpush3.bf16.msra.mxu1 %v2723_v30  ;;  %v3311_v56 = vadd.f32 %v3245_v50, %v947_v47  ;;  %v3316_v58 = vadd.f32 %v3245_v50, %v948_v49  ;;  %v933_v0 = vld [vmem:[%s3239_s28 + $0xf0] sm:$0xff]  ;;  %v952_v7 = vmul.f32 %v3243_v11, %v915_v61  ;;  %v953_v52 = vmul.f32 %v3243_v11, %v916_v26  ;;  %v1020_v12 = vld [vmem:[%s3023_s22 + $0x58] sm:$0xff]  ;;  %v1021_v16 = vld [vmem:[%s3023_s22 + $0x60] sm:$0xff] }
 0x19e   : > { %2525 = vmatpush3.bf16.msra.mxu0 %v2724_v2  ;;  %2478 = vmatprep.subr.bf16.mxu1 %v2725_v3  ;;  %v3319_v59 = vadd.f32 %v3245_v50, %v949_v51  ;;  %v1077_v2 = vpack.c.bf16 %v1018_v28, %v1017_v57  ;;  %v970_v9 = vmul.f32 %v3243_v11, %v933_v0  ;;  %v1019_v10 = vld [vmem:[%s3023_s22 + $0x50] sm:$0xff]  ;;  %v918_v63 = vld [vmem:[%s3239_s28 + $0x78] sm:$0xff]  ;;  %v920_v25 = vld [vmem:[%s3239_s28 + $0x88] sm:$0xff] }
 0x19f   : > { %2526 = vmatprep.subr.bf16.mxu0 %v2726_v45  ;;  %v1044_v30 = vpack.c.bf16 %v3311_v56, %v3308_v55  ;;  %v3351_v8 = vadd.f32 %v3245_v50, %v952_v7  ;;  %v3354_v20 = vadd.f32 %v3245_v50, %v953_v52  ;;  %v917_v22 = vld [vmem:[%s3239_s28 + $0x70] sm:$0xff]  ;;  %v1078_v29 = vpack.c.bf16 %v1020_v12, %v1019_v10  ;;  %v1024_v42 = vld [vmem:[%s3023_s22 + $0x78] sm:$0xff]  ;;  %v1026_v46 = vld [vmem:[%s3023_s22 + $0x88] sm:$0xff] }
 0x1a0   : > { %v3347_v17 = vadd.f32 %v3245_v50, %v970_v9  ;;  %v954_v6 = vmul.f32 %v3243_v11, %v917_v22  ;;  %v955_v36 = vmul.f32 %v3243_v11, %v918_v63  ;;  %v957_v40 = vmul.f32 %v3243_v11, %v920_v25  ;;  %v1023_v41 = vld [vmem:[%s3023_s22 + $0x70] sm:$0xff]  ;;  %v922_v51 = vld [vmem:[%s3239_s28 + $0x98] sm:$0xff]  ;;  %v923_v53 = vld [vmem:[%s3239_s28 + $0xa0] sm:$0xff] }
 0x1a1   : > { %2479 = vmatpush3.bf16.msra.mxu1 %v2725_v3  ;;  %v950_v3 = vmul.f32 %v3243_v11, %v913_v60  ;;  %v1047_v37 = vpack.c.bf16 %v3354_v20, %v3351_v8  ;;  %v921_v49 = vld [vmem:[%s3239_s28 + $0x90] sm:$0xff]  ;;  %v924_v54 = vld [vmem:[%s3239_s28 + $0xa8] sm:$0xff]  ;;  %v1080_v57 = vpack.c.bf16 %v1024_v42, %v1023_v41  ;;  %v959_v61 = vmul.f32 %v3243_v11, %v922_v51  ;;  %v927_v10 = vld [vmem:[%s3239_s28 + $0xc0] sm:$0xff] }
 0x1a2   : > { %2527 = vmatpush3.bf16.msra.mxu0 %v2726_v45  ;;  %2480 = vmatprep.subr.bf16.mxu1 %v2727_v4  ;;  %v951_v45 = vmul.f32 %v3243_v11, %v914_v32  ;;  %3743 = vst [vmem:[#allocation5_spill] sm:$0xff] %v3347_v17  ;;  %v958_v32 = vmul.f32 %v3243_v11, %v921_v49  ;;  %v925_v9 = vld [vmem:[%s3239_s28 + $0xb0] sm:$0xff]  ;;  %v928_v12 = vld [vmem:[%s3239_s28 + $0xc8] sm:$0xff]  ;;  %v931_v49 = vld [vmem:[%s3239_s28 + $0xe0] sm:$0xff] }
 0x1a3   : > { %2528 = vmatprep.subr.bf16.mxu0 %v2728_v5  ;;  %v3340_v13 = vadd.f32 %v3245_v50, %v950_v3  ;;  %v961_v0 = vmul.f32 %v3243_v11, %v924_v54  ;;  %v962_v63 = vmul.f32 %v3243_v11, %v925_v9  ;;  %v932_v51 = vld [vmem:[%s3239_s28 + $0xe8] sm:$0xff] }
 0x1a4   : > { %v3402_v3 = vadd.f32 %v3245_v50, %v958_v32 }
 0x1a5   : > { %2481 = vmatpush3.bf16.msra.mxu1 %v2727_v4  ;;  %v934_v4 = vld [vmem:[%s3239_s28 + $0xf8] sm:$0xff]  ;;  %v3413_v52 = vadd.f32 %v3245_v50, %v961_v0 }
 0x1a6   : > { %2529 = vmatpush3.bf16.msra.mxu0 %v2728_v5  ;;  %2482 = vmatprep.subr.bf16.mxu1 %v2729_v1  ;;  %v1045_v5 = vpack.c.bf16 %v3319_v59, %v3316_v58  ;;  %v971_v43 = vmul.f32 %v3243_v11, %v934_v4  ;;  %v1029_v4 = vld [vmem:[%s3023_s22 + $0xa0] sm:$0xff]  ;;  %v1036_v0 = vld [vmem:[%s3023_s22 + $0xd8] sm:$0xff] }
 0x1a7   : > { %2530 = vmatprep.subr.bf16.mxu0 %v2730_v18 }
 0x1a8   : > { %v3359_v23 = vadd.f32 %v3245_v50, %v971_v43  ;;  %v926_v43 = vld [vmem:[%s3239_s28 + $0xb8] sm:$0xff] }
 0x1a9   : > { %2483 = vmatpush3.bf16.msra.mxu1 %v2729_v1  ;;  %v3343_v1 = vadd.f32 %v3245_v50, %v951_v45  ;;  %v3405_v45 = vadd.f32 %v3245_v50, %v959_v61  ;;  %v968_v61 = vmul.f32 %v3243_v11, %v931_v49 }
 0x1aa   : > { %2531 = vmatpush3.bf16.msra.mxu0 %v2730_v18  ;;  %2484 = vmatprep.subr.bf16.mxu1 %v2731_v24  ;;  %v1022_v18 = vld [vmem:[%s3023_s22 + $0x68] sm:$0xff]  ;;  %3744 = vst [vmem:[#allocation6_spill] sm:$0xff] %v3359_v23 }
 0x1ab   : > { %2532 = vmatprep.subr.bf16.mxu0 %v2732_v33  ;;  %v1079_v34 = vpack.c.bf16 %v1022_v18, %v1021_v16  ;;  %v1050_v18 = vpack.c.bf16 %v3405_v45, %v3402_v3  ;;  %v3466_v9 = vadd.f32 %v3245_v50, %v968_v61 }
 0x1ad   : > { %2485 = vmatpush3.bf16.msra.mxu1 %v2731_v24  ;;  %v919_v24 = vld [vmem:[%s3239_s28 + $0x80] sm:$0xff] }
 0x1ae   : > { %2533 = vmatpush3.bf16.msra.mxu0 %v2732_v33  ;;  %v1046_v33 = vpack.c.bf16 %v3343_v1, %v3340_v13  ;;  %v956_v39 = vmul.f32 %v3243_v11, %v919_v24  ;;  %v963_v24 = vmul.f32 %v3243_v11, %v926_v43 }
 0x1b0   : > { %2487 = vmatmul.mubr.bf16.vlgmr.msra.gmra.mrb[0].mxu1 %v1074_v19  ;;  %v3374_v19 = vadd.f32 %v3245_v50, %v954_v6  ;;  %v3382_v47 = vadd.f32 %v3245_v50, %v956_v39  ;;  %v1032_v6 = vld [vmem:[%s3023_s22 + $0xb8] sm:$0xff]  ;;  %v1033_v39 = vld [vmem:[%s3023_s22 + $0xc0] sm:$0xff] }
 0x1b1   : > { %2535 = vmatmul.mubr.bf16.vlgmr.msra.gmra.mrb[0].mxu0 %v1042_v44  ;;  %2490 = vmatprep.mubr.bf16.mxu1 %v1075_v27  ;;  %v3377_v44 = vadd.f32 %v3245_v50, %v955_v36  ;;  %v1025_v27 = vld [vmem:[%s3023_s22 + $0x80] sm:$0xff]  ;;  %v3430_v36 = vadd.f32 %v3245_v50, %v962_v63 }
 0x1b2   : > { %2538 = vmatprep.mubr.bf16.mxu0 %v1043_v48  ;;  %v3385_v48 = vadd.f32 %v3245_v50, %v957_v40  ;;  %v1081_v60 = vpack.c.bf16 %v1026_v46, %v1025_v27  ;;  %v1034_v40 = vld [vmem:[%s3023_s22 + $0xc8] sm:$0xff]  ;;  %v929_v27 = vld [vmem:[%s3239_s28 + $0xd0] sm:$0xff]  ;;  %v930_v46 = vld [vmem:[%s3239_s28 + $0xd8] sm:$0xff] }
 0x1b3   : > { %v1048_v28 = vpack.c.bf16 %v3377_v44, %v3374_v19 }
 0x1b4   : > { %v1049_v26 = vpack.c.bf16 %v3385_v48, %v3382_v47 }
 0x1b8   : > { %2491 = vmatmul.mubr.bf16.gmra.mrb[4].mxu1 %v1076_v62  ;;  %v960_v62 = vmul.f32 %v3243_v11, %v923_v53 }
 0x1b9   : > { %2539 = vmatmul.mubr.bf16.gmra.mrb[4].mxu0 %v1044_v30  ;;  %2494 = vmatprep.mubr.bf16.mxu1 %v1077_v2  ;;  %v1027_v30 = vld [vmem:[%s3023_s22 + $0x90] sm:$0xff]  ;;  %v1028_v2 = vld [vmem:[%s3023_s22 + $0x98] sm:$0xff] }
 0x1ba   : > { %2542 = vmatprep.mubr.bf16.mxu0 %v1045_v5  ;;  %v1030_v5 = vld [vmem:[%s3023_s22 + $0xa8] sm:$0xff]  ;;  %v3410_v7 = vadd.f32 %v3245_v50, %v960_v62  ;;  %v1082_v16 = vpack.c.bf16 %v1028_v2, %v1027_v30  ;;  %v1035_v62 = vld [vmem:[%s3023_s22 + $0xd0] sm:$0xff] }
 0x1bb   : > { %v1083_v22 = vpack.c.bf16 %v1030_v5, %v1029_v4  ;;  %v1037_v4 = vld [vmem:[%s3023_s22 + $0xe0] sm:$0xff]  ;;  %v1038_v5 = vld [vmem:[%s3023_s22 + $0xe8] sm:$0xff]  ;;  %v1086_v43 = vpack.c.bf16 %v1036_v0, %v1035_v62 }
 0x1bc   : > { %v1051_v25 = vpack.c.bf16 %v3413_v52, %v3410_v7 }
 0x1c0   : > { %2495 = vmatmul.mubr.bf16.gmra.mrb[8].mxu1 %v1078_v29  ;;  %v964_v29 = vmul.f32 %v3243_v11, %v927_v10 }
 0x1c1   : > { %2543 = vmatmul.mubr.bf16.gmra.mrb[8].mxu0 %v1046_v33  ;;  %2498 = vmatprep.mubr.bf16.mxu1 %v1079_v34  ;;  %v965_v33 = vmul.f32 %v3243_v11, %v928_v12  ;;  %v1031_v34 = vld [vmem:[%s3023_s22 + $0xb0] sm:$0xff]  ;;  %v1087_v12 = vpack.c.bf16 %v1038_v5, %v1037_v4 }
 0x1c2   : > { %2546 = vmatprep.mubr.bf16.mxu0 %v1047_v37  ;;  %v3433_v37 = vadd.f32 %v3245_v50, %v963_v24  ;;  %v3438_v41 = vadd.f32 %v3245_v50, %v964_v29  ;;  %v1084_v53 = vpack.c.bf16 %v1032_v6, %v1031_v34  ;;  %v1056_v24 = vpack.c.bf16 %v3359_v23, %v3347_v17 }
 0x1c3   : > { %v3441_v42 = vadd.f32 %v3245_v50, %v965_v33  ;;  %v3484_v33 = vld [vmem:[%s3734_s7] ss:$0 sm:$0xff] }
 0x1c4   : > { %v1052_v54 = vpack.c.bf16 %v3433_v37, %v3430_v36 }
 0x1c5   : > { %v1053_v32 = vpack.c.bf16 %v3441_v42, %v3438_v41 }
 0x1c8   : > { %2499 = vmatmul.mubr.bf16.gmra.mrb[12].mxu1 %v1080_v57  ;;  %v1085_v57 = vpack.c.bf16 %v1034_v40, %v1033_v39 }
 0x1c9   : > { %2547 = vmatmul.mubr.bf16.gmra.mrb[12].mxu0 %v1048_v28  ;;  %2502 = vmatprep.mubr.bf16.mxu1 %v1081_v60  ;;  %v966_v28 = vmul.f32 %v3243_v11, %v929_v27  ;;  %v967_v60 = vmul.f32 %v3243_v11, %v930_v46 }
 0x1ca   : > { %2550 = vmatprep.mubr.bf16.mxu0 %v1049_v26  ;;  %v969_v26 = vmul.f32 %v3243_v11, %v932_v51 }
 0x1cb   : > { %v3458_v30 = vadd.f32 %v3245_v50, %v966_v28  ;;  %v3461_v2 = vadd.f32 %v3245_v50, %v967_v60 }
 0x1cc   : > { %v3469_v11 = vadd.f32 %v3245_v50, %v969_v26  ;;  %v3736_v50 = vmov 0  }
 0x1cd   : > { %v1054_v10 = vpack.c.bf16 %v3461_v2, %v3458_v30  ;;  %2683 = vset.pattern.permute.xlu1 %v3736_v50  ;;  %2685 = vset.pattern.permute.xlu0 %v3736_v50 }
 0x1ce   : > { %3745 = vst [vmem:[#allocation7_spill] sm:$0xff] %v3469_v11 }
 0x1d0   : > { %2503 = vmatmul.mubr.bf16.gmra.mrb[16].mxu1 %v1082_v16  ;;  %v1055_v16 = vpack.c.bf16 %v3469_v11, %v3466_v9 }
 0x1d1   : > { %2551 = vmatmul.mubr.bf16.gmra.mrb[16].mxu0 %v1050_v18  ;;  %2506 = vmatprep.mubr.bf16.mxu1 %v1083_v22  ;;  %v1039_v18 = vld [vmem:[%s3023_s22 + $0xf0] sm:$0xff]  ;;  %v1040_v22 = vld [vmem:[%s3023_s22 + $0xf8] sm:$0xff] }
 0x1d2   : > { %2554 = vmatprep.mubr.bf16.mxu0 %v1051_v25  ;;  %v1088_v63 = vpack.c.bf16 %v1040_v22, %v1039_v18 }
 0x1d8   : > { %2507 = vmatmul.mubr.bf16.gmra.mrb[20].mxu1 %v1084_v53 }
 0x1d9   : > { %2555 = vmatmul.mubr.bf16.gmra.mrb[20].mxu0 %v1052_v54  ;;  %2510 = vmatprep.mubr.bf16.mxu1 %v1085_v57 }
 0x1da   : > { %2558 = vmatprep.mubr.bf16.mxu0 %v1053_v32 }
 0x1e0   : > { %2511 = vmatmul.mubr.bf16.gmra.mrb[24].mxu1 %v1086_v43 }
 0x1e1   : > { %2559 = vmatmul.mubr.bf16.gmra.mrb[24].mxu0 %v1054_v10  ;;  %2514 = vmatprep.mubr.bf16.mxu1 %v1087_v12 }
 0x1e2   : > { %2562 = vmatprep.mubr.bf16.mxu0 %v1055_v16 }
 0x1e8   : > { %2515 = vmatmul.mubr.bf16.gmra.mrb[28].mxu1 %v1088_v63 }
 0x1e9   : > { %2563 = vmatmul.mubr.bf16.gmra.mrb[28].mxu0 %v1056_v24 }
 0x283   : > { %v2488_v25 = vpop.f32.mrb[0].mxu1 }
 0x284   : > { %v2536_v29 = vpop.f32.mrb[0].mxu0  ;;  %v1187_v34 = vpop.f32.mrb[1].mxu1 }
 0x285   : > { %v1405_v6 = vadd.f32 %v2536_v29, %v2488_v25  ;;  %v1396_v39 = vpop.f32.mrb[1].mxu0  ;;  %v2489_v40 = vpop.f32.mrb[2].mxu1 }
 0x286   : > { %v1397_v27 = vadd.f32 %v1396_v39, %v1187_v34  ;;  %v2537_v46 = vpop.f32.mrb[2].mxu0  ;;  %v1190_v49 = vpop.f32.mrb[3].mxu1 }
 0x287   : > { %v1532_v51 = vadd.f32 %v3484_v33, %v1405_v6  ;;  %v1408_v53 = vadd.f32 %v2537_v46, %v2489_v40  ;;  %v1399_v54 = vpop.f32.mrb[3].mxu0 }
 0x288   : > { %v1530_v57 = vadd.f32 %v3484_v33, %v1397_v27  ;;  %v1400_v28 = vadd.f32 %v1399_v54, %v1190_v49 }
 0x289   : > { %v2318_v60 = vmul.f32 -1.442695, %v1532_v51  ;;  %v1533_v32 = vadd.f32 %v3484_v33, %v1408_v53 }
 0x28a   : > { %v2316_v61 = vmul.f32 -1.442695, %v1530_v57  ;;  %v1531_v12 = vadd.f32 %v3484_v33, %v1400_v28 }
 0x28b   : > { %2733 = vpow2.f32 %v2318_v60  ;;  %v2492_v26 = vpop.f32.mrb[4].mxu1  ;;  %v2319_v4 = vmul.f32 -1.442695, %v1533_v32 }
 0x28c   : > { %2735 = vpow2.f32 %v2316_v61  ;;  %v2540_v62 = vpop.f32.mrb[4].mxu0  ;;  %v1203_v0 = vpop.f32.mrb[5].mxu1  ;;  %v2317_v34 = vmul.f32 -1.442695, %v1531_v12 }
 0x28d   : > { %v1421_v5 = vadd.f32 %v2540_v62, %v2492_v26  ;;  %v1412_v43 = vpop.f32.mrb[5].mxu0  ;;  %v2493_v10 = vpop.f32.mrb[6].mxu1  ;;  %2737 = vpow2.f32 %v2319_v4 }
 0x28e   : > { %v1413_v16 = vadd.f32 %v1412_v43, %v1203_v0  ;;  %v2541_v18 = vpop.f32.mrb[6].mxu0  ;;  %v1206_v22 = vpop.f32.mrb[7].mxu1  ;;  %2739 = vpow2.f32 %v2317_v34 }
 0x28f   : > { %v1536_v63 = vadd.f32 %v3484_v33, %v1421_v5  ;;  %v1424_v24 = vadd.f32 %v2541_v18, %v2493_v10  ;;  %v1415_v25 = vpop.f32.mrb[7].mxu0 }
 0x290   : > { %v1416_v29 = vadd.f32 %v1415_v25, %v1206_v22  ;;  %v1534_v28 = vadd.f32 %v3484_v33, %v1413_v16 }
 0x291   : > { %v2322_v6 = vmul.f32 -1.442695, %v1536_v63  ;;  %v1537_v10 = vadd.f32 %v3484_v33, %v1424_v24 }
 0x292   : > { %v2320_v5 = vmul.f32 -1.442695, %v1534_v28 }
 0x293   : > { %v2496_v39 = vpop.f32.mrb[8].mxu1  ;;  %2741 = vpow2.f32 %v2322_v6  ;;  %v1535_v6 = vadd.f32 %v3484_v33, %v1416_v29 }
 0x294   : > { %v2544_v40 = vpop.f32.mrb[8].mxu0  ;;  %v1219_v27 = vpop.f32.mrb[9].mxu1 }
 0x295   : > { %v2734_v46 = vpop.eup %2733  ;;  %v1437_v49 = vadd.f32 %v2544_v40, %v2496_v39  ;;  %v1428_v51 = vpop.f32.mrb[9].mxu0 }
 0x296   : > { %v2497_v53 = vpop.f32.mrb[10].mxu1  ;;  %v2736_v54 = vpop.eup %2735  ;;  %v1660_v57 = vadd.f32 1.0, %v2734_v46  ;;  %v1429_v60 = vadd.f32 %v1428_v51, %v1219_v27  ;;  %v2323_v46 = vmul.f32 -1.442695, %v1537_v10 }
 0x297   : > { %v2545_v32 = vpop.f32.mrb[10].mxu0  ;;  %v1222_v61 = vpop.f32.mrb[11].mxu1  ;;  %v1658_v26 = vadd.f32 1.0, %v2736_v54 }
 0x298   : > { %v3492_v62 = vadd.f32 %v2545_v32, %v2497_v53  ;;  %v1431_v0 = vpop.f32.mrb[11].mxu0  ;;  %2743 = vrcp.f32 %v1660_v57  ;;  %v2738_v43 = vpop.eup %2737 }
 0x299   : > { %v3494_v4 = vadd.f32 %v1431_v0, %v1222_v61  ;;  %2745 = vrcp.f32 %v1658_v26  ;;  %v1661_v34 = vadd.f32 1.0, %v2738_v43  ;;  %v2740_v54 = vpop.eup %2739  ;;  %v2321_v61 = vmul.f32 -1.442695, %v1535_v6 }
 0x29a   : > { %2747 = vpow2.f32 %v2320_v5  ;;  %v1540_v26 = vadd.f32 %v3484_v33, %v1437_v49  ;;  %v1659_v5 = vadd.f32 1.0, %v2740_v54 }
 0x29b   : > { %v2500_v12 = vpop.f32.mrb[12].mxu1  ;;  %2749 = vrcp.f32 %v1661_v34 }
 0x29c   : > { %v2548_v18 = vpop.f32.mrb[12].mxu0  ;;  %v1235_v22 = vpop.f32.mrb[13].mxu1  ;;  %2751 = vpow2.f32 %v2323_v46  ;;  %v2326_v34 = vmul.f32 -1.442695, %v1540_v26 }
 0x29d   : > { %v3497_v16 = vadd.f32 %v2548_v18, %v2500_v12  ;;  %v1444_v63 = vpop.f32.mrb[13].mxu0  ;;  %v2501_v25 = vpop.f32.mrb[14].mxu1  ;;  %2753 = vpow2.f32 %v2321_v61 }
 0x29e   : > { %v3500_v39 = vadd.f32 %v1444_v63, %v1235_v22  ;;  %v2549_v40 = vpop.f32.mrb[14].mxu0  ;;  %v1238_v27 = vpop.f32.mrb[15].mxu1  ;;  %2755 = vrcp.f32 %v1659_v5 }
 0x29f   : > { %v1456_v51 = vadd.f32 %v2549_v40, %v2501_v25  ;;  %v1447_v53 = vpop.f32.mrb[15].mxu0  ;;  %v2742_v57 = vpop.eup %2741 }
 0x2a0   : > { %v1448_v24 = vadd.f32 %v1447_v53, %v1238_v27  ;;  %v1664_v18 = vadd.f32 1.0, %v2742_v57  ;;  %v3738_v27 = vmov 1  }
 0x2a1   : > { %v3503_v28 = vadd.f32 %v3484_v33, %v1456_v51 }
 0x2a2   : > { %v2744_v32 = vpop.eup %2743  ;;  %v3507_v29 = vadd.f32 %v3484_v33, %v1448_v24  ;;  %v1538_v24 = vadd.f32 %v3484_v33, %v1429_v60  ;;  %2757 = vrcp.f32 %v1664_v18  ;;  %v1541_v18 = vadd.f32 %v3484_v33, %v3492_v62 }
 0x2a3   : > { %v2746_v0 = vpop.eup %2745  ;;  %1766 = vperm.xlu1 %2683, %v2744_v32   ;;  %v2504_v43 = vpop.f32.mrb[16].mxu1  ;;  %2759 = vpow2.f32 %v2326_v34 }
 0x2a4   : > { %1756 = vperm.xlu0 %2685, %v2746_v0   ;;  %v2552_v10 = vpop.f32.mrb[16].mxu0  ;;  %v1251_v12 = vpop.f32.mrb[17].mxu1  ;;  %v2324_v60 = vmul.f32 -1.442695, %v1538_v24 }
 0x2a5   : > { %v1469_v22 = vadd.f32 %v2552_v10, %v2504_v43  ;;  %v1460_v63 = vpop.f32.mrb[17].mxu0  ;;  %v2505_v25 = vpop.f32.mrb[18].mxu1 }
 0x2a6   : > { %v1461_v6 = vadd.f32 %v1460_v63, %v1251_v12  ;;  %v2553_v40 = vpop.f32.mrb[18].mxu0  ;;  %v1254_v49 = vpop.f32.mrb[19].mxu1 }
 0x2a7   : > { %2684 = vset.pattern.permute.xlu1 %v3738_v27  ;;  %v3511_v46 = vadd.f32 %v3484_v33, %v1469_v22  ;;  %v1472_v51 = vadd.f32 %v2553_v40, %v2505_v25  ;;  %v1463_v53 = vpop.f32.mrb[19].mxu0  ;;  %v2748_v54 = vpop.eup %2747 }
 0x2a8   : > { %1955 = vperm.xlu1 %2684, %v2744_v32   ;;  %2686 = vset.pattern.permute.xlu0 %v3738_v27  ;;  %v3516_v57 = vadd.f32 %v3484_v33, %v1461_v6  ;;  %v1464_v61 = vadd.f32 %v1463_v53, %v1254_v49  ;;  %v1662_v43 = vadd.f32 1.0, %v2748_v54  ;;  %v2750_v12 = vpop.eup %2749 }
 0x2a9   : > { %1947 = vperm.xlu0 %2686, %v2746_v0   ;;  %v3519_v26 = vadd.f32 %v3484_v33, %v1472_v51  ;;  %v2752_v63 = vpop.eup %2751 }
 0x2aa   : > { %v3522_v5 = vadd.f32 %v3484_v33, %v1464_v61  ;;  %2761 = vrcp.f32 %v1662_v43  ;;  %v2754_v24 = vpop.eup %2753  ;;  %v1665_v61 = vadd.f32 1.0, %v2752_v63  ;;  %v3746_v43 = vmov 0  }
 0x2ab   : > { %v2508_v10 = vpop.f32.mrb[20].mxu1  ;;  %2763 = vpow2.f32 %v2324_v60 }
 0x2ac   : > { %2687 = vset.pattern.permute.xlu1 %v3736_v50  ;;  %v2556_v32 = vpop.f32.mrb[20].mxu0  ;;  %v1267_v22 = vpop.f32.mrb[21].mxu1  ;;  %2765 = vrcp.f32 %v1665_v61 }
 0x2ad   : > { %1771 = vperm.xlu1 %2687, %v2750_v12   ;;  %1959 = vperm.xlu0 %2686, %v2750_v12   ;;  %v1485_v0 = vadd.f32 %v2556_v32, %v2508_v10  ;;  %v1476_v25 = vpop.f32.mrb[21].mxu0  ;;  %v2509_v34 = vpop.f32.mrb[22].mxu1  ;;  %v2327_v10 = vmul.f32 -1.442695, %v1541_v18  ;;  %v1539_v32 = vadd.f32 %v3484_v33, %v3494_v4  ;;  %v1663_v18 = vadd.f32 1.0, %v2754_v24 }
 0x2ae   : > { %v1477_v6 = vadd.f32 %v1476_v25, %v1267_v22  ;;  %v2557_v40 = vpop.f32.mrb[22].mxu0  ;;  %v1270_v49 = vpop.f32.mrb[23].mxu1  ;;  %v1544_v4 = vadd.f32 %v3484_v33, %v3497_v16 }
 0x2af   : > { %v3528_v51 = vadd.f32 %v3484_v33, %v1485_v0  ;;  %v1488_v53 = vadd.f32 %v2557_v40, %v2509_v34  ;;  %v1479_v54 = vpop.f32.mrb[23].mxu0  ;;  %v2756_v12 = vpop.eup %2755  ;;  %2767 = vpow2.f32 %v2327_v10  ;;  %v2325_v40 = vmul.f32 -1.442695, %v1539_v32 }
 0x2b0   : > { %v3531_v50 = vadd.f32 %v3484_v33, %v1477_v6  ;;  %v1480_v62 = vadd.f32 %v1479_v54, %v1270_v49  ;;  %v2758_v63 = vpop.eup %2757  ;;  %2769 = vrcp.f32 %v1663_v18  ;;  %v2330_v16 = vmul.f32 -1.442695, %v1544_v4 }
 0x2b1   : > { %2689 = vset.pattern.permute.xlu1 %v3738_v27  ;;  %2688 = vset.pattern.permute.xlu0 %v3746_v43  ;;  %v3538_v22 = vadd.f32 %v3484_v33, %v1488_v53  ;;  %v2760_v25 = vpop.eup %2759  ;;  %2771 = vpow2.f32 %v2325_v40 }
 0x2b2   : > { %1951 = vperm.xlu1 %2689, %v2756_v12   ;;  %1761 = vperm.xlu0 %2688, %v2756_v12   ;;  %v3541_v60 = vadd.f32 %v3484_v33, %v1480_v62  ;;  %v1668_v17 = vadd.f32 1.0, %v2760_v25  ;;  %v1542_v25 = vadd.f32 %v3484_v33, %v3500_v39 }
 0x2b3   : > { %v2512_v0 = vpop.f32.mrb[24].mxu1 }
 0x2b4   : > { %v2560_v34 = vpop.f32.mrb[24].mxu0  ;;  %v1283_v6 = vpop.f32.mrb[25].mxu1  ;;  %2773 = vrcp.f32 %v1668_v17 }
 0x2b5   : > { %v1501_v49 = vadd.f32 %v2560_v34, %v2512_v0  ;;  %v1492_v53 = vpop.f32.mrb[25].mxu0  ;;  %v2513_v54 = vpop.f32.mrb[26].mxu1  ;;  %2775 = vpow2.f32 %v2330_v16 }
 0x2b6   : > { %1971 = vperm.xlu1 %2689, %v2758_v63   ;;  %1786 = vperm.xlu0 %2688, %v2758_v63   ;;  %v1493_v12 = vadd.f32 %v1492_v53, %v1283_v6  ;;  %v2561_v62 = vpop.f32.mrb[26].mxu0  ;;  %v1286_v27 = vpop.f32.mrb[27].mxu1 }
 0x2b7   : > { %v3546_v23 = vadd.f32 %v3484_v33, %v1501_v49  ;;  %v1504_v24 = vadd.f32 %v2561_v62, %v2513_v54  ;;  %v1495_v61 = vpop.f32.mrb[27].mxu0  ;;  %v2762_v32 = vpop.eup %2761  ;;  %v3747_v62 = vmov 1  }
 0x2b8   : > { %v3549_v11 = vadd.f32 %v3484_v33, %v1493_v12  ;;  %v1496_v10 = vadd.f32 %v1495_v61, %v1286_v27  ;;  %v2764_v63 = vpop.eup %2763  ;;  %v2328_v12 = vmul.f32 -1.442695, %v1542_v25 }
 0x2b9   : > { %v3552_v0 = vadd.f32 %v3484_v33, %v1504_v24  ;;  %v1666_v27 = vadd.f32 1.0, %v2764_v63  ;;  %v2766_v54 = vpop.eup %2765 }
 0x2ba   : > { %1963 = vperm.xlu1 %2689, %v2762_v32   ;;  %1776 = vperm.xlu0 %2688, %v2762_v32   ;;  %v3557_v34 = vadd.f32 %v3484_v33, %v1496_v10  ;;  %v2768_v10 = vpop.eup %2767 }
 0x2bb   : > { %v2516_v18 = vpop.f32.mrb[28].mxu1  ;;  %2777 = vrcp.f32 %v1666_v27  ;;  %v2329_v27 = vmul.f32 -1.442695, %v3507_v29  ;;  %v2332_v29 = vmul.f32 -1.442695, %v3516_v57 }
 0x2bc   : > { %v2564_v4 = vpop.f32.mrb[28].mxu0  ;;  %v1299_v6 = vpop.f32.mrb[29].mxu1  ;;  %2779 = vpow2.f32 %v2328_v12  ;;  %v2334_v12 = vmul.f32 -1.442695, %v3511_v46 }
 0x2bd   : > { %v1517_v49 = vadd.f32 %v2564_v4, %v2516_v18  ;;  %v1508_v40 = vpop.f32.mrb[29].mxu0  ;;  %v2517_v53 = vpop.f32.mrb[30].mxu1 }
 0x2be   : > { %2690 = vset.pattern.permute.xlu1 %v3746_v43  ;;  %2691 = vset.pattern.permute.xlu0 %v3747_v62  ;;  %v1509_v39 = vadd.f32 %v1508_v40, %v1299_v6  ;;  %v2565_v24 = vpop.f32.mrb[30].mxu0  ;;  %v1302_v61 = vpop.f32.mrb[31].mxu1  ;;  %v1669_v6 = vadd.f32 1.0, %v2768_v10 }
 0x2bf   : > { %1791 = vperm.xlu1 %2690, %v2766_v54   ;;  %1975 = vperm.xlu0 %2691, %v2766_v54   ;;  %v3562_v17 = vadd.f32 %v3484_v33, %v1517_v49  ;;  %v1520_v16 = vadd.f32 %v2565_v24, %v2517_v53  ;;  %v1511_v32 = vpop.f32.mrb[31].mxu0  ;;  %v2770_v4 = vpop.eup %2769  ;;  %v2331_v49 = vmul.f32 -1.442695, %v3503_v28 }
 0x2c0   : > { %v3565_v63 = vadd.f32 %v3484_v33, %v1509_v39  ;;  %v1512_v18 = vadd.f32 %v1511_v32, %v1302_v61  ;;  %v2772_v54 = vpop.eup %2771  ;;  %2781 = vrcp.f32 %v1669_v6  ;;  %v2335_v6 = vmul.f32 -1.442695, %v3519_v26 }
 0x2c1   : > { %v3568_v25 = vadd.f32 %v3484_v33, %v1520_v16  ;;  %v2774_v53 = vpop.eup %2773  ;;  %v1667_v39 = vadd.f32 1.0, %v2772_v54  ;;  %2783 = vpow2.f32 %v2331_v49 }
 0x2c2   : > { %v3571_v40 = vadd.f32 %v3484_v33, %v1512_v18  ;;  %v2776_v24 = vpop.eup %2775 }
 0x2c3   : > { %1781 = vperm.xlu1 %2690, %v2770_v4   ;;  %1967 = vperm.xlu0 %2691, %v2770_v4   ;;  %v1672_v33 = vadd.f32 1.0, %v2776_v24  ;;  %2785 = vrcp.f32 %v1667_v39  ;;  %v2338_v39 = vmul.f32 -1.442695, %v3528_v51 }
 0x2c4   : > { %2787 = vpow2.f32 %v2329_v27 }
 0x2c5   : > { %v2778_v28 = vpop.eup %2777  ;;  %2789 = vrcp.f32 %v1672_v33 }
 0x2c6   : > { %v2780_v61 = vpop.eup %2779  ;;  %2791 = vpow2.f32 %v2334_v12 }
 0x2c7   : > { %2693 = vset.pattern.permute.xlu1 %v3747_v62  ;;  %2692 = vset.pattern.permute.xlu0 %v3746_v43  ;;  %v1670_v10 = vadd.f32 1.0, %v2780_v61 }
 0x2c8   : > { %1987 = vperm.xlu1 %2693, %v2774_v53   ;;  %1806 = vperm.xlu0 %2692, %v2774_v53   ;;  %v2333_v53 = vmul.f32 -1.442695, %v3522_v5  ;;  %v2336_v5 = vmul.f32 -1.442695, %v3531_v50 }
 0x2c9   : > { %2793 = vrcp.f32 %v1670_v10 }
 0x2ca   : > { %v2782_v16 = vpop.eup %2781  ;;  %2795 = vpow2.f32 %v2332_v29 }
 0x2cb   : > { %v2784_v32 = vpop.eup %2783 }
 0x2cc   : > { %1979 = vperm.xlu1 %2693, %v2778_v28   ;;  %1796 = vperm.xlu0 %2692, %v2778_v28   ;;  %v1673_v18 = vadd.f32 1.0, %v2784_v32 }
 0x2cd   : > { %v2786_v46 = vpop.eup %2785 }
 0x2ce   : > { %v2788_v4 = vpop.eup %2787  ;;  %2797 = vrcp.f32 %v1673_v18 }
 0x2cf   : > { %v2790_v54 = vpop.eup %2789  ;;  %v1671_v57 = vadd.f32 1.0, %v2788_v4  ;;  %2799 = vpow2.f32 %v2335_v6  ;;  %v2342_v4 = vmul.f32 -1.442695, %v3546_v23 }
 0x2d0   : > { %2694 = vset.pattern.permute.xlu1 %v3746_v43  ;;  %2695 = vset.pattern.permute.xlu0 %v3747_v62  ;;  %v2792_v49 = vpop.eup %2791 }
 0x2d1   : > { %1811 = vperm.xlu1 %2694, %v2782_v16   ;;  %1991 = vperm.xlu0 %2695, %v2782_v16   ;;  %v1676_v24 = vadd.f32 1.0, %v2792_v49  ;;  %2801 = vrcp.f32 %v1671_v57  ;;  %v2339_v16 = vmul.f32 -1.442695, %v3538_v22 }
 0x2d2   : > { %2803 = vpow2.f32 %v2333_v53 }
 0x2d3   : > { %v2794_v26 = vpop.eup %2793  ;;  %2805 = vrcp.f32 %v1676_v24 }
 0x2d4   : > { %v2796_v27 = vpop.eup %2795  ;;  %2807 = vpow2.f32 %v2338_v39  ;;  %v2343_v39 = vmul.f32 -1.442695, %v3552_v0  ;;  %v2344_v0 = vmul.f32 -1.442695, %v3565_v63 }
 0x2d5   : > { %1801 = vperm.xlu1 %2694, %v2786_v46   ;;  %1983 = vperm.xlu0 %2695, %v2786_v46   ;;  %v1674_v33 = vadd.f32 1.0, %v2796_v27  ;;  %v2337_v46 = vmul.f32 -1.442695, %v3541_v60  ;;  %v2340_v60 = vmul.f32 -1.442695, %v3549_v11 }
 0x2d7   : > { %2809 = vrcp.f32 %v1674_v33  ;;  %v2341_v33 = vmul.f32 -1.442695, %v3557_v34 }
 0x2d8   : > { %v2798_v12 = vpop.eup %2797  ;;  %2811 = vpow2.f32 %v2336_v5 }
 0x2d9   : > { %2697 = vset.pattern.permute.xlu1 %v3747_v62  ;;  %2696 = vset.pattern.permute.xlu0 %v3746_v43  ;;  %v2800_v28 = vpop.eup %2799 }
 0x2da   : > { %2003 = vperm.xlu1 %2697, %v2790_v54   ;;  %1826 = vperm.xlu0 %2696, %v2790_v54   ;;  %v1677_v61 = vadd.f32 1.0, %v2800_v28 }
 0x2db   : > { %v2802_v51 = vpop.eup %2801 }
 0x2dc   : > { %v2804_v10 = vpop.eup %2803  ;;  %2813 = vrcp.f32 %v1677_v61 }
 0x2dd   : > { %v2806_v29 = vpop.eup %2805  ;;  %v1675_v50 = vadd.f32 1.0, %v2804_v10  ;;  %2815 = vpow2.f32 %v2339_v16 }
 0x2de   : > { %1995 = vperm.xlu1 %2697, %v2794_v26   ;;  %1816 = vperm.xlu0 %2696, %v2794_v26   ;;  %v2808_v32 = vpop.eup %2807 }
 0x2df   : > { %v1680_v18 = vadd.f32 1.0, %v2808_v32  ;;  %2817 = vrcp.f32 %v1675_v50  ;;  %v2345_v32 = vmul.f32 -1.442695, %v3571_v40 }
 0x2e0   : > { %2819 = vpow2.f32 %v2337_v46 }
 0x2e1   : > { %v2810_v22 = vpop.eup %2809  ;;  %2821 = vrcp.f32 %v1680_v18 }
 0x2e2   : > { %2698 = vset.pattern.permute.xlu1 %v3746_v43  ;;  %2699 = vset.pattern.permute.xlu0 %v3747_v62  ;;  %v2812_v6 = vpop.eup %2811  ;;  %2823 = vpow2.f32 %v2342_v4 }
 0x2e3   : > { %1831 = vperm.xlu1 %2698, %v2798_v12   ;;  %2007 = vperm.xlu0 %2699, %v2798_v12   ;;  %v1678_v54 = vadd.f32 1.0, %v2812_v6  ;;  %v2346_v12 = vmul.f32 -1.442695, %v3562_v17  ;;  %v2347_v17 = vmul.f32 -1.442695, %v3568_v25 }
 0x2e5   : > { %2825 = vrcp.f32 %v1678_v54 }
 0x2e6   : > { %v2814_v49 = vpop.eup %2813  ;;  %2827 = vpow2.f32 %v2340_v60 }
 0x2e7   : > { %1821 = vperm.xlu1 %2698, %v2802_v51   ;;  %1999 = vperm.xlu0 %2699, %v2802_v51   ;;  %v2816_v57 = vpop.eup %2815 }
 0x2e8   : > { %v1681_v53 = vadd.f32 1.0, %v2816_v57 }
 0x2e9   : > { %v2818_v23 = vpop.eup %2817 }
 0x2ea   : > { %v2820_v24 = vpop.eup %2819  ;;  %2829 = vrcp.f32 %v1681_v53 }
 0x2eb   : > { %2701 = vset.pattern.permute.xlu1 %v3747_v62  ;;  %2700 = vset.pattern.permute.xlu0 %v3746_v43  ;;  %v2822_v26 = vpop.eup %2821  ;;  %v1679_v11 = vadd.f32 1.0, %v2820_v24  ;;  %2831 = vpow2.f32 %v2343_v39 }
 0x2ec   : > { %2019 = vperm.xlu1 %2701, %v2806_v29   ;;  %1846 = vperm.xlu0 %2700, %v2806_v29   ;;  %v2824_v27 = vpop.eup %2823 }
 0x2ed   : > { %v1684_v5 = vadd.f32 1.0, %v2824_v27  ;;  %2833 = vrcp.f32 %v1679_v11 }
 0x2ee   : > { %2835 = vpow2.f32 %v2341_v33 }
 0x2ef   : > { %v2826_v28 = vpop.eup %2825  ;;  %2837 = vpow2.f32 %v2346_v12  ;;  %v2861_v12 = vld [vmem:[%s3023_s22 + $0x10] sm:$0xff] }
 0x2f0   : > { %2011 = vperm.xlu1 %2701, %v2810_v22   ;;  %1836 = vperm.xlu0 %2700, %v2810_v22   ;;  %v2828_v51 = vpop.eup %2827  ;;  %2839 = vrcp.f32 %v1684_v5 }
 0x2f1   : > { %2841 = vpow2.f32 %v2344_v0  ;;  %v1682_v34 = vadd.f32 1.0, %v2828_v51  ;;  %v2862_v51 = vld [vmem:[%s3023_s22] sm:$0xff] }
 0x2f3   : > { %2843 = vrcp.f32 %v1682_v34 }
 0x2f4   : > { %2702 = vset.pattern.permute.xlu1 %v3746_v43  ;;  %2703 = vset.pattern.permute.xlu0 %v3747_v62  ;;  %v2830_v61 = vpop.eup %2829  ;;  %2845 = vpow2.f32 %v2347_v17 }
 0x2f5   : > { %1851 = vperm.xlu1 %2702, %v2814_v49   ;;  %2023 = vperm.xlu0 %2703, %v2814_v49   ;;  %v2832_v10 = vpop.eup %2831 }
 0x2f6   : > { %v1685_v16 = vadd.f32 1.0, %v2832_v10 }
 0x2f7   : > { %v2834_v63 = vpop.eup %2833 }
 0x2f8   : > { %v2836_v29 = vpop.eup %2835  ;;  %2847 = vrcp.f32 %v1685_v16  ;;  %v2863_v16 = vld [vmem:[%s3023_s22 + $0x18] sm:$0xff] }
 0x2f9   : > { %1841 = vperm.xlu1 %2702, %v2818_v23   ;;  %2015 = vperm.xlu0 %2703, %v2818_v23   ;;  %v2838_v50 = vpop.eup %2837  ;;  %v1683_v4 = vadd.f32 1.0, %v2836_v29  ;;  %2849 = vpow2.f32 %v2345_v32 }
 0x2fa   : > { %v2840_v46 = vpop.eup %2839  ;;  %v1688_v25 = vadd.f32 1.0, %v2838_v50 }
 0x2fb   : > { %v2842_v18 = vpop.eup %2841  ;;  %2851 = vrcp.f32 %v1683_v4 }
 0x2fc   : > { %v1686_v22 = vadd.f32 1.0, %v2842_v18  ;;  %2853 = vrcp.f32 %v1688_v25 }
 0x2fd   : > { %2705 = vset.pattern.permute.xlu1 %v3747_v62  ;;  %2704 = vset.pattern.permute.xlu0 %v3746_v43  ;;  %v2844_v6 = vpop.eup %2843 }
 0x2fe   : > { %2035 = vperm.xlu1 %2705, %v2822_v26   ;;  %1866 = vperm.xlu0 %2704, %v2822_v26   ;;  %v2846_v40 = vpop.eup %2845  ;;  %2855 = vrcp.f32 %v1686_v22 }
 0x2ff   : > { %v1689_v49 = vadd.f32 1.0, %v2846_v40 }
 0x301   : > { %2857 = vrcp.f32 %v1689_v49 }
 0x302   : > { %2027 = vperm.xlu1 %2705, %v2826_v28   ;;  %1856 = vperm.xlu0 %2704, %v2826_v28   ;;  %v2848_v54 = vpop.eup %2847 }
 0x303   : > { %v2850_v60 = vpop.eup %2849 }
 0x304   : > { %v1687_v23 = vadd.f32 1.0, %v2850_v60 }
 0x305   : > { %v2852_v57 = vpop.eup %2851 }
 0x306   : > { %2706 = vset.pattern.permute.xlu1 %v3746_v43  ;;  %2707 = vset.pattern.permute.xlu0 %v3747_v62  ;;  %v2854_v53 = vpop.eup %2853  ;;  %2859 = vrcp.f32 %v1687_v23 }
 0x307   : > { %1871 = vperm.xlu1 %2706, %v2830_v61   ;;  %2039 = vperm.xlu0 %2707, %v2830_v61  }
 0x308   : > { %v2856_v24 = vpop.eup %2855 }
 0x30b   : > { %1861 = vperm.xlu1 %2706, %v2834_v63   ;;  %2031 = vperm.xlu0 %2707, %v2834_v63   ;;  %v2858_v27 = vpop.eup %2857 }
 0x30f   : > { %2709 = vset.pattern.permute.xlu1 %v3747_v62  ;;  %2708 = vset.pattern.permute.xlu0 %v3746_v43 }
 0x310   : > { %2051 = vperm.xlu1 %2709, %v2840_v46   ;;  %1886 = vperm.xlu0 %2708, %v2840_v46   ;;  %v2860_v61 = vpop.eup %2859  ;;  %v2864_v46 = vld [vmem:[%s3023_s22 + $0x8] sm:$0xff] }
 0x314   : > { %2043 = vperm.xlu1 %2709, %v2844_v6   ;;  %1876 = vperm.xlu0 %2708, %v2844_v6   ;;  %v2865_v6 = vld [vmem:[%s3023_s22 + $0x30] sm:$0xff] }
 0x318   : > { %2710 = vset.pattern.permute.xlu1 %v3746_v43  ;;  %2711 = vset.pattern.permute.xlu0 %v3747_v62 }
 0x319   : > { %1891 = vperm.xlu1 %2710, %v2848_v54   ;;  %2055 = vperm.xlu0 %2711, %v2848_v54  }
 0x31d   : > { %1881 = vperm.xlu1 %2710, %v2852_v57   ;;  %2047 = vperm.xlu0 %2711, %v2852_v57   ;;  %v2866_v57 = vld [vmem:[%s3023_s22 + $0x20] sm:$0xff] }
 0x321   : > { %2713 = vset.pattern.permute.xlu1 %v3747_v62  ;;  %2712 = vset.pattern.permute.xlu0 %v3746_v43 }
 0x322   : > { %v1767_v39 = vpop.permute.xlu1 %1766  ;;  %2059 = vperm.xlu1 %2713, %v2856_v24   ;;  %1906 = vperm.xlu0 %2712, %v2854_v53  }
 0x323   : > { %v1757_v26 = vpop.permute.xlu0 %1756  ;;  %v1916_v33 = vmul.f32 %v1767_v39, %v3280_v35 }
 0x324   : > { %v1914_v28 = vmul.f32 %v1757_v26, %v3253_v14 }
 0x326   : > { %2714 = vset.pattern.permute.xlu1 %v3746_v43  ;;  %1896 = vperm.xlu0 %2712, %v2856_v24  }
 0x327   : > { %v1956_v11 = vpop.permute.xlu1 %1955  ;;  %1911 = vperm.xlu1 %2714, %v2858_v27  }
 0x328   : > { %v2076_v5 = vmul.f32 %v2861_v12, %v1956_v11  ;;  %v1948_v0 = vpop.permute.xlu0 %1947 }
 0x329   : > { %v2074_v34 = vmul.f32 %v2862_v51, %v1948_v0  ;;  %v2868_v0 = vld [vmem:[%s3023_s22 + $0x28] sm:$0xff] }
 0x32a   : > { %v2108_v10 = vadd.f32 %v2076_v5, %v1916_v33  ;;  %2715 = vset.pattern.permute.xlu0 %v3747_v62 }
 0x32b   : > { %v2106_v43 = vadd.f32 %v2074_v34, %v1914_v28  ;;  %1901 = vperm.xlu1 %2714, %v2860_v61   ;;  %2063 = vperm.xlu0 %2715, %v2860_v61   ;;  %v2869_v61 = vld [vmem:[%s3023_s22 + $0x50] sm:$0xff] }
 0x32c   : > { %2140 = vst [vmem:[%s3033_s13 + $0x10] sm:$0xff] %v2108_v10  ;;  %v1772_v35 = vpop.permute.xlu1 %1771  ;;  %v1960_v17 = vpop.permute.xlu0 %1959 }
 0x32d   : > { %2138 = vst [vmem:[%s3033_s13] sm:$0xff] %v2106_v43  ;;  %v1917_v63 = vmul.f32 %v1772_v35, %v3283_v21  ;;  %v2077_v14 = vmul.f32 %v2863_v16, %v1960_v17 }
 0x32f   : > { %v2109_v29 = vadd.f32 %v2077_v14, %v1917_v63  ;;  %2716 = vset.pattern.permute.xlu1 %v3747_v62  ;;  %2071 = vperm.xlu0 %2715, %v2858_v27   ;;  %v2867_v27 = vld [vmem:[%s3023_s22 + $0x38] sm:$0xff]  ;;  %v2870_v63 = vld [vmem:[%s3023_s22 + $0x40] sm:$0xff] }
 0x330   : > { %2067 = vperm.xlu1 %2716, %v2854_v53  }
 0x331   : > { %2141 = vst [vmem:[%s3033_s13 + $0x18] sm:$0xff] %v2109_v29  ;;  %v1952_v32 = vpop.permute.xlu1 %1951  ;;  %v1762_v50 = vpop.permute.xlu0 %1761 }
 0x332   : > { %v2075_v18 = vmul.f32 %v2864_v46, %v1952_v32  ;;  %v1915_v4 = vmul.f32 %v1762_v50, %v3256_v15  ;;  %v2871_v46 = vld [vmem:[%s3023_s22 + $0x58] sm:$0xff] }
 0x334   : > { %v2107_v21 = vadd.f32 %v2075_v18, %v1915_v4 }
 0x335   : > { %v1972_v25 = vpop.permute.xlu1 %1971  ;;  %v1787_v22 = vpop.permute.xlu0 %1786 }
 0x336   : > { %2139 = vst [vmem:[%s3033_s13 + $0x8] sm:$0xff] %v2107_v21  ;;  %v2080_v40 = vmul.f32 %v2865_v6, %v1972_v25  ;;  %v1920_v62 = vmul.f32 %v1787_v22, %v3308_v55  ;;  %v2872_v22 = vld [vmem:[%s3023_s22 + $0x48] sm:$0xff] }
 0x338   : > { %v2112_v54 = vadd.f32 %v2080_v40, %v1920_v62 }
 0x339   : > { %v1964_v49 = vpop.permute.xlu1 %1963  ;;  %v1777_v60 = vpop.permute.xlu0 %1776 }
 0x33a   : > { %2144 = vst [vmem:[%s3033_s13 + $0x30] sm:$0xff] %v2112_v54  ;;  %v2078_v23 = vmul.f32 %v2866_v57, %v1964_v49  ;;  %v1918_v15 = vmul.f32 %v1777_v60, %v3288_v38  ;;  %v2873_v54 = vld [vmem:[%s3023_s22 + $0x70] sm:$0xff] }
 0x33c   : > { %v2110_v53 = vadd.f32 %v2078_v23, %v1918_v15  ;;  %v2874_v15 = vld [vmem:[%s3023_s22 + $0x60] sm:$0xff] }
 0x33e   : > { %2142 = vst [vmem:[%s3033_s13 + $0x20] sm:$0xff] %v2110_v53  ;;  %v1792_v24 = vpop.permute.xlu1 %1791  ;;  %v1976_v39 = vpop.permute.xlu0 %1975 }
 0x33f   : > { %v1921_v26 = vmul.f32 %v1792_v24, %v3311_v56  ;;  %v2081_v55 = vmul.f32 %v2867_v27, %v1976_v39 }
 0x341   : > { %v2113_v11 = vadd.f32 %v2081_v55, %v1921_v26  ;;  %v2875_v55 = vld [vmem:[%s3023_s22 + $0x78] sm:$0xff] }
 0x342   : > { %v1782_v33 = vpop.permute.xlu1 %1781  ;;  %v1968_v12 = vpop.permute.xlu0 %1967 }
 0x343   : > { %2145 = vst [vmem:[%s3033_s13 + $0x38] sm:$0xff] %v2113_v11  ;;  %v1919_v5 = vmul.f32 %v1782_v33, %v3291_v31  ;;  %v2079_v38 = vmul.f32 %v2868_v0, %v1968_v12  ;;  %v2876_v0 = vld [vmem:[%s3023_s22 + $0x68] sm:$0xff] }
 0x345   : > { %v2111_v28 = vadd.f32 %v2079_v38, %v1919_v5 }
 0x347   : > { %2143 = vst [vmem:[%s3033_s13 + $0x28] sm:$0xff] %v2111_v28  ;;  %v1988_v51 = vpop.permute.xlu1 %1987  ;;  %v1807_v34 = vpop.permute.xlu0 %1806 }
 0x348   : > { %v2084_v56 = vmul.f32 %v2869_v61, %v1988_v51  ;;  %v1924_v10 = vmul.f32 %v1807_v34, %v3340_v13  ;;  %v2877_v34 = vld [vmem:[%s3023_s22 + $0x90] sm:$0xff] }
 0x34a   : > { %v2116_v43 = vadd.f32 %v2084_v56, %v1924_v10 }
 0x34b   : > { %v1980_v35 = vpop.permute.xlu1 %1979  ;;  %v1797_v17 = vpop.permute.xlu0 %1796 }
 0x34c   : > { %2148 = vst [vmem:[%s3033_s13 + $0x50] sm:$0xff] %v2116_v43  ;;  %v2082_v31 = vmul.f32 %v2870_v63, %v1980_v35  ;;  %v1922_v16 = vmul.f32 %v1797_v17, %v3316_v58  ;;  %v2878_v35 = vld [vmem:[%s3023_s22 + $0x80] sm:$0xff] }
 0x34e   : > { %v2114_v14 = vadd.f32 %v2082_v31, %v1922_v16 }
 0x350   : > { %2146 = vst [vmem:[%s3033_s13 + $0x40] sm:$0xff] %v2114_v14  ;;  %v1812_v29 = vpop.permute.xlu1 %1811  ;;  %v1992_v32 = vpop.permute.xlu0 %1991 }
 0x351   : > { %v1925_v50 = vmul.f32 %v1812_v29, %v3343_v1  ;;  %v2085_v13 = vmul.f32 %v2871_v46, %v1992_v32  ;;  %v2879_v29 = vld [vmem:[%s3023_s22 + $0x98] sm:$0xff] }
 0x353   : > { %v2117_v18 = vadd.f32 %v2085_v13, %v1925_v50 }
 0x354   : > { %v1802_v4 = vpop.permute.xlu1 %1801  ;;  %v1984_v21 = vpop.permute.xlu0 %1983 }
 0x355   : > { %2149 = vst [vmem:[%s3033_s13 + $0x58] sm:$0xff] %v2117_v18  ;;  %v1923_v25 = vmul.f32 %v1802_v4, %v3319_v59  ;;  %v2083_v58 = vmul.f32 %v2872_v22, %v1984_v21  ;;  %v2880_v18 = vld [vmem:[%s3023_s22 + $0x88] sm:$0xff]  ;;  %v2881_v22 = vld [vmem:[%s3023_s22 + $0xb0] sm:$0xff] }
 0x357   : > { %v2115_v6 = vadd.f32 %v2083_v58, %v1923_v25 }
 0x359   : > { %2147 = vst [vmem:[%s3033_s13 + $0x48] sm:$0xff] %v2115_v6  ;;  %v2004_v40 = vpop.permute.xlu1 %2003  ;;  %v1827_v62 = vpop.permute.xlu0 %1826 }
 0x35a   : > { %v2088_v1 = vmul.f32 %v2873_v54, %v2004_v40  ;;  %v1928_v49 = vmul.f32 %v1827_v62, %v3374_v19  ;;  %v2882_v54 = vld [vmem:[%s3023_s22 + $0xa0] sm:$0xff] }
 0x35c   : > { %v2120_v60 = vadd.f32 %v2088_v1, %v1928_v49 }
 0x35d   : > { %v1996_v57 = vpop.permute.xlu1 %1995  ;;  %v1817_v23 = vpop.permute.xlu0 %1816 }
 0x35e   : > { %2152 = vst [vmem:[%s3033_s13 + $0x70] sm:$0xff] %v2120_v60  ;;  %v2086_v59 = vmul.f32 %v2874_v15, %v1996_v57  ;;  %v1926_v53 = vmul.f32 %v1817_v23, %v3351_v8  ;;  %v2883_v15 = vld [vmem:[%s3023_s22 + $0xb8] sm:$0xff] }
 0x360   : > { %v2118_v24 = vadd.f32 %v2086_v59, %v1926_v53 }
 0x362   : > { %2150 = vst [vmem:[%s3033_s13 + $0x60] sm:$0xff] %v2118_v24  ;;  %v1832_v39 = vpop.permute.xlu1 %1831  ;;  %v2008_v26 = vpop.permute.xlu0 %2007 }
 0x363   : > { %v1929_v27 = vmul.f32 %v1832_v39, %v3377_v44  ;;  %v2089_v19 = vmul.f32 %v2875_v55, %v2008_v26  ;;  %v2884_v26 = vld [vmem:[%s3023_s22 + $0xa8] sm:$0xff] }
 0x365   : > { %v2121_v11 = vadd.f32 %v2089_v19, %v1929_v27 }
 0x366   : > { %v1822_v33 = vpop.permute.xlu1 %1821  ;;  %v2000_v12 = vpop.permute.xlu0 %1999 }
 0x367   : > { %2153 = vst [vmem:[%s3033_s13 + $0x78] sm:$0xff] %v2121_v11  ;;  %v1927_v5 = vmul.f32 %v1822_v33, %v3354_v20  ;;  %v2087_v8 = vmul.f32 %v2876_v0, %v2000_v12  ;;  %v2885_v11 = vld [vmem:[%s3023_s22 + $0xd0] sm:$0xff] }
 0x369   : > { %v2119_v38 = vadd.f32 %v2087_v8, %v1927_v5  ;;  %v2886_v8 = vld [vmem:[%s3023_s22 + $0xc0] sm:$0xff] }
 0x36b   : > { %2151 = vst [vmem:[%s3033_s13 + $0x68] sm:$0xff] %v2119_v38  ;;  %v2020_v28 = vpop.permute.xlu1 %2019  ;;  %v1847_v51 = vpop.permute.xlu0 %1846 }
 0x36c   : > { %v2092_v44 = vmul.f32 %v2877_v34, %v2020_v28  ;;  %v1932_v61 = vmul.f32 %v1847_v51, %v3402_v3 }
 0x36e   : > { %v2124_v56 = vadd.f32 %v2092_v44, %v1932_v61  ;;  %v2887_v61 = vld [vmem:[%s3023_s22 + $0xd8] sm:$0xff] }
 0x36f   : > { %v2012_v10 = vpop.permute.xlu1 %2011  ;;  %v1837_v43 = vpop.permute.xlu0 %1836 }
 0x370   : > { %2156 = vst [vmem:[%s3033_s13 + $0x90] sm:$0xff] %v2124_v56  ;;  %v2090_v20 = vmul.f32 %v2878_v35, %v2012_v10  ;;  %v1930_v17 = vmul.f32 %v1837_v43, %v3382_v47 }
 0x372   : > { %v2122_v63 = vadd.f32 %v2090_v20, %v1930_v17  ;;  %v2888_v20 = vld [vmem:[%s3023_s22 + $0xc8] sm:$0xff] }
 0x374   : > { %2154 = vst [vmem:[%s3033_s13 + $0x80] sm:$0xff] %v2122_v63  ;;  %v1852_v31 = vpop.permute.xlu1 %1851  ;;  %v2024_v16 = vpop.permute.xlu0 %2023 }
 0x375   : > { %v1933_v14 = vmul.f32 %v1852_v31, %v3405_v45  ;;  %v2093_v3 = vmul.f32 %v2879_v29, %v2024_v16 }
 0x377   : > { %v2125_v32 = vadd.f32 %v2093_v3, %v1933_v14 }
 0x378   : > { %v1842_v50 = vpop.permute.xlu1 %1841  ;;  %v2016_v46 = vpop.permute.xlu0 %2015 }
 0x379   : > { %2157 = vst [vmem:[%s3033_s13 + $0x98] sm:$0xff] %v2125_v32  ;;  %v1931_v13 = vmul.f32 %v1842_v50, %v3385_v48  ;;  %v2091_v47 = vmul.f32 %v2880_v18, %v2016_v46  ;;  %v3748_v46 = vld [vmem:[#allocation7_spill] sm:$0xff]  ;;  %v2890_v18 = vld [vmem:[%s3023_s22 + $0xe8] sm:$0xff] }
 0x37b   : > { %v2123_v4 = vadd.f32 %v2091_v47, %v1931_v13 }
 0x37d   : > { %2155 = vst [vmem:[%s3033_s13 + $0x88] sm:$0xff] %v2123_v4  ;;  %v2036_v21 = vpop.permute.xlu1 %2035  ;;  %v1867_v25 = vpop.permute.xlu0 %1866 }
 0x37e   : > { %v2096_v45 = vmul.f32 %v2881_v22, %v2036_v21  ;;  %v1936_v58 = vmul.f32 %v1867_v25, %v3430_v36  ;;  %v3749_v25 = vld [vmem:[#allocation6_spill] sm:$0xff] }
 0x380   : > { %v2128_v6 = vadd.f32 %v2096_v45, %v1936_v58  ;;  %v2891_v45 = vld [vmem:[%s3023_s22 + $0xf8] sm:$0xff] }
 0x381   : > { %v2028_v40 = vpop.permute.xlu1 %2027  ;;  %v1857_v62 = vpop.permute.xlu0 %1856 }
 0x382   : > { %2160 = vst [vmem:[%s3033_s13 + $0xb0] sm:$0xff] %v2128_v6  ;;  %v2094_v48 = vmul.f32 %v2882_v54, %v2028_v40  ;;  %v1934_v1 = vmul.f32 %v1857_v62, %v3410_v7  ;;  %v3750_v6 = vld [vmem:[#allocation5_spill] sm:$0xff]  ;;  %v2892_v62 = vld [vmem:[%s3023_s22 + $0xf0] sm:$0xff] }
 0x384   : > { %v2126_v49 = vadd.f32 %v2094_v48, %v1934_v1 }
 0x386   : > { %2158 = vst [vmem:[%s3033_s13 + $0xa0] sm:$0xff] %v2126_v49  ;;  %v1872_v60 = vpop.permute.xlu1 %1871  ;;  %v2040_v57 = vpop.permute.xlu0 %2039 }
 0x387   : > { %v1937_v23 = vmul.f32 %v1872_v60, %v3433_v37  ;;  %v2097_v36 = vmul.f32 %v2883_v15, %v2040_v57 }
 0x389   : > { %v2129_v59 = vadd.f32 %v2097_v36, %v1937_v23 }
 0x38a   : > { %v1862_v53 = vpop.permute.xlu1 %1861  ;;  %v2032_v24 = vpop.permute.xlu0 %2031 }
 0x38b   : > { %2161 = vst [vmem:[%s3033_s13 + $0xb8] sm:$0xff] %v2129_v59  ;;  %v1935_v39 = vmul.f32 %v1862_v53, %v3413_v52  ;;  %v2095_v7 = vmul.f32 %v2884_v26, %v2032_v24 }
 0x38d   : > { %v2127_v27 = vadd.f32 %v2095_v7, %v1935_v39 }
 0x38f   : > { %2159 = vst [vmem:[%s3033_s13 + $0xa8] sm:$0xff] %v2127_v27  ;;  %v2052_v55 = vpop.permute.xlu1 %2051  ;;  %v1887_v19 = vpop.permute.xlu0 %1886 }
 0x390   : > { %v2100_v37 = vmul.f32 %v2885_v11, %v2052_v55  ;;  %v1940_v33 = vmul.f32 %v1887_v19, %v3458_v30 }
 0x392   : > { %v2132_v12 = vadd.f32 %v2100_v37, %v1940_v33 }
 0x393   : > { %v2044_v5 = vpop.permute.xlu1 %2043  ;;  %v1877_v0 = vpop.permute.xlu0 %1876 }
 0x394   : > { %2164 = vst [vmem:[%s3033_s13 + $0xd0] sm:$0xff] %v2132_v12  ;;  %v2098_v52 = vmul.f32 %v2886_v8, %v2044_v5  ;;  %v1938_v38 = vmul.f32 %v1877_v0, %v3438_v41 }
 0x396   : > { %v2130_v28 = vadd.f32 %v2098_v52, %v1938_v38 }
 0x398   : > { %2162 = vst [vmem:[%s3033_s13 + $0xc0] sm:$0xff] %v2130_v28  ;;  %v1892_v51 = vpop.permute.xlu1 %1891  ;;  %v2056_v34 = vpop.permute.xlu0 %2055 }
 0x399   : > { %v1941_v44 = vmul.f32 %v1892_v51, %v3461_v2  ;;  %v2101_v30 = vmul.f32 %v2887_v61, %v2056_v34  ;;  %v2889_v2 = vld [vmem:[%s3023_s22 + $0xe0] sm:$0xff] }
 0x39b   : > { %v2133_v56 = vadd.f32 %v2101_v30, %v1941_v44 }
 0x39c   : > { %v1882_v10 = vpop.permute.xlu1 %1881  ;;  %v2048_v43 = vpop.permute.xlu0 %2047 }
 0x39d   : > { %2165 = vst [vmem:[%s3033_s13 + $0xd8] sm:$0xff] %v2133_v56  ;;  %v1939_v35 = vmul.f32 %v1882_v10, %v3441_v42  ;;  %v2099_v41 = vmul.f32 %v2888_v20, %v2048_v43 }
 0x39f   : > { %v2131_v17 = vadd.f32 %v2099_v41, %v1939_v35 }
 0x3a1   : > { %2163 = vst [vmem:[%s3033_s13 + $0xc8] sm:$0xff] %v2131_v17  ;;  %v2060_v63 = vpop.permute.xlu1 %2059  ;;  %v1907_v31 = vpop.permute.xlu0 %1906 }
 0x3a2   : > { %v2102_v14 = vmul.f32 %v2889_v2, %v2060_v63  ;;  %v1944_v40 = vmul.f32 %v1907_v31, %v3750_v6 }
 0x3a5   : > { %v1897_v16 = vpop.permute.xlu0 %1896 }
 0x3a6   : > { %v1942_v29 = vmul.f32 %v1897_v16, %v3466_v9  ;;  %v1912_v3 = vpop.permute.xlu1 %1911 }
 0x3a7   : > { %v1945_v22 = vmul.f32 %v1912_v3, %v3749_v25 }
 0x3a8   : > { %v2134_v32 = vadd.f32 %v2102_v14, %v1942_v29 }
 0x3aa   : > { %2166 = vst [vmem:[%s3033_s13 + $0xe0] sm:$0xff] %v2134_v32  ;;  %v1902_v50 = vpop.permute.xlu1 %1901  ;;  %v2064_v42 = vpop.permute.xlu0 %2063 }
 0x3ab   : > { %v1943_v13 = vmul.f32 %v1902_v50, %v3748_v46  ;;  %v2103_v47 = vmul.f32 %v2890_v18, %v2064_v42 }
 0x3ad   : > { %v2135_v4 = vadd.f32 %v2103_v47, %v1943_v13 }
 0x3ae   : > { %v2072_v21 = vpop.permute.xlu0 %2071 }
 0x3af   : > { %2167 = vst [vmem:[%s3033_s13 + $0xe8] sm:$0xff] %v2135_v4  ;;  %v2105_v58 = vmul.f32 %v2891_v45, %v2072_v21  ;;  %v2068_v9 = vpop.permute.xlu1 %2067 }
 0x3b0   : > { %v2104_v54 = vmul.f32 %v2892_v62, %v2068_v9 }
 0x3b1   : > { %v2137_v48 = vadd.f32 %v2105_v58, %v1945_v22 }
 0x3b2   : > { %v2136_v1 = vadd.f32 %v2104_v54, %v1944_v40 }
 0x3b3   : > { %2169 = vst [vmem:[%s3033_s13 + $0xf8] sm:$0xff] %v2137_v48 }
 0x3b4   : > { %2168 = vst [vmem:[%s3033_s13 + $0xf0] sm:$0xff] %v2136_v1 }
 0x3b5 PF: > { %s18_s9 = sadd.s32 1, %s2931_s9   ;;  %s3751_s27 = smov %s2923_s29 }
 0x3b6   : > { %p15_p11 = scmp.ge.s32.totalorder %s18_s9, 6   ;;  %s3752_s28 = smov %s2927_s30 }
 0x3b7   : > { %s3753_s29 = smov %s3756_s10  ;;  %s3754_s30 = smov %s3760_s11 }
 0x3b8   :  { %17 = sbr.rel (!%p15_p11) target bundleno = 3 (0x3), region = 103 }

// kernel: transxnet_reviewkd_forward_train.12
= control target key start
LH: loop header
LB: loop body
LE: loop exit
PB: predicated region body
PF: predicated region fallthrough
CT: control target
= control target key end

     0   :  { %s6092_s18 = smov 0   ;;  %s7680_s0 = inlined_call_operand.vmem [shape: bf16[2,290,128], index: 0, kind: input, shape index: {}]   ;;  %s7681_s1 = inlined_call_operand.vmem [shape: bf16[3,3,128,128], index: 1, kind: input, shape index: {}]   ;;  %s7682_s2 = inlined_call_operand.vmem [shape: f32[256,1], index: 2, kind: input, shape index: {}]   ;;  %s7683_s3 = inlined_call_operand.vmem [shape: f32[256,1], index: 3, kind: input, shape index: {}]   ;;  %s7684_s4 = inlined_call_operand.vmem [shape: f32[2,256,128], index: 4, kind: output, shape index: {0}]   ;;  %s7685_s5 = inlined_call_operand.vmem [shape: f32[2,2,128], index: 5, kind: output, shape index: {1}]  }
   0x1 LB: > { %s4665_s19 = sadd.s32 4294967295, %s6059_s18   ;;  %p4669_p0 = scmp.ge.s32.totalorder %s6059_s18, 1  ;;  %s6059_s18 = sphi %s6092_s18, %s16_s18  }
   0x2   : > { %p190_p1 = scmp.lt.s32.totalorder %s6059_s18, 3 }
   0x4   : > { %p191_p2 = pnand %p4669_p0, %p190_p1 }
   0x6   : > { %194 = sbr.rel (%p191_p2) target bundleno = 568 (0x238), region = 36 }
   0xd   : > { %v5879_v0 = vld [vmem:[%s7681_s1] sm:$0xff]   ;;  %v5880_v1 = vld [vmem:[%s7681_s1 + $0x8] sm:$0xff]   ;;  %v6061_v2 = vmov 0   ;;  %p222_p3 = scmp.lt.s32.totalorder %s4665_s19, 1  ;;  %v5881_v3 = vld [vmem:[%s7681_s1 + $0x10] sm:$0xff]   ;;  %vm1358_vm1 = vcmask 1046528  }
   0xe   : > { %5877 = vset.pattern.permute.xlu0 %v6061_v2  ;;  %5878 = vset.pattern.permute.xlu1 %v6061_v2  ;;  %v590_v4 = vld [vmem:[%s7682_s2] sm:$0xff]  ;;  %v591_v5 = vld [vmem:[%s7682_s2 + $0x8] sm:$0xff]  ;;  %v5882_v6 = vld [vmem:[%s7681_s1 + $0x18] sm:$0xff]   ;;  %vm947_vm0 = vsmask.f32 7424 }
   0xf   : > { %5195 = vmatprep.subr.bf16.mxu0 %v5879_v0  ;;  %5627 = vmatprep.subr.bf16.mxu1 %v5879_v0  ;;  %s7995_s19 = smov (!%p222_p3, %s4665_s19), 1  ;;  %v594_v7 = vld [vmem:[%s7682_s2 + $0x20] sm:$0xff]  ;;  %v596_v11 = vld [vmem:[%s7682_s2 + $0x30] sm:$0xff]  ;;  %v5884_v12 = vld [vmem:[%s7681_s1 + $0x28] sm:$0xff]  }
  0x10   : > { %5196 = vmatpush3.bf16.msra.mxu0 %v5879_v0  ;;  %5635 = vmatpush3.bf16.msra.mxu1 %v5879_v0  ;;  %s5867_s28 = smul.u32 148, %s7995_s19  ;;  %v5883_v10 = vld [vmem:[%s7681_s1 + $0x20] sm:$0xff]   ;;  %v5885_v14 = vld [vmem:[%s7681_s1 + $0x30] sm:$0xff]   ;;  %v5886_v16 = vld [vmem:[%s7681_s1 + $0x38] sm:$0xff]   ;;  %s4673_s10 = sshll.u32 %s7995_s19, 1 }
  0x11   : > { %5197 = vmatprep.subr.bf16.mxu0 %v5880_v1  ;;  %5628 = vmatprep.subr.bf16.mxu1 %v5880_v1  ;;  %v598_v13 = vld [vmem:[%s7682_s2 + $0x40] sm:$0xff]  ;;  %v600_v15 = vld [vmem:[%s7682_s2 + $0x50] sm:$0xff]  ;;  %v5893_v22 = vld [vmem:[%s7681_s1 + $0x48] sm:$0xff]   ;;  %s235_s13 = scalar_lea.vmem %s7685_s5, %s4673_s10 }
  0x12   : > { %624 = vperm.xlu0 %5877, %v590_v4   ;;  %s6121_s8 = scalar_lea.vmem %s7680_s0, %s5867_s28  ;;  %v5891_v17 = vld [vmem:[%s7681_s1 + $0x40] sm:$0xff]   ;;  %v5894_v23 = vld [vmem:[%s7681_s1 + $0x88] sm:$0xff]   ;;  %v5899_v26 = vld [vmem:[%s7681_s1 + $0x50] sm:$0xff]  }
  0x13   : > { %v5887_v8 = vld [vmem:[%s6121_s8] sm:$0xff]   ;;  %v5889_v20 = vld [vmem:[%s6121_s8 + $0x8] sm:$0xff]   ;;  %v5895_v24 = vld [vmem:[%s6121_s8 + $0x10] sm:$0xff]  }
  0x14   : > { %5198 = vmatpush3.bf16.msra.mxu0 %v5880_v1  ;;  %5636 = vmatpush3.bf16.msra.mxu1 %v5880_v1  ;;  %v5888_v9 = vld [vmem:[%s6121_s8 + $0x40] sm:$0xff]   ;;  %v5890_v21 = vld [vmem:[%s6121_s8 + $0x48] sm:$0xff]   ;;  %v5896_v25 = vld [vmem:[%s6121_s8 + $0x50] sm:$0xff]  }
  0x15   : > { %5199 = vmatprep.subr.bf16.mxu0 %v5881_v3  ;;  %5629 = vmatprep.subr.bf16.mxu1 %v5881_v3  ;;  %v602_v18 = vld [vmem:[%s7682_s2 + $0x60] sm:$0xff]  ;;  %v604_v27 = vld [vmem:[%s7682_s2 + $0x70] sm:$0xff]  ;;  %v5897_v29 = vld [vmem:[%s6121_s8 + $0x18] sm:$0xff]  }
  0x16   : > { %629 = vperm.xlu0 %5877, %v591_v5   ;;  %5211 = vmatprep.mubr.bf16.mxu0 %v5887_v8  ;;  %v5892_v19 = vld [vmem:[%s7681_s1 + $0x80] sm:$0xff]   ;;  %v5900_v28 = vld [vmem:[%s7681_s1 + $0x90] sm:$0xff]   ;;  %v5898_v30 = vld [vmem:[%s6121_s8 + $0x58] sm:$0xff]  }
  0x17   : > { %5227 = vmatprep.mubr.bf16.mxu1 %v5888_v9  ;;  %v5901_v31 = vld [vmem:[%s7681_s1 + $0x58] sm:$0xff]   ;;  %v5903_v33 = vld [vmem:[%s6121_s8 + $0x20] sm:$0xff]   ;;  %v5905_v40 = vld [vmem:[%s6121_s8 + $0x28] sm:$0xff]  }
  0x18   : > { %5200 = vmatpush3.bf16.msra.mxu0 %v5881_v3  ;;  %5637 = vmatpush3.bf16.msra.mxu1 %v5881_v3  ;;  %v5902_v32 = vld [vmem:[%s7681_s1 + $0x98] sm:$0xff]   ;;  %v5904_v34 = vld [vmem:[%s6121_s8 + $0x60] sm:$0xff]   ;;  %v5906_v41 = vld [vmem:[%s6121_s8 + $0x68] sm:$0xff]  }
  0x19   : > { %5201 = vmatprep.subr.bf16.mxu0 %v5882_v6  ;;  %5630 = vmatprep.subr.bf16.mxu1 %v5882_v6  ;;  %v5907_v35 = vld [vmem:[%s7681_s1 + $0x60] sm:$0xff]   ;;  %v6204_v43 = vld [vmem:[%s6121_s8 + $0x8] sm:$0xff]   ;;  %v608_v47 = vld [vmem:[%s7682_s2 + $0x90] sm:$0xff] }
  0x1a   : > { %644 = vperm.xlu0 %5877, %v594_v7   ;;  %v5908_v36 = vld [vmem:[%s7681_s1 + $0xa0] sm:$0xff]   ;;  %v5909_v44 = vld [vmem:[%s7681_s1 + $0x68] sm:$0xff]   ;;  %v5911_v49 = vld [vmem:[%s6121_s8 + $0x30] sm:$0xff]   ;;  %v956_v55 = vshll.u32 %v6204_v43, 16  ;;  %v960_v2 = vshrl.u32 %v6204_v43, 16  ;;  %v1360_v4 = vrot.slane %v6204_v43, 1 }
  0x1b   : > { %v606_v37 = vld [vmem:[%s7682_s2 + $0x80] sm:$0xff]  ;;  %v5910_v45 = vld [vmem:[%s7681_s1 + $0xa8] sm:$0xff]   ;;  %v5912_v50 = vld [vmem:[%s6121_s8 + $0x70] sm:$0xff]  }
  0x1c   : > { %5202 = vmatpush3.bf16.msra.mxu0 %v5882_v6  ;;  %5638 = vmatpush3.bf16.msra.mxu1 %v5882_v6  ;;  %v814_v38 = vld [vmem:[%s6121_s8] sm:$0xf]  ;;  %v815_v39 = vld [vmem:[%s6121_s8 + $0x4] sm:$0xf]  ;;  %v5915_v51 = vld [vmem:[%s7681_s1 + $0x70] sm:$0xff]   ;;  %v958_v1 = vrot.slane %v956_v55, 1 }
  0x1d   : > { %5203 = vmatprep.subr.bf16.mxu0 %v5883_v10  ;;  %5631 = vmatprep.subr.bf16.mxu1 %v5883_v10  ;;  %v4714_v42 = vcombine.low %v814_v38, %v815_v39  ;;  %v1337_v48 = vld [vmem:[%s6121_s8] sm:$0xe]  ;;  %v5916_v52 = vld [vmem:[%s7681_s1 + $0xb0] sm:$0xff]   ;;  %v5913_v58 = vld [vmem:[%s6121_s8 + $0x38] sm:$0xff]  }
  0x1e   : > { %654 = vperm.xlu0 %5877, %v596_v11   ;;  %v4755_v56 = vcombine.low %v1337_v48, %v815_v39  ;;  %v6226_v57 = vld [vmem:[%s6121_s8 + $0x10] sm:$0xff]   ;;  %v5914_v59 = vld [vmem:[%s6121_s8 + $0x78] sm:$0xff]   ;;  %v610_v60 = vld [vmem:[%s7682_s2 + $0xa0] sm:$0xff]  ;;  %v962_v11 = vor.u32 %v960_v2, %v958_v1 }
  0x1f   : > { %v951_v46 = vshll.u32 %v4714_v42, 16  ;;  %v949_v53 = vshrl.u32 %v4714_v42, 16  ;;  %v6234_v61 = vld [vmem:[%s6121_s8 + $0x18] sm:$0xff]   ;;  %v964_v5 = vshll.u32 %v6226_v57, 16  ;;  %v612_v6 = vld [vmem:[%s7682_s2 + $0xb0] sm:$0xff]  ;;  %v968_v7 = vshrl.u32 %v6226_v57, 16 }
  0x20   : > { %5204 = vmatpush3.bf16.msra.mxu0 %v5883_v10  ;;  %5639 = vmatpush3.bf16.msra.mxu1 %v5883_v10  ;;  %v5917_v62 = vld [vmem:[%s7681_s1 + $0x78] sm:$0xff]   ;;  %v1359_v3 = vrot.slane %v4755_v56, 1  ;;  %v972_v8 = vshll.u32 %v6234_v61, 16  ;;  %v6252_v10 = vld [vmem:[%s6121_s8 + $0x20] sm:$0xff]   ;;  %v5931_v39 = vld [vmem:[%s7681_s1 + $0xd0] sm:$0xff]  }
  0x21   : > { %5205 = vmatprep.subr.bf16.mxu0 %v5884_v12  ;;  %5632 = vmatprep.subr.bf16.mxu1 %v5884_v12  ;;  %v953_v54 = vrot.slane %v951_v46, 1  ;;  %v5918_v63 = vld [vmem:[%s7681_s1 + $0xb8] sm:$0xff]   ;;  %v6321_v55 = vld [vmem:[%s6121_s8 + $0x40] sm:$0xff]  }
  0x22   : > { %664 = vperm.xlu0 %5877, %v598_v13   ;;  %v966_v13 = vrot.slane %v964_v5, 1  ;;  %v5935_v56 = vld [vmem:[%s7681_s1 + $0xd8] sm:$0xff]   ;;  %v5939_v2 = vld [vmem:[%s7681_s1 + $0xe0] sm:$0xff]  }
  0x23   : > { %v954_v0 = vor.u32 %v953_v54, %v949_v53  ;;  %v1621_v54 = vld [vmem:[%s7683_s3 + $0x20] sm:$0xff] }
  0x24   : > { %5206 = vmatpush3.bf16.msra.mxu0 %v5884_v12  ;;  %5640 = vmatpush3.bf16.msra.mxu1 %v5884_v12  ;;  %v1361_v12 = vsel %vm1358_vm1, %v1359_v3, %v1360_v4  ;;  %v1623_v3 = vld [vmem:[%s7683_s3 + $0x30] sm:$0xff] }
  0x25   : > { %5207 = vmatprep.subr.bf16.mxu0 %v5885_v14  ;;  %5633 = vmatprep.subr.bf16.mxu1 %v5885_v14  ;;  %v959_v9 = vsel %vm947_vm0, %v954_v0, %v958_v1  ;;  %v6335_v1 = vld [vmem:[%s6121_s8 + $0x48] sm:$0xff]  }
  0x26   : > { %674 = vperm.xlu0 %5877, %v600_v15   ;;  %v5923_v15 = vld [vmem:[%s7681_s1 + $0xc0] sm:$0xff]  }
  0x28   : > { %5208 = vmatpush3.bf16.msra.mxu0 %v5885_v14  ;;  %5641 = vmatpush3.bf16.msra.mxu1 %v5885_v14  ;;  %v1362_v14 = vrot.slane %v6226_v57, 1 }
  0x29   : > { %5209 = vmatprep.subr.bf16.mxu0 %v5886_v16  ;;  %5634 = vmatprep.subr.bf16.mxu1 %v5886_v16 }
  0x2a   : > { %684 = vperm.xlu0 %5877, %v602_v18   ;;  %v592_v18 = vld [vmem:[%s7682_s2 + $0x10] sm:$0xff] }
  0x2b   : > { %634 = vperm.xlu1 %5878, %v592_v18  }
  0x2c   : > { %5210 = vmatpush3.bf16.msra.mxu0 %v5886_v16  ;;  %5642 = vmatpush3.bf16.msra.mxu1 %v5886_v16  ;;  %v5924_v16 = vld [vmem:[%s7681_s1 + $0x140] sm:$0xff]  }
  0x2d   : > { %5243 = vmatprep.subr.bf16.mxu1 %v5891_v17  ;;  %5291 = vmatprep.subr.bf16.mxu0 %v5892_v19 }
  0x2e   : > { %694 = vperm.xlu0 %5877, %v604_v27   ;;  %v1617_v27 = vld [vmem:[%s7683_s3] sm:$0xff] }
  0x2f   : > { %5212 = vmatmul.mubr.bf16.vlgmr.msra.gmra.mrb[0].mxu0 %v5889_v20  ;;  %5228 = vmatmul.mubr.bf16.vlgmr.msra.gmra.mrb[0].mxu1 %v5890_v21  ;;  %v974_v20 = vrot.slane %v972_v8, 1  ;;  %v1364_v21 = vrot.slane %v6234_v61, 1  ;;  %v1016_v8 = vshrl.u32 %v6321_v55, 16 }
  0x30   : > { %5244 = vmatpush3.bf16.msra.mxu1 %v5891_v17  ;;  %5292 = vmatpush3.bf16.msra.mxu0 %v5892_v19  ;;  %v6263_v17 = vld [vmem:[%s6121_s8 + $0x28] sm:$0xff]   ;;  %v970_v19 = vor.u32 %v968_v7, %v966_v13 }
  0x31   : > { %5245 = vmatprep.subr.bf16.mxu1 %v5893_v22  ;;  %5293 = vmatprep.subr.bf16.mxu0 %v5894_v23  ;;  %v1368_v38 = vrot.slane %v6263_v17, 1 }
  0x32   : > { %5215 = vmatprep.mubr.bf16.mxu0 %v5895_v24  ;;  %5231 = vmatprep.mubr.bf16.mxu1 %v5896_v25  ;;  %v967_v24 = vsel %vm947_vm0, %v962_v11, %v966_v13  ;;  %v1363_v25 = vsel %vm1358_vm1, %v1360_v4, %v1362_v14  ;;  %v1012_v4 = vshll.u32 %v6321_v55, 16  ;;  %v5940_v13 = vld [vmem:[%s7681_s1 + $0x160] sm:$0xff]  }
  0x33   : > { %704 = vperm.xlu0 %5877, %v606_v37   ;;  %v1366_v37 = vrot.slane %v6252_v10, 1 }
  0x34   : > { %5246 = vmatpush3.bf16.msra.mxu1 %v5893_v22  ;;  %5294 = vmatpush3.bf16.msra.mxu0 %v5894_v23  ;;  %v614_v22 = vld [vmem:[%s7682_s2 + $0xc0] sm:$0xff]  ;;  %v980_v23 = vshll.u32 %v6252_v10, 16 }
  0x35   : > { %5247 = vmatprep.subr.bf16.mxu1 %v5899_v26  ;;  %5295 = vmatprep.subr.bf16.mxu0 %v5900_v28  ;;  %v1367_v48 = vsel %vm1358_vm1, %v1364_v21, %v1366_v37 }
  0x37   : > { %5216 = vmatmul.mubr.bf16.gmra.mrb[4].mxu0 %v5897_v29  ;;  %5232 = vmatmul.mubr.bf16.gmra.mrb[4].mxu1 %v5898_v30  ;;  %v988_v29 = vshll.u32 %v6263_v17, 16  ;;  %v975_v30 = vsel %vm947_vm0, %v970_v19, %v974_v20  ;;  %v1374_v19 = vrot.slane %v6321_v55, 1 }
  0x38   : > { %5248 = vmatpush3.bf16.msra.mxu1 %v5899_v26  ;;  %5296 = vmatpush3.bf16.msra.mxu0 %v5900_v28  ;;  %v976_v26 = vshrl.u32 %v6234_v61, 16  ;;  %v984_v28 = vshrl.u32 %v6252_v10, 16  ;;  %v595_v61 = vld [vmem:[%s7682_s2 + $0x28] sm:$0xff] }
  0x39   : > { %5249 = vmatprep.subr.bf16.mxu1 %v5901_v31  ;;  %5297 = vmatprep.subr.bf16.mxu0 %v5902_v32  ;;  %v990_v43 = vrot.slane %v988_v29, 1 }
  0x3a   : > { %5219 = vmatprep.mubr.bf16.mxu0 %v5903_v33  ;;  %5235 = vmatprep.mubr.bf16.mxu1 %v5904_v34  ;;  %v982_v33 = vrot.slane %v980_v23, 1  ;;  %v5928_v34 = vld [vmem:[%s7681_s1 + $0x148] sm:$0xff]   ;;  %v1376_v23 = vrot.slane %v6335_v1, 1 }
  0x3b   : > { %714 = vperm.xlu0 %5877, %v608_v47  }
  0x3c   : > { %5250 = vmatpush3.bf16.msra.mxu1 %v5901_v31  ;;  %5298 = vmatpush3.bf16.msra.mxu0 %v5902_v32  ;;  %v1365_v31 = vsel %vm1358_vm1, %v1362_v14, %v1364_v21  ;;  %v5927_v32 = vld [vmem:[%s7681_s1 + $0xc8] sm:$0xff]   ;;  %v986_v42 = vor.u32 %v984_v28, %v982_v33  ;;  %v597_v14 = vld [vmem:[%s7682_s2 + $0x38] sm:$0xff] }
  0x3d   : > { %5251 = vmatprep.subr.bf16.mxu1 %v5907_v35  ;;  %5299 = vmatprep.subr.bf16.mxu0 %v5908_v36 }
  0x3f   : > { %5220 = vmatmul.mubr.bf16.gmra.mrb[8].mxu0 %v5905_v40  ;;  %5236 = vmatmul.mubr.bf16.gmra.mrb[8].mxu1 %v5906_v41  ;;  %v5932_v40 = vld [vmem:[%s7681_s1 + $0x150] sm:$0xff]   ;;  %v593_v41 = vld [vmem:[%s7682_s2 + $0x18] sm:$0xff] }
  0x40   : > { %5252 = vmatpush3.bf16.msra.mxu1 %v5907_v35  ;;  %5300 = vmatpush3.bf16.msra.mxu0 %v5908_v36  ;;  %v6290_v35 = vld [vmem:[%s6121_s8 + $0x30] sm:$0xff]   ;;  %v978_v36 = vor.u32 %v976_v26, %v974_v20  ;;  %v5944_v20 = vld [vmem:[%s7681_s1 + $0x168] sm:$0xff]  }
  0x41   : > { %5253 = vmatprep.subr.bf16.mxu1 %v5909_v44  ;;  %5301 = vmatprep.subr.bf16.mxu0 %v5910_v45  ;;  %v996_v46 = vshll.u32 %v6290_v35, 16  ;;  %v1627_v26 = vld [vmem:[%s7683_s3 + $0x50] sm:$0xff] }
  0x42   : > { %5223 = vmatprep.mubr.bf16.mxu0 %v5911_v49  ;;  %5239 = vmatprep.mubr.bf16.mxu1 %v5912_v50  ;;  %v983_v47 = vsel %vm947_vm0, %v978_v36, %v982_v33  ;;  %v992_v49 = vshrl.u32 %v6263_v17, 16  ;;  %v991_v50 = vsel %vm947_vm0, %v986_v42, %v990_v43  ;;  %v5943_v17 = vld [vmem:[%s7681_s1 + $0xe8] sm:$0xff]   ;;  %v1377_v33 = vsel %vm1358_vm1, %v1374_v19, %v1376_v23 }
  0x43   : > { %724 = vperm.xlu0 %5877, %v610_v60   ;;  %639 = vperm.xlu1 %5878, %v593_v41   ;;  %v998_v57 = vrot.slane %v996_v46, 1  ;;  %v1370_v60 = vrot.slane %v6290_v35, 1 }
  0x44   : > { %5254 = vmatpush3.bf16.msra.mxu1 %v5909_v44  ;;  %5302 = vmatpush3.bf16.msra.mxu0 %v5910_v45  ;;  %v6304_v44 = vld [vmem:[%s6121_s8 + $0x38] sm:$0xff]   ;;  %v1619_v45 = vld [vmem:[%s7683_s3 + $0x10] sm:$0xff] }
  0x45   : > { %5255 = vmatprep.subr.bf16.mxu1 %v5915_v51  ;;  %5303 = vmatprep.subr.bf16.mxu0 %v5916_v52  ;;  %v1004_v53 = vshll.u32 %v6304_v44, 16  ;;  %v1372_v0 = vrot.slane %v6304_v44, 1  ;;  %v1008_v7 = vshrl.u32 %v6304_v44, 16 }
  0x47   : > { %5224 = vmatmul.mubr.bf16.gmra.mrb[12].mxu0 %v5913_v58  ;;  %5240 = vmatmul.mubr.bf16.gmra.mrb[12].mxu1 %v5914_v59  ;;  %v5936_v58 = vld [vmem:[%s7681_s1 + $0x158] sm:$0xff]   ;;  %v994_v59 = vor.u32 %v992_v49, %v990_v43  ;;  %v1373_v11 = vsel %vm1358_vm1, %v1370_v60, %v1372_v0  ;;  %v1375_v29 = vsel %vm1358_vm1, %v1372_v0, %v1374_v19  ;;  %v6443_v0 = vld [vmem:[%s7681_s1 + $0x180] sm:$0xff]  }
  0x48   : > { %5256 = vmatpush3.bf16.msra.mxu1 %v5915_v51  ;;  %5304 = vmatpush3.bf16.msra.mxu0 %v5916_v52  ;;  %v1369_v51 = vsel %vm1358_vm1, %v1366_v37, %v1368_v38  ;;  %v1000_v52 = vshrl.u32 %v6290_v35, 16  ;;  %v5947_v37 = vld [vmem:[%s7681_s1 + $0xf0] sm:$0xff]   ;;  %v5951_v43 = vld [vmem:[%s7681_s1 + $0xf8] sm:$0xff]  }
  0x49   : > { %5257 = vmatprep.subr.bf16.mxu1 %v5917_v62  ;;  %5305 = vmatprep.subr.bf16.mxu0 %v5918_v63  ;;  %v999_v5 = vsel %vm947_vm0, %v994_v59, %v998_v57  ;;  %v5952_v49 = vld [vmem:[%s7681_s1 + $0x178] sm:$0xff]  }
  0x4a   : > { %734 = vperm.xlu0 %5877, %v612_v6   ;;  %5259 = vmatprep.mubr.bf16.mxu1 %v959_v9  ;;  %v1371_v6 = vsel %vm1358_vm1, %v1368_v38, %v1370_v60  ;;  %v1625_v9 = vld [vmem:[%s7683_s3 + $0x40] sm:$0xff]  ;;  %v605_v59 = vld [vmem:[%s7682_s2 + $0x78] sm:$0xff] }
  0x4b   : > { %5307 = vmatprep.mubr.bf16.mxu0 %v1361_v12  ;;  %649 = vperm.xlu1 %5878, %v595_v61   ;;  %v1020_v12 = vshll.u32 %v6335_v1, 16  ;;  %v5946_v61 = vld [vmem:[%s6121_s8 + $0x70] sm:$0xff]  }
  0x4c   : > { %5258 = vmatpush3.bf16.msra.mxu1 %v5917_v62  ;;  %5306 = vmatpush3.bf16.msra.mxu0 %v5918_v63  ;;  %v1002_v62 = vor.u32 %v1000_v52, %v998_v57  ;;  %v1006_v63 = vrot.slane %v1004_v53, 1 }
  0x4d   : > { %5339 = vmatprep.subr.bf16.mxu1 %v5923_v15  ;;  %5435 = vmatprep.subr.bf16.mxu0 %v5924_v16 }
  0x4e   : > { %744 = vperm.xlu0 %5877, %v614_v22   ;;  %v1007_v10 = vsel %vm947_vm0, %v1002_v62, %v1006_v63  ;;  %v1010_v18 = vor.u32 %v1008_v7, %v1006_v63  ;;  %v1022_v22 = vrot.slane %v1020_v12, 1  ;;  %v6438_v63 = vld [vmem:[%s7681_s1 + $0x100] sm:$0xff]   ;;  %v607_v7 = vld [vmem:[%s7682_s2 + $0x88] sm:$0xff] }
  0x4f   : > { %5260 = vmatmul.mubr.bf16.vlgmr.msra.gmra.mrb[16].mxu1 %v967_v24  ;;  %5308 = vmatmul.mubr.bf16.vlgmr.msra.gmra.mrb[16].mxu0 %v1363_v25  ;;  %v6372_v24 = vld [vmem:[%s6121_s8 + $0x58] sm:$0xff]   ;;  %v599_v25 = vld [vmem:[%s7682_s2 + $0x48] sm:$0xff] }
  0x50   : > { %5340 = vmatpush3.bf16.msra.mxu1 %v5923_v15  ;;  %5436 = vmatpush3.bf16.msra.mxu0 %v5924_v16  ;;  %v1014_v15 = vrot.slane %v1012_v4, 1  ;;  %v6361_v16 = vld [vmem:[%s6121_s8 + $0x50] sm:$0xff]   ;;  %v1036_v36 = vshll.u32 %v6372_v24, 16  ;;  %v1380_v46 = vrot.slane %v6372_v24, 1 }
  0x51   : > { %5263 = vmatprep.mubr.bf16.mxu1 %v975_v30  ;;  %5311 = vmatprep.mubr.bf16.mxu0 %v1365_v31  ;;  %v1024_v30 = vshrl.u32 %v6335_v1, 16  ;;  %v1629_v31 = vld [vmem:[%s7683_s3 + $0x60] sm:$0xff]  ;;  %v1032_v35 = vshrl.u32 %v6361_v16, 16  ;;  %v1378_v42 = vrot.slane %v6361_v16, 1 }
  0x52   : > { %1651 = vperm.xlu0 %5877, %v1617_v27   ;;  %5341 = vmatprep.subr.bf16.mxu1 %v5927_v32  ;;  %v1018_v21 = vor.u32 %v1016_v8, %v1014_v15  ;;  %v1028_v27 = vshll.u32 %v6361_v16, 16  ;;  %v1015_v28 = vsel %vm947_vm0, %v1010_v18, %v1014_v15  ;;  %v1635_v8 = vld [vmem:[%s7683_s3 + $0x90] sm:$0xff]  ;;  %v609_v18 = vld [vmem:[%s7682_s2 + $0x98] sm:$0xff] }
  0x53   : > { %5437 = vmatprep.subr.bf16.mxu0 %v5928_v34  ;;  %659 = vperm.xlu1 %5878, %v597_v14   ;;  %v1026_v41 = vor.u32 %v1024_v30, %v1022_v22  ;;  %v1379_v53 = vsel %vm1358_vm1, %v1376_v23, %v1378_v42  ;;  %v1637_v14 = vld [vmem:[%s7683_s3 + $0xa0] sm:$0xff] }
  0x54   : > { %5342 = vmatpush3.bf16.msra.mxu1 %v5927_v32  ;;  %5438 = vmatpush3.bf16.msra.mxu0 %v5928_v34  ;;  %v1023_v32 = vsel %vm947_vm0, %v1018_v21, %v1022_v22  ;;  %v601_v34 = vld [vmem:[%s7682_s2 + $0x58] sm:$0xff]  ;;  %v1030_v38 = vrot.slane %v1028_v27, 1  ;;  %v5950_v22 = vld [vmem:[%s6121_s8 + $0x80] ss:$0 sps:$4 sm:$0x11]  }
  0x55   : > { %5343 = vmatprep.subr.bf16.mxu1 %v5931_v39  ;;  %5439 = vmatprep.subr.bf16.mxu0 %v5932_v40  ;;  %v6476_v27 = vld [vmem:[%s6121_s8 + $0xc] sm:$0xf] }
  0x56   : > { %1661 = vperm.xlu0 %5877, %v1619_v45   ;;  %v1034_v44 = vor.u32 %v1032_v35, %v1030_v38  ;;  %v1038_v45 = vrot.slane %v1036_v36, 1  ;;  %v1031_v52 = vsel %vm947_vm0, %v1026_v41, %v1030_v38  ;;  %v6488_v36 = vld [vmem:[%s6121_s8 + $0x10] sm:$0xff]   ;;  %v613_v38 = vld [vmem:[%s7682_s2 + $0xb8] sm:$0xff] }
  0x57   : > { %5264 = vmatmul.mubr.bf16.gmra.mrb[20].mxu1 %v983_v47  ;;  %5312 = vmatmul.mubr.bf16.gmra.mrb[20].mxu0 %v1367_v48  ;;  %v603_v47 = vld [vmem:[%s7682_s2 + $0x68] sm:$0xff] }
  0x58   : > { %5267 = vmatprep.mubr.bf16.mxu1 %v991_v50  ;;  %5315 = vmatprep.mubr.bf16.mxu0 %v1369_v51  ;;  %v6412_v48 = vld [vmem:[%s6121_s8 + $0x68] sm:$0xff]   ;;  %v1631_v50 = vld [vmem:[%s7683_s3 + $0x70] sm:$0xff]  ;;  %v1039_v57 = vsel %vm947_vm0, %v1034_v44, %v1038_v45 }
  0x59   : > { %5344 = vmatpush3.bf16.msra.mxu1 %v5931_v39  ;;  %5440 = vmatpush3.bf16.msra.mxu0 %v5932_v40  ;;  %v6398_v39 = vld [vmem:[%s6121_s8 + $0x60] sm:$0xff]   ;;  %v5948_v40 = vld [vmem:[%s7681_s1 + $0x170] sm:$0xff]   ;;  %v1052_v60 = vshll.u32 %v6412_v48, 16  ;;  %v1056_v12 = vshrl.u32 %v6412_v48, 16 }
  0x5a   : > { %1671 = vperm.xlu0 %5877, %v1621_v54   ;;  %5345 = vmatprep.subr.bf16.mxu1 %v5935_v56  ;;  %v1044_v51 = vshll.u32 %v6398_v39, 16  ;;  %v1040_v54 = vshrl.u32 %v6372_v24, 16  ;;  %v1048_v55 = vshrl.u32 %v6398_v39, 16 }
  0x5b   : > { %5441 = vmatprep.subr.bf16.mxu0 %v5936_v58  ;;  %669 = vperm.xlu1 %5878, %v599_v25   ;;  %v611_v25 = vld [vmem:[%s7682_s2 + $0xa8] sm:$0xff] }
  0x5c   : > { %v1046_v62 = vrot.slane %v1044_v51, 1  ;;  %v1042_v1 = vor.u32 %v1040_v54, %v1038_v45  ;;  %v2835_v45 = vrot.slane %v6488_v36, 1  ;;  %v617_v54 = vld [vmem:[%s7682_s2 + $0xd8] sm:$0xff] }
  0x5d   : > { %5346 = vmatpush3.bf16.msra.mxu1 %v5935_v56  ;;  %5442 = vmatpush3.bf16.msra.mxu0 %v5936_v58  ;;  %v1633_v56 = vld [vmem:[%s7683_s3 + $0x80] sm:$0xff]  ;;  %v1381_v58 = vsel %vm1358_vm1, %v1378_v42, %v1380_v46  ;;  %v1390_v42 = vrot.slane %v5950_v22, 1 }
  0x5e   : > { %1681 = vperm.xlu0 %5877, %v1623_v3   ;;  %5347 = vmatprep.subr.bf16.mxu1 %v5939_v2  ;;  %v6447_v3 = vld [vmem:[%s6121_s8 + $0x78] sm:$0xff]   ;;  %v1050_v4 = vor.u32 %v1048_v55, %v1046_v62 }
  0x5f   : > { %5268 = vmatmul.mubr.bf16.gmra.mrb[24].mxu1 %v999_v5  ;;  %5316 = vmatmul.mubr.bf16.gmra.mrb[24].mxu0 %v1371_v6  ;;  %v1054_v5 = vrot.slane %v1052_v60, 1  ;;  %v1384_v6 = vrot.slane %v6412_v48, 1  ;;  %v1388_v21 = vrot.slane %v6447_v3, 1  ;;  %v5961_v60 = vld [vmem:[%s6121_s8 + $0x18] sm:$0xff]  }
  0x60   : > { %5271 = vmatprep.mubr.bf16.mxu1 %v1007_v10  ;;  %5319 = vmatprep.mubr.bf16.mxu0 %v1373_v11  ;;  %v1047_v10 = vsel %vm947_vm0, %v1042_v1, %v1046_v62  ;;  %v5964_v62 = vld [vmem:[%s7681_s1 + $0x108] sm:$0xff]  }
  0x61   : > { %5443 = vmatprep.subr.bf16.mxu0 %v5940_v13  ;;  %5348 = vmatpush3.bf16.msra.mxu1 %v5939_v2  ;;  %v1382_v2 = vrot.slane %v6398_v39, 1  ;;  %v1055_v15 = vsel %vm947_vm0, %v1050_v4, %v1054_v5  ;;  %v1058_v23 = vor.u32 %v1056_v12, %v1054_v5  ;;  %v1641_v39 = vld [vmem:[%s7683_s3 + $0xc0] sm:$0xff]  ;;  %v6535_v1 = vld [vmem:[%s6121_s8 + $0x28] sm:$0xff]  }
  0x62   : > { %1691 = vperm.xlu0 %5877, %v1625_v9   ;;  %5444 = vmatpush3.bf16.msra.mxu0 %v5940_v13  ;;  %v1060_v9 = vshll.u32 %v5946_v61, 16  ;;  %v1068_v13 = vshll.u32 %v6447_v3, 16  ;;  %v5966_v5 = vld [vmem:[%s7681_s1 + $0x188] sm:$0xff]  }
  0x63   : > { %5349 = vmatprep.subr.bf16.mxu1 %v5943_v17  ;;  %5445 = vmatprep.subr.bf16.mxu0 %v5944_v20  ;;  %v1383_v11 = vsel %vm1358_vm1, %v1380_v46, %v1382_v2  ;;  %v1385_v16 = vsel %vm1358_vm1, %v1382_v2, %v1384_v6  ;;  %v615_v46 = vld [vmem:[%s7682_s2 + $0xc8] sm:$0xff] }
  0x64   : > { %679 = vperm.xlu1 %5878, %v601_v34   ;;  %v1062_v19 = vrot.slane %v1060_v9, 1  ;;  %v1070_v24 = vrot.slane %v1068_v13, 1  ;;  %v619_v2 = vld [vmem:[%s7682_s2 + $0xe8] sm:$0xff]  ;;  %v6567_v13 = vld [vmem:[%s6121_s8 + $0x38] sm:$0xff]  }
  0x65   : > { %5350 = vmatpush3.bf16.msra.mxu1 %v5943_v17  ;;  %v1064_v17 = vshrl.u32 %v5946_v61, 16 }
  0x66   : > { %1701 = vperm.xlu0 %5877, %v1627_v26   ;;  %5446 = vmatpush3.bf16.msra.mxu0 %v5944_v20  ;;  %v1386_v20 = vrot.slane %v5946_v61, 1  ;;  %v1063_v30 = vsel %vm947_vm0, %v1058_v23, %v1062_v19 }
  0x67   : > { %5272 = vmatmul.mubr.bf16.gmra.mrb[28].mxu1 %v1015_v28  ;;  %5320 = vmatmul.mubr.bf16.gmra.mrb[28].mxu0 %v1375_v29  ;;  %v1066_v26 = vor.u32 %v1064_v17, %v1062_v19  ;;  %v2813_v28 = vld [vmem:[%s6121_s8 + $0x8] sm:$0xe]  ;;  %v1639_v29 = vld [vmem:[%s7683_s3 + $0xb0] sm:$0xff]  ;;  %v6577_v17 = vld [vmem:[%s6121_s8 + $0x40] sm:$0xff]  }
  0x68   : > { %5275 = vmatprep.mubr.bf16.mxu1 %v1023_v32  ;;  %5323 = vmatprep.mubr.bf16.mxu0 %v1377_v33  ;;  %v1072_v32 = vshrl.u32 %v6447_v3, 16  ;;  %v1076_v33 = vshll.u32 %v5950_v22, 16  ;;  %v1389_v35 = vsel %vm1358_vm1, %v1386_v20, %v1388_v21  ;;  %v6541_v3 = vld [vmem:[%s6121_s8 + $0x30] sm:$0xff]   ;;  %v5978_v19 = vld [vmem:[%s7681_s1 + $0x198] sm:$0xff]   ;;  %v1626_v22 = vld [vmem:[%s7683_s3 + $0x48] sm:$0xff]  ;;  %v2847_v23 = vrot.slane %v6577_v17, 1 }
  0x69   : > { %5351 = vmatprep.subr.bf16.mxu1 %v5947_v37  ;;  %5447 = vmatprep.subr.bf16.mxu0 %v5948_v40  ;;  %v1071_v34 = vsel %vm947_vm0, %v1066_v26, %v1070_v24  ;;  %v2843_v9 = vrot.slane %v6541_v3, 1 }
  0x6a   : > { %1711 = vperm.xlu0 %5877, %v1629_v31   ;;  %5352 = vmatpush3.bf16.msra.mxu1 %v5947_v37  ;;  %v1387_v31 = vsel %vm1358_vm1, %v1384_v6, %v1386_v20  ;;  %v4861_v37 = vcombine.low %v2813_v28, %v6476_v27  ;;  %v1078_v41 = vrot.slane %v1076_v33, 1  ;;  %v1622_v6 = vld [vmem:[%s7683_s3 + $0x28] sm:$0xff]  ;;  %v2845_v20 = vrot.slane %v6567_v13, 1  ;;  %v1628_v33 = vld [vmem:[%s7683_s3 + $0x58] sm:$0xff] }
  0x6b   : > { %5353 = vmatprep.subr.bf16.mxu1 %v5951_v43  ;;  %689 = vperm.xlu1 %5878, %v603_v47   ;;  %v5953_v47 = vld [vmem:[%s6121_s8 + $0x8] sm:$0xff]  }
  0x6c   : > { %5448 = vmatpush3.bf16.msra.mxu0 %v5948_v40  ;;  %v1074_v40 = vor.u32 %v1072_v32, %v1070_v24  ;;  %v2834_v44 = vrot.slane %v4861_v37, 1  ;;  %v5973_v24 = vld [vmem:[%s6121_s8 + $0x38] sm:$0xff]   ;;  %v6598_v28 = vld [vmem:[%s6121_s8 + $0x48] sm:$0xff]   ;;  %v5984_v32 = vld [vmem:[%s7681_s1 + $0x1a0] sm:$0xff]  }
  0x6d   : > { %5449 = vmatprep.subr.bf16.mxu0 %v5952_v49  ;;  %v2849_v37 = vrot.slane %v6598_v28, 1 }
  0x6e   : > { %1721 = vperm.xlu0 %5877, %v1631_v50   ;;  %5354 = vmatpush3.bf16.msra.mxu1 %v5951_v43  ;;  %v616_v43 = vld [vmem:[%s7682_s2 + $0xd0] sm:$0xff]  ;;  %v1079_v48 = vsel %vm947_vm0, %v1074_v40, %v1078_v41  ;;  %v6508_v50 = vld [vmem:[%s6121_s8 + $0x18] sm:$0xff]   ;;  %v2836_v51 = vsel %vm1358_vm1, %v2834_v44, %v2835_v45  ;;  %v1630_v40 = vld [vmem:[%s7683_s3 + $0x68] sm:$0xff] }
  0x6f   : > { %5276 = vmatmul.mubr.bf16.gmra.mrb[32].mxu1 %v1031_v52  ;;  %5324 = vmatmul.mubr.bf16.gmra.mrb[32].mxu0 %v1379_v53  ;;  %v1618_v52 = vld [vmem:[%s7683_s3 + $0x8] sm:$0xff]  ;;  %v6515_v53 = vld [vmem:[%s6121_s8 + $0x20] sm:$0xff]   ;;  %v2837_v55 = vrot.slane %v6508_v50, 1  ;;  %v2850_v44 = vsel %vm1358_vm1, %v2847_v23, %v2849_v37 }
  0x70   : > { %5279 = vmatprep.mubr.bf16.mxu1 %v1039_v57  ;;  %5327 = vmatprep.mubr.bf16.mxu0 %v1381_v58  ;;  %v2839_v57 = vrot.slane %v6515_v53, 1  ;;  %v1620_v58 = vld [vmem:[%s7683_s3 + $0x18] sm:$0xff] }
  0x71   : > { %699 = vperm.xlu1 %5878, %v605_v59   ;;  %5450 = vmatpush3.bf16.msra.mxu0 %v5952_v49  ;;  %v1391_v49 = vsel %vm1358_vm1, %v1388_v21, %v1390_v42  ;;  %v618_v59 = vld [vmem:[%s7682_s2 + $0xe0] sm:$0xff]  ;;  %v2838_v61 = vsel %vm1358_vm1, %v2835_v45, %v2837_v55  ;;  %v5969_v21 = vld [vmem:[%s6121_s8 + $0x30] sm:$0xff]   ;;  %v5979_v42 = vld [vmem:[%s6121_s8 + $0x48] sm:$0xff]  }
  0x72   : > { %1731 = vperm.xlu0 %5877, %v1633_v56   ;;  %5387 = vmatprep.subr.bf16.mxu1 %v6438_v63  ;;  %v5957_v56 = vld [vmem:[%s6121_s8 + $0x10] sm:$0xff]   ;;  %v2840_v4 = vsel %vm1358_vm1, %v2837_v55, %v2839_v57  ;;  %v6631_v45 = vld [vmem:[%s6121_s8 + $0x60] sm:$0xff]   ;;  %v6002_v55 = vld [vmem:[%s7681_s1 + $0x1b8] sm:$0xff]  }
  0x73   : > { %5483 = vmatprep.subr.bf16.mxu0 %v6443_v0 }
  0x75   : > { %709 = vperm.xlu1 %5878, %v607_v7   ;;  %v2841_v7 = vrot.slane %v6535_v1, 1 }
  0x76   : > { %1741 = vperm.xlu0 %5877, %v1635_v8   ;;  %v5970_v8 = vld [vmem:[%s7681_s1 + $0x110] sm:$0xff]  }
  0x77   : > { %5280 = vmatmul.mubr.bf16.gmra.mrb[36].mxu1 %v1047_v10  ;;  %5328 = vmatmul.mubr.bf16.gmra.mrb[36].mxu0 %v1383_v11  ;;  %v5972_v10 = vld [vmem:[%s7681_s1 + $0x190] sm:$0xff]   ;;  %v5967_v11 = vld [vmem:[%s6121_s8 + $0x28] sm:$0xff]   ;;  %v2842_v12 = vsel %vm1358_vm1, %v2839_v57, %v2841_v7 }
  0x78   : > { %5283 = vmatprep.mubr.bf16.mxu1 %v1055_v15  ;;  %5331 = vmatprep.mubr.bf16.mxu0 %v1385_v16  ;;  %v2844_v15 = vsel %vm1358_vm1, %v2841_v7, %v2843_v9  ;;  %v1624_v16 = vld [vmem:[%s7683_s3 + $0x38] sm:$0xff]  ;;  %v1634_v57 = vld [vmem:[%s7683_s3 + $0x88] sm:$0xff] }
  0x79   : > { %719 = vperm.xlu1 %5878, %v609_v18   ;;  %v5976_v18 = vld [vmem:[%s7681_s1 + $0x118] sm:$0xff]  }
  0x7a   : > { %1751 = vperm.xlu0 %5877, %v1637_v14   ;;  %v621_v14 = vld [vmem:[%s7682_s2 + $0xf8] sm:$0xff] }
  0x7b   : > { %v1636_v7 = vld [vmem:[%s7683_s3 + $0x98] sm:$0xff] }
  0x7d   : > { %729 = vperm.xlu1 %5878, %v611_v25   ;;  %v5982_v25 = vld [vmem:[%s7681_s1 + $0x120] sm:$0xff]  }
  0x7e   : > { %1761 = vperm.xlu0 %5877, %v1639_v29   ;;  %v2846_v29 = vsel %vm1358_vm1, %v2843_v9, %v2845_v20 }
  0x7f   : > { %5284 = vmatmul.mubr.bf16.gmra.mrb[40].mxu1 %v1063_v30  ;;  %5332 = vmatmul.mubr.bf16.gmra.mrb[40].mxu0 %v1387_v31  ;;  %v6602_v30 = vld [vmem:[%s6121_s8 + $0x50] sm:$0xff]   ;;  %v2848_v31 = vsel %vm1358_vm1, %v2845_v20, %v2847_v23  ;;  %v1640_v20 = vld [vmem:[%s7683_s3 + $0xb8] sm:$0xff] }
  0x80   : > { %5287 = vmatprep.mubr.bf16.mxu1 %v1071_v34  ;;  %5335 = vmatprep.mubr.bf16.mxu0 %v1389_v35  ;;  %v5988_v34 = vld [vmem:[%s7681_s1 + $0x128] sm:$0xff]   ;;  %v2851_v41 = vrot.slane %v6602_v30, 1 }
  0x81   : > { %739 = vperm.xlu1 %5878, %v613_v38   ;;  %v5990_v35 = vld [vmem:[%s7681_s1 + $0x1a8] sm:$0xff]  }
  0x82   : > { %1771 = vperm.xlu0 %5877, %v1641_v39   ;;  %v5975_v39 = vld [vmem:[%s6121_s8 + $0x40] sm:$0xff]  }
  0x85   : > { %749 = vperm.xlu1 %5878, %v615_v46   ;;  %v5994_v46 = vld [vmem:[%s7681_s1 + $0x130] sm:$0xff]  }
  0x86   : > { %754 = vperm.xlu0 %5877, %v616_v43   ;;  %v6627_v43 = vld [vmem:[%s6121_s8 + $0x58] sm:$0xff]  }
  0x87   : > { %5288 = vmatmul.mubr.bf16.gmra.mrb[44].mxu1 %v1079_v48  ;;  %5336 = vmatmul.mubr.bf16.gmra.mrb[44].mxu0 %v1391_v49  ;;  %v5996_v48 = vld [vmem:[%s7681_s1 + $0x1b0] sm:$0xff]   ;;  %v1632_v49 = vld [vmem:[%s7683_s3 + $0x78] sm:$0xff] }
  0x88   : > { %5355 = vmatprep.mubr.bf16.mxu1 %v5953_v47  ;;  %5451 = vmatprep.mubr.bf16.mxu0 %v2836_v51  ;;  %v2852_v47 = vsel %vm1358_vm1, %v2849_v37, %v2851_v41  ;;  %v2432_v37 = vshll.u32 %v6488_v36, 16 }
  0x89   : > { %1656 = vperm.xlu1 %5878, %v1618_v52   ;;  %v6000_v52 = vld [vmem:[%s7681_s1 + $0x138] sm:$0xff]  }
  0x8a   : > { %759 = vperm.xlu0 %5877, %v617_v54   ;;  %v2853_v54 = vrot.slane %v6627_v43, 1 }
  0x8d   : > { %1666 = vperm.xlu1 %5878, %v1620_v58   ;;  %v2855_v58 = vrot.slane %v6631_v45, 1 }
  0x8e   : > { %764 = vperm.xlu0 %5877, %v618_v59   ;;  %v5985_v59 = vld [vmem:[%s6121_s8 + $0x58] sm:$0xff]  }
  0x8f   : > { %5356 = vmatmul.mubr.bf16.vlgmr.msra.gmra.mrb[48].mxu1 %v5957_v56  ;;  %5452 = vmatmul.mubr.bf16.vlgmr.msra.gmra.mrb[48].mxu0 %v2838_v61  ;;  %v5981_v56 = vld [vmem:[%s6121_s8 + $0x50] sm:$0xff]   ;;  %v2854_v61 = vsel %vm1358_vm1, %v2851_v41, %v2853_v54 }
  0x90   : > { %5388 = vmatpush3.bf16.msra.mxu1 %v6438_v63  ;;  %5484 = vmatpush3.bf16.msra.mxu0 %v6443_v0  ;;  %v5963_v63 = vld [vmem:[%s6121_s8 + $0x20] sm:$0xff]   ;;  %v620_v0 = vld [vmem:[%s7682_s2 + $0xf0] sm:$0xff] }
  0x91   : > { %5359 = vmatprep.mubr.bf16.mxu1 %v5961_v60  ;;  %5455 = vmatprep.mubr.bf16.mxu0 %v2840_v4  ;;  %v6595_v26 = vpop.permute.xlu0 %624  ;;  %v6659_v60 = vld [vmem:[%s6121_s8 + $0x68] sm:$0xff]   ;;  %v2856_v4 = vsel %vm1358_vm1, %v2853_v54, %v2855_v58  ;;  %v2440_v54 = vshll.u32 %v6508_v50, 16 }
  0x92   : > { %769 = vperm.xlu0 %5877, %v619_v2   ;;  %5389 = vmatprep.subr.bf16.mxu1 %v5964_v62  ;;  %7776 = vst [vmem:[#allocation2_spill] sm:$0xff] %v6595_v26  ;;  %v2857_v9 = vrot.slane %v6659_v60, 1 }
  0x93   : > { %5485 = vmatprep.subr.bf16.mxu0 %v5966_v5  ;;  %1676 = vperm.xlu1 %5878, %v1622_v6   ;;  %v6676_v6 = vld [vmem:[%s7681_s1 + $0x200] sm:$0xff]  }
  0x94   : > { %5390 = vmatpush3.bf16.msra.mxu1 %v5964_v62  ;;  %5486 = vmatpush3.bf16.msra.mxu0 %v5966_v5  ;;  %v6663_v62 = vld [vmem:[%s6121_s8 + $0x70] sm:$0xff]   ;;  %v6671_v5 = vld [vmem:[%s7681_s1 + $0x1c0] sm:$0xff]  }
  0x95   : > { %5391 = vmatprep.subr.bf16.mxu1 %v5970_v8  ;;  %5487 = vmatprep.subr.bf16.mxu0 %v5972_v10  ;;  %v6618_v38 = vpop.permute.xlu0 %629 }
  0x96   : > { %774 = vperm.xlu0 %5877, %v620_v0   ;;  %v1638_v0 = vld [vmem:[%s7683_s3 + $0xa8] sm:$0xff] }
  0x97   : > { %5360 = vmatmul.mubr.bf16.gmra.mrb[52].mxu1 %v5963_v63  ;;  %5456 = vmatmul.mubr.bf16.gmra.mrb[52].mxu0 %v2842_v12  ;;  %v2859_v63 = vrot.slane %v6663_v62, 1  ;;  %v5991_v12 = vld [vmem:[%s6121_s8 + $0x68] sm:$0xff]  }
  0x98   : > { %5363 = vmatprep.mubr.bf16.mxu1 %v5967_v11  ;;  %5459 = vmatprep.mubr.bf16.mxu0 %v2844_v15  ;;  %v6695_v15 = vld [vmem:[%s6121_s8 + $0x78] sm:$0xff]  }
  0x99   : > { %5392 = vmatpush3.bf16.msra.mxu1 %v5970_v8  ;;  %5488 = vmatpush3.bf16.msra.mxu0 %v5972_v10  ;;  %v6643_v51 = vpop.permute.xlu0 %644  ;;  %v2291_v8 = vld [vmem:[%s6121_s8 + $0x8] sm:$0xf]  ;;  %v5987_v10 = vld [vmem:[%s6121_s8 + $0x60] sm:$0xff]  }
  0x9a   : > { %779 = vperm.xlu0 %5877, %v621_v14   ;;  %1686 = vperm.xlu1 %5878, %v1624_v16   ;;  %7777 = vst [vmem:[#allocation3_spill] sm:$0xff] %v6643_v51  ;;  %v2858_v14 = vsel %vm1358_vm1, %v2855_v58, %v2857_v9  ;;  %v4820_v16 = vcombine.low %v2291_v8, %v6476_v27  ;;  %v2448_v58 = vshll.u32 %v6515_v53, 16 }
  0x9b   : > { %5393 = vmatprep.subr.bf16.mxu1 %v5976_v18  ;;  %5489 = vmatprep.subr.bf16.mxu0 %v5978_v19 }
  0x9c   : > { %v2427_v23 = vshll.u32 %v4820_v16, 16 }
  0x9d   : > { %5394 = vmatpush3.bf16.msra.mxu1 %v5976_v18  ;;  %5490 = vmatpush3.bf16.msra.mxu0 %v5978_v19  ;;  %v6665_v2 = vpop.permute.xlu0 %654  ;;  %v2860_v18 = vsel %vm1358_vm1, %v2857_v9, %v2859_v63  ;;  %v6700_v19 = vld [vmem:[%s6121_s8 + $0x80] sm:$0xff]   ;;  %v6004_v9 = vld [vmem:[%s6121_s8 + $0x18] sm:$0xff]  }
  0x9e   : > { %1696 = vperm.xlu1 %5878, %v1626_v22   ;;  %5395 = vmatprep.subr.bf16.mxu1 %v5982_v25  ;;  %7778 = vst [vmem:[#allocation4_spill] sm:$0xff] %v6665_v2  ;;  %v2863_v27 = vrot.slane %v6700_v19, 1 }
  0x9f   : > { %5364 = vmatmul.mubr.bf16.gmra.mrb[56].mxu1 %v5969_v21  ;;  %5460 = vmatmul.mubr.bf16.gmra.mrb[56].mxu0 %v2846_v29  ;;  %v2861_v21 = vrot.slane %v6695_v15, 1  ;;  %v1642_v29 = vld [vmem:[%s7683_s3 + $0xc8] sm:$0xff] }
  0xa0   : > { %5367 = vmatprep.mubr.bf16.mxu1 %v5973_v24  ;;  %5463 = vmatprep.mubr.bf16.mxu0 %v2848_v31  ;;  %v5993_v24 = vld [vmem:[%s6121_s8 + $0x70] sm:$0xff]  }
  0xa1   : > { %5491 = vmatprep.subr.bf16.mxu0 %v5984_v32  ;;  %5396 = vmatpush3.bf16.msra.mxu1 %v5982_v25  ;;  %v6690_v11 = vpop.permute.xlu0 %664  ;;  %v6711_v25 = vld [vmem:[%s6121_s8 + $0x88] ss:$0 sps:$4 sm:$0x11]   ;;  %v2862_v31 = vsel %vm1358_vm1, %v2859_v63, %v2861_v21 }
  0xa2   : > { %1706 = vperm.xlu1 %5878, %v1628_v33   ;;  %5492 = vmatpush3.bf16.msra.mxu0 %v5984_v32  ;;  %v5997_v32 = vld [vmem:[%s6121_s8 + $0x78] sm:$0xff]   ;;  %v2425_v33 = vshrl.u32 %v4820_v16, 16  ;;  %v2865_v41 = vrot.slane %v6711_v25, 1  ;;  %v2460_v16 = vshrl.u32 %v6535_v1, 16 }
  0xa3   : > { %5397 = vmatprep.subr.bf16.mxu1 %v5988_v34  ;;  %5493 = vmatprep.subr.bf16.mxu0 %v5990_v35 }
  0xa5   : > { %5398 = vmatpush3.bf16.msra.mxu1 %v5988_v34  ;;  %v6706_v22 = vpop.permute.xlu0 %674  ;;  %v2864_v34 = vsel %vm1358_vm1, %v2861_v21, %v2863_v27  ;;  %v6010_v21 = vld [vmem:[%s7681_s1 + $0x208] sm:$0xff]  }
  0xa6   : > { %1716 = vperm.xlu1 %5878, %v1630_v40   ;;  %5494 = vmatpush3.bf16.msra.mxu0 %v5990_v35  ;;  %v2429_v35 = vrot.slane %v2427_v23, 1  ;;  %v1643_v40 = vld [vmem:[%s7683_s3 + $0xd0] sm:$0xff] }
  0xa7   : > { %5368 = vmatmul.mubr.bf16.gmra.mrb[60].mxu1 %v5975_v39  ;;  %5464 = vmatmul.mubr.bf16.gmra.mrb[60].mxu0 %v2850_v44  ;;  %v2434_v44 = vrot.slane %v2432_v37, 1  ;;  %v1647_v23 = vld [vmem:[%s7683_s3 + $0xf0] sm:$0xff]  ;;  %v2468_v37 = vshrl.u32 %v6541_v3, 16 }
  0xa8   : > { %5371 = vmatprep.mubr.bf16.mxu1 %v5979_v42  ;;  %5467 = vmatprep.mubr.bf16.mxu0 %v2852_v47  ;;  %v2430_v42 = vor.u32 %v2429_v35, %v2425_v33  ;;  %v1644_v47 = vld [vmem:[%s7683_s3 + $0xd8] sm:$0xff]  ;;  %v2472_v33 = vshll.u32 %v6567_v13, 16 }
  0xa9   : > { %5399 = vmatprep.subr.bf16.mxu1 %v5994_v46  ;;  %5495 = vmatprep.subr.bf16.mxu0 %v5996_v48  ;;  %v6720_v39 = vpop.permute.xlu0 %684  ;;  %v1648_v35 = vld [vmem:[%s7683_s3 + $0xf8] sm:$0xff] }
  0xaa   : > { %1726 = vperm.xlu1 %5878, %v1632_v49   ;;  %5400 = vmatpush3.bf16.msra.mxu1 %v5994_v46  ;;  %7779 = vst [vmem:[#allocation5_spill] sm:$0xff] %v6720_v39  ;;  %v5999_v46 = vld [vmem:[%s6121_s8 + $0x80] sm:$0xff]   ;;  %v2436_v49 = vshrl.u32 %v6488_v36, 16 }
  0xab   : > { %5496 = vmatpush3.bf16.msra.mxu0 %v5996_v48  ;;  %5401 = vmatprep.subr.bf16.mxu1 %v6000_v52  ;;  %v2866_v48 = vsel %vm1358_vm1, %v2863_v27, %v2865_v41  ;;  %v1645_v36 = vld [vmem:[%s7683_s3 + $0xe0] sm:$0xff]  ;;  %v6761_v27 = vpop.permute.xlu1 %634  ;;  %v2476_v41 = vshrl.u32 %v6567_v13, 16  ;;  %v6018_v13 = vld [vmem:[%s7681_s1 + $0x218] sm:$0xff]  }
  0xac   : > { %5497 = vmatprep.subr.bf16.mxu0 %v6002_v55  ;;  %7782 = vst [vmem:[#allocation8_spill] sm:$0xff] %v6761_v27 }
  0xae   : > { %1736 = vperm.xlu1 %5878, %v1634_v57   ;;  %5402 = vmatpush3.bf16.msra.mxu1 %v6000_v52  ;;  %v6003_v52 = vld [vmem:[%s6121_s8 + $0x10] sm:$0xff]   ;;  %v2444_v57 = vshrl.u32 %v6508_v50, 16  ;;  %v1646_v50 = vld [vmem:[%s7683_s3 + $0xe8] sm:$0xff] }
  0xaf   : > { %5372 = vmatmul.mubr.bf16.gmra.mrb[64].mxu1 %v5981_v56  ;;  %5468 = vmatmul.mubr.bf16.gmra.mrb[64].mxu0 %v2854_v61  ;;  %v2435_v56 = vsel %vm947_vm0, %v2430_v42, %v2434_v44  ;;  %v2442_v61 = vrot.slane %v2440_v54, 1 }
  0xb0   : > { %5375 = vmatprep.mubr.bf16.mxu1 %v5985_v59  ;;  %5471 = vmatprep.mubr.bf16.mxu0 %v2856_v4  ;;  %v2438_v59 = vor.u32 %v2436_v49, %v2434_v44  ;;  %v6011_v44 = vld [vmem:[%s6121_s8 + $0x30] sm:$0xff]  }
  0xb1   : > { %5498 = vmatpush3.bf16.msra.mxu0 %v6002_v55  ;;  %5531 = vmatprep.subr.bf16.mxu1 %v6671_v5  ;;  %v6734_v55 = vpop.permute.xlu0 %694  ;;  %v2446_v4 = vor.u32 %v2444_v57, %v2442_v61  ;;  %v6021_v57 = vld [vmem:[%s7681_s1 + $0x1e0] sm:$0xff]  }
  0xb2   : > { %1746 = vperm.xlu1 %5878, %v1636_v7   ;;  %5579 = vmatprep.subr.bf16.mxu0 %v6676_v6  ;;  %7780 = vst [vmem:[#allocation6_spill] sm:$0xff] %v6734_v55  ;;  %v2450_v7 = vrot.slane %v2448_v58, 1  ;;  %v2443_v63 = vsel %vm947_vm0, %v2438_v59, %v2442_v61  ;;  %v6012_v58 = vld [vmem:[%s6121_s8 + $0x38] sm:$0xff]   ;;  %v6015_v61 = vld [vmem:[%s6121_s8 + $0x40] sm:$0xff]  }
  0xb5   : > { %v6742_v8 = vpop.permute.xlu0 %704 }
  0xb6   : > { %1756 = vperm.xlu1 %5878, %v1638_v0   ;;  %7781 = vst [vmem:[#allocation7_spill] sm:$0xff] %v6742_v8  ;;  %v2452_v0 = vshrl.u32 %v6515_v53, 16 }
  0xb7   : > { %5376 = vmatmul.mubr.bf16.gmra.mrb[68].mxu1 %v5987_v10  ;;  %5472 = vmatmul.mubr.bf16.gmra.mrb[68].mxu0 %v2858_v14  ;;  %v2456_v10 = vshll.u32 %v6535_v1, 16  ;;  %v6009_v14 = vld [vmem:[%s7681_s1 + $0x1c8] sm:$0xff]  }
  0xb8   : > { %5379 = vmatprep.mubr.bf16.mxu1 %v5991_v12  ;;  %5475 = vmatprep.mubr.bf16.mxu0 %v2860_v18  ;;  %v6007_v12 = vld [vmem:[%s6121_s8 + $0x20] sm:$0xff]   ;;  %v2464_v18 = vshll.u32 %v6541_v3, 16  ;;  %v2454_v1 = vor.u32 %v2452_v0, %v2450_v7  ;;  %v2474_v3 = vrot.slane %v2472_v33, 1  ;;  %v6025_v0 = vld [vmem:[%s7681_s1 + $0x1e8] sm:$0xff]   ;;  %v2512_v33 = vshll.u32 %v6631_v45, 16 }
  0xb9   : > { %v2458_v53 = vrot.slane %v2456_v10, 1  ;;  %v2496_v10 = vshll.u32 %v6602_v30, 16 }
  0xba   : > { %1766 = vperm.xlu1 %5878, %v1640_v20   ;;  %v2451_v20 = vsel %vm947_vm0, %v2446_v4, %v2450_v7  ;;  %v2484_v4 = vshrl.u32 %v6577_v17, 16 }
  0xbe   : > { %1776 = vperm.xlu1 %5878, %v1642_v29   ;;  %v6771_v29 = vpop.permute.xlu0 %714 }
  0xbf   : > { %5380 = vmatmul.mubr.bf16.gmra.mrb[72].mxu1 %v5993_v24  ;;  %5476 = vmatmul.mubr.bf16.gmra.mrb[72].mxu0 %v2862_v31  ;;  %v6013_v24 = vld [vmem:[%s7681_s1 + $0x1d0] sm:$0xff]   ;;  %7783 = vst [vmem:[#allocation9_spill] sm:$0xff] %v6771_v29  ;;  %v2462_v31 = vor.u32 %v2460_v16, %v2458_v53  ;;  %v6046_v29 = vld [vmem:[%s6121_s8 + $0x60] sm:$0xff]  }
  0xc0   : > { %5383 = vmatprep.mubr.bf16.mxu1 %v5997_v32  ;;  %5479 = vmatprep.mubr.bf16.mxu0 %v2864_v34  ;;  %v2466_v32 = vrot.slane %v2464_v18, 1  ;;  %v2459_v34 = vsel %vm947_vm0, %v2454_v1, %v2458_v53  ;;  %v2498_v18 = vrot.slane %v2496_v10, 1  ;;  %v6016_v53 = vld [vmem:[%s6121_s8 + $0x48] sm:$0xff]   ;;  %v2504_v1 = vshll.u32 %v6627_v43, 16  ;;  %v3574_v10 = vld [vmem:[%s6121_s8 + $0x10] sm:$0xf] }
  0xc2   : > { %1781 = vperm.xlu1 %5878, %v1643_v40   ;;  %v6783_v40 = vpop.permute.xlu1 %639  ;;  %v2467_v42 = vsel %vm947_vm0, %v2462_v31, %v2466_v32  ;;  %v2470_v49 = vor.u32 %v2468_v37, %v2466_v32  ;;  %v2500_v31 = vshrl.u32 %v6602_v30, 16  ;;  %v2506_v30 = vrot.slane %v2504_v1, 1 }
  0xc4   : > { %v2475_v59 = vsel %vm947_vm0, %v2470_v49, %v2474_v3  ;;  %v2502_v37 = vor.u32 %v2500_v31, %v2498_v18  ;;  %v6023_v49 = vld [vmem:[%s6121_s8 + $0x60] sm:$0xff]  }
  0xc6   : > { %1786 = vperm.xlu1 %5878, %v1644_v47   ;;  %v6017_v47 = vld [vmem:[%s7681_s1 + $0x1d8] sm:$0xff]  }
  0xc7   : > { %5384 = vmatmul.mubr.bf16.gmra.mrb[76].mxu1 %v5999_v46  ;;  %5480 = vmatmul.mubr.bf16.gmra.mrb[76].mxu0 %v2866_v48  ;;  %v2480_v46 = vshll.u32 %v6577_v17, 16  ;;  %v6792_v48 = vpop.permute.xlu0 %724 }
  0xc8   : > { %5403 = vmatprep.mubr.bf16.mxu1 %v2435_v56  ;;  %5499 = vmatprep.mubr.bf16.mxu0 %v6003_v52  ;;  %7784 = vst [vmem:[#allocation10_spill] sm:$0xff] %v6792_v48  ;;  %v2478_v52 = vor.u32 %v2476_v41, %v2474_v3  ;;  %v2520_v3 = vshll.u32 %v6659_v60, 16  ;;  %v6965_v48 = vld [vmem:[%s6121_s8 + $0x48] sm:$0xff]  }
  0xc9   : > { %v2482_v54 = vrot.slane %v2480_v46, 1  ;;  %v2514_v46 = vrot.slane %v2512_v33, 1 }
  0xca   : > { %1791 = vperm.xlu1 %5878, %v1645_v36   ;;  %v6797_v56 = vpop.permute.xlu1 %649  ;;  %v2488_v36 = vshll.u32 %v6598_v28, 16 }
  0xcb   : > { %v6807_v7 = vpop.permute.xlu0 %734 }
  0xcc   : > { %7785 = vst [vmem:[#allocation11_spill] sm:$0xff] %v6807_v7  ;;  %v2490_v17 = vrot.slane %v2488_v36, 1  ;;  %v2528_v36 = vshll.u32 %v6663_v62, 16  ;;  %v3763_v7 = vshll.u32 %v6965_v48, 16 }
  0xce   : > { %1796 = vperm.xlu1 %5878, %v1646_v50   ;;  %v2492_v50 = vshrl.u32 %v6598_v28, 16  ;;  %v6026_v28 = vld [vmem:[%s7681_s1 + $0x228] sm:$0xff]  }
  0xcf   : > { %5404 = vmatmul.mubr.bf16.vlgmr.msra.gmra.mrb[16].mxu1 %v2443_v63  ;;  %5500 = vmatmul.mubr.bf16.vlgmr.msra.gmra.mrb[80].mxu0 %v6004_v9  ;;  %v2483_v9 = vsel %vm947_vm0, %v2478_v52, %v2482_v54  ;;  %v6022_v63 = vld [vmem:[%s7681_s1 + $0x220] sm:$0xff]   ;;  %v2516_v52 = vshrl.u32 %v6631_v45, 16 }
  0xd0   : > { %5532 = vmatpush3.bf16.msra.mxu1 %v6671_v5  ;;  %5580 = vmatpush3.bf16.msra.mxu0 %v6676_v6  ;;  %v6014_v5 = vld [vmem:[%s7681_s1 + $0x210] sm:$0xff]   ;;  %v6008_v6 = vld [vmem:[%s6121_s8 + $0x28] sm:$0xff]   ;;  %v2494_v16 = vor.u32 %v2492_v50, %v2490_v17  ;;  %v2530_v50 = vrot.slane %v2528_v36, 1 }
  0xd1   : > { %5407 = vmatprep.mubr.bf16.mxu1 %v2451_v20  ;;  %5503 = vmatprep.mubr.bf16.mxu0 %v6007_v12  ;;  %v2486_v12 = vor.u32 %v2484_v4, %v2482_v54  ;;  %v6029_v20 = vld [vmem:[%s7681_s1 + $0x1f0] sm:$0xff]   ;;  %v2518_v45 = vor.u32 %v2516_v52, %v2514_v46 }
  0xd2   : > { %5533 = vmatprep.subr.bf16.mxu1 %v6009_v14  ;;  %5581 = vmatprep.subr.bf16.mxu0 %v6010_v21 }
  0xd3   : > { %1801 = vperm.xlu1 %5878, %v1647_v23   ;;  %v2491_v23 = vsel %vm947_vm0, %v2486_v12, %v2490_v17  ;;  %v2532_v12 = vshrl.u32 %v6663_v62, 16 }
  0xd4   : > { %5534 = vmatpush3.bf16.msra.mxu1 %v6009_v14  ;;  %5582 = vmatpush3.bf16.msra.mxu0 %v6010_v21  ;;  %v6821_v14 = vpop.permute.xlu1 %659  ;;  %v6826_v21 = vpop.permute.xlu0 %744 }
  0xd5   : > { %5535 = vmatprep.subr.bf16.mxu1 %v6013_v24  ;;  %5583 = vmatprep.subr.bf16.mxu0 %v6014_v5  ;;  %7786 = vst [vmem:[#allocation12_spill] sm:$0xff] %v6826_v21  ;;  %v2534_v62 = vor.u32 %v2532_v12, %v2530_v50  ;;  %v6032_v12 = vld [vmem:[%s6121_s8 + $0x88] sm:$0xff]  }
  0xd7   : > { %5408 = vmatmul.mubr.bf16.gmra.mrb[20].mxu1 %v2459_v34  ;;  %5504 = vmatmul.mubr.bf16.gmra.mrb[84].mxu0 %v6008_v6  ;;  %v2508_v6 = vshrl.u32 %v6627_v43, 16  ;;  %v6030_v34 = vld [vmem:[%s7681_s1 + $0x230] sm:$0xff]   ;;  %v6034_v43 = vld [vmem:[%s7681_s1 + $0x238] sm:$0xff]  }
  0xd8   : > { %1806 = vperm.xlu1 %5878, %v1648_v35   ;;  %5411 = vmatprep.mubr.bf16.mxu1 %v2467_v42  ;;  %v6033_v35 = vld [vmem:[%s7681_s1 + $0x1f8] sm:$0xff]   ;;  %v6849_v42 = vpop.permute.xlu0 %1651 }
  0xd9   : > { %5507 = vmatprep.mubr.bf16.mxu0 %v6011_v44  ;;  %5536 = vmatpush3.bf16.msra.mxu1 %v6013_v24  ;;  %v6019_v24 = vld [vmem:[%s6121_s8 + $0x50] sm:$0xff]   ;;  %7787 = vst [vmem:[#allocation13_spill] sm:$0xff] %v6849_v42  ;;  %v2510_v44 = vor.u32 %v2508_v6, %v2506_v30  ;;  %v6882_v6 = vld [vmem:[%s6121_s8 + $0x18] sm:$0xff]  }
  0xda   : > { %5584 = vmatpush3.bf16.msra.mxu0 %v6014_v5  ;;  %5537 = vmatprep.subr.bf16.mxu1 %v6017_v47  ;;  %v6833_v32 = vpop.permute.xlu1 %669  ;;  %v2499_v5 = vsel %vm947_vm0, %v2494_v16, %v2498_v18  ;;  %v2540_v18 = vshrl.u32 %v6695_v15, 16  ;;  %v3715_v52 = vshll.u32 %v6882_v6, 16 }
  0xdb   : > { %5585 = vmatprep.subr.bf16.mxu0 %v6018_v13 }
  0xdd   : > { %5538 = vmatpush3.bf16.msra.mxu1 %v6017_v47  ;;  %v6020_v47 = vld [vmem:[%s6121_s8 + $0x58] sm:$0xff]  }
  0xde   : > { %5586 = vmatpush3.bf16.msra.mxu0 %v6018_v13  ;;  %5539 = vmatprep.subr.bf16.mxu1 %v6021_v57  ;;  %v2507_v13 = vsel %vm947_vm0, %v2502_v37, %v2506_v30  ;;  %v6028_v30 = vld [vmem:[%s6121_s8 + $0x78] sm:$0xff]  }
  0xdf   : > { %5412 = vmatmul.mubr.bf16.gmra.mrb[24].mxu1 %v2475_v59  ;;  %5508 = vmatmul.mubr.bf16.gmra.mrb[88].mxu0 %v6012_v58  ;;  %v2524_v58 = vshrl.u32 %v6659_v60, 16  ;;  %v6861_v59 = vpop.permute.xlu0 %1661  ;;  %v2536_v60 = vshll.u32 %v6695_v15, 16 }
  0xe0   : > { %5415 = vmatprep.mubr.bf16.mxu1 %v2483_v9  ;;  %5511 = vmatprep.mubr.bf16.mxu0 %v6015_v61  ;;  %7789 = vst [vmem:[#allocation15_spill] sm:$0xff] %v6861_v59  ;;  %v2522_v61 = vrot.slane %v2520_v3, 1 }
  0xe1   : > { %5587 = vmatprep.subr.bf16.mxu0 %v6022_v63  ;;  %5540 = vmatpush3.bf16.msra.mxu1 %v6021_v57  ;;  %v2515_v57 = vsel %vm947_vm0, %v2510_v44, %v2514_v46  ;;  %v6031_v44 = vld [vmem:[%s6121_s8 + $0x80] sm:$0xff]   ;;  %v2548_v46 = vshrl.u32 %v6700_v19, 16 }
  0xe2   : > { %5588 = vmatpush3.bf16.msra.mxu0 %v6022_v63  ;;  %5541 = vmatprep.subr.bf16.mxu1 %v6025_v0  ;;  %v2526_v9 = vor.u32 %v2524_v58, %v2522_v61  ;;  %v3575_v63 = vld [vmem:[%s6121_s8 + $0x14] sm:$0xf]  ;;  %v2523_v17 = vsel %vm947_vm0, %v2518_v45, %v2522_v61  ;;  %v6038_v58 = vld [vmem:[%s6121_s8 + $0x20] sm:$0xff]  }
  0xe3   : > { %5589 = vmatprep.subr.bf16.mxu0 %v6026_v28  ;;  %v6847_v41 = vpop.permute.xlu1 %679 }
  0xe4   : > { %v2531_v1 = vsel %vm947_vm0, %v2526_v9, %v2530_v50  ;;  %v3717_v9 = vrot.slane %v3715_v52, 1 }
  0xe5   : > { %5542 = vmatpush3.bf16.msra.mxu1 %v6025_v0  ;;  %v6024_v0 = vld [vmem:[%s6121_s8 + $0x68] sm:$0xff]  }
  0xe6   : > { %5590 = vmatpush3.bf16.msra.mxu0 %v6026_v28  ;;  %5543 = vmatprep.subr.bf16.mxu1 %v6029_v20  ;;  %v6027_v28 = vld [vmem:[%s6121_s8 + $0x70] sm:$0xff]  }
  0xe7   : > { %5416 = vmatmul.mubr.bf16.gmra.mrb[28].mxu1 %v2491_v23  ;;  %5512 = vmatmul.mubr.bf16.gmra.mrb[92].mxu0 %v6016_v53  ;;  %v6876_v53 = vpop.permute.xlu0 %1671  ;;  %v4926_v23 = vcombine.low %v3574_v10, %v3575_v63  ;;  %v6903_v10 = vld [vmem:[%s6121_s8 + $0x28] sm:$0xff]  }
  0xe8   : > { %5419 = vmatprep.mubr.bf16.mxu1 %v2499_v5  ;;  %5515 = vmatprep.mubr.bf16.mxu0 %v6019_v24  ;;  %7791 = vst [vmem:[#allocation17_spill] sm:$0xff] %v6876_v53  ;;  %v2538_v24 = vrot.slane %v2536_v60, 1  ;;  %v4118_v60 = vrot.slane %v6882_v6, 1  ;;  %v4122_v52 = vrot.slane %v6903_v10, 1 }
  0xe9   : > { %5591 = vmatprep.subr.bf16.mxu0 %v6030_v34  ;;  %5544 = vmatpush3.bf16.msra.mxu1 %v6029_v20  ;;  %v2544_v20 = vshll.u32 %v6700_v19, 16  ;;  %v3710_v33 = vshll.u32 %v4926_v23, 16 }
  0xea   : > { %5592 = vmatpush3.bf16.msra.mxu0 %v6030_v34  ;;  %5545 = vmatprep.subr.bf16.mxu1 %v6033_v35  ;;  %v6856_v54 = vpop.permute.xlu1 %689  ;;  %v2542_v5 = vor.u32 %v2540_v18, %v2538_v24  ;;  %v4096_v34 = vld [vmem:[%s6121_s8 + $0x10] sm:$0xe]  ;;  %v3723_v18 = vshll.u32 %v6038_v58, 16 }
  0xeb   : > { %5593 = vmatprep.subr.bf16.mxu0 %v6034_v43  ;;  %7788 = vst [vmem:[#allocation14_spill] sm:$0xff] %v6856_v54  ;;  %v2546_v15 = vrot.slane %v2544_v20, 1 }
  0xed   : > { %5546 = vmatpush3.bf16.msra.mxu1 %v6033_v35  ;;  %v6885_v35 = vpop.permute.xlu0 %1681  ;;  %v2547_v37 = vsel %vm947_vm0, %v2542_v5, %v2546_v15  ;;  %v2550_v36 = vor.u32 %v2548_v46, %v2546_v15 }
  0xee   : > { %5594 = vmatpush3.bf16.msra.mxu0 %v6034_v43  ;;  %7793 = vst [vmem:[#allocation19_spill] sm:$0xff] %v6885_v35  ;;  %v2539_v43 = vsel %vm947_vm0, %v2534_v62, %v2538_v24  ;;  %v3719_v24 = vshrl.u32 %v6882_v6, 16  ;;  %v4120_v6 = vrot.slane %v6038_v58, 1 }
  0xef   : > { %5420 = vmatmul.mubr.bf16.gmra.mrb[32].mxu1 %v2507_v13  ;;  %5516 = vmatmul.mubr.bf16.gmra.mrb[96].mxu0 %v6020_v47  ;;  %v2552_v47 = vshll.u32 %v6711_v25, 16  ;;  %v3708_v13 = vshrl.u32 %v4926_v23, 16 }
  0xf0   : > { %5423 = vmatprep.mubr.bf16.mxu1 %v2515_v57  ;;  %5519 = vmatprep.mubr.bf16.mxu0 %v6023_v49  ;;  %v6863_v4 = vpop.permute.xlu1 %699  ;;  %v3712_v49 = vrot.slane %v3710_v33, 1  ;;  %v4967_v57 = vcombine.low %v4096_v34, %v3575_v63  ;;  %v3727_v34 = vshrl.u32 %v6038_v58, 16  ;;  %v3721_v46 = vor.u32 %v3719_v24, %v3717_v9 }
  0xf1   : > { %v2554_v61 = vrot.slane %v2552_v47, 1  ;;  %v6897_v45 = vpop.permute.xlu0 %1691 }
  0xf2   : > { %7795 = vst [vmem:[#allocation21_spill] sm:$0xff] %v6897_v45  ;;  %v3713_v25 = vor.u32 %v3712_v49, %v3708_v13  ;;  %v4117_v50 = vrot.slane %v4967_v57, 1  ;;  %v6934_v57 = vld [vmem:[%s6121_s8 + $0x38] sm:$0xff]  }
  0xf3   : > { %v2555_v23 = vsel %vm947_vm0, %v2550_v36, %v2554_v61 }
  0xf4   : > { %v6872_v16 = vpop.permute.xlu1 %709  ;;  %v3718_v15 = vsel %vm947_vm0, %v3713_v25, %v3717_v9  ;;  %v4119_v33 = vsel %vm1358_vm1, %v4117_v50, %v4118_v60 }
  0xf5   : > { %7790 = vst [vmem:[#allocation16_spill] sm:$0xff] %v6872_v16 }
  0xf7   : > { %5424 = vmatmul.mubr.bf16.gmra.mrb[36].mxu1 %v2523_v17  ;;  %5520 = vmatmul.mubr.bf16.gmra.mrb[100].mxu0 %v6024_v0 }
  0xf8   : > { %5427 = vmatprep.mubr.bf16.mxu1 %v2531_v1  ;;  %5523 = vmatprep.mubr.bf16.mxu0 %v6027_v28  ;;  %v6879_v31 = vpop.permute.xlu1 %719 }
  0xf9   : > { %7792 = vst [vmem:[#allocation18_spill] sm:$0xff] %v6879_v31 }
  0xfc   : > { %v6893_v3 = vpop.permute.xlu1 %729 }
  0xfd   : > { %7794 = vst [vmem:[#allocation20_spill] sm:$0xff] %v6893_v3 }
  0xff   : > { %5428 = vmatmul.mubr.bf16.gmra.mrb[40].mxu1 %v2539_v43  ;;  %5524 = vmatmul.mubr.bf16.gmra.mrb[104].mxu0 %v6028_v30  ;;  %v3731_v30 = vshll.u32 %v6903_v10, 16  ;;  %v3725_v43 = vrot.slane %v3723_v18, 1  ;;  %v4121_v18 = vsel %vm1358_vm1, %v4118_v60, %v4120_v6 }
 0x100   : > { %5431 = vmatprep.mubr.bf16.mxu1 %v2547_v37  ;;  %5527 = vmatprep.mubr.bf16.mxu0 %v6031_v44  ;;  %v6899_v19 = vpop.permute.xlu1 %739  ;;  %v6040_v37 = vld [vmem:[%s6121_s8 + $0x30] sm:$0xff]   ;;  %v6928_v44 = vpop.permute.xlu0 %1701 }
 0x101   : > { %7796 = vst [vmem:[#allocation22_spill] sm:$0xff] %v6899_v19  ;;  %7801 = vst [vmem:[#allocation27_spill] sm:$0xff] %v6928_v44  ;;  %v3729_v13 = vor.u32 %v3727_v34, %v3725_v43  ;;  %v3733_v49 = vrot.slane %v3731_v30, 1  ;;  %v3739_v9 = vshll.u32 %v6040_v37, 16  ;;  %v3726_v58 = vsel %vm947_vm0, %v3721_v46, %v3725_v43 }
 0x102   : > { %v6905_v63 = vpop.f32.mrb[0].mxu0  ;;  %v6907_v0 = vpop.f32.mrb[0].mxu1  ;;  %v4123_v34 = vsel %vm1358_vm1, %v4120_v6, %v4122_v52  ;;  %v3743_v30 = vshrl.u32 %v6040_v37, 16  ;;  %v4126_v19 = vrot.slane %v6934_v57, 1 }
 0x103   : > { %7797 = vst [vmem:[#allocation23_spill] sm:$0xff] %v6907_v0  ;;  %v6909_v17 = vpop.f32.mrb[1].mxu0  ;;  %v6911_v28 = vpop.f32.mrb[1].mxu1  ;;  %v3741_v60 = vrot.slane %v3739_v9, 1 }
 0x104   : > { %7798 = vst [vmem:[#allocation24_spill] sm:$0xff] %v6911_v28  ;;  %v6914_v20 = vpop.f32.mrb[2].mxu0  ;;  %v6916_v1 = vpop.f32.mrb[2].mxu1 }
 0x105   : > { %7799 = vst [vmem:[#allocation25_spill] sm:$0xff] %v6916_v1  ;;  %v6920_v62 = vpop.f32.mrb[3].mxu0  ;;  %v6922_v5 = vpop.f32.mrb[3].mxu1  ;;  %v3765_v1 = vrot.slane %v3763_v7, 1 }
 0x106   : > { %7800 = vst [vmem:[#allocation26_spill] sm:$0xff] %v6922_v5  ;;  %v6930_v47 = vpop.permute.xlu1 %749  ;;  %v6956_v21 = vpop.permute.xlu0 %1711 }
 0x107   : > { %5432 = vmatmul.mubr.bf16.gmra.mrb[44].mxu1 %v2555_v23  ;;  %5528 = vmatmul.mubr.bf16.gmra.mrb[108].mxu0 %v6032_v12  ;;  %7802 = vst [vmem:[#allocation28_spill] sm:$0xff] %v6930_v47  ;;  %v3735_v23 = vshrl.u32 %v6903_v10, 16  ;;  %v3747_v47 = vshll.u32 %v6934_v57, 16  ;;  %7806 = vst [vmem:[#allocation32_spill] sm:$0xff] %v6956_v21  ;;  %v6042_v10 = vld [vmem:[%s6121_s8 + $0x40] sm:$0xff]  }
 0x108   : > { %5547 = vmatprep.mubr.bf16.mxu1 %v3718_v15  ;;  %5595 = vmatprep.mubr.bf16.mxu0 %v4119_v33  ;;  %v3734_v33 = vsel %vm947_vm0, %v3729_v13, %v3733_v49  ;;  %v4124_v13 = vrot.slane %v6040_v37, 1 }
 0x109   : > { %v3737_v46 = vor.u32 %v3735_v23, %v3733_v49  ;;  %v3749_v6 = vrot.slane %v3747_v47, 1  ;;  %v3751_v23 = vshrl.u32 %v6934_v57, 16 }
 0x10a   : > { %v6936_v36 = vpop.f32.mrb[4].mxu0  ;;  %v6938_v61 = vpop.f32.mrb[4].mxu1  ;;  %v4125_v47 = vsel %vm1358_vm1, %v4122_v52, %v4124_v13 }
 0x10b   : > { %7803 = vst [vmem:[#allocation29_spill] sm:$0xff] %v6938_v61  ;;  %v6940_v25 = vpop.f32.mrb[5].mxu0  ;;  %v6942_v50 = vpop.f32.mrb[5].mxu1  ;;  %v3742_v37 = vsel %vm947_vm0, %v3737_v46, %v3741_v60  ;;  %v3753_v57 = vor.u32 %v3751_v23, %v3749_v6  ;;  %v4128_v46 = vrot.slane %v6042_v10, 1 }
 0x10c   : > { %7804 = vst [vmem:[#allocation30_spill] sm:$0xff] %v6942_v50  ;;  %v6944_v12 = vpop.f32.mrb[6].mxu0  ;;  %v6949_v24 = vpop.f32.mrb[6].mxu1 }
 0x10d   : > { %7805 = vst [vmem:[#allocation31_spill] sm:$0xff] %v6949_v24  ;;  %v6951_v15 = vpop.f32.mrb[7].mxu0  ;;  %v6958_v3 = vpop.f32.mrb[7].mxu1  ;;  %v3745_v24 = vor.u32 %v3743_v30, %v3741_v60  ;;  %v6044_v60 = vld [vmem:[%s6121_s8 + $0x50] sm:$0xff]  }
 0x10e   : > { %7807 = vst [vmem:[#allocation33_spill] sm:$0xff] %v6958_v3  ;;  %v6961_v43 = vpop.permute.xlu1 %1656  ;;  %v3759_v3 = vshrl.u32 %v6042_v10, 16  ;;  %v3771_v28 = vshll.u32 %v6044_v60, 16 }
 0x10f   : > { %5548 = vmatmul.mubr.bf16.vlgmr.msra.gmra.mrb[16].mxu1 %v3726_v58  ;;  %5596 = vmatmul.mubr.bf16.vlgmr.msra.gmra.mrb[112].mxu0 %v4121_v18  ;;  %7808 = vst [vmem:[#allocation34_spill] sm:$0xff] %v6961_v43  ;;  %v3755_v18 = vshll.u32 %v6042_v10, 16 }
 0x110   : > { %5551 = vmatprep.mubr.bf16.mxu1 %v3734_v33  ;;  %5599 = vmatprep.mubr.bf16.mxu0 %v4123_v34  ;;  %v6975_v33 = vpop.permute.xlu0 %1721 }
 0x111   : > { %7811 = vst [vmem:[#allocation37_spill] sm:$0xff] %v6975_v33  ;;  %v3757_v52 = vrot.slane %v3755_v18, 1 }
 0x112   : > { %v6967_v50 = vpop.f32.mrb[8].mxu0  ;;  %v6969_v61 = vpop.f32.mrb[8].mxu1 }
 0x113   : > { %7809 = vst [vmem:[#allocation35_spill] sm:$0xff] %v6969_v61  ;;  %v6971_v58 = vpop.f32.mrb[9].mxu0  ;;  %v6973_v9 = vpop.f32.mrb[9].mxu1  ;;  %v3750_v61 = vsel %vm947_vm0, %v3745_v24, %v3749_v6  ;;  %v3761_v24 = vor.u32 %v3759_v3, %v3757_v52  ;;  %v3758_v7 = vsel %vm947_vm0, %v3753_v57, %v3757_v52  ;;  %v4129_v3 = vsel %vm1358_vm1, %v4126_v19, %v4128_v46 }
 0x114   : > { %7810 = vst [vmem:[#allocation36_spill] sm:$0xff] %v6973_v9  ;;  %v6977_v49 = vpop.f32.mrb[10].mxu0  ;;  %v6982_v34 = vpop.f32.mrb[10].mxu1  ;;  %v4127_v9 = vsel %vm1358_vm1, %v4124_v13, %v4126_v19  ;;  %v4130_v13 = vrot.slane %v6965_v48, 1  ;;  %v3775_v6 = vshrl.u32 %v6044_v60, 16  ;;  %v3773_v52 = vrot.slane %v3771_v28, 1 }
 0x115   : > { %7812 = vst [vmem:[#allocation38_spill] sm:$0xff] %v6982_v34  ;;  %v6984_v30 = vpop.f32.mrb[11].mxu0  ;;  %v6989_v16 = vpop.f32.mrb[11].mxu1  ;;  %v6995_v34 = vld [vmem:[%s6121_s8 + $0x58] sm:$0xff]   ;;  %v3766_v23 = vsel %vm947_vm0, %v3761_v24, %v3765_v1  ;;  %v4132_v57 = vrot.slane %v6044_v60, 1  ;;  %v3787_v60 = vshll.u32 %v6046_v29, 16 }
 0x116   : > { %7813 = vst [vmem:[#allocation39_spill] sm:$0xff] %v6989_v16  ;;  %v6991_v5 = vpop.permute.xlu1 %1666  ;;  %v3767_v16 = vshrl.u32 %v6965_v48, 16  ;;  %v4134_v19 = vrot.slane %v6995_v34, 1  ;;  %v3777_v24 = vor.u32 %v3775_v6, %v3773_v52 }
 0x117   : > { %7814 = vst [vmem:[#allocation40_spill] sm:$0xff] %v6991_v5  ;;  %5552 = vmatmul.mubr.bf16.gmra.mrb[20].mxu1 %v3742_v37  ;;  %5600 = vmatmul.mubr.bf16.gmra.mrb[116].mxu0 %v4125_v47  ;;  %v4133_v28 = vsel %vm1358_vm1, %v4130_v13, %v4132_v57 }
 0x118   : > { %5555 = vmatprep.mubr.bf16.mxu1 %v3750_v61  ;;  %5603 = vmatprep.mubr.bf16.mxu0 %v4127_v9  ;;  %v7007_v61 = vpop.permute.xlu0 %1731  ;;  %v3779_v9 = vshll.u32 %v6995_v34, 16  ;;  %v3769_v0 = vor.u32 %v3767_v16, %v3765_v1  ;;  %v4135_v1 = vsel %vm1358_vm1, %v4132_v57, %v4134_v19 }
 0x119   : > { %7817 = vst [vmem:[#allocation43_spill] sm:$0xff] %v7007_v61 }
 0x11a   : > { %v6998_v31 = vpop.f32.mrb[12].mxu0  ;;  %v7000_v8 = vpop.f32.mrb[12].mxu1  ;;  %v3774_v16 = vsel %vm947_vm0, %v3769_v0, %v3773_v52 }
 0x11b   : > { %7815 = vst [vmem:[#allocation41_spill] sm:$0xff] %v7000_v8  ;;  %v7003_v37 = vpop.f32.mrb[13].mxu0  ;;  %v7005_v18 = vpop.f32.mrb[13].mxu1 }
 0x11c   : > { %7816 = vst [vmem:[#allocation42_spill] sm:$0xff] %v7005_v18  ;;  %v7009_v10 = vpop.permute.xlu1 %1676  ;;  %v7014_v47 = vpop.f32.mrb[14].mxu0  ;;  %v4131_v18 = vsel %vm1358_vm1, %v4128_v46, %v4130_v13  ;;  %v3783_v46 = vshrl.u32 %v6995_v34, 16  ;;  %v3791_v34 = vshrl.u32 %v6046_v29, 16 }
 0x11d   : > { %7818 = vst [vmem:[#allocation44_spill] sm:$0xff] %v7009_v10  ;;  %7819 = vst [vmem:[#allocation45_spill] sm:$0xff] %v7014_v47  ;;  %v7016_v48 = vpop.f32.mrb[14].mxu1  ;;  %v7020_v8 = vpop.f32.mrb[15].mxu0  ;;  %v7030_v47 = vld [vmem:[%s6121_s8 + $0x68] sm:$0xff]  }
 0x11e   : > { %7820 = vst [vmem:[#allocation46_spill] sm:$0xff] %v7016_v48  ;;  %7821 = vst [vmem:[#allocation47_spill] sm:$0xff] %v7020_v8  ;;  %v7022_v61 = vpop.f32.mrb[15].mxu1  ;;  %v3781_v48 = vrot.slane %v3779_v9, 1  ;;  %v4136_v9 = vrot.slane %v6046_v29, 1 }
 0x11f   : > { %7822 = vst [vmem:[#allocation48_spill] sm:$0xff] %v7022_v61  ;;  %5556 = vmatmul.mubr.bf16.gmra.mrb[24].mxu1 %v3758_v7  ;;  %5604 = vmatmul.mubr.bf16.gmra.mrb[120].mxu0 %v4129_v3  ;;  %v7035_v7 = vpop.permute.xlu0 %1741  ;;  %v784_v3 = vmul.f32 %v6905_v63, %v6761_v27  ;;  %v785_v63 = vmul.f32 %v6914_v20, %v6783_v40  ;;  %v4138_v20 = vrot.slane %v7030_v47, 1 }
 0x120   : > { %v7026_v54 = vpop.permute.xlu1 %1686  ;;  %5559 = vmatprep.mubr.bf16.mxu1 %v3766_v23  ;;  %5607 = vmatprep.mubr.bf16.mxu0 %v4131_v18  ;;  %7824 = vst [vmem:[#allocation50_spill] sm:$0xff] %v7035_v7  ;;  %v782_v23 = vmul.f32 %v6595_v26, %v6909_v17  ;;  %v3782_v57 = vsel %vm947_vm0, %v3777_v24, %v3781_v48  ;;  %v3789_v24 = vrot.slane %v3787_v60, 1 }
 0x121   : > { %7823 = vst [vmem:[#allocation49_spill] sm:$0xff] %v7026_v54  ;;  %v3785_v61 = vor.u32 %v3783_v46, %v3781_v48  ;;  %v783_v17 = vmul.f32 %v6618_v38, %v6920_v62  ;;  %v6048_v48 = vld [vmem:[%s6121_s8 + $0x70] sm:$0xff]  }
 0x122   : > { %v5309_v8 = vpop.f32.mrb[16].mxu0 }
 0x123   : > { %v1811_v18 = vmul.f32 %v5309_v8, %v6861_v59  ;;  %v1490_v6 = vpop.f32.mrb[17].mxu0  ;;  %v3795_v59 = vshll.u32 %v7030_v47, 16  ;;  %v7068_v62 = vpop.permute.xlu0 %1751 }
 0x124   : > { %v1809_v0 = vmul.f32 %v6849_v42, %v1490_v6  ;;  %v7043_v13 = vpop.permute.xlu1 %1696  ;;  %v5310_v52 = vpop.f32.mrb[18].mxu0  ;;  %7827 = vst [vmem:[#allocation53_spill] sm:$0xff] %v7068_v62 }
 0x125   : > { %7825 = vst [vmem:[#allocation51_spill] sm:$0xff] %v7043_v13  ;;  %v7048_v27 = vadd.f32 %v1811_v18, %v784_v3  ;;  %v1812_v8 = vmul.f32 %v5310_v52, %v6991_v5  ;;  %v1493_v29 = vpop.f32.mrb[19].mxu0  ;;  %v7066_v52 = vld [vmem:[%s6121_s8 + $0x78] sm:$0xff]  }
 0x126   : > { %v7054_v6 = vadd.f32 %v1809_v0, %v782_v23  ;;  %v1810_v42 = vmul.f32 %v6961_v43, %v1493_v29  ;;  %v3793_v23 = vor.u32 %v3791_v34, %v3789_v24  ;;  %v3797_v0 = vrot.slane %v3795_v59, 1 }
 0x127   : > { %v7058_v46 = vadd.f32 %v1812_v8, %v785_v63  ;;  %5560 = vmatmul.mubr.bf16.gmra.mrb[28].mxu1 %v3774_v16  ;;  %5608 = vmatmul.mubr.bf16.gmra.mrb[124].mxu0 %v4133_v28  ;;  %v3790_v63 = vsel %vm947_vm0, %v3785_v61, %v3789_v24  ;;  %v4137_v16 = vsel %vm1358_vm1, %v4134_v19, %v4136_v9  ;;  %v3799_v28 = vshrl.u32 %v7030_v47, 16  ;;  %v7097_v43 = vpop.permute.xlu0 %1761 }
 0x128   : > { %v7061_v3 = vadd.f32 %v1810_v42, %v783_v17  ;;  %v7063_v18 = vpop.permute.xlu1 %1706  ;;  %5563 = vmatprep.mubr.bf16.mxu1 %v3782_v57  ;;  %5611 = vmatprep.mubr.bf16.mxu0 %v4135_v1  ;;  %v3803_v8 = vshll.u32 %v6048_v48, 16  ;;  %v788_v42 = vmul.f32 %v6936_v36, %v6665_v2  ;;  %v4139_v29 = vsel %vm1358_vm1, %v4136_v9, %v4138_v20 }
 0x129   : > { %7826 = vst [vmem:[#allocation52_spill] sm:$0xff] %v7063_v18  ;;  %v4140_v17 = vrot.slane %v6048_v48, 1  ;;  %v786_v59 = vmul.f32 %v6643_v51, %v6940_v25  ;;  %v3807_v47 = vshrl.u32 %v6048_v48, 16  ;;  %v3811_v24 = vshll.u32 %v7066_v52, 16  ;;  %v7095_v51 = vld [vmem:[%s6121_s8 + $0x80] sm:$0xff]   ;;  %7829 = vst [vmem:[#allocation55_spill] sm:$0xff] %v7097_v43 }
 0x12a   : > { %v5313_v60 = vpop.f32.mrb[20].mxu0  ;;  %v789_v36 = vmul.f32 %v6944_v12, %v6821_v14  ;;  %v3798_v2 = vsel %vm947_vm0, %v3793_v23, %v3797_v0  ;;  %v787_v25 = vmul.f32 %v6797_v56, %v6951_v15  ;;  %v4142_v23 = vrot.slane %v7066_v52, 1 }
 0x12b   : > { %v1815_v57 = vmul.f32 %v5313_v60, %v6885_v35  ;;  %v1506_v1 = vpop.f32.mrb[21].mxu0 }
 0x12c   : > { %v1813_v61 = vmul.f32 %v6876_v53, %v1506_v1  ;;  %v7080_v34 = vpop.permute.xlu1 %1716  ;;  %v5314_v19 = vpop.f32.mrb[22].mxu0  ;;  %v3805_v53 = vrot.slane %v3803_v8, 1  ;;  %v7107_v8 = vld [vmem:[%s6121_s8 + $0x88] sm:$0xff]  }
 0x12d   : > { %7828 = vst [vmem:[#allocation54_spill] sm:$0xff] %v7080_v34  ;;  %v7085_v60 = vadd.f32 %v1815_v57, %v788_v42  ;;  %v1816_v9 = vmul.f32 %v5314_v19, %v7026_v54  ;;  %v1509_v35 = vpop.f32.mrb[23].mxu0  ;;  %v3801_v42 = vor.u32 %v3799_v28, %v3797_v0  ;;  %v4141_v19 = vsel %vm1358_vm1, %v4138_v20, %v4140_v17 }
 0x12e   : > { %v7091_v1 = vadd.f32 %v1813_v61, %v786_v59  ;;  %v1814_v48 = vmul.f32 %v7009_v10, %v1509_v35  ;;  %v3809_v59 = vor.u32 %v3807_v47, %v3805_v53  ;;  %v3813_v35 = vrot.slane %v3811_v24, 1 }
 0x12f   : > { %v7099_v12 = vadd.f32 %v1816_v9, %v789_v36  ;;  %5564 = vmatmul.mubr.bf16.gmra.mrb[32].mxu1 %v3790_v63  ;;  %5612 = vmatmul.mubr.bf16.gmra.mrb[128].mxu0 %v4137_v16  ;;  %v3815_v36 = vshrl.u32 %v7066_v52, 16  ;;  %v3819_v63 = vshll.u32 %v7095_v51, 16  ;;  %v792_v0 = vmul.f32 %v6967_v50, %v6706_v22 }
 0x130   : > { %v7102_v57 = vadd.f32 %v1814_v48, %v787_v25  ;;  %v7104_v15 = vpop.permute.xlu1 %1726  ;;  %5567 = vmatprep.mubr.bf16.mxu1 %v3798_v2  ;;  %5615 = vmatprep.mubr.bf16.mxu0 %v4139_v29  ;;  %v3806_v2 = vsel %vm947_vm0, %v3801_v42, %v3805_v53  ;;  %v4143_v29 = vsel %vm1358_vm1, %v4140_v17, %v4142_v23  ;;  %v3823_v50 = vshrl.u32 %v7095_v51, 16  ;;  %v7124_v25 = vpop.permute.xlu0 %1771 }
 0x131   : > { %7830 = vst [vmem:[#allocation56_spill] sm:$0xff] %v7104_v15  ;;  %v790_v47 = vmul.f32 %v6690_v11, %v6971_v58  ;;  %v3814_v9 = vsel %vm947_vm0, %v3809_v59, %v3813_v35  ;;  %7832 = vst [vmem:[#allocation58_spill] sm:$0xff] %v7124_v25  ;;  %v793_v53 = vmul.f32 %v6977_v49, %v6847_v41  ;;  %v3827_v42 = vshll.u32 %v7107_v8, 16 }
 0x132   : > { %v5317_v61 = vpop.f32.mrb[24].mxu0  ;;  %v3821_v49 = vrot.slane %v3819_v63, 1 }
 0x133   : > { %v1819_v16 = vmul.f32 %v5317_v61, %v6928_v44  ;;  %v1522_v28 = vpop.f32.mrb[25].mxu0  ;;  %v791_v61 = vmul.f32 %v6833_v32, %v6984_v30  ;;  %v4146_v30 = vrot.slane %v7107_v8, 1 }
 0x134   : > { %v1817_v24 = vmul.f32 %v6897_v45, %v1522_v28  ;;  %v7120_v20 = vpop.permute.xlu1 %1736  ;;  %v5318_v52 = vpop.f32.mrb[26].mxu0  ;;  %v4144_v45 = vrot.slane %v7095_v51, 1 }
 0x135   : > { %7831 = vst [vmem:[#allocation57_spill] sm:$0xff] %v7120_v20  ;;  %v7128_v48 = vadd.f32 %v1819_v16, %v792_v0  ;;  %v1820_v17 = vmul.f32 %v5318_v52, %v7063_v18  ;;  %v1525_v58 = vpop.f32.mrb[27].mxu0  ;;  %v6052_v0 = vld [vmem:[%s6121_s8 + $0x90] ss:$0 sps:$4 sm:$0x11]   ;;  %v3817_v18 = vor.u32 %v3815_v36, %v3813_v35  ;;  %v794_v35 = vmul.f32 %v6720_v39, %v7003_v37  ;;  %v7837_v37 = vld [vmem:[#allocation47_spill] sm:$0xff] }
 0x136   : > { %v7134_v28 = vadd.f32 %v1817_v24, %v790_v47  ;;  %v1818_v59 = vmul.f32 %v7043_v13, %v1525_v58  ;;  %v3825_v47 = vor.u32 %v3823_v50, %v3821_v49  ;;  %v3829_v24 = vrot.slane %v3827_v42, 1  ;;  %v7838_v39 = vld [vmem:[#allocation14_spill] sm:$0xff]  ;;  %s4978_s8 = sshll.u32 %s7995_s19, 8 }
 0x137   : > { %v7138_v44 = vadd.f32 %v1820_v17, %v793_v53  ;;  %5568 = vmatmul.mubr.bf16.gmra.mrb[36].mxu1 %v3806_v2  ;;  %5616 = vmatmul.mubr.bf16.gmra.mrb[132].mxu0 %v4141_v19  ;;  %v4145_v51 = vsel %vm1358_vm1, %v4142_v23, %v4144_v45  ;;  %v7147_v53 = vpop.permute.xlu0 %754  ;;  %v796_v19 = vmul.f32 %v6998_v31, %v6734_v55  ;;  %v3831_v17 = vshrl.u32 %v7107_v8, 16  ;;  %v7836_v31 = vld [vmem:[#allocation45_spill] sm:$0xff]  ;;  %s7577_s9 = scalar_lea.vmem %s7684_s4, %s4978_s8 }
 0x138   : > { %v7141_v16 = vadd.f32 %v1818_v59, %v791_v61  ;;  %v7143_v52 = vpop.permute.xlu1 %1746  ;;  %5571 = vmatprep.mubr.bf16.mxu1 %v3814_v9  ;;  %5619 = vmatprep.mubr.bf16.mxu0 %v4143_v29  ;;  %7834 = vst [vmem:[#allocation60_spill] sm:$0xff] %v7147_v53  ;;  %v3835_v9 = vshll.u32 %v6052_v0, 16  ;;  %v3822_v23 = vsel %vm947_vm0, %v3817_v18, %v3821_v49 }
 0x139   : > { %7833 = vst [vmem:[#allocation59_spill] sm:$0xff] %v7143_v52  ;;  %v4147_v42 = vsel %vm1358_vm1, %v4144_v45, %v4146_v30  ;;  %v797_v61 = vmul.f32 %v7836_v31, %v6863_v4 }
 0x13a   : > { %v5321_v58 = vpop.f32.mrb[28].mxu0 }
 0x13b   : > { %v1823_v63 = vmul.f32 %v5321_v58, %v6975_v33  ;;  %v1538_v2 = vpop.f32.mrb[29].mxu0  ;;  %v3830_v33 = vsel %vm947_vm0, %v3825_v47, %v3829_v24  ;;  %v4148_v47 = vrot.slane %v6052_v0, 1 }
 0x13c   : > { %v1821_v36 = vmul.f32 %v6956_v21, %v1538_v2  ;;  %v7156_v29 = vpop.permute.xlu1 %1756  ;;  %v5322_v50 = vpop.f32.mrb[30].mxu0  ;;  %v795_v2 = vmul.f32 %v7838_v39, %v7837_v37 }
 0x13d   : > { %7835 = vst [vmem:[#allocation61_spill] sm:$0xff] %v7156_v29  ;;  %v7162_v59 = vadd.f32 %v1823_v63, %v796_v19  ;;  %v1824_v8 = vmul.f32 %v5322_v50, %v7104_v15  ;;  %v1541_v58 = vpop.f32.mrb[31].mxu0  ;;  %v3833_v19 = vor.u32 %v3831_v17, %v3829_v24  ;;  %v3837_v63 = vrot.slane %v3835_v9, 1  ;;  %v7177_v50 = vpop.permute.xlu0 %759  ;;  %v7848_v17 = vld [vmem:[#allocation18_spill] sm:$0xff]  ;;  %v7849_v9 = vld [vmem:[#allocation25_spill] sm:$0xff] }
 0x13e   : > { %v7168_v21 = vadd.f32 %v1821_v36, %v794_v35  ;;  %v1822_v55 = vmul.f32 %v7080_v34, %v1541_v58  ;;  %7841 = vst [vmem:[#allocation14_spill] sm:$0xff] %v7177_v50  ;;  %v7842_v35 = vld [vmem:[#allocation9_spill] sm:$0xff]  ;;  %v7843_v36 = vld [vmem:[#allocation23_spill] sm:$0xff]  ;;  %v4149_v0 = vsel %vm1358_vm1, %v4146_v30, %v4148_v47 }
 0x13f   : > { %v7171_v18 = vadd.f32 %v1824_v8, %v797_v61  ;;  %5572 = vmatmul.mubr.bf16.gmra.mrb[40].mxu1 %v3822_v23  ;;  %5620 = vmatmul.mubr.bf16.gmra.mrb[136].mxu0 %v4145_v51  ;;  %v800_v37 = vmul.f32 %v7843_v36, %v7842_v35  ;;  %v7844_v23 = vld [vmem:[#allocation24_spill] sm:$0xff]  ;;  %v7845_v51 = vld [vmem:[#allocation7_spill] sm:$0xff]  ;;  %v3838_v24 = vsel %vm947_vm0, %v3833_v19, %v3837_v63 }
 0x140   : > { %v7173_v45 = vadd.f32 %v1822_v55, %v795_v2  ;;  %v7175_v49 = vpop.permute.xlu1 %1766  ;;  %5575 = vmatprep.mubr.bf16.mxu1 %v3830_v33  ;;  %5623 = vmatprep.mubr.bf16.mxu0 %v4147_v42  ;;  %v798_v55 = vmul.f32 %v7845_v51, %v7844_v23  ;;  %v7846_v58 = vld [vmem:[#allocation43_spill] sm:$0xff]  ;;  %v801_v42 = vmul.f32 %v7849_v9, %v7848_v17  ;;  %v7851_v35 = vld [vmem:[#allocation16_spill] sm:$0xff]  ;;  %v7859_v9 = vld [vmem:[#allocation10_spill] sm:$0xff] }
 0x141   : > { %7840 = vst [vmem:[#allocation47_spill] sm:$0xff] %v7175_v49 }
 0x142   : > { %7839 = vst [vmem:[#allocation45_spill] sm:$0xff] %v7173_v45  ;;  %v5325_v31 = vpop.f32.mrb[32].mxu0 }
 0x143   : > { %v1827_v61 = vmul.f32 %v5325_v31, %v7035_v7  ;;  %v1554_v8 = vpop.f32.mrb[33].mxu0  ;;  %v7850_v7 = vld [vmem:[#allocation26_spill] sm:$0xff] }
 0x144   : > { %v1825_v2 = vmul.f32 %v7846_v58, %v1554_v8  ;;  %v7185_v34 = vpop.permute.xlu1 %1776  ;;  %v5326_v33 = vpop.f32.mrb[34].mxu0  ;;  %v799_v23 = vmul.f32 %v7851_v35, %v7850_v7 }
 0x145   : > { %7847 = vst [vmem:[#allocation23_spill] sm:$0xff] %v7185_v34  ;;  %v7191_v45 = vadd.f32 %v1827_v61, %v800_v37  ;;  %v1828_v31 = vmul.f32 %v5326_v33, %v7143_v52  ;;  %v1557_v36 = vpop.f32.mrb[35].mxu0  ;;  %v7199_v58 = vpop.permute.xlu0 %764  ;;  %v7856_v37 = vld [vmem:[#allocation11_spill] sm:$0xff]  ;;  %v7857_v61 = vld [vmem:[#allocation29_spill] sm:$0xff] }
 0x146   : > { %v7196_v51 = vadd.f32 %v1825_v2, %v798_v55  ;;  %v1826_v8 = vmul.f32 %v7120_v20, %v1557_v36  ;;  %7852 = vst [vmem:[#allocation24_spill] sm:$0xff] %v7199_v58  ;;  %v804_v33 = vmul.f32 %v7857_v61, %v7856_v37  ;;  %v7858_v2 = vld [vmem:[#allocation30_spill] sm:$0xff] }
 0x147   : > { %v7201_v19 = vadd.f32 %v1828_v31, %v801_v42  ;;  %5576 = vmatmul.mubr.bf16.gmra.mrb[44].mxu1 %v3838_v24  ;;  %5624 = vmatmul.mubr.bf16.gmra.mrb[140].mxu0 %v4149_v0  ;;  %v802_v36 = vmul.f32 %v7859_v9, %v7858_v2  ;;  %v7861_v0 = vld [vmem:[#allocation22_spill] sm:$0xff]  ;;  %v7862_v31 = vld [vmem:[#allocation31_spill] sm:$0xff] }
 0x148   : > { %v7203_v30 = vadd.f32 %v1826_v8, %v799_v23  ;;  %v7205_v63 = vpop.permute.xlu1 %1781  ;;  %v805_v23 = vmul.f32 %v7862_v31, %v7861_v0 }
 0x149   : > { %7853 = vst [vmem:[#allocation25_spill] sm:$0xff] %v7201_v19  ;;  %7855 = vst [vmem:[#allocation16_spill] sm:$0xff] %v7205_v63  ;;  %v7217_v8 = vpop.permute.xlu0 %769 }
 0x14a   : > { %7854 = vst [vmem:[#allocation26_spill] sm:$0xff] %v7203_v30  ;;  %v5329_v47 = vpop.f32.mrb[36].mxu0 }
 0x14b   : > { %v1831_v7 = vmul.f32 %v5329_v47, %v7097_v43  ;;  %v1570_v55 = vpop.f32.mrb[37].mxu0  ;;  %v7863_v47 = vld [vmem:[#allocation33_spill] sm:$0xff]  ;;  %v7864_v43 = vld [vmem:[#allocation20_spill] sm:$0xff] }
 0x14c   : > { %v1829_v20 = vmul.f32 %v7068_v62, %v1570_v55  ;;  %v7213_v42 = vpop.permute.xlu1 %1786  ;;  %v5330_v24 = vpop.f32.mrb[38].mxu0  ;;  %v803_v52 = vmul.f32 %v7864_v43, %v7863_v47  ;;  %v7870_v47 = vld [vmem:[#allocation36_spill] sm:$0xff] }
 0x14d   : > { %7860 = vst [vmem:[#allocation29_spill] sm:$0xff] %v7213_v42  ;;  %v7219_v30 = vadd.f32 %v1831_v7, %v804_v33  ;;  %v1832_v61 = vmul.f32 %v5330_v24, %v7175_v49  ;;  %v1573_v37 = vpop.f32.mrb[39].mxu0  ;;  %v7868_v33 = vld [vmem:[#allocation35_spill] sm:$0xff]  ;;  %v7235_v0 = vpop.permute.xlu0 %774 }
 0x14e   : > { %v7224_v19 = vadd.f32 %v1829_v20, %v802_v36  ;;  %v1830_v55 = vmul.f32 %v7156_v29, %v1573_v37  ;;  %v808_v7 = vmul.f32 %v7868_v33, %v7147_v53  ;;  %7869 = vst [vmem:[#allocation35_spill] sm:$0xff] %v7235_v0  ;;  %v7871_v20 = vld [vmem:[#allocation12_spill] sm:$0xff] }
 0x14f   : > { %v7227_v2 = vadd.f32 %v1832_v61, %v805_v23  ;;  %v806_v36 = vmul.f32 %v7871_v20, %v7870_v47  ;;  %v7873_v61 = vld [vmem:[#allocation38_spill] sm:$0xff] }
 0x150   : > { %v7229_v62 = vadd.f32 %v1830_v55, %v803_v52  ;;  %v7231_v9 = vpop.permute.xlu1 %1791  ;;  %v809_v55 = vmul.f32 %v7873_v61, %v7177_v50 }
 0x151   : > { %7865 = vst [vmem:[#allocation30_spill] sm:$0xff] %v7227_v2  ;;  %7867 = vst [vmem:[#allocation33_spill] sm:$0xff] %v7231_v9  ;;  %v7875_v2 = vld [vmem:[#allocation28_spill] sm:$0xff]  ;;  %v7259_v43 = vpop.permute.xlu0 %779 }
 0x152   : > { %7866 = vst [vmem:[#allocation31_spill] sm:$0xff] %v7229_v62  ;;  %v5333_v31 = vpop.f32.mrb[40].mxu0  ;;  %v7874_v62 = vld [vmem:[#allocation39_spill] sm:$0xff]  ;;  %7879 = vst [vmem:[#allocation62_spill] sm:$0xff] %v7259_v43 }
 0x153   : > { %v1835_v24 = vmul.f32 %v5333_v31, %v7205_v63  ;;  %v1586_v49 = vpop.f32.mrb[41].mxu0  ;;  %v807_v31 = vmul.f32 %v7875_v2, %v7874_v62  ;;  %v7881_v62 = vld [vmem:[#allocation42_spill] sm:$0xff] }
 0x154   : > { %v1833_v37 = vmul.f32 %v7124_v25, %v1586_v49  ;;  %v7241_v23 = vpop.permute.xlu1 %1796  ;;  %v5334_v52 = vpop.f32.mrb[42].mxu0 }
 0x155   : > { %7872 = vst [vmem:[#allocation36_spill] sm:$0xff] %v7241_v23  ;;  %v7245_v29 = vadd.f32 %v1835_v24, %v808_v7  ;;  %v1836_v33 = vmul.f32 %v5334_v52, %v7213_v42  ;;  %v1589_v53 = vpop.f32.mrb[43].mxu0  ;;  %v7880_v24 = vld [vmem:[#allocation41_spill] sm:$0xff] }
 0x156   : > { %v7250_v63 = vadd.f32 %v1833_v37, %v806_v36  ;;  %v1834_v47 = vmul.f32 %v7185_v34, %v1589_v53  ;;  %v812_v52 = vmul.f32 %v7880_v24, %v7235_v0  ;;  %v810_v36 = vmul.f32 %v7199_v58, %v7881_v62  ;;  %v7884_v24 = vld [vmem:[#allocation48_spill] sm:$0xff] }
 0x157   : > { %v7253_v20 = vadd.f32 %v1836_v33, %v809_v55  ;;  %v7883_v33 = vld [vmem:[#allocation46_spill] sm:$0xff] }
 0x158   : > { %v7255_v49 = vadd.f32 %v1834_v47, %v807_v31  ;;  %v7257_v25 = vpop.permute.xlu1 %1801  ;;  %v813_v31 = vmul.f32 %v7883_v33, %v7259_v43 }
 0x159   : > { %7876 = vst [vmem:[#allocation38_spill] sm:$0xff] %v7253_v20  ;;  %7878 = vst [vmem:[#allocation28_spill] sm:$0xff] %v7257_v25  ;;  %v7886_v20 = vld [vmem:[#allocation8_spill] sm:$0xff] }
 0x15a   : > { %7877 = vst [vmem:[#allocation39_spill] sm:$0xff] %v7255_v49  ;;  %v5337_v7 = vpop.f32.mrb[44].mxu0 }
 0x15b   : > { %v1839_v61 = vmul.f32 %v5337_v7, %v7257_v25  ;;  %v1602_v42 = vpop.f32.mrb[45].mxu0  ;;  %v811_v7 = vmul.f32 %v7217_v8, %v7884_v24 }
 0x15c   : > { %v1837_v53 = vmul.f32 %v7231_v9, %v1602_v42  ;;  %v7267_v37 = vpop.permute.xlu1 %1806  ;;  %v5338_v55 = vpop.f32.mrb[46].mxu0 }
 0x15d   : > { %7882 = vst [vmem:[#allocation41_spill] sm:$0xff] %v7267_v37  ;;  %v7271_v47 = vadd.f32 %v1839_v61, %v812_v52  ;;  %v1840_v34 = vmul.f32 %v5338_v55, %v7267_v37  ;;  %v1605_v49 = vpop.f32.mrb[47].mxu0 }
 0x15e   : > { %v7276_v25 = vadd.f32 %v1837_v53, %v810_v36  ;;  %v1838_v62 = vmul.f32 %v7241_v23, %v1605_v49  ;;  %v7887_v36 = vld [vmem:[#allocation15_spill] sm:$0xff] }
 0x15f   : > { %v7279_v58 = vadd.f32 %v1840_v34, %v813_v31 }
 0x160   : > { %v7281_v42 = vadd.f32 %v1838_v62, %v811_v7  ;;  %v7888_v62 = vld [vmem:[#allocation13_spill] sm:$0xff] }
 0x162   : > { %7885 = vst [vmem:[#allocation42_spill] sm:$0xff] %v7281_v42  ;;  %v5357_v9 = vpop.f32.mrb[48].mxu1  ;;  %v5453_v0 = vpop.f32.mrb[48].mxu0 }
 0x163   : > { %v2229_v33 = vmul.f32 %v5357_v9, %v7886_v20  ;;  %v2100_v52 = vpop.f32.mrb[49].mxu1  ;;  %v2965_v61 = vpop.f32.mrb[49].mxu0  ;;  %v3094_v53 = vmul.f32 %v5453_v0, %v7887_v36  ;;  %v7889_v0 = vld [vmem:[#allocation34_spill] sm:$0xff] }
 0x164   : > { %v2227_v55 = vmul.f32 %v2100_v52, %v6595_v26  ;;  %v5358_v37 = vpop.f32.mrb[50].mxu1  ;;  %v5454_v43 = vpop.f32.mrb[50].mxu0  ;;  %v3092_v23 = vmul.f32 %v2965_v61, %v7888_v62  ;;  %v7891_v62 = vld [vmem:[#allocation3_spill] sm:$0xff] }
 0x165   : > { %v5644_v24 = vadd.f32 %v7048_v27, %v2229_v33  ;;  %v2230_v49 = vmul.f32 %v5358_v37, %v6783_v40  ;;  %v2103_v34 = vpop.f32.mrb[51].mxu1  ;;  %v2968_v31 = vpop.f32.mrb[51].mxu0  ;;  %v3095_v26 = vmul.f32 %v5454_v43, %v6991_v5 }
 0x166   : > { %v5649_v7 = vadd.f32 %v7054_v6, %v2227_v55  ;;  %v2228_v9 = vmul.f32 %v2103_v34, %v6618_v38  ;;  %v3093_v37 = vmul.f32 %v2968_v31, %v7889_v0  ;;  %v7890_v55 = vld [vmem:[#allocation4_spill] sm:$0xff] }
 0x167   : > { %v7291_v20 = vadd.f32 %v5644_v24, %v3094_v53  ;;  %v5654_v52 = vadd.f32 %v7058_v46, %v2230_v49 }
 0x168   : > { %v7295_v42 = vadd.f32 %v5649_v7, %v3092_v23  ;;  %v5659_v27 = vadd.f32 %v7061_v3, %v2228_v9  ;;  %v7892_v7 = vld [vmem:[#allocation19_spill] sm:$0xff] }
 0x169   : > { %v7299_v33 = vadd.f32 %v5654_v52, %v3095_v26 }
 0x16a   : > { %v7301_v36 = vadd.f32 %v5659_v27, %v3093_v37  ;;  %v5361_v6 = vpop.f32.mrb[52].mxu1  ;;  %v5457_v61 = vpop.f32.mrb[52].mxu0  ;;  %v7893_v27 = vld [vmem:[#allocation17_spill] sm:$0xff] }
 0x16b   : > { %v2233_v34 = vmul.f32 %v5361_v6, %v7890_v55  ;;  %v2116_v24 = vpop.f32.mrb[53].mxu1  ;;  %v2981_v53 = vpop.f32.mrb[53].mxu0  ;;  %v3098_v3 = vmul.f32 %v5457_v61, %v7892_v7 }
 0x16c   : > { %v2231_v46 = vmul.f32 %v2116_v24, %v7891_v62  ;;  %v5362_v49 = vpop.f32.mrb[54].mxu1  ;;  %v5458_v43 = vpop.f32.mrb[54].mxu0  ;;  %v3096_v37 = vmul.f32 %v2981_v53, %v7893_v27 }
 0x16d   : > { %v5664_v23 = vadd.f32 %v7085_v60, %v2233_v34  ;;  %v2234_v31 = vmul.f32 %v5362_v49, %v6821_v14  ;;  %v2119_v26 = vpop.f32.mrb[55].mxu1  ;;  %v2984_v9 = vpop.f32.mrb[55].mxu0  ;;  %v3099_v5 = vmul.f32 %v5458_v43, %v7026_v54 }
 0x16e   : > { %v5669_v52 = vadd.f32 %v7091_v1, %v2231_v46  ;;  %v2232_v6 = vmul.f32 %v2119_v26, %v6797_v56  ;;  %v3097_v61 = vmul.f32 %v2984_v9, %v7009_v10  ;;  %v7896_v10 = vld [vmem:[#allocation52_spill] sm:$0xff] }
 0x16f   : > { %v7311_v0 = vadd.f32 %v5664_v23, %v3098_v3  ;;  %v5674_v24 = vadd.f32 %v7099_v12, %v2234_v31 }
 0x170   : > { %v7315_v62 = vadd.f32 %v5669_v52, %v3096_v37  ;;  %v5679_v60 = vadd.f32 %v7102_v57, %v2232_v6  ;;  %v7894_v52 = vld [vmem:[#allocation27_spill] sm:$0xff] }
 0x171   : > { %v7319_v34 = vadd.f32 %v5674_v24, %v3099_v5  ;;  %v7895_v24 = vld [vmem:[#allocation21_spill] sm:$0xff] }
 0x172   : > { %v7321_v49 = vadd.f32 %v5679_v60, %v3097_v61  ;;  %v5365_v1 = vpop.f32.mrb[56].mxu1  ;;  %v5461_v53 = vpop.f32.mrb[56].mxu0 }
 0x173   : > { %v2237_v46 = vmul.f32 %v5365_v1, %v6706_v22  ;;  %v2132_v23 = vpop.f32.mrb[57].mxu1  ;;  %v2997_v3 = vpop.f32.mrb[57].mxu0  ;;  %v3102_v57 = vmul.f32 %v5461_v53, %v7894_v52 }
 0x174   : > { %v2235_v12 = vmul.f32 %v2132_v23, %v6690_v11  ;;  %v5366_v31 = vpop.f32.mrb[58].mxu1  ;;  %v5462_v43 = vpop.f32.mrb[58].mxu0  ;;  %v3100_v60 = vmul.f32 %v2997_v3, %v7895_v24  ;;  %v7898_v24 = vld [vmem:[#allocation5_spill] sm:$0xff] }
 0x175   : > { %v5684_v26 = vadd.f32 %v7128_v48, %v2237_v46  ;;  %v2238_v9 = vmul.f32 %v5366_v31, %v6847_v41  ;;  %v2135_v5 = vpop.f32.mrb[59].mxu1  ;;  %v3000_v37 = vpop.f32.mrb[59].mxu0  ;;  %v3103_v54 = vmul.f32 %v5462_v43, %v7896_v10 }
 0x176   : > { %v5689_v6 = vadd.f32 %v7134_v28, %v2235_v12  ;;  %v2236_v61 = vmul.f32 %v2135_v5, %v6833_v32  ;;  %v3101_v53 = vmul.f32 %v3000_v37, %v7043_v13  ;;  %v7897_v12 = vld [vmem:[#allocation6_spill] sm:$0xff] }
 0x177   : > { %v7331_v1 = vadd.f32 %v5684_v26, %v3102_v57  ;;  %v5694_v23 = vadd.f32 %v7138_v44, %v2238_v9 }
 0x178   : > { %v7335_v27 = vadd.f32 %v5689_v6, %v3100_v60  ;;  %v5699_v48 = vadd.f32 %v7141_v16, %v2236_v61  ;;  %v7899_v60 = vld [vmem:[#allocation37_spill] sm:$0xff] }
 0x179   : > { %v7339_v46 = vadd.f32 %v5694_v23, %v3103_v54 }
 0x17a   : > { %v7341_v31 = vadd.f32 %v5699_v48, %v3101_v53  ;;  %v5369_v28 = vpop.f32.mrb[60].mxu1  ;;  %v5465_v3 = vpop.f32.mrb[60].mxu0  ;;  %v7900_v48 = vld [vmem:[#allocation32_spill] sm:$0xff] }
 0x17b   : > { %v2241_v5 = vmul.f32 %v5369_v28, %v7897_v12  ;;  %v2148_v26 = vpop.f32.mrb[61].mxu1  ;;  %v3013_v57 = vpop.f32.mrb[61].mxu0  ;;  %v3106_v16 = vmul.f32 %v5465_v3, %v7899_v60 }
 0x17c   : > { %v2239_v44 = vmul.f32 %v2148_v26, %v7898_v24  ;;  %v5370_v9 = vpop.f32.mrb[62].mxu1  ;;  %v5466_v43 = vpop.f32.mrb[62].mxu0  ;;  %v3104_v53 = vmul.f32 %v3013_v57, %v7900_v48  ;;  %v7905_v48 = vld [vmem:[#allocation7_spill] sm:$0xff] }
 0x17d   : > { %v5704_v6 = vadd.f32 %v7162_v59, %v2241_v5  ;;  %v2242_v37 = vmul.f32 %v5370_v9, %v6863_v4  ;;  %v2151_v54 = vpop.f32.mrb[63].mxu1  ;;  %v3016_v61 = vpop.f32.mrb[63].mxu0  ;;  %v3107_v10 = vmul.f32 %v5466_v43, %v7104_v15  ;;  %v7901_v59 = vld [vmem:[#allocation45_spill] sm:$0xff]  ;;  %v7902_v5 = vld [vmem:[#allocation54_spill] sm:$0xff] }
 0x17e   : > { %v5709_v23 = vadd.f32 %v7168_v21, %v2239_v44  ;;  %v2240_v28 = vmul.f32 %v2151_v54, %v7838_v39  ;;  %v3105_v9 = vmul.f32 %v3016_v61, %v7902_v5  ;;  %v7904_v44 = vld [vmem:[#allocation9_spill] sm:$0xff] }
 0x17f   : > { %v7351_v13 = vadd.f32 %v5704_v6, %v3106_v16  ;;  %v5714_v26 = vadd.f32 %v7171_v18, %v2242_v37  ;;  %v7908_v15 = vld [vmem:[#allocation25_spill] sm:$0xff] }
 0x180   : > { %v7355_v52 = vadd.f32 %v5709_v23, %v3104_v53  ;;  %v5719_v3 = vadd.f32 %v7901_v59, %v2240_v28  ;;  %v7906_v53 = vld [vmem:[#allocation50_spill] sm:$0xff] }
 0x181   : > { %v7359_v60 = vadd.f32 %v5714_v26, %v3107_v10 }
 0x182   : > { %v7361_v7 = vadd.f32 %v5719_v3, %v3105_v9  ;;  %v5373_v21 = vpop.f32.mrb[64].mxu1  ;;  %v5469_v57 = vpop.f32.mrb[64].mxu0  ;;  %v7907_v3 = vld [vmem:[#allocation43_spill] sm:$0xff] }
 0x183   : > { %v2245_v54 = vmul.f32 %v5373_v21, %v7904_v44  ;;  %v2164_v6 = vpop.f32.mrb[65].mxu1  ;;  %v3029_v16 = vpop.f32.mrb[65].mxu0  ;;  %v3110_v28 = vmul.f32 %v5469_v57, %v7906_v53 }
 0x184   : > { %7903 = vst [vmem:[#allocation46_spill] sm:$0xff] %v7361_v7  ;;  %v2243_v18 = vmul.f32 %v2164_v6, %v7905_v48  ;;  %v5374_v37 = vpop.f32.mrb[66].mxu1  ;;  %v5470_v43 = vpop.f32.mrb[66].mxu0  ;;  %v3108_v9 = vmul.f32 %v3029_v16, %v7907_v3  ;;  %v7909_v48 = vld [vmem:[#allocation59_spill] sm:$0xff]  ;;  %v7916_v3 = vld [vmem:[#allocation10_spill] sm:$0xff] }
 0x185   : > { %v5724_v23 = vadd.f32 %v7191_v45, %v2245_v54  ;;  %v2246_v61 = vmul.f32 %v5374_v37, %v7848_v17  ;;  %v2167_v10 = vpop.f32.mrb[67].mxu1  ;;  %v3032_v26 = vpop.f32.mrb[67].mxu0  ;;  %v3111_v44 = vmul.f32 %v5470_v43, %v7909_v48  ;;  %v7911_v45 = vld [vmem:[#allocation26_spill] sm:$0xff]  ;;  %v7912_v54 = vld [vmem:[#allocation57_spill] sm:$0xff]  ;;  %v7920_v48 = vld [vmem:[#allocation20_spill] sm:$0xff] }
 0x186   : > { %v5729_v59 = vadd.f32 %v7196_v51, %v2243_v18  ;;  %v2244_v21 = vmul.f32 %v2167_v10, %v7851_v35  ;;  %v3109_v37 = vmul.f32 %v3032_v26, %v7912_v54  ;;  %v7915_v18 = vld [vmem:[#allocation11_spill] sm:$0xff] }
 0x187   : > { %v7371_v5 = vadd.f32 %v5724_v23, %v3110_v28  ;;  %v5734_v6 = vadd.f32 %v7908_v15, %v2246_v61 }
 0x188   : > { %v7375_v7 = vadd.f32 %v5729_v59, %v3108_v9  ;;  %v5739_v57 = vadd.f32 %v7911_v45, %v2244_v21  ;;  %v7917_v9 = vld [vmem:[#allocation55_spill] sm:$0xff]  ;;  %v7918_v45 = vld [vmem:[#allocation22_spill] sm:$0xff] }
 0x189   : > { %v7379_v53 = vadd.f32 %v5734_v6, %v3111_v44 }
 0x18a   : > { %7910 = vst [vmem:[#allocation48_spill] sm:$0xff] %v7375_v7  ;;  %v7381_v17 = vadd.f32 %v5739_v57, %v3109_v37  ;;  %v5377_v51 = vpop.f32.mrb[68].mxu1  ;;  %v5473_v16 = vpop.f32.mrb[68].mxu0  ;;  %v7919_v37 = vld [vmem:[#allocation53_spill] sm:$0xff] }
 0x18b   : > { %7913 = vst [vmem:[#allocation4_spill] sm:$0xff] %v7379_v53  ;;  %v2249_v10 = vmul.f32 %v5377_v51, %v7915_v18  ;;  %v2180_v23 = vpop.f32.mrb[69].mxu1  ;;  %v3045_v28 = vpop.f32.mrb[69].mxu0  ;;  %v3114_v21 = vmul.f32 %v5473_v16, %v7917_v9 }
 0x18c   : > { %7914 = vst [vmem:[#allocation6_spill] sm:$0xff] %v7381_v17  ;;  %v2247_v15 = vmul.f32 %v2180_v23, %v7916_v3  ;;  %v5378_v61 = vpop.f32.mrb[70].mxu1  ;;  %v5474_v43 = vpop.f32.mrb[70].mxu0  ;;  %v3112_v54 = vmul.f32 %v3045_v28, %v7919_v37  ;;  %v7921_v17 = vld [vmem:[#allocation30_spill] sm:$0xff]  ;;  %v7922_v3 = vld [vmem:[#allocation47_spill] sm:$0xff]  ;;  %v7927_v37 = vld [vmem:[#allocation12_spill] sm:$0xff] }
 0x18d   : > { %v5744_v59 = vadd.f32 %v7219_v30, %v2249_v10  ;;  %v2250_v26 = vmul.f32 %v5378_v61, %v7918_v45  ;;  %v2183_v44 = vpop.f32.mrb[71].mxu1  ;;  %v3048_v6 = vpop.f32.mrb[71].mxu0  ;;  %v3115_v53 = vmul.f32 %v5474_v43, %v7922_v3  ;;  %v7923_v30 = vld [vmem:[#allocation31_spill] sm:$0xff]  ;;  %v7924_v10 = vld [vmem:[#allocation61_spill] sm:$0xff]  ;;  %v7930_v3 = vld [vmem:[#allocation38_spill] sm:$0xff] }
 0x18e   : > { %v5749_v57 = vadd.f32 %v7224_v19, %v2247_v15  ;;  %v2248_v51 = vmul.f32 %v2183_v44, %v7920_v48  ;;  %v3113_v61 = vmul.f32 %v3048_v6, %v7924_v10  ;;  %v7926_v15 = vld [vmem:[#allocation60_spill] sm:$0xff] }
 0x18f   : > { %v7391_v18 = vadd.f32 %v5744_v59, %v3114_v21  ;;  %v5754_v23 = vadd.f32 %v7921_v17, %v2250_v26 }
 0x190   : > { %v7395_v7 = vadd.f32 %v5749_v57, %v3112_v54  ;;  %v5759_v16 = vadd.f32 %v7923_v30, %v2248_v51  ;;  %v7928_v57 = vld [vmem:[#allocation16_spill] sm:$0xff] }
 0x191   : > { %v7399_v9 = vadd.f32 %v5754_v23, %v3115_v53 }
 0x192   : > { %v7401_v45 = vadd.f32 %v5759_v16, %v3113_v61  ;;  %v5381_v19 = vpop.f32.mrb[72].mxu1  ;;  %v5477_v28 = vpop.f32.mrb[72].mxu0  ;;  %v7929_v16 = vld [vmem:[#allocation58_spill] sm:$0xff] }
 0x193   : > { %v2253_v44 = vmul.f32 %v5381_v19, %v7926_v15  ;;  %v2196_v59 = vpop.f32.mrb[73].mxu1  ;;  %v3061_v21 = vpop.f32.mrb[73].mxu0  ;;  %v3118_v51 = vmul.f32 %v5477_v28, %v7928_v57 }
 0x194   : > { %7925 = vst [vmem:[#allocation5_spill] sm:$0xff] %v7401_v45  ;;  %v2251_v17 = vmul.f32 %v2196_v59, %v7927_v37  ;;  %v5382_v26 = vpop.f32.mrb[74].mxu1  ;;  %v5478_v43 = vpop.f32.mrb[74].mxu0  ;;  %v3116_v61 = vmul.f32 %v3061_v21, %v7929_v16  ;;  %v7931_v37 = vld [vmem:[#allocation29_spill] sm:$0xff]  ;;  %v7936_v16 = vld [vmem:[#allocation24_spill] sm:$0xff] }
 0x195   : > { %v5764_v54 = vadd.f32 %v7245_v29, %v2253_v44  ;;  %v2254_v6 = vmul.f32 %v5382_v26, %v7177_v50  ;;  %v2199_v53 = vpop.f32.mrb[75].mxu1  ;;  %v3064_v23 = vpop.f32.mrb[75].mxu0  ;;  %v3119_v15 = vmul.f32 %v5478_v43, %v7931_v37  ;;  %v7932_v29 = vld [vmem:[#allocation39_spill] sm:$0xff] }
 0x196   : > { %v5769_v30 = vadd.f32 %v7250_v63, %v2251_v17  ;;  %v2252_v19 = vmul.f32 %v2199_v53, %v7875_v2  ;;  %v7933_v44 = vld [vmem:[#allocation23_spill] sm:$0xff] }
 0x197   : > { %v7411_v10 = vadd.f32 %v5764_v54, %v3118_v51  ;;  %v5774_v59 = vadd.f32 %v7930_v3, %v2254_v6  ;;  %v3117_v26 = vmul.f32 %v3064_v23, %v7933_v44  ;;  %v7935_v17 = vld [vmem:[#allocation35_spill] sm:$0xff] }
 0x198   : > { %v7415_v45 = vadd.f32 %v5769_v30, %v3116_v61  ;;  %v5779_v28 = vadd.f32 %v7932_v29, %v2252_v19  ;;  %v7937_v61 = vld [vmem:[#allocation28_spill] sm:$0xff]  ;;  %v7938_v29 = vld [vmem:[#allocation62_spill] sm:$0xff] }
 0x199   : > { %v7419_v57 = vadd.f32 %v5774_v59, %v3119_v15 }
 0x19a   : > { %v7421_v50 = vadd.f32 %v5779_v28, %v3117_v26  ;;  %v5385_v63 = vpop.f32.mrb[76].mxu1  ;;  %v5481_v21 = vpop.f32.mrb[76].mxu0  ;;  %v7939_v26 = vld [vmem:[#allocation33_spill] sm:$0xff] }
 0x19b   : > { %v2257_v53 = vmul.f32 %v5385_v63, %v7935_v17  ;;  %v2212_v54 = vpop.f32.mrb[77].mxu1  ;;  %v3077_v51 = vpop.f32.mrb[77].mxu0  ;;  %v3122_v19 = vmul.f32 %v5481_v21, %v7937_v61 }
 0x19c   : > { %7934 = vst [vmem:[#allocation45_spill] sm:$0xff] %v7421_v50  ;;  %v2255_v3 = vmul.f32 %v2212_v54, %v7936_v16  ;;  %v5386_v6 = vpop.f32.mrb[78].mxu1  ;;  %v5482_v43 = vpop.f32.mrb[78].mxu0  ;;  %v3120_v44 = vmul.f32 %v3077_v51, %v7939_v26  ;;  %v7940_v16 = vld [vmem:[#allocation41_spill] sm:$0xff]  ;;  %v7943_v51 = vld [vmem:[#allocation8_spill] sm:$0xff] }
 0x19d   : > { %v5784_v30 = vadd.f32 %v7271_v47, %v2257_v53  ;;  %v2258_v23 = vmul.f32 %v5386_v6, %v7938_v29  ;;  %v2215_v15 = vpop.f32.mrb[79].mxu1  ;;  %v3080_v59 = vpop.f32.mrb[79].mxu0  ;;  %v3123_v17 = vmul.f32 %v5482_v43, %v7940_v16  ;;  %v7941_v47 = vld [vmem:[#allocation42_spill] sm:$0xff]  ;;  %v7942_v53 = vld [vmem:[#allocation36_spill] sm:$0xff] }
 0x19e   : > { %v5789_v28 = vadd.f32 %v7276_v25, %v2255_v3  ;;  %v2256_v63 = vmul.f32 %v2215_v15, %v7217_v8  ;;  %v3121_v6 = vmul.f32 %v3080_v59, %v7942_v53 }
 0x19f   : > { %v7431_v37 = vadd.f32 %v5784_v30, %v3122_v19  ;;  %v5794_v54 = vadd.f32 %v7279_v58, %v2258_v23  ;;  %v7944_v30 = vld [vmem:[#allocation2_spill] sm:$0xff] }
 0x1a0   : > { %v7435_v50 = vadd.f32 %v5789_v28, %v3120_v44  ;;  %v5799_v21 = vadd.f32 %v7941_v47, %v2256_v63 }
 0x1a1   : > { %v7439_v61 = vadd.f32 %v5794_v54, %v3123_v17 }
 0x1a2   : > { %v7441_v29 = vadd.f32 %v5799_v21, %v3121_v6  ;;  %v5501_v25 = vpop.f32.mrb[80].mxu0 }
 0x1a3   : > { %v3512_v3 = vmul.f32 %v5501_v25, %v7943_v51  ;;  %v3383_v15 = vpop.f32.mrb[81].mxu0 }
 0x1a4   : > { %v3510_v19 = vmul.f32 %v3383_v15, %v7944_v30  ;;  %v5502_v26 = vpop.f32.mrb[82].mxu0 }
 0x1a5   : > { %v3513_v58 = vmul.f32 %v5502_v26, %v6783_v40  ;;  %v3386_v43 = vpop.f32.mrb[83].mxu0  ;;  %v7447_v44 = vadd.f32 %v7291_v20, %v3512_v3  ;;  %v7945_v40 = vld [vmem:[#allocation3_spill] sm:$0xff] }
 0x1a6   : > { %v3511_v23 = vmul.f32 %v3386_v43, %v6618_v38  ;;  %v7451_v17 = vadd.f32 %v7295_v42, %v3510_v19 }
 0x1a7   : > { %v7454_v59 = vadd.f32 %v7299_v33, %v3513_v58 }
 0x1a8   : > { %v7457_v28 = vadd.f32 %v7301_v36, %v3511_v23 }
 0x1aa   : > { %v5505_v63 = vpop.f32.mrb[84].mxu0 }
 0x1ab   : > { %v3516_v54 = vmul.f32 %v5505_v63, %v7890_v55  ;;  %v3399_v47 = vpop.f32.mrb[85].mxu0  ;;  %v7946_v63 = vld [vmem:[#allocation46_spill] sm:$0xff] }
 0x1ac   : > { %v3514_v26 = vmul.f32 %v3399_v47, %v7945_v40  ;;  %v5506_v21 = vpop.f32.mrb[86].mxu0 }
 0x1ad   : > { %v3517_v20 = vmul.f32 %v5506_v21, %v6821_v14  ;;  %v3402_v6 = vpop.f32.mrb[87].mxu0  ;;  %v7463_v38 = vadd.f32 %v7311_v0, %v3516_v54 }
 0x1ae   : > { %v3515_v42 = vmul.f32 %v3402_v6, %v6797_v56  ;;  %v7467_v33 = vadd.f32 %v7315_v62, %v3514_v26 }
 0x1af   : > { %v7470_v36 = vadd.f32 %v7319_v34, %v3517_v20 }
 0x1b0   : > { %v7473_v55 = vadd.f32 %v7321_v49, %v3515_v42 }
 0x1b2   : > { %v5509_v25 = vpop.f32.mrb[88].mxu0 }
 0x1b3   : > { %v3520_v51 = vmul.f32 %v5509_v25, %v6706_v22  ;;  %v3415_v3 = vpop.f32.mrb[89].mxu0  ;;  %v7951_v25 = vld [vmem:[#allocation4_spill] sm:$0xff] }
 0x1b4   : > { %v3518_v14 = vmul.f32 %v3415_v3, %v6690_v11  ;;  %v5510_v15 = vpop.f32.mrb[90].mxu0  ;;  %v7952_v3 = vld [vmem:[#allocation6_spill] sm:$0xff] }
 0x1b5   : > { %v3521_v0 = vmul.f32 %v5510_v15, %v6847_v41  ;;  %v3418_v30 = vpop.f32.mrb[91].mxu0  ;;  %v7479_v56 = vadd.f32 %v7331_v1, %v3520_v51 }
 0x1b6   : > { %v3519_v62 = vmul.f32 %v3418_v30, %v6833_v32  ;;  %v7483_v34 = vadd.f32 %v7335_v27, %v3518_v14 }
 0x1b7   : > { %v7486_v49 = vadd.f32 %v7339_v46, %v3521_v0  ;;  %v7953_v0 = vld [vmem:[#allocation11_spill] sm:$0xff] }
 0x1b8   : > { %v7489_v22 = vadd.f32 %v7341_v31, %v3519_v62 }
 0x1ba   : > { %v5513_v19 = vpop.f32.mrb[92].mxu0 }
 0x1bb   : > { %v3524_v11 = vmul.f32 %v5513_v19, %v7897_v12  ;;  %v3431_v58 = vpop.f32.mrb[93].mxu0  ;;  %v7954_v19 = vld [vmem:[#allocation10_spill] sm:$0xff] }
 0x1bc   : > { %v3522_v41 = vmul.f32 %v3431_v58, %v7898_v24  ;;  %v5514_v43 = vpop.f32.mrb[94].mxu0  ;;  %v7947_v24 = vld [vmem:[#allocation9_spill] sm:$0xff] }
 0x1bd   : > { %v3525_v1 = vmul.f32 %v5514_v43, %v6863_v4  ;;  %v3434_v23 = vpop.f32.mrb[95].mxu0  ;;  %v7495_v32 = vadd.f32 %v7351_v13, %v3524_v11  ;;  %v7948_v4 = vld [vmem:[#allocation7_spill] sm:$0xff]  ;;  %v7949_v13 = vld [vmem:[#allocation18_spill] sm:$0xff] }
 0x1be   : > { %v3523_v27 = vmul.f32 %v3434_v23, %v7838_v39  ;;  %v7499_v46 = vadd.f32 %v7355_v52, %v3522_v41 }
 0x1bf   : > { %v7502_v31 = vadd.f32 %v7359_v60, %v3525_v1  ;;  %v7950_v60 = vld [vmem:[#allocation48_spill] sm:$0xff] }
 0x1c0   : > { %v7505_v12 = vadd.f32 %v7946_v63, %v3523_v27  ;;  %v7956_v63 = vld [vmem:[#allocation5_spill] sm:$0xff] }
 0x1c2   : > { %v5517_v54 = vpop.f32.mrb[96].mxu0 }
 0x1c3   : > { %v3528_v47 = vmul.f32 %v5517_v54, %v7947_v24  ;;  %v3447_v40 = vpop.f32.mrb[97].mxu0 }
 0x1c4   : > { %v3526_v26 = vmul.f32 %v3447_v40, %v7948_v4  ;;  %v5518_v21 = vpop.f32.mrb[98].mxu0 }
 0x1c5   : > { %v3529_v20 = vmul.f32 %v5518_v21, %v7949_v13  ;;  %v3450_v6 = vpop.f32.mrb[99].mxu0  ;;  %v7511_v39 = vadd.f32 %v7371_v5, %v3528_v47  ;;  %v7955_v5 = vld [vmem:[#allocation22_spill] sm:$0xff]  ;;  %v7957_v47 = vld [vmem:[#allocation60_spill] sm:$0xff] }
 0x1c6   : > { %v3527_v52 = vmul.f32 %v3450_v6, %v7851_v35  ;;  %v7515_v42 = vadd.f32 %v7950_v60, %v3526_v26  ;;  %v7958_v26 = vld [vmem:[#allocation12_spill] sm:$0xff]  ;;  %v7960_v60 = vld [vmem:[#allocation45_spill] sm:$0xff] }
 0x1c7   : > { %v7518_v51 = vadd.f32 %v7951_v25, %v3529_v20 }
 0x1c8   : > { %v7521_v14 = vadd.f32 %v7952_v3, %v3527_v52 }
 0x1ca   : > { %v5521_v15 = vpop.f32.mrb[100].mxu0 }
 0x1cb   : > { %v3532_v30 = vmul.f32 %v5521_v15, %v7953_v0  ;;  %v3463_v62 = vpop.f32.mrb[101].mxu0  ;;  %v7961_v15 = vld [vmem:[#allocation35_spill] sm:$0xff] }
 0x1cc   : > { %v3530_v11 = vmul.f32 %v3463_v62, %v7954_v19  ;;  %v5522_v58 = vpop.f32.mrb[102].mxu0  ;;  %v7962_v62 = vld [vmem:[#allocation24_spill] sm:$0xff] }
 0x1cd   : > { %v3533_v41 = vmul.f32 %v5522_v58, %v7955_v5  ;;  %v3466_v43 = vpop.f32.mrb[103].mxu0  ;;  %v7527_v35 = vadd.f32 %v7391_v18, %v3532_v30  ;;  %v7959_v18 = vld [vmem:[#allocation14_spill] sm:$0xff] }
 0x1ce   : > { %v3531_v1 = vmul.f32 %v3466_v43, %v7920_v48  ;;  %v7531_v23 = vadd.f32 %v7395_v7, %v3530_v11  ;;  %v7963_v11 = vld [vmem:[#allocation62_spill] sm:$0xff] }
 0x1cf   : > { %v7534_v27 = vadd.f32 %v7399_v9, %v3533_v41 }
 0x1d0   : > { %v7537_v54 = vadd.f32 %v7956_v63, %v3531_v1 }
 0x1d2   : > { %v5525_v24 = vpop.f32.mrb[104].mxu0 }
 0x1d3   : > { %v3536_v40 = vmul.f32 %v5525_v24, %v7957_v47  ;;  %v3479_v4 = vpop.f32.mrb[105].mxu0  ;;  %v7964_v47 = vld [vmem:[#allocation15_spill] sm:$0xff] }
 0x1d4   : > { %v3534_v21 = vmul.f32 %v3479_v4, %v7958_v26  ;;  %v5526_v13 = vpop.f32.mrb[106].mxu0 }
 0x1d5   : > { %v3537_v20 = vmul.f32 %v5526_v13, %v7959_v18  ;;  %v3482_v6 = vpop.f32.mrb[107].mxu0  ;;  %v7543_v48 = vadd.f32 %v7411_v10, %v3536_v40  ;;  %v7966_v13 = vld [vmem:[#allocation40_spill] sm:$0xff] }
 0x1d6   : > { %v3535_v7 = vmul.f32 %v3482_v6, %v7875_v2  ;;  %v7547_v9 = vadd.f32 %v7415_v45, %v3534_v21 }
 0x1d7   : > { %v7550_v52 = vadd.f32 %v7419_v57, %v3537_v20 }
 0x1d8   : > { %v7553_v25 = vadd.f32 %v7960_v60, %v3535_v7 }
 0x1da   : > { %v5529_v3 = vpop.f32.mrb[108].mxu0 }
 0x1db   : > { %v3540_v0 = vmul.f32 %v5529_v3, %v7961_v15  ;;  %v3495_v30 = vpop.f32.mrb[109].mxu0  ;;  %v7967_v3 = vld [vmem:[#allocation34_spill] sm:$0xff] }
 0x1dc   : > { %v3538_v19 = vmul.f32 %v3495_v30, %v7962_v62  ;;  %v5530_v10 = vpop.f32.mrb[110].mxu0 }
 0x1dd   : > { %v3541_v58 = vmul.f32 %v5530_v10, %v7963_v11  ;;  %v3498_v2 = vpop.f32.mrb[111].mxu0  ;;  %v7559_v5 = vadd.f32 %v7431_v37, %v3540_v0 }
 0x1de   : > { %v3539_v45 = vmul.f32 %v3498_v2, %v7217_v8  ;;  %v7563_v57 = vadd.f32 %v7435_v50, %v3538_v19  ;;  %v7965_v8 = vld [vmem:[#allocation13_spill] sm:$0xff]  ;;  %v7968_v2 = vld [vmem:[#allocation19_spill] sm:$0xff] }
 0x1df   : > { %v7566_v41 = vadd.f32 %v7439_v61, %v3541_v58 }
 0x1e0   : > { %v7569_v43 = vadd.f32 %v7441_v29, %v3539_v45 }
 0x1e2   : > { %v5549_v1 = vpop.f32.mrb[16].mxu1  ;;  %v5597_v63 = vpop.f32.mrb[112].mxu0 }
 0x1e3   : > { %v5647_v24 = vadd.f32 %v7447_v44, %v5549_v1  ;;  %v4377_v40 = vmul.f32 %v5597_v63, %v7964_v47  ;;  %v3937_v37 = vpop.f32.mrb[17].mxu1  ;;  %v4248_v4 = vpop.f32.mrb[113].mxu0 }
 0x1e4   : > { %v5652_v50 = vadd.f32 %v7451_v17, %v3937_v37  ;;  %v4375_v61 = vmul.f32 %v4248_v4, %v7965_v8  ;;  %v5550_v29 = vpop.f32.mrb[18].mxu1  ;;  %v5598_v26 = vpop.f32.mrb[114].mxu0 }
 0x1e5   : > { %v4409_v44 = vadd.f32 %v5647_v24, %v4377_v40  ;;  %v5657_v21 = vadd.f32 %v7454_v59, %v5550_v29  ;;  %v4378_v18 = vmul.f32 %v5598_v26, %v7966_v13  ;;  %v3940_v20 = vpop.f32.mrb[19].mxu1  ;;  %v4251_v6 = vpop.f32.mrb[115].mxu0  ;;  %v7969_v40 = vld [vmem:[#allocation17_spill] sm:$0xff] }
 0x1e6   : > { %v4407_v7 = vadd.f32 %v5652_v50, %v4375_v61  ;;  %v5662_v60 = vadd.f32 %v7457_v28, %v3940_v20  ;;  %v4376_v15 = vmul.f32 %v4251_v6, %v7967_v3 }
 0x1e7   : > { %4441 = vst [vmem:[%s7577_s9 + $0x10] sm:$0xff] %v4409_v44  ;;  %v4410_v17 = vadd.f32 %v5657_v21, %v4378_v18  ;;  %v4511_v11 = vmul.f32 %v4409_v44, %v4409_v44 }
 0x1e8   : > { %4439 = vst [vmem:[%s7577_s9] sm:$0xff] %v4407_v7  ;;  %v4408_v0 = vadd.f32 %v5662_v60, %v4376_v15  ;;  %v4509_v30 = vmul.f32 %v4407_v7, %v4407_v7 }
 0x1e9   : > { %4442 = vst [vmem:[%s7577_s9 + $0x18] sm:$0xff] %v4410_v17  ;;  %v4512_v8 = vmul.f32 %v4410_v17, %v4410_v17 }
 0x1ea   : > { %4440 = vst [vmem:[%s7577_s9 + $0x8] sm:$0xff] %v4408_v0  ;;  %v4471_v62 = vadd.f32 %v4408_v0, %v4407_v7  ;;  %v4510_v19 = vmul.f32 %v4408_v0, %v4408_v0  ;;  %v5553_v10 = vpop.f32.mrb[20].mxu1  ;;  %v5601_v59 = vpop.f32.mrb[116].mxu0  ;;  %v7971_v7 = vld [vmem:[#allocation44_spill] sm:$0xff] }
 0x1eb   : > { %v5667_v58 = vadd.f32 %v7463_v38, %v5553_v10  ;;  %v4381_v45 = vmul.f32 %v5601_v59, %v7968_v2  ;;  %v3953_v1 = vpop.f32.mrb[21].mxu1  ;;  %v4264_v28 = vpop.f32.mrb[117].mxu0  ;;  %v7970_v38 = vld [vmem:[#allocation49_spill] sm:$0xff] }
 0x1ec   : > { %v4472_v63 = vadd.f32 %v4471_v62, %v4409_v44  ;;  %v4541_v24 = vadd.f32 %v4510_v19, %v4509_v30  ;;  %v5672_v47 = vadd.f32 %v7467_v33, %v3953_v1  ;;  %v4379_v37 = vmul.f32 %v4264_v28, %v7969_v40  ;;  %v5554_v4 = vpop.f32.mrb[22].mxu1  ;;  %v5602_v50 = vpop.f32.mrb[118].mxu0  ;;  %v7973_v28 = vld [vmem:[#allocation21_spill] sm:$0xff] }
 0x1ed   : > { %v4413_v61 = vadd.f32 %v5667_v58, %v4381_v45  ;;  %v5677_v29 = vadd.f32 %v7470_v36, %v5554_v4  ;;  %v4382_v26 = vmul.f32 %v5602_v50, %v7970_v38  ;;  %v3956_v21 = vpop.f32.mrb[23].mxu1  ;;  %v4267_v13 = vpop.f32.mrb[119].mxu0  ;;  %v7974_v38 = vld [vmem:[#allocation52_spill] sm:$0xff] }
 0x1ee   : > { %v4542_v18 = vadd.f32 %v4541_v24, %v4511_v11  ;;  %v4411_v44 = vadd.f32 %v5672_v47, %v4379_v37  ;;  %v4473_v20 = vadd.f32 %v4472_v63, %v4410_v17  ;;  %v5682_v33 = vadd.f32 %v7473_v55, %v3956_v21  ;;  %v7972_v11 = vld [vmem:[#allocation27_spill] sm:$0xff] }
 0x1ef   : > { %4445 = vst [vmem:[%s7577_s9 + $0x30] sm:$0xff] %v4413_v61  ;;  %v4414_v6 = vadd.f32 %v5677_v29, %v4382_v26  ;;  %v4380_v60 = vmul.f32 %v4267_v13, %v7971_v7  ;;  %v4515_v45 = vmul.f32 %v4413_v61, %v4413_v61  ;;  %v7975_v21 = vld [vmem:[#allocation51_spill] sm:$0xff] }
 0x1f0   : > { %4443 = vst [vmem:[%s7577_s9 + $0x20] sm:$0xff] %v4411_v44  ;;  %v4474_v3 = vadd.f32 %v4473_v20, %v4411_v44  ;;  %v4513_v15 = vmul.f32 %v4411_v44, %v4411_v44  ;;  %v4543_v0 = vadd.f32 %v4542_v18, %v4512_v8 }
 0x1f1   : > { %4446 = vst [vmem:[%s7577_s9 + $0x38] sm:$0xff] %v4414_v6  ;;  %v4412_v36 = vadd.f32 %v5682_v33, %v4380_v60  ;;  %v4516_v18 = vmul.f32 %v4414_v6, %v4414_v6 }
 0x1f2   : > { %v4544_v30 = vadd.f32 %v4543_v0, %v4513_v15  ;;  %v5557_v62 = vpop.f32.mrb[24].mxu1  ;;  %v5605_v19 = vpop.f32.mrb[120].mxu0 }
 0x1f3   : > { %4444 = vst [vmem:[%s7577_s9 + $0x28] sm:$0xff] %v4412_v36  ;;  %v4475_v10 = vadd.f32 %v4474_v3, %v4412_v36  ;;  %v4514_v59 = vmul.f32 %v4412_v36, %v4412_v36  ;;  %v5687_v17 = vadd.f32 %v7479_v56, %v5557_v62  ;;  %v4385_v55 = vmul.f32 %v5605_v19, %v7972_v11  ;;  %v3969_v58 = vpop.f32.mrb[25].mxu1  ;;  %v4280_v2 = vpop.f32.mrb[121].mxu0  ;;  %v7976_v62 = vld [vmem:[#allocation37_spill] sm:$0xff]  ;;  %v7977_v11 = vld [vmem:[#allocation32_spill] sm:$0xff] }
 0x1f4   : > { %v5692_v1 = vadd.f32 %v7483_v34, %v3969_v58  ;;  %v4383_v63 = vmul.f32 %v4280_v2, %v7973_v28  ;;  %v5558_v24 = vpop.f32.mrb[26].mxu1  ;;  %v5606_v47 = vpop.f32.mrb[122].mxu0 }
 0x1f5   : > { %v4476_v40 = vadd.f32 %v4475_v10, %v4413_v61  ;;  %v4545_v37 = vadd.f32 %v4544_v30, %v4514_v59  ;;  %v4417_v4 = vadd.f32 %v5687_v17, %v4385_v55  ;;  %v5697_v50 = vadd.f32 %v7486_v49, %v5558_v24  ;;  %v3972_v8 = vpop.f32.mrb[27].mxu1  ;;  %v4283_v56 = vpop.f32.mrb[123].mxu0 }
 0x1f6   : > { %v4415_v29 = vadd.f32 %v5692_v1, %v4383_v63  ;;  %v4386_v26 = vmul.f32 %v5606_v47, %v7974_v38  ;;  %v5702_v34 = vadd.f32 %v7489_v22, %v3972_v8  ;;  %v4384_v13 = vmul.f32 %v4283_v56, %v7975_v21 }
 0x1f7   : > { %v4546_v44 = vadd.f32 %v4545_v37, %v4515_v45  ;;  %4449 = vst [vmem:[%s7577_s9 + $0x50] sm:$0xff] %v4417_v4  ;;  %v4477_v20 = vadd.f32 %v4476_v40, %v4414_v6  ;;  %v4519_v6 = vmul.f32 %v4417_v4, %v4417_v4  ;;  %v7978_v40 = vld [vmem:[#allocation56_spill] sm:$0xff] }
 0x1f8   : > { %4447 = vst [vmem:[%s7577_s9 + $0x40] sm:$0xff] %v4415_v29  ;;  %v4517_v61 = vmul.f32 %v4415_v29, %v4415_v29  ;;  %v4418_v33 = vadd.f32 %v5697_v50, %v4386_v26  ;;  %v4416_v7 = vadd.f32 %v5702_v34, %v4384_v13  ;;  %v7979_v50 = vld [vmem:[#allocation54_spill] sm:$0xff] }
 0x1f9   : > { %v4478_v49 = vadd.f32 %v4477_v20, %v4415_v29  ;;  %v4547_v60 = vadd.f32 %v4546_v44, %v4516_v18 }
 0x1fa   : > { %4450 = vst [vmem:[%s7577_s9 + $0x58] sm:$0xff] %v4418_v33  ;;  %4448 = vst [vmem:[%s7577_s9 + $0x48] sm:$0xff] %v4416_v7  ;;  %v4518_v3 = vmul.f32 %v4416_v7, %v4416_v7  ;;  %v5561_v15 = vpop.f32.mrb[28].mxu1  ;;  %v5609_v0 = vpop.f32.mrb[124].mxu0  ;;  %v4520_v56 = vmul.f32 %v4418_v33, %v4418_v33 }
 0x1fb   : > { %v4548_v36 = vadd.f32 %v4547_v60, %v4517_v61  ;;  %v4479_v30 = vadd.f32 %v4478_v49, %v4416_v7  ;;  %v5707_v22 = vadd.f32 %v7495_v32, %v5561_v15  ;;  %v4389_v19 = vmul.f32 %v5609_v0, %v7976_v62  ;;  %v3985_v10 = vpop.f32.mrb[29].mxu1  ;;  %v4296_v59 = vpop.f32.mrb[125].mxu0  ;;  %v7980_v7 = vld [vmem:[#allocation50_spill] sm:$0xff]  ;;  %v7981_v0 = vld [vmem:[#allocation43_spill] sm:$0xff] }
 0x1fc   : > { %v5712_v17 = vadd.f32 %v7499_v46, %v3985_v10  ;;  %v4387_v55 = vmul.f32 %v4296_v59, %v7977_v11  ;;  %v5562_v58 = vpop.f32.mrb[30].mxu1  ;;  %v5610_v2 = vpop.f32.mrb[126].mxu0  ;;  %v7982_v11 = vld [vmem:[#allocation59_spill] sm:$0xff] }
 0x1fd   : > { %v4480_v45 = vadd.f32 %v4479_v30, %v4417_v4  ;;  %v4549_v1 = vadd.f32 %v4548_v36, %v4518_v3  ;;  %v4421_v28 = vadd.f32 %v5707_v22, %v4389_v19  ;;  %v5717_v63 = vadd.f32 %v7502_v31, %v5562_v58  ;;  %v3988_v24 = vpop.f32.mrb[31].mxu1  ;;  %v4299_v32 = vpop.f32.mrb[127].mxu0  ;;  %v7983_v58 = vld [vmem:[#allocation57_spill] sm:$0xff] }
 0x1fe   : > { %v4419_v47 = vadd.f32 %v5712_v17, %v4387_v55  ;;  %v4390_v37 = vmul.f32 %v5610_v2, %v7978_v40  ;;  %v5722_v46 = vadd.f32 %v7505_v12, %v3988_v24  ;;  %v4388_v8 = vmul.f32 %v4299_v32, %v7979_v50 }
 0x1ff   : > { %v4550_v29 = vadd.f32 %v4549_v1, %v4519_v6  ;;  %4453 = vst [vmem:[%s7577_s9 + $0x70] sm:$0xff] %v4421_v28  ;;  %v4481_v38 = vadd.f32 %v4480_v45, %v4418_v33  ;;  %v4523_v33 = vmul.f32 %v4421_v28, %v4421_v28 }
 0x200   : > { %4451 = vst [vmem:[%s7577_s9 + $0x60] sm:$0xff] %v4419_v47  ;;  %v4521_v4 = vmul.f32 %v4419_v47, %v4419_v47  ;;  %v4422_v26 = vadd.f32 %v5717_v63, %v4390_v37  ;;  %v4420_v34 = vadd.f32 %v5722_v46, %v4388_v8 }
 0x201   : > { %v4482_v31 = vadd.f32 %v4481_v38, %v4419_v47  ;;  %v4551_v21 = vadd.f32 %v4550_v29, %v4520_v56  ;;  %v7984_v56 = vld [vmem:[#allocation55_spill] sm:$0xff] }
 0x202   : > { %4454 = vst [vmem:[%s7577_s9 + $0x78] sm:$0xff] %v4422_v26  ;;  %4452 = vst [vmem:[%s7577_s9 + $0x68] sm:$0xff] %v4420_v34  ;;  %v4522_v13 = vmul.f32 %v4420_v34, %v4420_v34  ;;  %v5565_v18 = vpop.f32.mrb[32].mxu1  ;;  %v5613_v44 = vpop.f32.mrb[128].mxu0  ;;  %v4524_v45 = vmul.f32 %v4422_v26, %v4422_v26 }
 0x203   : > { %v4552_v20 = vadd.f32 %v4551_v21, %v4521_v4  ;;  %v4483_v61 = vadd.f32 %v4482_v31, %v4420_v34  ;;  %v5727_v12 = vadd.f32 %v7511_v39, %v5565_v18  ;;  %v4393_v49 = vmul.f32 %v5613_v44, %v7980_v7  ;;  %v4001_v60 = vpop.f32.mrb[33].mxu1  ;;  %v4312_v3 = vpop.f32.mrb[129].mxu0  ;;  %v7985_v31 = vld [vmem:[#allocation53_spill] sm:$0xff] }
 0x204   : > { %v5732_v15 = vadd.f32 %v7515_v42, %v4001_v60  ;;  %v4391_v36 = vmul.f32 %v4312_v3, %v7981_v0  ;;  %v5566_v30 = vpop.f32.mrb[34].mxu1  ;;  %v5614_v22 = vpop.f32.mrb[130].mxu0  ;;  %v7986_v60 = vld [vmem:[#allocation47_spill] sm:$0xff] }
 0x205   : > { %v4484_v62 = vadd.f32 %v4483_v61, %v4421_v28  ;;  %v4553_v19 = vadd.f32 %v4552_v20, %v4522_v13  ;;  %v4425_v10 = vadd.f32 %v5727_v12, %v4393_v49  ;;  %v5737_v59 = vadd.f32 %v7518_v51, %v5566_v30  ;;  %v4004_v6 = vpop.f32.mrb[35].mxu1  ;;  %v4315_v39 = vpop.f32.mrb[131].mxu0 }
 0x206   : > { %v4423_v17 = vadd.f32 %v5732_v15, %v4391_v36  ;;  %v4394_v55 = vmul.f32 %v5614_v22, %v7982_v11  ;;  %v5742_v42 = vadd.f32 %v7521_v14, %v4004_v6  ;;  %v4392_v2 = vmul.f32 %v4315_v39, %v7983_v58 }
 0x207   : > { %v4554_v1 = vadd.f32 %v4553_v19, %v4523_v33  ;;  %4457 = vst [vmem:[%s7577_s9 + $0x90] sm:$0xff] %v4425_v10  ;;  %v4485_v63 = vadd.f32 %v4484_v62, %v4422_v26  ;;  %v4527_v26 = vmul.f32 %v4425_v10, %v4425_v10  ;;  %v7987_v33 = vld [vmem:[#allocation61_spill] sm:$0xff] }
 0x208   : > { %4455 = vst [vmem:[%s7577_s9 + $0x80] sm:$0xff] %v4423_v17  ;;  %v4525_v28 = vmul.f32 %v4423_v17, %v4423_v17  ;;  %v4426_v24 = vadd.f32 %v5737_v59, %v4394_v55  ;;  %v4424_v32 = vadd.f32 %v5742_v42, %v4392_v2  ;;  %v7988_v55 = vld [vmem:[#allocation16_spill] sm:$0xff] }
 0x209   : > { %v4486_v51 = vadd.f32 %v4485_v63, %v4423_v17  ;;  %v4555_v47 = vadd.f32 %v4554_v1, %v4524_v45  ;;  %v7989_v63 = vld [vmem:[#allocation58_spill] sm:$0xff] }
 0x20a   : > { %4458 = vst [vmem:[%s7577_s9 + $0x98] sm:$0xff] %v4426_v24  ;;  %4456 = vst [vmem:[%s7577_s9 + $0x88] sm:$0xff] %v4424_v32  ;;  %v4526_v40 = vmul.f32 %v4424_v32, %v4424_v32  ;;  %v5569_v37 = vpop.f32.mrb[36].mxu1  ;;  %v5617_v46 = vpop.f32.mrb[132].mxu0  ;;  %v4528_v0 = vmul.f32 %v4426_v24, %v4426_v24 }
 0x20b   : > { %v4556_v50 = vadd.f32 %v4555_v47, %v4525_v28  ;;  %v4487_v8 = vadd.f32 %v4486_v51, %v4424_v32  ;;  %v5747_v14 = vadd.f32 %v7527_v35, %v5569_v37  ;;  %v4397_v29 = vmul.f32 %v5617_v46, %v7984_v56  ;;  %v4017_v38 = vpop.f32.mrb[37].mxu1  ;;  %v4328_v4 = vpop.f32.mrb[133].mxu0  ;;  %v7991_v56 = vld [vmem:[#allocation23_spill] sm:$0xff] }
 0x20c   : > { %v5752_v34 = vadd.f32 %v7531_v23, %v4017_v38  ;;  %v4395_v21 = vmul.f32 %v4328_v4, %v7985_v31  ;;  %v5570_v13 = vpop.f32.mrb[38].mxu1  ;;  %v5618_v18 = vpop.f32.mrb[134].mxu0 }
 0x20d   : > { %v4488_v44 = vadd.f32 %v4487_v8, %v4425_v10  ;;  %v4557_v20 = vadd.f32 %v4556_v50, %v4526_v40  ;;  %v4429_v61 = vadd.f32 %v5747_v14, %v4397_v29  ;;  %v5757_v12 = vadd.f32 %v7534_v27, %v5570_v13  ;;  %v4020_v7 = vpop.f32.mrb[39].mxu1  ;;  %v4331_v35 = vpop.f32.mrb[135].mxu0  ;;  %v7990_v8 = vld [vmem:[#allocation29_spill] sm:$0xff] }
 0x20e   : > { %v4427_v49 = vadd.f32 %v5752_v34, %v4395_v21  ;;  %v4398_v3 = vmul.f32 %v5618_v18, %v7986_v60  ;;  %v5762_v23 = vadd.f32 %v7537_v54, %v4020_v7  ;;  %v4396_v15 = vmul.f32 %v4331_v35, %v7987_v33  ;;  %v7992_v7 = vld [vmem:[#allocation28_spill] sm:$0xff]  ;;  %v7993_v33 = vld [vmem:[#allocation33_spill] sm:$0xff] }
 0x20f   : > { %v4558_v36 = vadd.f32 %v4557_v20, %v4527_v26  ;;  %4461 = vst [vmem:[%s7577_s9 + $0xb0] sm:$0xff] %v4429_v61  ;;  %v4489_v30 = vadd.f32 %v4488_v44, %v4426_v24  ;;  %v4531_v45 = vmul.f32 %v4429_v61, %v4429_v61 }
 0x210   : > { %4459 = vst [vmem:[%s7577_s9 + $0xa0] sm:$0xff] %v4427_v49  ;;  %v4529_v22 = vmul.f32 %v4427_v49, %v4427_v49  ;;  %v4430_v62 = vadd.f32 %v5757_v12, %v4398_v3  ;;  %v4428_v19 = vadd.f32 %v5762_v23, %v4396_v15 }
 0x211   : > { %v4490_v27 = vadd.f32 %v4489_v30, %v4427_v49  ;;  %v4559_v10 = vadd.f32 %v4558_v36, %v4528_v0 }
 0x212   : > { %4462 = vst [vmem:[%s7577_s9 + $0xb8] sm:$0xff] %v4430_v62  ;;  %4460 = vst [vmem:[%s7577_s9 + $0xa8] sm:$0xff] %v4428_v19  ;;  %v4530_v59 = vmul.f32 %v4428_v19, %v4428_v19  ;;  %v5573_v6 = vpop.f32.mrb[40].mxu1  ;;  %v5621_v39 = vpop.f32.mrb[136].mxu0  ;;  %v4532_v38 = vmul.f32 %v4430_v62, %v4430_v62 }
 0x213   : > { %v4560_v17 = vadd.f32 %v4559_v10, %v4529_v22  ;;  %v4491_v11 = vadd.f32 %v4490_v27, %v4428_v19  ;;  %v5767_v54 = vadd.f32 %v7543_v48, %v5573_v6  ;;  %v4401_v42 = vmul.f32 %v5621_v39, %v7988_v55  ;;  %v4033_v58 = vpop.f32.mrb[41].mxu1  ;;  %v4344_v2 = vpop.f32.mrb[137].mxu0 }
 0x214   : > { %v5772_v1 = vadd.f32 %v7547_v9, %v4033_v58  ;;  %v4399_v28 = vmul.f32 %v4344_v2, %v7989_v63  ;;  %v5574_v24 = vpop.f32.mrb[42].mxu1  ;;  %v5622_v32 = vpop.f32.mrb[138].mxu0 }
 0x215   : > { %v4492_v51 = vadd.f32 %v4491_v11, %v4429_v61  ;;  %v4561_v47 = vadd.f32 %v4560_v17, %v4530_v59  ;;  %v4433_v40 = vadd.f32 %v5767_v54, %v4401_v42  ;;  %v5777_v37 = vadd.f32 %v7550_v52, %v5574_v24  ;;  %v4036_v46 = vpop.f32.mrb[43].mxu1  ;;  %v4347_v48 = vpop.f32.mrb[139].mxu0 }
 0x216   : > { %v4431_v50 = vadd.f32 %v5772_v1, %v4399_v28  ;;  %v4402_v14 = vmul.f32 %v5622_v32, %v7990_v8  ;;  %v5782_v9 = vadd.f32 %v7553_v25, %v4036_v46  ;;  %v4400_v29 = vmul.f32 %v4347_v48, %v7991_v56 }
 0x217   : > { %v4562_v4 = vadd.f32 %v4561_v47, %v4531_v45  ;;  %4465 = vst [vmem:[%s7577_s9 + $0xd0] sm:$0xff] %v4433_v40  ;;  %v4493_v26 = vadd.f32 %v4492_v51, %v4430_v62  ;;  %v4535_v3 = vmul.f32 %v4433_v40, %v4433_v40 }
 0x218   : > { %4463 = vst [vmem:[%s7577_s9 + $0xc0] sm:$0xff] %v4431_v50  ;;  %v4533_v34 = vmul.f32 %v4431_v50, %v4431_v50  ;;  %v4434_v31 = vadd.f32 %v5777_v37, %v4402_v14  ;;  %v4432_v21 = vadd.f32 %v5782_v9, %v4400_v29 }
 0x219   : > { %v4494_v52 = vadd.f32 %v4493_v26, %v4431_v50  ;;  %v4563_v13 = vadd.f32 %v4562_v4, %v4532_v38 }
 0x21a   : > { %4466 = vst [vmem:[%s7577_s9 + $0xd8] sm:$0xff] %v4434_v31  ;;  %4464 = vst [vmem:[%s7577_s9 + $0xc8] sm:$0xff] %v4432_v21  ;;  %v4534_v18 = vmul.f32 %v4432_v21, %v4432_v21  ;;  %v5577_v44 = vpop.f32.mrb[44].mxu1  ;;  %v5625_v20 = vpop.f32.mrb[140].mxu0  ;;  %v4536_v39 = vmul.f32 %v4434_v31, %v4434_v31 }
 0x21b   : > { %v4564_v61 = vadd.f32 %v4563_v13, %v4533_v34  ;;  %v4495_v12 = vadd.f32 %v4494_v52, %v4432_v21  ;;  %v5787_v25 = vadd.f32 %v7559_v5, %v5577_v44  ;;  %v4405_v35 = vmul.f32 %v5625_v20, %v7992_v7  ;;  %v4049_v49 = vpop.f32.mrb[45].mxu1  ;;  %v4360_v60 = vpop.f32.mrb[141].mxu0 }
 0x21c   : > { %v5792_v23 = vadd.f32 %v7563_v57, %v4049_v49  ;;  %v4403_v15 = vmul.f32 %v4360_v60, %v7993_v33  ;;  %v5578_v0 = vpop.f32.mrb[46].mxu1  ;;  %v5626_v36 = vpop.f32.mrb[142].mxu0 }
 0x21d   : > { %v4496_v30 = vadd.f32 %v4495_v12, %v4433_v40  ;;  %v4565_v22 = vadd.f32 %v4564_v61, %v4534_v18  ;;  %v4437_v62 = vadd.f32 %v5787_v25, %v4405_v35  ;;  %v5797_v19 = vadd.f32 %v7566_v41, %v5578_v0  ;;  %v4052_v27 = vpop.f32.mrb[47].mxu1  ;;  %v4363_v5 = vpop.f32.mrb[143].mxu0 }
 0x21e   : > { %v4435_v10 = vadd.f32 %v5792_v23, %v4403_v15  ;;  %v4406_v59 = vmul.f32 %v5626_v36, %v7940_v16  ;;  %v5802_v57 = vadd.f32 %v7569_v43, %v4052_v27  ;;  %v4404_v6 = vmul.f32 %v4363_v5, %v7942_v53 }
 0x21f   : > { %v4566_v17 = vadd.f32 %v4565_v22, %v4535_v3  ;;  %4469 = vst [vmem:[%s7577_s9 + $0xf0] sm:$0xff] %v4437_v62  ;;  %v4497_v11 = vadd.f32 %v4496_v30, %v4434_v31  ;;  %v4539_v1 = vmul.f32 %v4437_v62, %v4437_v62 }
 0x220   : > { %4467 = vst [vmem:[%s7577_s9 + $0xe0] sm:$0xff] %v4435_v10  ;;  %v4537_v54 = vmul.f32 %v4435_v10, %v4435_v10  ;;  %v4438_v55 = vadd.f32 %v5797_v19, %v4406_v59  ;;  %v4436_v42 = vadd.f32 %v5802_v57, %v4404_v6 }
 0x221   : > { %v4498_v41 = vadd.f32 %v4497_v11, %v4435_v10  ;;  %v4567_v58 = vadd.f32 %v4566_v17, %v4536_v39 }
 0x222   : > { %4470 = vst [vmem:[%s7577_s9 + $0xf8] sm:$0xff] %v4438_v55  ;;  %4468 = vst [vmem:[%s7577_s9 + $0xe8] sm:$0xff] %v4436_v42  ;;  %v4538_v2 = vmul.f32 %v4436_v42, %v4436_v42  ;;  %v4540_v53 = vmul.f32 %v4438_v55, %v4438_v55 }
 0x223   : > { %v4568_v45 = vadd.f32 %v4567_v58, %v4537_v54  ;;  %v4499_v16 = vadd.f32 %v4498_v41, %v4436_v42 }
 0x225   : > { %v4500_v43 = vadd.f32 %v4499_v16, %v4437_v62  ;;  %v4569_v63 = vadd.f32 %v4568_v45, %v4538_v2 }
 0x227   : > { %v4501_v28 = vadd.f32 %v4500_v43, %v4438_v55  ;;  %v4570_v24 = vadd.f32 %v4569_v63, %v4539_v1 }
 0x229   : > { %v4502_v32 = vrot.slane %v4501_v28, 4  ;;  %v4571_v51 = vadd.f32 %v4570_v24, %v4540_v53 }
 0x22b   : > { %v4503_v47 = vadd.f32 %v4502_v32, %v4501_v28  ;;  %v4572_v40 = vrot.slane %v4571_v51, 4 }
 0x22d   : > { %v4504_v37 = vrot.slane %v4503_v47, 2  ;;  %v4573_v46 = vadd.f32 %v4572_v40, %v4571_v51 }
 0x22f   : > { %v4505_v48 = vadd.f32 %v4504_v37, %v4503_v47  ;;  %v4574_v50 = vrot.slane %v4573_v46, 2 }
 0x231   : > { %v4506_v8 = vrot.slane %v4505_v48, 1  ;;  %v4575_v14 = vadd.f32 %v4574_v50, %v4573_v46 }
 0x233   : > { %v4507_v9 = vadd.f32 %v4506_v8, %v4505_v48  ;;  %v4576_v56 = vrot.slane %v4575_v14, 1 }
 0x235   : > { %4508 = vst [vmem:[%s235_s13] sm:$0x1] %v4507_v9  ;;  %v4577_v29 = vadd.f32 %v4576_v56, %v4575_v14 }
 0x237   : > { %4578 = vst [vmem:[%s235_s13 + $0x1] sm:$0x1] %v4577_v29 }
 0x238 PF: > { %s16_s18 = sadd.s32 1, %s6059_s18  }
 0x239   : > { %p13_p4 = scmp.ge.s32.totalorder %s16_s18, 4  }
 0x23b   :  { %15 = sbr.rel (!%p13_p4) target bundleno = 1 (0x1), region = 86 }

// kernel: transxnet_reviewkd_forward_train.14
= control target key start
LH: loop header
LB: loop body
LE: loop exit
PB: predicated region body
PF: predicated region fallthrough
CT: control target
= control target key end

     0   :  { %s763_s12 = smov 0   ;;  %s765_s13 = smov 0   ;;  %s1066_s0 = inlined_call_operand.vmem [shape: f32[2,32,32,128], index: 0, kind: input, shape index: {}]   ;;  %s1067_s1 = inlined_call_operand.vmem [shape: f32[2,32,32,128], index: 1, kind: input, shape index: {}]   ;;  %s1068_s2 = inlined_call_operand.vmem [shape: f32[2,4,1,128], index: 2, kind: output, shape index: {0}]   ;;  %s1069_s3 = inlined_call_operand.vmem [shape: f32[2,4,4,128], index: 3, kind: output, shape index: {1}]  }
   0x1   :  { %s767_s14 = smov 0   ;;  %s769_s15 = smov 0  }
   0x2   :  { %s771_s16 = smov 0  }
   0x3 LB: > { %s23_s17 = sadd.s32 1, %s733_s14  ;;  %s26_s18 = sadd.s32 1, %s737_s15  ;;  %s741_s16 = sphi %s771_s16, %s14_s16   ;;  %s737_s15 = sphi %s769_s15, %s1103_s15   ;;  %s733_s14 = sphi %s767_s14, %s1102_s14   ;;  %s729_s13 = sphi %s765_s13, %s1101_s13   ;;  %s725_s12 = sphi %s763_s12, %s1100_s12  }
   0x4   : > { %p24_p0 = scmp.ge.s32.totalorder %s23_s17, 4  ;;  %p649_p1 = scmp.ge.s32.totalorder %s741_s16, 1 }
   0x5   : > { %p182_p2 = scmp.lt.s32.totalorder %s741_s16, 9 }
   0x6   : > { %s1105_s17 = smov (%p24_p0, %s23_s17), 0  ;;  %s1107_s18 = smov (!%p24_p0, %s26_s18), %s737_s15 }
   0x7   : > { %p183_p3 = pnand %p649_p1, %p182_p2  ;;  %p28_p4 = scmp.ge.s32.totalorder %s1107_s18, 2 }
   0x9   : > { %s1109_s18 = smov (%p28_p4, %s1107_s18), 0  ;;  %186 = sbr.rel (%p183_p3) target bundleno = 85 (0x55), region = 28 }
  0x10   : > { %s650_s19 = sshll.u32 %s725_s12, 3  ;;  %p232_p5 = scmp.lt.s32.totalorder %s729_s13, 1  ;;  %vm486_vm0 = vcmask 1040384   ;;  %vm488_vm1 = vcmask 1041408   ;;  %vm490_vm2 = vcmask 1042432  }
  0x11   : > { %p234_p6 = scmp.lt.s32.totalorder %s650_s19, 31  ;;  %p255_p7 = scmp.lt.s32.totalorder %s725_s12, 3 }
  0x12   : > { %s1111_s13 = smov (!%p232_p5, %s729_s13), 1 }
  0x13   : > { %s1113_s19 = smov (!%p234_p6, %s650_s19), 31  ;;  %s652_s20 = sshll.u32 %s1111_s13, 7 }
  0x14   : > { %s651_s21 = sshll.u32 %s1113_s19, 2  ;;  %s1115_s12 = smov (!%p255_p7, %s725_s12), 3 }
  0x15   : > { %s238_s22 = sadd.s32 %s652_s20, %s651_s21  ;;  %s658_s30 = sshll.u32 %s1111_s13, 2 }
  0x16   : > { %s653_s23 = sshll.u32 %s238_s22, 3  ;;  %s258_s4 = sadd.s32 %s658_s30, %s1115_s12 }
  0x17   : > { %s802_s26 = scalar_lea.vmem %s1066_s0, %s653_s23  ;;  %s808_s29 = scalar_lea.vmem %s1067_s1, %s653_s23 }
  0x18   : > { %v268_v0 = vld [vmem:[%s802_s26] sm:$0xff]  ;;  %v269_v1 = vld [vmem:[%s802_s26 + $0x8] sm:$0xff]  ;;  %v270_v2 = vld [vmem:[%s802_s26 + $0x10] sm:$0xff]  ;;  %s660_s5 = sshll.u32 %s258_s4, 2  ;;  %s259_s8 = scalar_lea.vmem %s1068_s2, %s258_s4 }
  0x19   : > { %v271_v3 = vld [vmem:[%s802_s26 + $0x18] sm:$0xff]  ;;  %v272_v4 = vld [vmem:[%s802_s26 + $0x20] sm:$0xff]  ;;  %v273_v5 = vld [vmem:[%s802_s26 + $0x28] sm:$0xff]  ;;  %s267_s11 = scalar_lea.vmem %s1069_s3, %s660_s5 }
  0x1a   : > { %v274_v6 = vld [vmem:[%s802_s26 + $0x30] sm:$0xff]  ;;  %v275_v7 = vld [vmem:[%s802_s26 + $0x38] sm:$0xff]  ;;  %v276_v8 = vld [vmem:[%s802_s26 + $0x40] sm:$0xff] }
  0x1b   : > { %v277_v9 = vld [vmem:[%s802_s26 + $0x48] sm:$0xff]  ;;  %v278_v10 = vld [vmem:[%s802_s26 + $0x50] sm:$0xff]  ;;  %v279_v11 = vld [vmem:[%s802_s26 + $0x58] sm:$0xff] }
  0x1c   : > { %v280_v12 = vld [vmem:[%s802_s26 + $0x60] sm:$0xff]  ;;  %v281_v14 = vld [vmem:[%s802_s26 + $0x68] sm:$0xff]  ;;  %v282_v15 = vld [vmem:[%s802_s26 + $0x70] sm:$0xff] }
  0x1d   : > { %v300_v13 = vld [vmem:[%s808_s29] sm:$0xff]  ;;  %v283_v16 = vld [vmem:[%s802_s26 + $0x78] sm:$0xff]  ;;  %v301_v17 = vld [vmem:[%s808_s29 + $0x8] sm:$0xff] }
  0x1e   : > { %v302_v18 = vld [vmem:[%s808_s29 + $0x10] sm:$0xff]  ;;  %v303_v19 = vld [vmem:[%s808_s29 + $0x18] sm:$0xff]  ;;  %v829_v20 = vsub.f32 %v268_v0, %v300_v13  ;;  %v284_v21 = vld [vmem:[%s802_s26 + $0x80] sm:$0xff]  ;;  %v837_v27 = vsub.f32 %v269_v1, %v301_v17 }
  0x1f   : > { %v285_v22 = vld [vmem:[%s802_s26 + $0x88] sm:$0xff]  ;;  %v286_v23 = vld [vmem:[%s802_s26 + $0x90] sm:$0xff]  ;;  %v304_v24 = vld [vmem:[%s808_s29 + $0x20] sm:$0xff]  ;;  %v839_v28 = vsub.f32 %v270_v2, %v302_v18  ;;  %v841_v29 = vsub.f32 %v271_v3, %v303_v19 }
  0x20   : > { %v305_v25 = vld [vmem:[%s808_s29 + $0x28] sm:$0xff]  ;;  %v306_v26 = vld [vmem:[%s808_s29 + $0x30] sm:$0xff]  ;;  %v287_v30 = vld [vmem:[%s802_s26 + $0x98] sm:$0xff]  ;;  %v849_v36 = vsub.f32 %v272_v4, %v304_v24  ;;  %v857_v39 = vmul.f32 %v829_v20, %v829_v20  ;;  %v873_v49 = vmul.f32 %v837_v27, %v837_v27 }
  0x21   : > { %v288_v31 = vld [vmem:[%s802_s26 + $0xa0] sm:$0xff]  ;;  %v289_v32 = vld [vmem:[%s802_s26 + $0xa8] sm:$0xff]  ;;  %v307_v33 = vld [vmem:[%s808_s29 + $0x38] sm:$0xff]  ;;  %v851_v37 = vsub.f32 %v273_v5, %v305_v25  ;;  %v853_v38 = vsub.f32 %v274_v6, %v306_v26  ;;  %v889_v59 = vmul.f32 %v839_v28, %v839_v28  ;;  %v367_v5 = vmul.f32 %v841_v29, %v841_v29 }
  0x22   : > { %v308_v34 = vld [vmem:[%s808_s29 + $0x40] sm:$0xff]  ;;  %v309_v35 = vld [vmem:[%s808_s29 + $0x48] sm:$0xff]  ;;  %v290_v40 = vld [vmem:[%s802_s26 + $0xb0] sm:$0xff]  ;;  %v865_v46 = vsub.f32 %v275_v7, %v307_v33  ;;  %v368_v13 = vmul.f32 %v849_v36, %v849_v36 }
  0x23   : > { %v291_v41 = vld [vmem:[%s802_s26 + $0xb8] sm:$0xff]  ;;  %v292_v42 = vld [vmem:[%s802_s26 + $0xc0] sm:$0xff]  ;;  %v310_v43 = vld [vmem:[%s808_s29 + $0x50] sm:$0xff]  ;;  %v867_v47 = vsub.f32 %v276_v8, %v308_v34  ;;  %v869_v48 = vsub.f32 %v277_v9, %v309_v35 }
  0x24   : > { %v311_v44 = vld [vmem:[%s808_s29 + $0x58] sm:$0xff]  ;;  %v312_v45 = vld [vmem:[%s808_s29 + $0x60] sm:$0xff]  ;;  %v293_v50 = vld [vmem:[%s802_s26 + $0xc8] sm:$0xff]  ;;  %v881_v56 = vsub.f32 %v278_v10, %v310_v43 }
  0x25   : > { %v294_v51 = vld [vmem:[%s802_s26 + $0xd0] sm:$0xff]  ;;  %v295_v52 = vld [vmem:[%s802_s26 + $0xd8] sm:$0xff]  ;;  %v313_v53 = vld [vmem:[%s808_s29 + $0x68] sm:$0xff]  ;;  %v883_v57 = vsub.f32 %v279_v11, %v311_v44  ;;  %v885_v58 = vsub.f32 %v280_v12, %v312_v45 }
  0x26   : > { %v314_v54 = vld [vmem:[%s808_s29 + $0x70] sm:$0xff]  ;;  %v315_v55 = vld [vmem:[%s808_s29 + $0x78] sm:$0xff]  ;;  %v296_v60 = vld [vmem:[%s802_s26 + $0xe0] sm:$0xff]  ;;  %v897_v2 = vsub.f32 %v281_v14, %v313_v53 }
  0x27   : > { %v297_v61 = vld [vmem:[%s802_s26 + $0xe8] sm:$0xff]  ;;  %v298_v62 = vld [vmem:[%s802_s26 + $0xf0] sm:$0xff]  ;;  %v316_v63 = vld [vmem:[%s808_s29 + $0x80] sm:$0xff]  ;;  %v899_v3 = vsub.f32 %v282_v15, %v314_v54  ;;  %v901_v4 = vsub.f32 %v283_v16, %v315_v55  ;;  %v372_v54 = vmul.f32 %v867_v47, %v867_v47 }
  0x28   : > { %v317_v0 = vld [vmem:[%s808_s29 + $0x88] sm:$0xff]  ;;  %v318_v1 = vld [vmem:[%s808_s29 + $0x90] sm:$0xff]  ;;  %v299_v6 = vld [vmem:[%s802_s26 + $0xf8] sm:$0xff]  ;;  %v909_v10 = vsub.f32 %v284_v21, %v316_v63  ;;  %v369_v21 = vmul.f32 %v851_v37, %v851_v37 }
  0x29   : > { %v319_v7 = vld [vmem:[%s808_s29 + $0x98] sm:$0xff]  ;;  %v320_v8 = vld [vmem:[%s808_s29 + $0xa0] sm:$0xff]  ;;  %v321_v9 = vld [vmem:[%s808_s29 + $0xa8] sm:$0xff]  ;;  %v911_v11 = vsub.f32 %v285_v22, %v317_v0  ;;  %v913_v12 = vsub.f32 %v286_v23, %v318_v1  ;;  %v379_v63 = vmul.f32 %v901_v4, %v901_v4 }
  0x2a   : > { %v322_v14 = vld [vmem:[%s808_s29 + $0xb0] sm:$0xff]  ;;  %v323_v15 = vld [vmem:[%s808_s29 + $0xb8] sm:$0xff]  ;;  %v324_v16 = vld [vmem:[%s808_s29 + $0xc0] sm:$0xff]  ;;  %v920_v17 = vsub.f32 %v287_v30, %v319_v7  ;;  %v922_v18 = vsub.f32 %v288_v31, %v320_v8  ;;  %v924_v19 = vsub.f32 %v289_v32, %v321_v9  ;;  %v370_v30 = vmul.f32 %v853_v38, %v853_v38 }
  0x2b   : > { %v325_v22 = vld [vmem:[%s808_s29 + $0xc8] sm:$0xff]  ;;  %v326_v23 = vld [vmem:[%s808_s29 + $0xd0] sm:$0xff]  ;;  %v327_v24 = vld [vmem:[%s808_s29 + $0xd8] sm:$0xff]  ;;  %v931_v25 = vsub.f32 %v290_v40, %v322_v14  ;;  %v933_v26 = vsub.f32 %v291_v41, %v323_v15  ;;  %v935_v33 = vsub.f32 %v292_v42, %v324_v16  ;;  %v371_v40 = vmul.f32 %v865_v46, %v865_v46 }
  0x2c   : > { %v328_v31 = vld [vmem:[%s808_s29 + $0xe0] sm:$0xff]  ;;  %v329_v34 = vld [vmem:[%s808_s29 + $0xe8] sm:$0xff]  ;;  %v330_v32 = vld [vmem:[%s808_s29 + $0xf0] sm:$0xff]  ;;  %v942_v35 = vsub.f32 %v293_v50, %v325_v22  ;;  %v944_v43 = vsub.f32 %v294_v51, %v326_v23  ;;  %v946_v44 = vsub.f32 %v295_v52, %v327_v24  ;;  %v373_v50 = vmul.f32 %v869_v48, %v869_v48 }
  0x2d   : > { %1080 = vst [vmem:[#allocation2_spill] sm:$0xff] %v931_v25  ;;  %1081 = vst [vmem:[#allocation3_spill] sm:$0xff] %v933_v26  ;;  %v331_v45 = vld [vmem:[%s808_s29 + $0xf8] sm:$0xff]  ;;  %v951_v41 = vsub.f32 %v296_v60, %v328_v31  ;;  %v953_v42 = vsub.f32 %v297_v61, %v329_v34  ;;  %v955_v53 = vsub.f32 %v298_v62, %v330_v32 }
  0x2e   : > { %1082 = vst [vmem:[#allocation4_spill] sm:$0xff] %v935_v33  ;;  %1083 = vst [vmem:[#allocation5_spill] sm:$0xff] %v942_v35  ;;  %v959_v55 = vsub.f32 %v299_v6, %v331_v45  ;;  %v374_v51 = vmul.f32 %v881_v56, %v881_v56  ;;  %v375_v52 = vmul.f32 %v883_v57, %v883_v57 }
  0x2f   : > { %1084 = vst [vmem:[#allocation6_spill] sm:$0xff] %v944_v43  ;;  %1085 = vst [vmem:[#allocation7_spill] sm:$0xff] %v946_v44  ;;  %v376_v60 = vmul.f32 %v885_v58, %v885_v58  ;;  %v377_v61 = vmul.f32 %v897_v2, %v897_v2  ;;  %v378_v62 = vmul.f32 %v899_v3, %v899_v3 }
  0x30   : > { %1086 = vst [vmem:[#allocation8_spill] sm:$0xff] %v951_v41  ;;  %1087 = vst [vmem:[#allocation9_spill] sm:$0xff] %v953_v42  ;;  %v380_v0 = vmul.f32 %v909_v10, %v909_v10  ;;  %v381_v1 = vmul.f32 %v911_v11, %v911_v11  ;;  %v382_v6 = vmul.f32 %v913_v12, %v913_v12 }
  0x31   : > { %1088 = vst [vmem:[#allocation10_spill] sm:$0xff] %v955_v53  ;;  %1089 = vst [vmem:[#allocation11_spill] sm:$0xff] %v959_v55  ;;  %v383_v7 = vmul.f32 %v920_v17, %v920_v17  ;;  %v384_v8 = vmul.f32 %v922_v18, %v922_v18  ;;  %v385_v9 = vmul.f32 %v924_v19, %v924_v19 }
  0x32   : > { %v386_v14 = vmul.f32 %v931_v25, %v931_v25  ;;  %v387_v15 = vmul.f32 %v933_v26, %v933_v26  ;;  %v388_v16 = vmul.f32 %v935_v33, %v935_v33  ;;  %v389_v22 = vmul.f32 %v942_v35, %v942_v35 }
  0x33   : > { %v390_v23 = vmul.f32 %v944_v43, %v944_v43  ;;  %v391_v24 = vmul.f32 %v946_v44, %v946_v44  ;;  %v392_v31 = vmul.f32 %v951_v41, %v951_v41  ;;  %v393_v34 = vmul.f32 %v953_v42, %v953_v42 }
  0x34   : > { %v394_v32 = vmul.f32 %v955_v53, %v955_v53  ;;  %v395_v45 = vmul.f32 %v959_v55, %v959_v55  ;;  %v396_v35 = vadd.f32 %v368_v13, %v857_v39  ;;  %v403_v33 = vadd.f32 %v369_v21, %v873_v49 }
  0x35   : > { %v410_v43 = vadd.f32 %v370_v30, %v889_v59  ;;  %v417_v26 = vadd.f32 %v371_v40, %v367_v5  ;;  %v434_v44 = vadd.f32 %v849_v36, %v829_v20  ;;  %v441_v41 = vadd.f32 %v851_v37, %v837_v27 }
  0x36   : > { %v448_v42 = vadd.f32 %v853_v38, %v839_v28  ;;  %v455_v53 = vadd.f32 %v865_v46, %v841_v29  ;;  %v397_v55 = vadd.f32 %v396_v35, %v372_v54  ;;  %v404_v25 = vadd.f32 %v403_v33, %v373_v50 }
  0x37   : > { %v411_v39 = vadd.f32 %v410_v43, %v374_v51  ;;  %v418_v13 = vadd.f32 %v417_v26, %v375_v52  ;;  %v435_v49 = vadd.f32 %v434_v44, %v867_v47  ;;  %v442_v59 = vadd.f32 %v441_v41, %v869_v48  ;;  %v1090_v44 = vld [vmem:[#allocation2_spill] sm:$0xff]  ;;  %v1091_v41 = vld [vmem:[#allocation3_spill] sm:$0xff] }
  0x38   : > { %v449_v5 = vadd.f32 %v448_v42, %v881_v56  ;;  %v456_v20 = vadd.f32 %v455_v53, %v883_v57  ;;  %v398_v36 = vadd.f32 %v397_v55, %v376_v60  ;;  %v405_v27 = vadd.f32 %v404_v25, %v377_v61  ;;  %v1094_v51 = vld [vmem:[#allocation6_spill] sm:$0xff]  ;;  %v1095_v60 = vld [vmem:[#allocation7_spill] sm:$0xff] }
  0x39   : > { %v412_v37 = vadd.f32 %v411_v39, %v378_v62  ;;  %v419_v21 = vadd.f32 %v418_v13, %v379_v63  ;;  %v436_v28 = vadd.f32 %v435_v49, %v885_v58  ;;  %v443_v29 = vadd.f32 %v442_v59, %v897_v2  ;;  %v1096_v63 = vld [vmem:[#allocation8_spill] sm:$0xff] }
  0x3a   : > { %v450_v38 = vadd.f32 %v449_v5, %v899_v3  ;;  %v457_v46 = vadd.f32 %v456_v20, %v901_v4  ;;  %v399_v26 = vadd.f32 %v398_v36, %v380_v0  ;;  %v406_v47 = vadd.f32 %v405_v27, %v381_v1  ;;  %v1097_v1 = vld [vmem:[#allocation9_spill] sm:$0xff] }
  0x3b   : > { %v413_v33 = vadd.f32 %v412_v37, %v382_v6  ;;  %v420_v48 = vadd.f32 %v419_v21, %v383_v7  ;;  %v437_v56 = vadd.f32 %v436_v28, %v909_v10  ;;  %v444_v57 = vadd.f32 %v443_v29, %v911_v11  ;;  %v1098_v7 = vld [vmem:[#allocation10_spill] sm:$0xff] }
  0x3c   : > { %v451_v25 = vadd.f32 %v450_v38, %v913_v12  ;;  %v458_v30 = vadd.f32 %v457_v46, %v920_v17  ;;  %v400_v35 = vadd.f32 %v399_v26, %v384_v8  ;;  %v407_v58 = vadd.f32 %v406_v47, %v385_v9  ;;  %v1092_v12 = vld [vmem:[#allocation4_spill] sm:$0xff]  ;;  %v1093_v17 = vld [vmem:[#allocation5_spill] sm:$0xff]  ;;  %v1099_v9 = vld [vmem:[#allocation11_spill] sm:$0xff] }
  0x3d   : > { %v414_v43 = vadd.f32 %v413_v33, %v386_v14  ;;  %v421_v2 = vadd.f32 %v420_v48, %v387_v15  ;;  %v438_v3 = vadd.f32 %v437_v56, %v922_v18  ;;  %v445_v4 = vadd.f32 %v444_v57, %v924_v19 }
  0x3e   : > { %v452_v40 = vadd.f32 %v451_v25, %v1090_v44  ;;  %v459_v42 = vadd.f32 %v458_v30, %v1091_v41  ;;  %v401_v53 = vadd.f32 %v400_v35, %v388_v16  ;;  %v408_v10 = vadd.f32 %v407_v58, %v389_v22 }
  0x3f   : > { %v415_v11 = vadd.f32 %v414_v43, %v390_v23  ;;  %v422_v54 = vadd.f32 %v421_v2, %v391_v24  ;;  %v439_v55 = vadd.f32 %v438_v3, %v1092_v12  ;;  %v446_v50 = vadd.f32 %v445_v4, %v1093_v17 }
  0x40   : > { %v453_v52 = vadd.f32 %v452_v40, %v1094_v51  ;;  %v460_v61 = vadd.f32 %v459_v42, %v1095_v60  ;;  %v402_v18 = vadd.f32 %v401_v53, %v392_v31  ;;  %v409_v62 = vadd.f32 %v408_v10, %v393_v34 }
  0x41   : > { %v416_v19 = vadd.f32 %v415_v11, %v394_v32  ;;  %v440_v0 = vadd.f32 %v439_v55, %v1096_v63  ;;  %v447_v6 = vadd.f32 %v446_v50, %v1097_v1  ;;  %v423_v15 = vadd.f32 %v422_v54, %v395_v45 }
  0x42   : > { %v454_v8 = vadd.f32 %v453_v52, %v1098_v7  ;;  %v461_v14 = vadd.f32 %v460_v61, %v1099_v9  ;;  %v424_v16 = vadd.f32 %v409_v62, %v402_v18 }
  0x43   : > { %v462_v22 = vrot.slane %v440_v0, 4  ;;  %v468_v23 = vrot.slane %v447_v6, 4 }
  0x44   : > { %v474_v24 = vrot.slane %v454_v8, 4  ;;  %v480_v39 = vrot.slane %v461_v14, 4  ;;  %v425_v31 = vadd.f32 %v424_v16, %v416_v19 }
  0x45   : > { %v463_v34 = vadd.f32 %v462_v22, %v440_v0  ;;  %v469_v32 = vadd.f32 %v468_v23, %v447_v6 }
  0x46   : > { %v475_v13 = vadd.f32 %v474_v24, %v454_v8  ;;  %v481_v49 = vadd.f32 %v480_v39, %v461_v14  ;;  %v426_v59 = vadd.f32 %v425_v31, %v423_v15 }
  0x47   : > { %v464_v5 = vrot.slane %v463_v34, 2  ;;  %v470_v20 = vrot.slane %v469_v32, 2 }
  0x48   : > { %v476_v36 = vrot.slane %v475_v13, 2  ;;  %v482_v27 = vrot.slane %v481_v49, 2  ;;  %v427_v45 = vrot.slane %v426_v59, 4 }
  0x49   : > { %v465_v37 = vadd.f32 %v464_v5, %v463_v34  ;;  %v471_v21 = vadd.f32 %v470_v20, %v469_v32 }
  0x4a   : > { %v477_v28 = vadd.f32 %v476_v36, %v475_v13  ;;  %v483_v29 = vadd.f32 %v482_v27, %v481_v49  ;;  %v428_v38 = vadd.f32 %v427_v45, %v426_v59 }
  0x4b   : > { %v466_v46 = vrot.slane %v465_v37, 1  ;;  %v472_v26 = vrot.slane %v471_v21, 1 }
  0x4c   : > { %v478_v47 = vrot.slane %v477_v28, 1  ;;  %v484_v33 = vrot.slane %v483_v29, 1  ;;  %v429_v48 = vrot.slane %v428_v38, 2 }
  0x4d   : > { %v467_v56 = vadd.f32 %v466_v46, %v465_v37  ;;  %v473_v57 = vadd.f32 %v472_v26, %v471_v21 }
  0x4e   : > { %v479_v25 = vadd.f32 %v478_v47, %v477_v28  ;;  %v485_v30 = vadd.f32 %v484_v33, %v483_v29  ;;  %v430_v35 = vadd.f32 %v429_v48, %v428_v38 }
  0x4f   : > { %v487_v58 = vsel %vm486_vm0, %v467_v56, %v473_v57 }
  0x50   : > { %v431_v43 = vrot.slane %v430_v35, 1  ;;  %v489_v2 = vsel %vm488_vm1, %v487_v58, %v479_v25 }
  0x51   : > { %v491_v3 = vsel %vm490_vm2, %v489_v2, %v485_v30 }
  0x52   : > { %v432_v4 = vadd.f32 %v431_v43, %v430_v35  ;;  %v492_v44 = vmul.f32 0.015625, %v491_v3 }
  0x54   : > { %433 = vst [vmem:[%s259_s8] sm:$0x1] %v432_v4  ;;  %493 = vst [vmem:[%s267_s11] sm:$0xf] %v492_v44 }
  0x55 PF: > { %s14_s16 = sadd.s32 1, %s741_s16   ;;  %s1100_s12 = smov %s733_s14 }
  0x56   : > { %p11_p8 = scmp.ge.s32.totalorder %s14_s16, 10   ;;  %s1101_s13 = smov %s737_s15 }
  0x57   : > { %s1102_s14 = smov %s1105_s17  ;;  %s1103_s15 = smov %s1109_s18 }
  0x58   :  { %13 = sbr.rel (!%p11_p8) target bundleno = 3 (0x3), region = 73 }

</bundles_post_ra>
